<compile_context>
chip_gen: v5e
topology: v5e:2x2
jax: 0.10.0
libtpu: 0.0.40
codegen_flags: <defaults>
</compile_context>

<pallas_src>
import math
from functools import partial

import jax
import jax.numpy as jnp
from jax.experimental import pallas as pl
from jax.experimental.pallas import tpu as pltpu


# ----------------------------------------------------------------------------
# small math helpers (VPU / EUP ops)
# ----------------------------------------------------------------------------
def _lrelu(x):
    return jnp.where(x >= 0.0, x, 0.01 * x)            # LeakyReLU(0.01)


def _elu(x):
    return jnp.where(x >= 0.0, x, jnp.exp(jnp.minimum(x, 0.0)) - 1.0)


def _layernorm(x, g, b, eps=1e-5):
    m = jnp.mean(x, axis=-1, keepdims=True)
    c = x - m
    v = jnp.mean(c * c, axis=-1, keepdims=True)
    return c * jax.lax.rsqrt(v + eps) * g + b


# ----------------------------------------------------------------------------
# Kernels 1 & 2: conv-as-matmul (+bias +LeakyReLU); bf16 operands, f32 accum
# ----------------------------------------------------------------------------
def _conv_mm_kernel(p_ref, w_ref, b_ref, o_ref):
    y = jnp.dot(p_ref[...], w_ref[...], preferred_element_type=jnp.float32)
    o_ref[...] = _lrelu(y + b_ref[...]).astype(o_ref.dtype)


def conv_matmul_lrelu(p_bf16, w_bf16, b_f32, row_blocks=1):
    """(M,K) bf16 patches @ (K,N) bf16 weight -> (M,N) bf16, LeakyReLU fused.

    row_blocks=1  -> one block, zero per-step grid overhead (v5e/v6e).
    row_blocks=2  -> two 'parallel' row blocks, one per TensorCore (v7x).
    """
    M, K = p_bf16.shape
    N = w_bf16.shape[1]
    if row_blocks <= 1:
        tm = M                                       # full-dim block
    else:
        tm = (((M + row_blocks - 1) // row_blocks) + 7) // 8 * 8
    grid = pl.cdiv(M, tm)
    return pl.pallas_call(
        _conv_mm_kernel,
        grid=(grid,),
        in_specs=[
            pl.BlockSpec((tm, K), lambda i: (i, 0)),
            pl.BlockSpec((K, N), lambda i: (0, 0)),
            pl.BlockSpec((1, N), lambda i: (0, 0)),
        ],
        out_specs=pl.BlockSpec((tm, N), lambda i: (i, 0)),
        out_shape=jax.ShapeDtypeStruct((M, N), jnp.bfloat16),
        compiler_params=pltpu.CompilerParams(
            dimension_semantics=("parallel",)),
    )(p_bf16, w_bf16, b_f32)


def _conv1_row_blocks():
    """2 parallel blocks on dual-TensorCore chips, 1 block otherwise."""
    try:
        kind = jax.devices()[0].device_kind.lower()
        return 2 if "7" in kind else 1
    except Exception:
        return 1


_CONV1_ROW_BLOCKS = _conv1_row_blocks()


# ----------------------------------------------------------------------------
# Kernel 3: fused encoder-dense + concat(MLP input) + MLP + final Linear +
#           reparameterised Normal sample.  No grid: one invocation, every
#           operand fully resident in VMEM (dense_w 3.1 MB dominates).
# ----------------------------------------------------------------------------
def _make_head_kernel(num_hidden):
    # packed-vector row layout (prepare_params):
    #   0: dense_b   1: logstd   2: out_b
    #   3+3i, 4+3i, 5+3i : layer-i bias, LN gamma, LN beta
    def kernel(*refs):
        o_ref = refs[-1]
        it = iter(refs[:-1])
        nxt = lambda: next(it)
        flat_ref = nxt()
        vec_ref = nxt()
        dw_ref = nxt()
        w0e_ref = nxt()
        w0v_ref = nxt()
        hid_w = [nxt() for _ in range(num_hidden - 1)]
        wo_ref, vecs_ref, eps_ref = nxt(), nxt(), nxt()

        V = vecs_ref[...]                              # (3+3H, 256) f32

        # --- encoder dense (the one big matmul) + LeakyReLU -----------------
        enc = jnp.dot(flat_ref[...], dw_ref[...],
                      preferred_element_type=jnp.float32)
        enc = _lrelu(enc + V[0, :][None, :])

        # --- mu_net layer 0: Linear(concat([enc, vector_obs])) -> ELU -> LN
        # concat avoided by splitting the weight into enc-part + vec-part.
        d0 = w0e_ref.shape[1]
        h = (jnp.dot(enc.astype(jnp.bfloat16), w0e_ref[...],
                     preferred_element_type=jnp.float32)
             + jnp.dot(vec_ref[...].astype(jnp.bfloat16), w0v_ref[...],
                       preferred_element_type=jnp.float32)
             + V[3, :d0][None, :])
        h = _layernorm(_elu(h), V[4, :d0][None, :], V[5, :d0][None, :])

        # --- remaining hidden layers: Linear -> ELU -> LayerNorm ------------
        row = 6
        for w_ref in hid_w:
            d = w_ref.shape[1]
            h = (jnp.dot(h.astype(jnp.bfloat16), w_ref[...],
                         preferred_element_type=jnp.float32)
                 + V[row, :d][None, :])
            h = _layernorm(_elu(h), V[row + 1, :d][None, :],
                           V[row + 2, :d][None, :])
            row += 3

        # --- final Linear (identity) + reparameterised Normal sample --------
        a = wo_ref.shape[1]
        mu = (jnp.dot(h.astype(jnp.bfloat16), wo_ref[...],
                      preferred_element_type=jnp.float32)
              + V[2, :a][None, :])
        o_ref[...] = (mu + jnp.exp(V[1, :a][None, :]) * eps_ref[...]
                      ).astype(o_ref.dtype)

    return kernel


def head_forward(flat, vec, eps, hp):
    args = [flat, vec, hp["dense_w"], hp["w0_enc"], hp["w0_vec"],
            *hp["hidden_w"], hp["out_w"], hp["vecs"], eps]
    num_hidden = len(hp["hidden_w"]) + 1
    B, A = eps.shape
    return pl.pallas_call(
        _make_head_kernel(num_hidden),
        out_shape=jax.ShapeDtypeStruct((B, A), jnp.float32),
    )(*args)


# ----------------------------------------------------------------------------
# Glue: im2col (jit-fused XLA gathers), jitted forward
# ----------------------------------------------------------------------------
def _im2col_nhwc(x, kh, kw, sh, sw):
    """(B,H,W,C) -> (B,oh,ow,C*kh*kw) patches, feature order (C, kh, kw)."""
    B, H, W, C = x.shape
    oh = (H - kh) // sh + 1
    ow = (W - kw) // sw + 1
    cols = []
    for di in range(kh):
        for dj in range(kw):
            cols.append(
                x[:, di: di + sh * (oh - 1) + 1: sh,
                     dj: dj + sw * (ow - 1) + 1: sw, :])
    p = jnp.stack(cols, axis=-1)                    # (B, oh, ow, C, kh*kw)
    return p.reshape(B, oh, ow, C * kh * kw), oh, ow


@partial(jax.jit, static_argnames=("deterministic",))
def actor_forward(kparams, gridsensor3, vector_obs, eps, deterministic=False):
    enc = kparams["encoder"]
    B = gridsensor3.shape[0]

    # conv1: bf16 im2col patches (XLA, fused) -> single-block Pallas matmul
    x = gridsensor3.astype(jnp.bfloat16)
    p1, oh1, ow1 = _im2col_nhwc(x, 8, 8, 4, 4)
    y1 = conv_matmul_lrelu(p1.reshape(-1, p1.shape[-1]),
                           enc["conv1_w"], enc["conv1_b"],
                           row_blocks=_CONV1_ROW_BLOCKS)
    y1 = y1.reshape(B, oh1, ow1, -1)                # bf16, 59 KB

    # conv2: im2col on the tiny bf16 conv1 output -> single-block matmul
    p2, _, _ = _im2col_nhwc(y1, 4, 4, 2, 2)
    y2 = conv_matmul_lrelu(p2.reshape(-1, p2.shape[-1]),
                           enc["conv2_w"], enc["conv2_b"])

    # NHWC flatten: FREE row-major bitcast in HBM (no transpose, no copy);
    # dense_w rows were pre-permuted to this order at prep time.
    flat = y2.reshape(B, -1)                        # (B, 6048) bf16

    if deterministic:
        eps = jnp.zeros_like(eps)
    return head_forward(flat, vector_obs, eps, kparams["head"])


# ----------------------------------------------------------------------------
# One-time parameter preparation (hoisted reshapes / transposes / bf16 cast /
# small-vector packing)
# ----------------------------------------------------------------------------
def _padv(v, width):
    v = v.reshape(-1)
    return jnp.pad(v, (0, width - v.shape[0]))


def prepare_params(params):
    p = params["encoder"]
    oc1 = p["conv1_w"].shape[0]
    oc2 = p["conv2_w"].shape[0]
    enc_k = dict(
        conv1_w=p["conv1_w"].reshape(oc1, -1).T.astype(jnp.bfloat16),
        conv1_b=p["conv1_b"].reshape(1, -1).astype(jnp.float32),
        conv2_w=p["conv2_w"].reshape(oc2, -1).T.astype(jnp.bfloat16),
        conv2_b=p["conv2_b"].reshape(1, -1).astype(jnp.float32),
    )

    # dense_w rows are in NCHW-flatten order (c2,i2,j2); permute once to the
    # NHWC order (i2,j2,c2) produced by the kernels' free row-major flatten.
    dw = p["dense_w"]                               # (final_flat, enc_out)
    final_flat, enc_out = dw.shape
    spatial = final_flat // oc2
    dw_nhwc = (dw.reshape(oc2, spatial, enc_out)
                 .transpose(1, 0, 2).reshape(final_flat, enc_out))

    mlp = params["mlp"]
    num_hidden = len(mlp) - 1
    action_dim = mlp[-1]["w"].shape[1]
    width = max([enc_out, action_dim] + [l["w"].shape[1] for l in mlp[:-1]])
    width = ((width + 127) // 128) * 128

    # pack all tiny per-feature vectors into one (3 + 3H, width) f32 array
    rows = [_padv(p["dense_b"], width),
            _padv(params["logstd"], width),
            _padv(mlp[-1]["b"], width)]
    for l in mlp[:-1]:
        rows += [_padv(l["b"], width), _padv(l["ln_g"], width),
                 _padv(l["ln_b"], width)]
    vecs = jnp.stack(rows, axis=0).astype(jnp.float32)

    w0 = mlp[0]["w"]                                # (enc_out + vec_dim, u0)
    head = dict(
        dense_w=dw_nhwc.astype(jnp.bfloat16),
        w0_enc=w0[:enc_out].astype(jnp.bfloat16),
        w0_vec=w0[enc_out:].astype(jnp.bfloat16),
        hidden_w=[l["w"].astype(jnp.bfloat16) for l in mlp[1:-1]],
        out_w=mlp[-1]["w"].astype(jnp.bfloat16),
        vecs=vecs,
    )
    return dict(encoder=enc_k, head=head)


# ----------------------------------------------------------------------------
# Deterministic synthetic parameter init (shapes follow the module __init__)
# ----------------------------------------------------------------------------
def init_params(key, *, height, width, in_channels, enc_out, vector_dim,
                units, action_dim, logstd_init=-1.0):
    h1, w1 = (height - 8) // 4 + 1, (width - 8) // 4 + 1
    h2, w2 = (h1 - 4) // 2 + 1, (w1 - 4) // 2 + 1
    final_flat = 32 * h2 * w2

    keys = jax.random.split(key, 4)

    def nrm(k, shape, fan_in, gain=1.0):
        return gain * jax.random.normal(k, shape, jnp.float32) / math.sqrt(fan_in)

    # TODO(synk): nn.init.orthogonal_ / KaimingHe init approximated by scaled
    # Gaussian (deterministic synthetic weights, not a checkpoint).
    enc = dict(
        conv1_w=nrm(keys[0], (16, in_channels, 8, 8), in_channels * 64),
        conv1_b=jnp.zeros((16,), jnp.float32),
        conv2_w=nrm(keys[1], (32, 16, 4, 4), 16 * 16),
        conv2_b=jnp.zeros((32,), jnp.float32),
        dense_w=nrm(keys[2], (final_flat, enc_out), final_flat, gain=1.41),
        dense_b=jnp.zeros((enc_out,), jnp.float32),
    )

    obs_dim = enc_out + vector_dim
    layer_dims = [obs_dim] + list(units) + [action_dim]
    mlp = []
    mkeys = jax.random.split(keys[3], len(layer_dims) - 1)
    for i in range(len(layer_dims) - 1):
        d_in, d_out = layer_dims[i], layer_dims[i + 1]
        layer = dict(
            w=nrm(mkeys[i], (d_in, d_out), d_in, gain=math.sqrt(2.0)),
            b=jnp.zeros((d_out,), jnp.float32),
        )
        if i < len(layer_dims) - 2:
            layer["ln_g"] = jnp.ones((d_out,), jnp.float32)
            layer["ln_b"] = jnp.zeros((d_out,), jnp.float32)
        mlp.append(layer)

    logstd = jnp.full((action_dim,), logstd_init, jnp.float32)
    return dict(encoder=enc, mlp=mlp, logstd=logstd), obs_dim


# ----------------------------------------------------------------------------
# Pure-JAX references (matched bf16-weight precision + full f32) for checking
# ----------------------------------------------------------------------------
@partial(jax.jit, static_argnames=("match_bf16",))
def reference_forward(params, gridsensor3, vector_obs, eps, match_bf16=True):
    if match_bf16:
        def dot(x, w):
            return jnp.dot(x.astype(jnp.bfloat16), w.astype(jnp.bfloat16),
                           preferred_element_type=jnp.float32)
    else:
        def dot(x, w):
            return jnp.dot(x, w, precision=jax.lax.Precision.HIGHEST)

    lrelu = lambda x: jnp.where(x >= 0, x, 0.01 * x)
    elu = lambda x: jnp.where(x >= 0, x, jnp.exp(jnp.minimum(x, 0.0)) - 1.0)

    def ln(x, g, b, e=1e-5):
        m = x.mean(-1, keepdims=True)
        v = ((x - m) ** 2).mean(-1, keepdims=True)
        return (x - m) / jnp.sqrt(v + e) * g[None, :] + b[None, :]

    p = params["encoder"]

    def conv(x, w, b, k, s):
        pat, oh, ow = _im2col_nhwc(x, k, k, s, s)
        y = lrelu(dot(pat.reshape(-1, pat.shape[-1]),
                      w.reshape(w.shape[0], -1).T) + b[None, :])
        return y.reshape(x.shape[0], oh, ow, w.shape[0])

    h = conv(gridsensor3, p["conv1_w"], p["conv1_b"], 8, 4)
    h = conv(h, p["conv2_w"], p["conv2_b"], 4, 2)
    flat = jnp.transpose(h, (0, 3, 1, 2)).reshape(h.shape[0], -1)  # NCHW flatten
    x = lrelu(dot(flat, p["dense_w"]) + p["dense_b"][None, :])
    x = jnp.concatenate([x, vector_obs], axis=1)
    layers = params["mlp"]
    for i, layer in enumerate(layers):
        x = dot(x, layer["w"]) + layer["b"][None, :]
        if i < len(layers) - 1:
            x = ln(elu(x), layer["ln_g"], layer["ln_b"])
    return x + jnp.exp(params["logstd"])[None, :] * eps


# ----------------------------------------------------------------------------
if __name__ == "__main__":
    B = 2
    HEIGHT, WIDTH, CIN = 90, 180, 1     # as hard-coded in the module __init__
    ENC_OUT = 256
    VECTOR_DIM = 16
    UNITS = [64, 64]                    # cfg_network['actor_mlp']['units'] (synthetic)
    ACTION_DIM = 8

    root = jax.random.PRNGKey(0)
    k_params, k_img, k_vec, k_eps = jax.random.split(root, 4)

    params, obs_dim = init_params(
        k_params, height=HEIGHT, width=WIDTH, in_channels=CIN,
        enc_out=ENC_OUT, vector_dim=VECTOR_DIM, units=UNITS,
        action_dim=ACTION_DIM, logstd_init=-1.0)
    kparams = prepare_params(params)    # one-time: bf16 cast, transposes, packing

    gridsensor3 = jax.random.uniform(k_img, (B, HEIGHT, WIDTH, CIN), jnp.float32)
    vector_obs = jax.random.normal(k_vec, (B, VECTOR_DIM), jnp.float32)
    eps = jax.random.normal(k_eps, (B, ACTION_DIM), jnp.float32)  # rsample noise

    sample = actor_forward(kparams, gridsensor3, vector_obs, eps)
    sample = jax.block_until_ready(sample)

    ref_match = reference_forward(params, gridsensor3, vector_obs, eps,
                                  match_bf16=True)    # same bf16-weight math
    ref_f32 = reference_forward(params, gridsensor3, vector_obs, eps,
                                match_bf16=False)     # full f32 semantics

    assert sample.shape == (B, ACTION_DIM)
    assert bool(jnp.all(jnp.isfinite(sample)))
    assert bool(jnp.max(jnp.abs(sample - ref_match)) < 5e-3)   # tight, matched precision
    assert bool(jnp.max(jnp.abs(sample - ref_f32)) < 1e-1)     # loose, vs f32 reference

    print("KERNEL_OK")
</pallas_src>

<mosaic_0001>
module attributes {stable_mosaic.version = 11 : i64} {
  func.func @_conv_mm_kernel(%arg0: i32, %arg1: memref<1848x64xbf16, #tpu.memory_space<vmem>>, %arg2: memref<64x16xbf16, #tpu.memory_space<vmem>>, %arg3: memref<1x16xf32, #tpu.memory_space<vmem>>, %arg4: memref<1848x16xbf16, #tpu.memory_space<vmem>>) attributes {dimension_semantics = [#tpu.dimension_semantics<parallel>], iteration_bounds = array<i64: 1>, scalar_prefetch = 0 : i64, scratch_operands = 0 : i64, tpu.core_type = #tpu.core_type<tc>, window_params = [{transform_indices = @transform_0, window_bounds = array<i64: 1848, 64>}, {pipeline_mode = #tpu.pipeline_mode<synchronous>, transform_indices = @transform_1, window_bounds = array<i64: 64, 16>}, {pipeline_mode = #tpu.pipeline_mode<synchronous>, transform_indices = @transform_2, window_bounds = array<i64: 1, 16>}, {transform_indices = @transform_3, window_bounds = array<i64: 1848, 16>}]} {
    %c0 = arith.constant 0 : index
    %c0_0 = arith.constant 0 : index
    %0 = vector.load %arg1[%c0, %c0_0] : memref<1848x64xbf16, #tpu.memory_space<vmem>>, vector<1848x64xbf16>
    %c0_1 = arith.constant 0 : index
    %c0_2 = arith.constant 0 : index
    %1 = vector.load %arg2[%c0_1, %c0_2] : memref<64x16xbf16, #tpu.memory_space<vmem>>, vector<64x16xbf16>
    %cst = arith.constant dense<0.000000e+00> : vector<1848x16xf32>
    %2 = tpu.matmul %0, %1, %cst {dimension_numbers = #tpu.dot_dimension_numbers<[1], [0], [0], [1], [0, 0, 1, 1], [], []>} : vector<1848x64xbf16>, vector<64x16xbf16>, vector<1848x16xf32> -> vector<1848x16xf32>
    %c0_3 = arith.constant 0 : index
    %c0_4 = arith.constant 0 : index
    %3 = vector.load %arg3[%c0_3, %c0_4] : memref<1x16xf32, #tpu.memory_space<vmem>>, vector<1x16xf32>
    %4 = vector.broadcast %3 : vector<1x16xf32> to vector<1848x16xf32>
    %5 = arith.addf %2, %4 : vector<1848x16xf32>
    %cst_5 = arith.constant 0.000000e+00 : f32
    %6 = vector.broadcast %cst_5 : f32 to vector<1848x16xf32>
    %7 = arith.cmpf oge, %5, %6 : vector<1848x16xf32>
    %cst_6 = arith.constant 0.00999999977 : f32
    %8 = vector.broadcast %cst_6 : f32 to vector<1848x16xf32>
    %9 = arith.mulf %8, %5 : vector<1848x16xf32>
    %10 = arith.select %7, %5, %9 : vector<1848x16xi1>, vector<1848x16xf32>
    %11 = arith.truncf %10 : vector<1848x16xf32> to vector<1848x16xbf16>
    %c0_7 = arith.constant 0 : index
    %c0_8 = arith.constant 0 : index
    %12 = vector.load %arg4[%c0_7, %c0_8] : memref<1848x16xbf16, #tpu.memory_space<vmem>>, vector<1848x16xbf16>
    tpu.vector_store %arg4[%c0_7, %c0_8], %11 {strides = array<i32>} : memref<1848x16xbf16, #tpu.memory_space<vmem>>, vector<1848x16xbf16>,
    return
  }
  func.func @transform_0(%arg0: i32) -> (i32, i32) {
    %c0_i32 = arith.constant 0 : i32
    %c0_i32_0 = arith.constant 0 : i32
    return %arg0, %c0_i32 : i32, i32
  }
  func.func @transform_1(%arg0: i32) -> (i32, i32) {
    %c0_i32 = arith.constant 0 : i32
    %c0_i32_0 = arith.constant 0 : i32
    %c0_i32_1 = arith.constant 0 : i32
    return %c0_i32, %c0_i32_0 : i32, i32
  }
  func.func @transform_2(%arg0: i32) -> (i32, i32) {
    %c0_i32 = arith.constant 0 : i32
    %c0_i32_0 = arith.constant 0 : i32
    %c0_i32_1 = arith.constant 0 : i32
    return %c0_i32, %c0_i32_0 : i32, i32
  }
  func.func @transform_3(%arg0: i32) -> (i32, i32) {
    %c0_i32 = arith.constant 0 : i32
    %c0_i32_0 = arith.constant 0 : i32
    return %arg0, %c0_i32 : i32, i32
  }
}

module attributes {stable_mosaic.version = 11 : i64} {
  func.func @_conv_mm_kernel(%arg0: i32, %arg1: memref<378x256xbf16, #tpu.memory_space<vmem>>, %arg2: memref<256x32xbf16, #tpu.memory_space<vmem>>, %arg3: memref<1x32xf32, #tpu.memory_space<vmem>>, %arg4: memref<378x32xbf16, #tpu.memory_space<vmem>>) attributes {dimension_semantics = [#tpu.dimension_semantics<parallel>], iteration_bounds = array<i64: 1>, scalar_prefetch = 0 : i64, scratch_operands = 0 : i64, tpu.core_type = #tpu.core_type<tc>, window_params = [{transform_indices = @transform_0, window_bounds = array<i64: 378, 256>}, {pipeline_mode = #tpu.pipeline_mode<synchronous>, transform_indices = @transform_1, window_bounds = array<i64: 256, 32>}, {pipeline_mode = #tpu.pipeline_mode<synchronous>, transform_indices = @transform_2, window_bounds = array<i64: 1, 32>}, {transform_indices = @transform_3, window_bounds = array<i64: 378, 32>}]} {
    %c0 = arith.constant 0 : index
    %c0_0 = arith.constant 0 : index
    %0 = vector.load %arg1[%c0, %c0_0] : memref<378x256xbf16, #tpu.memory_space<vmem>>, vector<378x256xbf16>
    %c0_1 = arith.constant 0 : index
    %c0_2 = arith.constant 0 : index
    %1 = vector.load %arg2[%c0_1, %c0_2] : memref<256x32xbf16, #tpu.memory_space<vmem>>, vector<256x32xbf16>
    %cst = arith.constant dense<0.000000e+00> : vector<378x32xf32>
    %2 = tpu.matmul %0, %1, %cst {dimension_numbers = #tpu.dot_dimension_numbers<[1], [0], [0], [1], [0, 0, 1, 1], [], []>} : vector<378x256xbf16>, vector<256x32xbf16>, vector<378x32xf32> -> vector<378x32xf32>
    %c0_3 = arith.constant 0 : index
    %c0_4 = arith.constant 0 : index
    %3 = vector.load %arg3[%c0_3, %c0_4] : memref<1x32xf32, #tpu.memory_space<vmem>>, vector<1x32xf32>
    %4 = vector.broadcast %3 : vector<1x32xf32> to vector<378x32xf32>
    %5 = arith.addf %2, %4 : vector<378x32xf32>
    %cst_5 = arith.constant 0.000000e+00 : f32
    %6 = vector.broadcast %cst_5 : f32 to vector<378x32xf32>
    %7 = arith.cmpf oge, %5, %6 : vector<378x32xf32>
    %cst_6 = arith.constant 0.00999999977 : f32
    %8 = vector.broadcast %cst_6 : f32 to vector<378x32xf32>
    %9 = arith.mulf %8, %5 : vector<378x32xf32>
    %10 = arith.select %7, %5, %9 : vector<378x32xi1>, vector<378x32xf32>
    %11 = arith.truncf %10 : vector<378x32xf32> to vector<378x32xbf16>
    %c0_7 = arith.constant 0 : index
    %c0_8 = arith.constant 0 : index
    %12 = vector.load %arg4[%c0_7, %c0_8] : memref<378x32xbf16, #tpu.memory_space<vmem>>, vector<378x32xbf16>
    tpu.vector_store %arg4[%c0_7, %c0_8], %11 {strides = array<i32>} : memref<378x32xbf16, #tpu.memory_space<vmem>>, vector<378x32xbf16>,
    return
  }
  func.func @transform_0(%arg0: i32) -> (i32, i32) {
    %c0_i32 = arith.constant 0 : i32
    %c0_i32_0 = arith.constant 0 : i32
    return %arg0, %c0_i32 : i32, i32
  }
  func.func @transform_1(%arg0: i32) -> (i32, i32) {
    %c0_i32 = arith.constant 0 : i32
    %c0_i32_0 = arith.constant 0 : i32
    %c0_i32_1 = arith.constant 0 : i32
    return %c0_i32, %c0_i32_0 : i32, i32
  }
  func.func @transform_2(%arg0: i32) -> (i32, i32) {
    %c0_i32 = arith.constant 0 : i32
    %c0_i32_0 = arith.constant 0 : i32
    %c0_i32_1 = arith.constant 0 : i32
    return %c0_i32, %c0_i32_0 : i32, i32
  }
  func.func @transform_3(%arg0: i32) -> (i32, i32) {
    %c0_i32 = arith.constant 0 : i32
    %c0_i32_0 = arith.constant 0 : i32
    return %arg0, %c0_i32 : i32, i32
  }
}

module attributes {stable_mosaic.version = 11 : i64} {
  func.func @kernel(%arg0: memref<2x6048xbf16, #tpu.memory_space<vmem>>, %arg1: memref<2x16xf32, #tpu.memory_space<vmem>>, %arg2: memref<6048x256xbf16, #tpu.memory_space<vmem>>, %arg3: memref<256x64xbf16, #tpu.memory_space<vmem>>, %arg4: memref<16x64xbf16, #tpu.memory_space<vmem>>, %arg5: memref<64x64xbf16, #tpu.memory_space<vmem>>, %arg6: memref<64x8xbf16, #tpu.memory_space<vmem>>, %arg7: memref<9x256xf32, #tpu.memory_space<vmem>>, %arg8: memref<2x8xf32, #tpu.memory_space<vmem>>, %arg9: memref<2x8xf32, #tpu.memory_space<vmem>>) attributes {dimension_semantics = [], scalar_prefetch = 0 : i64, scratch_operands = 0 : i64, tpu.core_type = #tpu.core_type<tc>} {
    %c0 = arith.constant 0 : index
    %c0_0 = arith.constant 0 : index
    %0 = vector.load %arg7[%c0, %c0_0] : memref<9x256xf32, #tpu.memory_space<vmem>>, vector<9x256xf32>
    %c0_1 = arith.constant 0 : index
    %c0_2 = arith.constant 0 : index
    %1 = vector.load %arg0[%c0_1, %c0_2] : memref<2x6048xbf16, #tpu.memory_space<vmem>>, vector<2x6048xbf16>
    %c0_3 = arith.constant 0 : index
    %c0_4 = arith.constant 0 : index
    %2 = vector.load %arg2[%c0_3, %c0_4] : memref<6048x256xbf16, #tpu.memory_space<vmem>>, vector<6048x256xbf16>
    %cst = arith.constant dense<0.000000e+00> : vector<2x256xf32>
    %3 = tpu.matmul %1, %2, %cst {dimension_numbers = #tpu.dot_dimension_numbers<[1], [0], [0], [1], [0, 0, 1, 1], [], []>} : vector<2x6048xbf16>, vector<6048x256xbf16>, vector<2x256xf32> -> vector<2x256xf32>
    %4 = vector.extract_strided_slice %0 {offsets = [0, 0], sizes = [1, 256], strides = [1, 1]} : vector<9x256xf32> to vector<1x256xf32>
    %5 = vector.shape_cast %4 : vector<1x256xf32> to vector<256xf32>
    %6 = vector.shape_cast %5 : vector<256xf32> to vector<1x256xf32>
    %7 = vector.broadcast %6 : vector<1x256xf32> to vector<2x256xf32>
    %8 = arith.addf %3, %7 : vector<2x256xf32>
    %cst_5 = arith.constant 0.000000e+00 : f32
    %9 = vector.broadcast %cst_5 : f32 to vector<2x256xf32>
    %10 = arith.cmpf oge, %8, %9 : vector<2x256xf32>
    %cst_6 = arith.constant 0.00999999977 : f32
    %11 = vector.broadcast %cst_6 : f32 to vector<2x256xf32>
    %12 = arith.mulf %11, %8 : vector<2x256xf32>
    %13 = arith.select %10, %8, %12 : vector<2x256xi1>, vector<2x256xf32>
    %14 = arith.truncf %13 : vector<2x256xf32> to vector<2x256xbf16>
    %c0_7 = arith.constant 0 : index
    %c0_8 = arith.constant 0 : index
    %15 = vector.load %arg3[%c0_7, %c0_8] : memref<256x64xbf16, #tpu.memory_space<vmem>>, vector<256x64xbf16>
    %cst_9 = arith.constant dense<0.000000e+00> : vector<2x64xf32>
    %16 = tpu.matmul %14, %15, %cst_9 {dimension_numbers = #tpu.dot_dimension_numbers<[1], [0], [0], [1], [0, 0, 1, 1], [], []>} : vector<2x256xbf16>, vector<256x64xbf16>, vector<2x64xf32> -> vector<2x64xf32>
    %c0_10 = arith.constant 0 : index
    %c0_11 = arith.constant 0 : index
    %17 = vector.load %arg1[%c0_10, %c0_11] : memref<2x16xf32, #tpu.memory_space<vmem>>, vector<2x16xf32>
    %18 = arith.truncf %17 : vector<2x16xf32> to vector<2x16xbf16>
    %c0_12 = arith.constant 0 : index
    %c0_13 = arith.constant 0 : index
    %19 = vector.load %arg4[%c0_12, %c0_13] : memref<16x64xbf16, #tpu.memory_space<vmem>>, vector<16x64xbf16>
    %cst_14 = arith.constant dense<0.000000e+00> : vector<2x64xf32>
    %20 = tpu.matmul %18, %19, %cst_14 {dimension_numbers = #tpu.dot_dimension_numbers<[1], [0], [0], [1], [0, 0, 1, 1], [], []>} : vector<2x16xbf16>, vector<16x64xbf16>, vector<2x64xf32> -> vector<2x64xf32>
    %21 = arith.addf %16, %20 : vector<2x64xf32>
    %22 = vector.extract_strided_slice %0 {offsets = [3, 0], sizes = [1, 64], strides = [1, 1]} : vector<9x256xf32> to vector<1x64xf32>
    %23 = vector.shape_cast %22 : vector<1x64xf32> to vector<64xf32>
    %24 = vector.shape_cast %23 : vector<64xf32> to vector<1x64xf32>
    %25 = vector.broadcast %24 : vector<1x64xf32> to vector<2x64xf32>
    %26 = arith.addf %21, %25 : vector<2x64xf32>
    %cst_15 = arith.constant 0.000000e+00 : f32
    %27 = vector.broadcast %cst_15 : f32 to vector<2x64xf32>
    %28 = arith.cmpf oge, %26, %27 : vector<2x64xf32>
    %cst_16 = arith.constant 0.000000e+00 : f32
    %29 = vector.broadcast %cst_16 : f32 to vector<2x64xf32>
    %30 = arith.minimumf %26, %29 : vector<2x64xf32>
    %31 = math.exp %30 : vector<2x64xf32>
    %cst_17 = arith.constant 1.000000e+00 : f32
    %32 = vector.broadcast %cst_17 : f32 to vector<2x64xf32>
    %33 = arith.subf %31, %32 : vector<2x64xf32>
    %34 = arith.select %28, %26, %33 : vector<2x64xi1>, vector<2x64xf32>
    %35 = vector.extract_strided_slice %0 {offsets = [4, 0], sizes = [1, 64], strides = [1, 1]} : vector<9x256xf32> to vector<1x64xf32>
    %36 = vector.shape_cast %35 : vector<1x64xf32> to vector<64xf32>
    %37 = vector.shape_cast %36 : vector<64xf32> to vector<1x64xf32>
    %38 = vector.extract_strided_slice %0 {offsets = [5, 0], sizes = [1, 64], strides = [1, 1]} : vector<9x256xf32> to vector<1x64xf32>
    %39 = vector.shape_cast %38 : vector<1x64xf32> to vector<64xf32>
    %40 = vector.shape_cast %39 : vector<64xf32> to vector<1x64xf32>
    %cst_18 = arith.constant dense<0.000000e+00> : vector<2xf32>
    %41 = vector.multi_reduction <add>, %34, %cst_18 [1] : vector<2x64xf32> to vector<2xf32>
    %42 = vector.shape_cast %41 : vector<2xf32> to vector<2x1xf32>
    %cst_19 = arith.constant 6.400000e+01 : f32
    %43 = vector.broadcast %cst_19 : f32 to vector<2x1xf32>
    %44 = arith.divf %42, %43 : vector<2x1xf32>
    %45 = vector.broadcast %44 : vector<2x1xf32> to vector<2x64xf32>
    %46 = arith.subf %34, %45 : vector<2x64xf32>
    %47 = arith.mulf %46, %46 : vector<2x64xf32>
    %cst_20 = arith.constant dense<0.000000e+00> : vector<2xf32>
    %48 = vector.multi_reduction <add>, %47, %cst_20 [1] : vector<2x64xf32> to vector<2xf32>
    %49 = vector.shape_cast %48 : vector<2xf32> to vector<2x1xf32>
    %cst_21 = arith.constant 6.400000e+01 : f32
    %50 = vector.broadcast %cst_21 : f32 to vector<2x1xf32>
    %51 = arith.divf %49, %50 : vector<2x1xf32>
    %cst_22 = arith.constant 9.99999974E-6 : f32
    %52 = vector.broadcast %cst_22 : f32 to vector<2x1xf32>
    %53 = arith.addf %51, %52 : vector<2x1xf32>
    %54 = math.rsqrt %53 : vector<2x1xf32>
    %55 = vector.broadcast %54 : vector<2x1xf32> to vector<2x64xf32>
    %56 = arith.mulf %46, %55 : vector<2x64xf32>
    %57 = vector.broadcast %37 : vector<1x64xf32> to vector<2x64xf32>
    %58 = arith.mulf %56, %57 : vector<2x64xf32>
    %59 = vector.broadcast %40 : vector<1x64xf32> to vector<2x64xf32>
    %60 = arith.addf %58, %59 : vector<2x64xf32>
    %61 = arith.truncf %60 : vector<2x64xf32> to vector<2x64xbf16>
    %c0_23 = arith.constant 0 : index
    %c0_24 = arith.constant 0 : index
    %62 = vector.load %arg5[%c0_23, %c0_24] : memref<64x64xbf16, #tpu.memory_space<vmem>>, vector<64x64xbf16>
    %cst_25 = arith.constant dense<0.000000e+00> : vector<2x64xf32>
    %63 = tpu.matmul %61, %62, %cst_25 {dimension_numbers = #tpu.dot_dimension_numbers<[1], [0], [0], [1], [0, 0, 1, 1], [], []>} : vector<2x64xbf16>, vector<64x64xbf16>, vector<2x64xf32> -> vector<2x64xf32>
    %64 = vector.extract_strided_slice %0 {offsets = [6, 0], sizes = [1, 64], strides = [1, 1]} : vector<9x256xf32> to vector<1x64xf32>
    %65 = vector.shape_cast %64 : vector<1x64xf32> to vector<64xf32>
    %66 = vector.shape_cast %65 : vector<64xf32> to vector<1x64xf32>
    %67 = vector.broadcast %66 : vector<1x64xf32> to vector<2x64xf32>
    %68 = arith.addf %63, %67 : vector<2x64xf32>
    %cst_26 = arith.constant 0.000000e+00 : f32
    %69 = vector.broadcast %cst_26 : f32 to vector<2x64xf32>
    %70 = arith.cmpf oge, %68, %69 : vector<2x64xf32>
    %cst_27 = arith.constant 0.000000e+00 : f32
    %71 = vector.broadcast %cst_27 : f32 to vector<2x64xf32>
    %72 = arith.minimumf %68, %71 : vector<2x64xf32>
    %73 = math.exp %72 : vector<2x64xf32>
    %cst_28 = arith.constant 1.000000e+00 : f32
    %74 = vector.broadcast %cst_28 : f32 to vector<2x64xf32>
    %75 = arith.subf %73, %74 : vector<2x64xf32>
    %76 = arith.select %70, %68, %75 : vector<2x64xi1>, vector<2x64xf32>
    %77 = vector.extract_strided_slice %0 {offsets = [7, 0], sizes = [1, 64], strides = [1, 1]} : vector<9x256xf32> to vector<1x64xf32>
    %78 = vector.shape_cast %77 : vector<1x64xf32> to vector<64xf32>
    %79 = vector.shape_cast %78 : vector<64xf32> to vector<1x64xf32>
    %80 = vector.extract_strided_slice %0 {offsets = [8, 0], sizes = [1, 64], strides = [1, 1]} : vector<9x256xf32> to vector<1x64xf32>
    %81 = vector.shape_cast %80 : vector<1x64xf32> to vector<64xf32>
    %82 = vector.shape_cast %81 : vector<64xf32> to vector<1x64xf32>
    %cst_29 = arith.constant dense<0.000000e+00> : vector<2xf32>
    %83 = vector.multi_reduction <add>, %76, %cst_29 [1] : vector<2x64xf32> to vector<2xf32>
    %84 = vector.shape_cast %83 : vector<2xf32> to vector<2x1xf32>
    %cst_30 = arith.constant 6.400000e+01 : f32
    %85 = vector.broadcast %cst_30 : f32 to vector<2x1xf32>
    %86 = arith.divf %84, %85 : vector<2x1xf32>
    %87 = vector.broadcast %86 : vector<2x1xf32> to vector<2x64xf32>
    %88 = arith.subf %76, %87 : vector<2x64xf32>
    %89 = arith.mulf %88, %88 : vector<2x64xf32>
    %cst_31 = arith.constant dense<0.000000e+00> : vector<2xf32>
    %90 = vector.multi_reduction <add>, %89, %cst_31 [1] : vector<2x64xf32> to vector<2xf32>
    %91 = vector.shape_cast %90 : vector<2xf32> to vector<2x1xf32>
    %cst_32 = arith.constant 6.400000e+01 : f32
    %92 = vector.broadcast %cst_32 : f32 to vector<2x1xf32>
    %93 = arith.divf %91, %92 : vector<2x1xf32>
    %cst_33 = arith.constant 9.99999974E-6 : f32
    %94 = vector.broadcast %cst_33 : f32 to vector<2x1xf32>
    %95 = arith.addf %93, %94 : vector<2x1xf32>
    %96 = math.rsqrt %95 : vector<2x1xf32>
    %97 = vector.broadcast %96 : vector<2x1xf32> to vector<2x64xf32>
    %98 = arith.mulf %88, %97 : vector<2x64xf32>
    %99 = vector.broadcast %79 : vector<1x64xf32> to vector<2x64xf32>
    %100 = arith.mulf %98, %99 : vector<2x64xf32>
    %101 = vector.broadcast %82 : vector<1x64xf32> to vector<2x64xf32>
    %102 = arith.addf %100, %101 : vector<2x64xf32>
    %103 = arith.truncf %102 : vector<2x64xf32> to vector<2x64xbf16>
    %c0_34 = arith.constant 0 : index
    %c0_35 = arith.constant 0 : index
    %104 = vector.load %arg6[%c0_34, %c0_35] : memref<64x8xbf16, #tpu.memory_space<vmem>>, vector<64x8xbf16>
    %cst_36 = arith.constant dense<0.000000e+00> : vector<2x8xf32>
    %105 = tpu.matmul %103, %104, %cst_36 {dimension_numbers = #tpu.dot_dimension_numbers<[1], [0], [0], [1], [0, 0, 1, 1], [], []>} : vector<2x64xbf16>, vector<64x8xbf16>, vector<2x8xf32> -> vector<2x8xf32>
    %106 = vector.extract_strided_slice %0 {offsets = [2, 0], sizes = [1, 8], strides = [1, 1]} : vector<9x256xf32> to vector<1x8xf32>
    %107 = vector.shape_cast %106 : vector<1x8xf32> to vector<8xf32>
    %108 = vector.shape_cast %107 : vector<8xf32> to vector<1x8xf32>
    %109 = vector.broadcast %108 : vector<1x8xf32> to vector<2x8xf32>
    %110 = arith.addf %105, %109 : vector<2x8xf32>
    %111 = vector.extract_strided_slice %0 {offsets = [1, 0], sizes = [1, 8], strides = [1, 1]} : vector<9x256xf32> to vector<1x8xf32>
    %112 = vector.shape_cast %111 : vector<1x8xf32> to vector<8xf32>
    %113 = vector.shape_cast %112 : vector<8xf32> to vector<1x8xf32>
    %114 = math.exp %113 : vector<1x8xf32>
    %c0_37 = arith.constant 0 : index
    %c0_38 = arith.constant 0 : index
    %115 = vector.load %arg8[%c0_37, %c0_38] : memref<2x8xf32, #tpu.memory_space<vmem>>, vector<2x8xf32>
    %116 = vector.broadcast %114 : vector<1x8xf32> to vector<2x8xf32>
    %117 = arith.mulf %116, %115 : vector<2x8xf32>
    %118 = arith.addf %110, %117 : vector<2x8xf32>
    %c0_39 = arith.constant 0 : index
    %c0_40 = arith.constant 0 : index
    %119 = vector.load %arg9[%c0_39, %c0_40] : memref<2x8xf32, #tpu.memory_space<vmem>>, vector<2x8xf32>
    tpu.vector_store %arg9[%c0_39, %c0_40], %118 {strides = array<i32>} : memref<2x8xf32, #tpu.memory_space<vmem>>, vector<2x8xf32>,
    return
  }
}

</mosaic_0001>

<bundles_post_ra>
// kernel: actor_forward.3
= control target key start
LH: loop header
LB: loop body
LE: loop exit
PB: predicated region body
PF: predicated region fallthrough
CT: control target
= control target key end

     0   :  { %vm860_vm0 = vcmask 523264   ;;  %vm2721_vm3 = vcmask 125952   ;;  %s5355_s1 = inlined_call_operand.vmem [shape: bf16[64,16], index: 1, kind: input, shape index: {}]   ;;  %s5356_s2 = inlined_call_operand.vmem [shape: f32[1,16], index: 2, kind: input, shape index: {}]   ;;  %s5357_s0 = inlined_call_operand.vmem [shape: bf16[1848,64], index: 0, kind: input, shape index: {}]   ;;  %s5358_s3 = inlined_call_operand.vmem [shape: bf16[1848,16], index: 3, kind: output, shape index: {}]  }
   0x1   :  { %v3667_v0 = vld [vmem:[%s5355_s1 + $0x18] sm:$0xff]  ;;  %v3666_v1 = vld [vmem:[%s5355_s1 + $0x10] sm:$0xff]  ;;  %v3665_v2 = vld [vmem:[%s5355_s1 + $0x8] sm:$0xff] }
   0x2   :  { %1213 = vmatpush.bf16.msra.mxu0 %v3667_v0  ;;  %3668 = vmatpush.bf16.msra.mxu1 %v3667_v0  ;;  %v3664_v3 = vld [vmem:[%s5355_s1] sm:$0xff]  ;;  %v3578_v5 = vld [vmem:[%s5357_s0 + $0xe8] sm:$0xff]  ;;  %v3607_v6 = vld [vmem:[%s5357_s0 + $0x1d0] sm:$0xff] }
   0x3   :  { %3669 = vmatpush.bf16.msra.mxu2 %v3667_v0  ;;  %3670 = vmatpush.bf16.msra.mxu3 %v3667_v0  ;;  %v3549_v4 = vld [vmem:[%s5357_s0] sm:$0xff]  ;;  %v3636_v7 = vld [vmem:[%s5357_s0 + $0x2b8] sm:$0xff]  ;;  %v3550_v8 = vld [vmem:[%s5357_s0 + $0x8] sm:$0xff] }
   0x4   :  { %v3579_v9 = vld [vmem:[%s5357_s0 + $0xf0] sm:$0xff]  ;;  %v3608_v10 = vld [vmem:[%s5357_s0 + $0x1d8] sm:$0xff]  ;;  %v3637_v11 = vld [vmem:[%s5357_s0 + $0x2c0] sm:$0xff] }
   0x5   :  { %v3551_v12 = vld [vmem:[%s5357_s0 + $0x10] sm:$0xff]  ;;  %v3580_v13 = vld [vmem:[%s5357_s0 + $0xf8] sm:$0xff]  ;;  %v3609_v14 = vld [vmem:[%s5357_s0 + $0x1e0] sm:$0xff] }
   0x6   :  { %1214 = vmatpush.bf16.msra.mxu0 %v3666_v1  ;;  %3671 = vmatpush.bf16.msra.mxu1 %v3666_v1  ;;  %v3638_v15 = vld [vmem:[%s5357_s0 + $0x2c8] sm:$0xff]  ;;  %v3552_v16 = vld [vmem:[%s5357_s0 + $0x18] sm:$0xff]  ;;  %v3581_v17 = vld [vmem:[%s5357_s0 + $0x100] sm:$0xff] }
   0x7   :  { %3672 = vmatpush.bf16.msra.mxu2 %v3666_v1  ;;  %3673 = vmatpush.bf16.msra.mxu3 %v3666_v1  ;;  %v3610_v18 = vld [vmem:[%s5357_s0 + $0x1e8] sm:$0xff]  ;;  %v3639_v19 = vld [vmem:[%s5357_s0 + $0x2d0] sm:$0xff]  ;;  %v3553_v20 = vld [vmem:[%s5357_s0 + $0x20] sm:$0xff] }
   0x8   :  { %v3582_v21 = vld [vmem:[%s5357_s0 + $0x108] sm:$0xff]  ;;  %v3611_v22 = vld [vmem:[%s5357_s0 + $0x1f0] sm:$0xff]  ;;  %v3640_v23 = vld [vmem:[%s5357_s0 + $0x2d8] sm:$0xff] }
   0x9   :  { %v3554_v24 = vld [vmem:[%s5357_s0 + $0x28] sm:$0xff]  ;;  %v3583_v25 = vld [vmem:[%s5357_s0 + $0x110] sm:$0xff]  ;;  %v3612_v26 = vld [vmem:[%s5357_s0 + $0x1f8] sm:$0xff] }
   0xa   :  { %1215 = vmatpush.bf16.msra.mxu0 %v3665_v2  ;;  %3674 = vmatpush.bf16.msra.mxu1 %v3665_v2  ;;  %v3641_v27 = vld [vmem:[%s5357_s0 + $0x2e0] sm:$0xff]  ;;  %v3555_v28 = vld [vmem:[%s5357_s0 + $0x30] sm:$0xff]  ;;  %v3584_v29 = vld [vmem:[%s5357_s0 + $0x118] sm:$0xff] }
   0xb   :  { %3675 = vmatpush.bf16.msra.mxu2 %v3665_v2  ;;  %3676 = vmatpush.bf16.msra.mxu3 %v3665_v2  ;;  %v3613_v30 = vld [vmem:[%s5357_s0 + $0x200] sm:$0xff]  ;;  %v3642_v31 = vld [vmem:[%s5357_s0 + $0x2e8] sm:$0xff]  ;;  %v3556_v32 = vld [vmem:[%s5357_s0 + $0x38] sm:$0xff] }
   0xc   :  { %v3585_v33 = vld [vmem:[%s5357_s0 + $0x120] sm:$0xff]  ;;  %v3614_v34 = vld [vmem:[%s5357_s0 + $0x208] sm:$0xff]  ;;  %v3643_v35 = vld [vmem:[%s5357_s0 + $0x2f0] sm:$0xff] }
   0xd   :  { %v3847_v36 = vld [vmem:[%s5356_s2] ss:$0 sm:$0xff]  ;;  %v3586_v38 = vld [vmem:[%s5357_s0 + $0x128] sm:$0xff]  ;;  %v3615_v41 = vld [vmem:[%s5357_s0 + $0x210] sm:$0xff] }
   0xe   :  { %1216 = vmatpush.bf16.msra.mxu0 %v3664_v3  ;;  %3677 = vmatpush.bf16.msra.mxu1 %v3664_v3  ;;  %v3557_v37 = vld [vmem:[%s5357_s0 + $0x40] sm:$0xff]  ;;  %v3644_v42 = vld [vmem:[%s5357_s0 + $0x2f8] sm:$0xff] }
   0xf   :  { %3678 = vmatpush.bf16.msra.mxu2 %v3664_v3  ;;  %3679 = vmatpush.bf16.msra.mxu3 %v3664_v3 }
  0x11   :  { %3433 = vmatmul.msk.bf16.vlgmr.msra.gmra.mxu0 %vm860_vm0, %v3549_v4  ;;  %3462 = vmatmul.msk.bf16.vlgmr.msra.gmra.mxu1 %vm860_vm0, %v3578_v5 }
  0x12   :  { %3491 = vmatmul.msk.bf16.vlgmr.msra.gmra.mxu2 %vm860_vm0, %v3607_v6  ;;  %3520 = vmatmul.msk.bf16.vlgmr.msra.gmra.mxu3 %vm860_vm0, %v3636_v7 }
  0x21   :  { %3434 = vmatmul.msk.bf16.gmra.mxu0 %vm860_vm0, %v3550_v8  ;;  %3463 = vmatmul.msk.bf16.gmra.mxu1 %vm860_vm0, %v3579_v9  ;;  %v3558_v9 = vld [vmem:[%s5357_s0 + $0x48] sm:$0xff] }
  0x22   :  { %3492 = vmatmul.msk.bf16.gmra.mxu2 %vm860_vm0, %v3608_v10  ;;  %3521 = vmatmul.msk.bf16.gmra.mxu3 %vm860_vm0, %v3637_v11  ;;  %v3587_v10 = vld [vmem:[%s5357_s0 + $0x130] sm:$0xff] }
  0x31   :  { %3435 = vmatmul.msk.bf16.gmra.mxu0 %vm860_vm0, %v3551_v12  ;;  %3464 = vmatmul.msk.bf16.gmra.mxu1 %vm860_vm0, %v3580_v13 }
  0x32   :  { %3493 = vmatmul.msk.bf16.gmra.mxu2 %vm860_vm0, %v3609_v14  ;;  %3522 = vmatmul.msk.bf16.gmra.mxu3 %vm860_vm0, %v3638_v15  ;;  %v3616_v15 = vld [vmem:[%s5357_s0 + $0x218] sm:$0xff] }
  0x41   :  { %3436 = vmatmul.msk.bf16.gmra.mxu0 %vm860_vm0, %v3552_v16  ;;  %3465 = vmatmul.msk.bf16.gmra.mxu1 %vm860_vm0, %v3581_v17  ;;  %v3645_v16 = vld [vmem:[%s5357_s0 + $0x300] sm:$0xff] }
  0x42   :  { %3494 = vmatmul.msk.bf16.gmra.mxu2 %vm860_vm0, %v3610_v18  ;;  %3523 = vmatmul.msk.bf16.gmra.mxu3 %vm860_vm0, %v3639_v19 }
  0x51   :  { %3437 = vmatmul.msk.bf16.gmra.mxu0 %vm860_vm0, %v3553_v20  ;;  %3466 = vmatmul.msk.bf16.gmra.mxu1 %vm860_vm0, %v3582_v21 }
  0x52   :  { %3495 = vmatmul.msk.bf16.gmra.mxu2 %vm860_vm0, %v3611_v22  ;;  %3524 = vmatmul.msk.bf16.gmra.mxu3 %vm860_vm0, %v3640_v23 }
  0x61   :  { %3438 = vmatmul.msk.bf16.gmra.mxu0 %vm860_vm0, %v3554_v24  ;;  %3467 = vmatmul.msk.bf16.gmra.mxu1 %vm860_vm0, %v3583_v25 }
  0x62   :  { %3496 = vmatmul.msk.bf16.gmra.mxu2 %vm860_vm0, %v3612_v26  ;;  %3525 = vmatmul.msk.bf16.gmra.mxu3 %vm860_vm0, %v3641_v27 }
  0x71   :  { %3439 = vmatmul.msk.bf16.gmra.mxu0 %vm860_vm0, %v3555_v28  ;;  %3468 = vmatmul.msk.bf16.gmra.mxu1 %vm860_vm0, %v3584_v29 }
  0x72   :  { %3497 = vmatmul.msk.bf16.gmra.mxu2 %vm860_vm0, %v3613_v30  ;;  %3526 = vmatmul.msk.bf16.gmra.mxu3 %vm860_vm0, %v3642_v31 }
  0x81   :  { %3440 = vmatmul.msk.bf16.gmra.mxu0 %vm860_vm0, %v3556_v32  ;;  %3469 = vmatmul.msk.bf16.gmra.mxu1 %vm860_vm0, %v3585_v33 }
  0x82   :  { %3498 = vmatmul.msk.bf16.gmra.mxu2 %vm860_vm0, %v3614_v34  ;;  %3527 = vmatmul.msk.bf16.gmra.mxu3 %vm860_vm0, %v3643_v35 }
  0x8e   :  { %v1218_v39 = vpop.f32.mrf.mxu0  ;;  %v1363_v40 = vpop.f32.mrf.mxu1 }
  0x8f   :  { %v1219_v43 = vadd.f32 %v3847_v36, %v1218_v39  ;;  %v1364_v44 = vadd.f32 %v3847_v36, %v1363_v40 }
  0x91   :  { %vm1797_vm1 = vcmp.ge.f32.partialorder %v1219_v43, 0.0  ;;  %v2028_v45 = vmul.f32 0.01, %v1219_v43  ;;  %vm1855_vm2 = vcmp.ge.f32.partialorder %v1364_v44, 0.0  ;;  %v2086_v46 = vmul.f32 0.01, %v1364_v44  ;;  %3441 = vmatmul.msk.bf16.gmra.mxu0 %vm860_vm0, %v3557_v37  ;;  %3470 = vmatmul.msk.bf16.gmra.mxu1 %vm860_vm0, %v3586_v38 }
  0x92   :  { %3499 = vmatmul.msk.bf16.gmra.mxu2 %vm860_vm0, %v3615_v41  ;;  %3528 = vmatmul.msk.bf16.gmra.mxu3 %vm860_vm0, %v3644_v42 }
  0x93   :  { %v2259_v47 = vsel %vm1797_vm1, %v1219_v43, %v2028_v45  ;;  %v2317_v48 = vsel %vm1855_vm2, %v1364_v44, %v2086_v46 }
  0x94   :  { %v2490_v49 = vpack.c.bf16 %v2259_v47, %v2259_v47  ;;  %v2548_v50 = vpack.c.bf16 %v2317_v48, %v2317_v48 }
  0x95   :  { %v1508_v51 = vpop.f32.mrf.mxu2  ;;  %v1653_v52 = vpop.f32.mrf.mxu3 }
  0x96   :  { %2722 = vst.msk [vmem:[%s5358_s3] sm:$0xf] %vm2721_vm3, %v2490_v49  ;;  %v1509_v53 = vadd.f32 %v3847_v36, %v1508_v51  ;;  %v1654_v54 = vadd.f32 %v3847_v36, %v1653_v52  ;;  %v1220_v55 = vpop.f32.mrf.mxu0  ;;  %v1365_v56 = vpop.f32.mrf.mxu1 }
  0x97   :  { %2780 = vst.msk [vmem:[%s5358_s3 + $0xe8] sm:$0xf] %vm2721_vm3, %v2548_v50  ;;  %v1221_v57 = vadd.f32 %v3847_v36, %v1220_v55  ;;  %v1366_v58 = vadd.f32 %v3847_v36, %v1365_v56  ;;  %v3588_v55 = vld [vmem:[%s5357_s0 + $0x138] sm:$0xff] }
  0x98   :  { %vm1913_vm4 = vcmp.ge.f32.partialorder %v1509_v53, 0.0  ;;  %v2144_v59 = vmul.f32 0.01, %v1509_v53  ;;  %vm1971_vm5 = vcmp.ge.f32.partialorder %v1654_v54, 0.0  ;;  %v2202_v60 = vmul.f32 0.01, %v1654_v54 }
  0x99   :  { %vm1798_vm6 = vcmp.ge.f32.partialorder %v1221_v57, 0.0  ;;  %v2029_v61 = vmul.f32 0.01, %v1221_v57  ;;  %vm1856_vm7 = vcmp.ge.f32.partialorder %v1366_v58, 0.0  ;;  %v2087_v62 = vmul.f32 0.01, %v1366_v58 }
  0x9a   :  { %v2375_v63 = vsel %vm1913_vm4, %v1509_v53, %v2144_v59  ;;  %v2433_v0 = vsel %vm1971_vm5, %v1654_v54, %v2202_v60  ;;  %v3559_v54 = vld [vmem:[%s5357_s0 + $0x50] sm:$0xff]  ;;  %v3617_v60 = vld [vmem:[%s5357_s0 + $0x220] sm:$0xff] }
  0x9b   :  { %v2606_v1 = vpack.c.bf16 %v2375_v63, %v2375_v63  ;;  %v2664_v2 = vpack.c.bf16 %v2433_v0, %v2433_v0  ;;  %v2260_v3 = vsel %vm1798_vm6, %v1221_v57, %v2029_v61  ;;  %v2318_v4 = vsel %vm1856_vm7, %v1366_v58, %v2087_v62  ;;  %v3646_v61 = vld [vmem:[%s5357_s0 + $0x308] sm:$0xff] }
  0x9c   :  { %v2491_v5 = vpack.c.bf16 %v2260_v3, %v2260_v3  ;;  %v2549_v6 = vpack.c.bf16 %v2318_v4, %v2318_v4 }
  0x9d   :  { %2838 = vst.msk [vmem:[%s5358_s3 + $0x1d0] sm:$0xf] %vm2721_vm3, %v2606_v1  ;;  %v1510_v7 = vpop.f32.mrf.mxu2  ;;  %v1655_v8 = vpop.f32.mrf.mxu3 }
  0x9e   :  { %2896 = vst.msk [vmem:[%s5358_s3 + $0x2b8] sm:$0xf] %vm2721_vm3, %v2664_v2  ;;  %v1511_v11 = vadd.f32 %v3847_v36, %v1510_v7  ;;  %v1656_v12 = vadd.f32 %v3847_v36, %v1655_v8  ;;  %v1223_v13 = vpop.f32.mrf.mxu0  ;;  %v1368_v14 = vpop.f32.mrf.mxu1 }
  0x9f   :  { %2723 = vst.msk [vmem:[%s5358_s3 + $0x4] sm:$0xf] %vm2721_vm3, %v2491_v5  ;;  %v1224_v17 = vadd.f32 %v3847_v36, %v1223_v13  ;;  %v1369_v18 = vadd.f32 %v3847_v36, %v1368_v14 }
  0xa0   :  { %2781 = vst.msk [vmem:[%s5358_s3 + $0xec] sm:$0xf] %vm2721_vm3, %v2549_v6  ;;  %vm1914_vm8 = vcmp.ge.f32.partialorder %v1511_v11, 0.0  ;;  %v2145_v19 = vmul.f32 0.01, %v1511_v11  ;;  %vm1972_vm9 = vcmp.ge.f32.partialorder %v1656_v12, 0.0 }
  0xa1   :  { %v2203_v20 = vmul.f32 0.01, %v1656_v12  ;;  %vm1799_vm10 = vcmp.ge.f32.partialorder %v1224_v17, 0.0  ;;  %v2030_v21 = vmul.f32 0.01, %v1224_v17  ;;  %vm1857_vm11 = vcmp.ge.f32.partialorder %v1369_v18, 0.0  ;;  %3442 = vmatmul.msk.bf16.gmra.mxu0 %vm860_vm0, %v3558_v9  ;;  %3471 = vmatmul.msk.bf16.gmra.mxu1 %vm860_vm0, %v3587_v10 }
  0xa2   :  { %v2376_v22 = vsel %vm1914_vm8, %v1511_v11, %v2145_v19  ;;  %v2088_v23 = vmul.f32 0.01, %v1369_v18  ;;  %3500 = vmatmul.msk.bf16.gmra.mxu2 %vm860_vm0, %v3616_v15  ;;  %3529 = vmatmul.msk.bf16.gmra.mxu3 %vm860_vm0, %v3645_v16 }
  0xa3   :  { %v2607_v24 = vpack.c.bf16 %v2376_v22, %v2376_v22  ;;  %v2434_v25 = vsel %vm1972_vm9, %v1656_v12, %v2203_v20  ;;  %v2261_v26 = vsel %vm1799_vm10, %v1224_v17, %v2030_v21 }
  0xa4   :  { %v2665_v27 = vpack.c.bf16 %v2434_v25, %v2434_v25  ;;  %v2492_v28 = vpack.c.bf16 %v2261_v26, %v2261_v26  ;;  %v2319_v29 = vsel %vm1857_vm11, %v1369_v18, %v2088_v23 }
  0xa5   :  { %2839 = vst.msk [vmem:[%s5358_s3 + $0x1d4] sm:$0xf] %vm2721_vm3, %v2607_v24  ;;  %v2550_v30 = vpack.c.bf16 %v2319_v29, %v2319_v29  ;;  %v1513_v31 = vpop.f32.mrf.mxu2  ;;  %v1658_v32 = vpop.f32.mrf.mxu3 }
  0xa6   :  { %2897 = vst.msk [vmem:[%s5358_s3 + $0x2bc] sm:$0xf] %vm2721_vm3, %v2665_v27  ;;  %v1514_v33 = vadd.f32 %v3847_v36, %v1513_v31  ;;  %v1659_v34 = vadd.f32 %v3847_v36, %v1658_v32  ;;  %v1225_v35 = vpop.f32.mrf.mxu0  ;;  %v1370_v37 = vpop.f32.mrf.mxu1 }
  0xa7   :  { %2724 = vst.msk [vmem:[%s5358_s3 + $0x8] sm:$0xf] %vm2721_vm3, %v2492_v28  ;;  %v1226_v38 = vadd.f32 %v3847_v36, %v1225_v35  ;;  %v1371_v39 = vadd.f32 %v3847_v36, %v1370_v37  ;;  %v3589_v35 = vld [vmem:[%s5357_s0 + $0x140] sm:$0xff] }
  0xa8   :  { %2782 = vst.msk [vmem:[%s5358_s3 + $0xf0] sm:$0xf] %vm2721_vm3, %v2550_v30  ;;  %vm1915_vm12 = vcmp.ge.f32.partialorder %v1514_v33, 0.0  ;;  %v2146_v40 = vmul.f32 0.01, %v1514_v33  ;;  %vm1973_vm13 = vcmp.ge.f32.partialorder %v1659_v34, 0.0 }
  0xa9   :  { %v2204_v41 = vmul.f32 0.01, %v1659_v34  ;;  %vm1800_vm14 = vcmp.ge.f32.partialorder %v1226_v38, 0.0  ;;  %v2031_v42 = vmul.f32 0.01, %v1226_v38  ;;  %vm1858_vm15 = vcmp.ge.f32.partialorder %v1371_v39, 0.0 }
  0xaa   :  { %v2377_v43 = vsel %vm1915_vm12, %v1514_v33, %v2146_v40  ;;  %v2089_v44 = vmul.f32 0.01, %v1371_v39 }
  0xab   :  { %v2608_v45 = vpack.c.bf16 %v2377_v43, %v2377_v43  ;;  %v2435_v46 = vsel %vm1973_vm13, %v1659_v34, %v2204_v41  ;;  %v2262_v47 = vsel %vm1800_vm14, %v1226_v38, %v2031_v42  ;;  %v3560_v34 = vld [vmem:[%s5357_s0 + $0x58] sm:$0xff]  ;;  %v3618_v41 = vld [vmem:[%s5357_s0 + $0x228] sm:$0xff]  ;;  %v3647_v42 = vld [vmem:[%s5357_s0 + $0x310] sm:$0xff] }
  0xac   :  { %v2666_v48 = vpack.c.bf16 %v2435_v46, %v2435_v46  ;;  %v2493_v49 = vpack.c.bf16 %v2262_v47, %v2262_v47  ;;  %v2320_v50 = vsel %vm1858_vm15, %v1371_v39, %v2089_v44 }
  0xad   :  { %2840 = vst.msk [vmem:[%s5358_s3 + $0x1d8] sm:$0xf] %vm2721_vm3, %v2608_v45  ;;  %v2551_v51 = vpack.c.bf16 %v2320_v50, %v2320_v50  ;;  %v1515_v52 = vpop.f32.mrf.mxu2  ;;  %v1660_v53 = vpop.f32.mrf.mxu3 }
  0xae   :  { %2898 = vst.msk [vmem:[%s5358_s3 + $0x2c0] sm:$0xf] %vm2721_vm3, %v2666_v48  ;;  %v1516_v56 = vadd.f32 %v3847_v36, %v1515_v52  ;;  %v1661_v57 = vadd.f32 %v3847_v36, %v1660_v53  ;;  %v1228_v58 = vpop.f32.mrf.mxu0  ;;  %v1373_v59 = vpop.f32.mrf.mxu1 }
  0xaf   :  { %2725 = vst.msk [vmem:[%s5358_s3 + $0xc] sm:$0xf] %vm2721_vm3, %v2493_v49  ;;  %v1229_v62 = vadd.f32 %v3847_v36, %v1228_v58  ;;  %v1374_v63 = vadd.f32 %v3847_v36, %v1373_v59 }
  0xb0   :  { %2783 = vst.msk [vmem:[%s5358_s3 + $0xf4] sm:$0xf] %vm2721_vm3, %v2551_v51  ;;  %vm1916_vm1 = vcmp.ge.f32.partialorder %v1516_v56, 0.0  ;;  %v2147_v0 = vmul.f32 0.01, %v1516_v56  ;;  %vm1974_vm2 = vcmp.ge.f32.partialorder %v1661_v57, 0.0 }
  0xb1   :  { %v2205_v1 = vmul.f32 0.01, %v1661_v57  ;;  %vm1801_vm4 = vcmp.ge.f32.partialorder %v1229_v62, 0.0  ;;  %v2032_v2 = vmul.f32 0.01, %v1229_v62  ;;  %vm1859_vm5 = vcmp.ge.f32.partialorder %v1374_v63, 0.0  ;;  %3443 = vmatmul.msk.bf16.gmra.mxu0 %vm860_vm0, %v3559_v54  ;;  %3472 = vmatmul.msk.bf16.gmra.mxu1 %vm860_vm0, %v3588_v55 }
  0xb2   :  { %v2378_v3 = vsel %vm1916_vm1, %v1516_v56, %v2147_v0  ;;  %v2090_v4 = vmul.f32 0.01, %v1374_v63  ;;  %3501 = vmatmul.msk.bf16.gmra.mxu2 %vm860_vm0, %v3617_v60  ;;  %3530 = vmatmul.msk.bf16.gmra.mxu3 %vm860_vm0, %v3646_v61 }
  0xb3   :  { %v2609_v5 = vpack.c.bf16 %v2378_v3, %v2378_v3  ;;  %v2436_v6 = vsel %vm1974_vm2, %v1661_v57, %v2205_v1  ;;  %v2263_v7 = vsel %vm1801_vm4, %v1229_v62, %v2032_v2 }
  0xb4   :  { %v2667_v8 = vpack.c.bf16 %v2436_v6, %v2436_v6  ;;  %v2494_v9 = vpack.c.bf16 %v2263_v7, %v2263_v7  ;;  %v2321_v10 = vsel %vm1859_vm5, %v1374_v63, %v2090_v4 }
  0xb5   :  { %2841 = vst.msk [vmem:[%s5358_s3 + $0x1dc] sm:$0xf] %vm2721_vm3, %v2609_v5  ;;  %v2552_v11 = vpack.c.bf16 %v2321_v10, %v2321_v10  ;;  %v1518_v12 = vpop.f32.mrf.mxu2  ;;  %v1663_v13 = vpop.f32.mrf.mxu3 }
  0xb6   :  { %2899 = vst.msk [vmem:[%s5358_s3 + $0x2c4] sm:$0xf] %vm2721_vm3, %v2667_v8  ;;  %v1519_v14 = vadd.f32 %v3847_v36, %v1518_v12  ;;  %v1664_v15 = vadd.f32 %v3847_v36, %v1663_v13  ;;  %v1230_v16 = vpop.f32.mrf.mxu0  ;;  %v1375_v17 = vpop.f32.mrf.mxu1 }
  0xb7   :  { %2726 = vst.msk [vmem:[%s5358_s3 + $0x10] sm:$0xf] %vm2721_vm3, %v2494_v9  ;;  %v1231_v18 = vadd.f32 %v3847_v36, %v1230_v16  ;;  %v1376_v19 = vadd.f32 %v3847_v36, %v1375_v17  ;;  %v3590_v16 = vld [vmem:[%s5357_s0 + $0x148] sm:$0xff] }
  0xb8   :  { %2784 = vst.msk [vmem:[%s5358_s3 + $0xf8] sm:$0xf] %vm2721_vm3, %v2552_v11  ;;  %vm1917_vm6 = vcmp.ge.f32.partialorder %v1519_v14, 0.0  ;;  %v2148_v20 = vmul.f32 0.01, %v1519_v14  ;;  %vm1975_vm7 = vcmp.ge.f32.partialorder %v1664_v15, 0.0 }
  0xb9   :  { %v2206_v21 = vmul.f32 0.01, %v1664_v15  ;;  %vm1802_vm8 = vcmp.ge.f32.partialorder %v1231_v18, 0.0  ;;  %v2033_v22 = vmul.f32 0.01, %v1231_v18  ;;  %vm1860_vm9 = vcmp.ge.f32.partialorder %v1376_v19, 0.0 }
  0xba   :  { %v2379_v23 = vsel %vm1917_vm6, %v1519_v14, %v2148_v20  ;;  %v2091_v24 = vmul.f32 0.01, %v1376_v19 }
  0xbb   :  { %v2610_v25 = vpack.c.bf16 %v2379_v23, %v2379_v23  ;;  %v2437_v26 = vsel %vm1975_vm7, %v1664_v15, %v2206_v21  ;;  %v2264_v27 = vsel %vm1802_vm8, %v1231_v18, %v2033_v22  ;;  %v3561_v15 = vld [vmem:[%s5357_s0 + $0x60] sm:$0xff]  ;;  %v3619_v21 = vld [vmem:[%s5357_s0 + $0x230] sm:$0xff]  ;;  %v3648_v22 = vld [vmem:[%s5357_s0 + $0x318] sm:$0xff] }
  0xbc   :  { %v2668_v28 = vpack.c.bf16 %v2437_v26, %v2437_v26  ;;  %v2495_v29 = vpack.c.bf16 %v2264_v27, %v2264_v27  ;;  %v2322_v30 = vsel %vm1860_vm9, %v1376_v19, %v2091_v24 }
  0xbd   :  { %2842 = vst.msk [vmem:[%s5358_s3 + $0x1e0] sm:$0xf] %vm2721_vm3, %v2610_v25  ;;  %v2553_v31 = vpack.c.bf16 %v2322_v30, %v2322_v30  ;;  %v1520_v32 = vpop.f32.mrf.mxu2  ;;  %v1665_v33 = vpop.f32.mrf.mxu3 }
  0xbe   :  { %2900 = vst.msk [vmem:[%s5358_s3 + $0x2c8] sm:$0xf] %vm2721_vm3, %v2668_v28  ;;  %v1521_v37 = vadd.f32 %v3847_v36, %v1520_v32  ;;  %v1666_v38 = vadd.f32 %v3847_v36, %v1665_v33  ;;  %v1233_v39 = vpop.f32.mrf.mxu0  ;;  %v1378_v40 = vpop.f32.mrf.mxu1 }
  0xbf   :  { %2727 = vst.msk [vmem:[%s5358_s3 + $0x14] sm:$0xf] %vm2721_vm3, %v2495_v29  ;;  %v1234_v43 = vadd.f32 %v3847_v36, %v1233_v39  ;;  %v1379_v44 = vadd.f32 %v3847_v36, %v1378_v40 }
  0xc0   :  { %2785 = vst.msk [vmem:[%s5358_s3 + $0xfc] sm:$0xf] %vm2721_vm3, %v2553_v31  ;;  %vm1918_vm10 = vcmp.ge.f32.partialorder %v1521_v37, 0.0  ;;  %v2149_v45 = vmul.f32 0.01, %v1521_v37  ;;  %vm1976_vm11 = vcmp.ge.f32.partialorder %v1666_v38, 0.0 }
  0xc1   :  { %v2207_v46 = vmul.f32 0.01, %v1666_v38  ;;  %vm1803_vm12 = vcmp.ge.f32.partialorder %v1234_v43, 0.0  ;;  %v2034_v47 = vmul.f32 0.01, %v1234_v43  ;;  %vm1861_vm13 = vcmp.ge.f32.partialorder %v1379_v44, 0.0  ;;  %3444 = vmatmul.msk.bf16.gmra.mxu0 %vm860_vm0, %v3560_v34  ;;  %3473 = vmatmul.msk.bf16.gmra.mxu1 %vm860_vm0, %v3589_v35 }
  0xc2   :  { %v2380_v48 = vsel %vm1918_vm10, %v1521_v37, %v2149_v45  ;;  %v2092_v49 = vmul.f32 0.01, %v1379_v44  ;;  %3502 = vmatmul.msk.bf16.gmra.mxu2 %vm860_vm0, %v3618_v41  ;;  %3531 = vmatmul.msk.bf16.gmra.mxu3 %vm860_vm0, %v3647_v42 }
  0xc3   :  { %v2611_v50 = vpack.c.bf16 %v2380_v48, %v2380_v48  ;;  %v2438_v51 = vsel %vm1976_vm11, %v1666_v38, %v2207_v46  ;;  %v2265_v52 = vsel %vm1803_vm12, %v1234_v43, %v2034_v47 }
  0xc4   :  { %v2669_v53 = vpack.c.bf16 %v2438_v51, %v2438_v51  ;;  %v2496_v54 = vpack.c.bf16 %v2265_v52, %v2265_v52  ;;  %v2323_v55 = vsel %vm1861_vm13, %v1379_v44, %v2092_v49 }
  0xc5   :  { %2843 = vst.msk [vmem:[%s5358_s3 + $0x1e4] sm:$0xf] %vm2721_vm3, %v2611_v50  ;;  %v2554_v56 = vpack.c.bf16 %v2323_v55, %v2323_v55  ;;  %v1523_v57 = vpop.f32.mrf.mxu2  ;;  %v1668_v58 = vpop.f32.mrf.mxu3 }
  0xc6   :  { %2901 = vst.msk [vmem:[%s5358_s3 + $0x2cc] sm:$0xf] %vm2721_vm3, %v2669_v53  ;;  %v1524_v59 = vadd.f32 %v3847_v36, %v1523_v57  ;;  %v1669_v60 = vadd.f32 %v3847_v36, %v1668_v58  ;;  %v1235_v61 = vpop.f32.mrf.mxu0  ;;  %v1380_v62 = vpop.f32.mrf.mxu1 }
  0xc7   :  { %2728 = vst.msk [vmem:[%s5358_s3 + $0x18] sm:$0xf] %vm2721_vm3, %v2496_v54  ;;  %v1236_v63 = vadd.f32 %v3847_v36, %v1235_v61  ;;  %v1381_v0 = vadd.f32 %v3847_v36, %v1380_v62  ;;  %v3591_v61 = vld [vmem:[%s5357_s0 + $0x150] sm:$0xff] }
  0xc8   :  { %2786 = vst.msk [vmem:[%s5358_s3 + $0x100] sm:$0xf] %vm2721_vm3, %v2554_v56  ;;  %vm1919_vm14 = vcmp.ge.f32.partialorder %v1524_v59, 0.0  ;;  %v2150_v1 = vmul.f32 0.01, %v1524_v59  ;;  %vm1977_vm15 = vcmp.ge.f32.partialorder %v1669_v60, 0.0 }
  0xc9   :  { %v2208_v2 = vmul.f32 0.01, %v1669_v60  ;;  %vm1804_vm1 = vcmp.ge.f32.partialorder %v1236_v63, 0.0  ;;  %v2035_v3 = vmul.f32 0.01, %v1236_v63  ;;  %vm1862_vm2 = vcmp.ge.f32.partialorder %v1381_v0, 0.0 }
  0xca   :  { %v2381_v4 = vsel %vm1919_vm14, %v1524_v59, %v2150_v1  ;;  %v2093_v5 = vmul.f32 0.01, %v1381_v0 }
  0xcb   :  { %v2612_v6 = vpack.c.bf16 %v2381_v4, %v2381_v4  ;;  %v2439_v7 = vsel %vm1977_vm15, %v1669_v60, %v2208_v2  ;;  %v2266_v8 = vsel %vm1804_vm1, %v1236_v63, %v2035_v3  ;;  %v3562_v60 = vld [vmem:[%s5357_s0 + $0x68] sm:$0xff]  ;;  %v3620_v2 = vld [vmem:[%s5357_s0 + $0x238] sm:$0xff]  ;;  %v3649_v3 = vld [vmem:[%s5357_s0 + $0x320] sm:$0xff] }
  0xcc   :  { %v2670_v9 = vpack.c.bf16 %v2439_v7, %v2439_v7  ;;  %v2497_v10 = vpack.c.bf16 %v2266_v8, %v2266_v8  ;;  %v2324_v11 = vsel %vm1862_vm2, %v1381_v0, %v2093_v5 }
  0xcd   :  { %2844 = vst.msk [vmem:[%s5358_s3 + $0x1e8] sm:$0xf] %vm2721_vm3, %v2612_v6  ;;  %v2555_v12 = vpack.c.bf16 %v2324_v11, %v2324_v11  ;;  %v1525_v13 = vpop.f32.mrf.mxu2  ;;  %v1670_v14 = vpop.f32.mrf.mxu3 }
  0xce   :  { %2902 = vst.msk [vmem:[%s5358_s3 + $0x2d0] sm:$0xf] %vm2721_vm3, %v2670_v9  ;;  %v1526_v17 = vadd.f32 %v3847_v36, %v1525_v13  ;;  %v1671_v18 = vadd.f32 %v3847_v36, %v1670_v14  ;;  %v1238_v19 = vpop.f32.mrf.mxu0  ;;  %v1383_v20 = vpop.f32.mrf.mxu1 }
  0xcf   :  { %2729 = vst.msk [vmem:[%s5358_s3 + $0x1c] sm:$0xf] %vm2721_vm3, %v2497_v10  ;;  %v1239_v23 = vadd.f32 %v3847_v36, %v1238_v19  ;;  %v1384_v24 = vadd.f32 %v3847_v36, %v1383_v20 }
  0xd0   :  { %2787 = vst.msk [vmem:[%s5358_s3 + $0x104] sm:$0xf] %vm2721_vm3, %v2555_v12  ;;  %vm1920_vm4 = vcmp.ge.f32.partialorder %v1526_v17, 0.0  ;;  %v2151_v25 = vmul.f32 0.01, %v1526_v17  ;;  %vm1978_vm5 = vcmp.ge.f32.partialorder %v1671_v18, 0.0 }
  0xd1   :  { %v2209_v26 = vmul.f32 0.01, %v1671_v18  ;;  %vm1805_vm6 = vcmp.ge.f32.partialorder %v1239_v23, 0.0  ;;  %v2036_v27 = vmul.f32 0.01, %v1239_v23  ;;  %vm1863_vm7 = vcmp.ge.f32.partialorder %v1384_v24, 0.0  ;;  %3445 = vmatmul.msk.bf16.gmra.mxu0 %vm860_vm0, %v3561_v15  ;;  %3474 = vmatmul.msk.bf16.gmra.mxu1 %vm860_vm0, %v3590_v16 }
  0xd2   :  { %v2382_v28 = vsel %vm1920_vm4, %v1526_v17, %v2151_v25  ;;  %v2094_v29 = vmul.f32 0.01, %v1384_v24  ;;  %3503 = vmatmul.msk.bf16.gmra.mxu2 %vm860_vm0, %v3619_v21  ;;  %3532 = vmatmul.msk.bf16.gmra.mxu3 %vm860_vm0, %v3648_v22 }
  0xd3   :  { %v2613_v30 = vpack.c.bf16 %v2382_v28, %v2382_v28  ;;  %v2440_v31 = vsel %vm1978_vm5, %v1671_v18, %v2209_v26  ;;  %v2267_v32 = vsel %vm1805_vm6, %v1239_v23, %v2036_v27 }
  0xd4   :  { %v2671_v33 = vpack.c.bf16 %v2440_v31, %v2440_v31  ;;  %v2498_v34 = vpack.c.bf16 %v2267_v32, %v2267_v32  ;;  %v2325_v35 = vsel %vm1863_vm7, %v1384_v24, %v2094_v29 }
  0xd5   :  { %2845 = vst.msk [vmem:[%s5358_s3 + $0x1ec] sm:$0xf] %vm2721_vm3, %v2613_v30  ;;  %v2556_v37 = vpack.c.bf16 %v2325_v35, %v2325_v35  ;;  %v1528_v38 = vpop.f32.mrf.mxu2  ;;  %v1673_v39 = vpop.f32.mrf.mxu3 }
  0xd6   :  { %2903 = vst.msk [vmem:[%s5358_s3 + $0x2d4] sm:$0xf] %vm2721_vm3, %v2671_v33  ;;  %v1529_v40 = vadd.f32 %v3847_v36, %v1528_v38  ;;  %v1674_v41 = vadd.f32 %v3847_v36, %v1673_v39  ;;  %v1240_v42 = vpop.f32.mrf.mxu0  ;;  %v1385_v43 = vpop.f32.mrf.mxu1 }
  0xd7   :  { %2730 = vst.msk [vmem:[%s5358_s3 + $0x20] sm:$0xf] %vm2721_vm3, %v2498_v34  ;;  %v1241_v44 = vadd.f32 %v3847_v36, %v1240_v42  ;;  %v1386_v45 = vadd.f32 %v3847_v36, %v1385_v43  ;;  %v3592_v42 = vld [vmem:[%s5357_s0 + $0x158] sm:$0xff] }
  0xd8   :  { %2788 = vst.msk [vmem:[%s5358_s3 + $0x108] sm:$0xf] %vm2721_vm3, %v2556_v37  ;;  %vm1921_vm8 = vcmp.ge.f32.partialorder %v1529_v40, 0.0  ;;  %v2152_v46 = vmul.f32 0.01, %v1529_v40  ;;  %vm1979_vm9 = vcmp.ge.f32.partialorder %v1674_v41, 0.0 }
  0xd9   :  { %v2210_v47 = vmul.f32 0.01, %v1674_v41  ;;  %vm1806_vm10 = vcmp.ge.f32.partialorder %v1241_v44, 0.0  ;;  %v2037_v48 = vmul.f32 0.01, %v1241_v44  ;;  %vm1864_vm11 = vcmp.ge.f32.partialorder %v1386_v45, 0.0 }
  0xda   :  { %v2383_v49 = vsel %vm1921_vm8, %v1529_v40, %v2152_v46  ;;  %v2095_v50 = vmul.f32 0.01, %v1386_v45 }
  0xdb   :  { %v2614_v51 = vpack.c.bf16 %v2383_v49, %v2383_v49  ;;  %v2441_v52 = vsel %vm1979_vm9, %v1674_v41, %v2210_v47  ;;  %v2268_v53 = vsel %vm1806_vm10, %v1241_v44, %v2037_v48  ;;  %v3563_v41 = vld [vmem:[%s5357_s0 + $0x70] sm:$0xff]  ;;  %v3621_v47 = vld [vmem:[%s5357_s0 + $0x240] sm:$0xff]  ;;  %v3650_v48 = vld [vmem:[%s5357_s0 + $0x328] sm:$0xff] }
  0xdc   :  { %v2672_v54 = vpack.c.bf16 %v2441_v52, %v2441_v52  ;;  %v2499_v55 = vpack.c.bf16 %v2268_v53, %v2268_v53  ;;  %v2326_v56 = vsel %vm1864_vm11, %v1386_v45, %v2095_v50 }
  0xdd   :  { %2846 = vst.msk [vmem:[%s5358_s3 + $0x1f0] sm:$0xf] %vm2721_vm3, %v2614_v51  ;;  %v2557_v57 = vpack.c.bf16 %v2326_v56, %v2326_v56  ;;  %v1530_v58 = vpop.f32.mrf.mxu2  ;;  %v1675_v59 = vpop.f32.mrf.mxu3 }
  0xde   :  { %2904 = vst.msk [vmem:[%s5358_s3 + $0x2d8] sm:$0xf] %vm2721_vm3, %v2672_v54  ;;  %v1531_v62 = vadd.f32 %v3847_v36, %v1530_v58  ;;  %v1676_v63 = vadd.f32 %v3847_v36, %v1675_v59  ;;  %v1243_v0 = vpop.f32.mrf.mxu0  ;;  %v1388_v1 = vpop.f32.mrf.mxu1 }
  0xdf   :  { %2731 = vst.msk [vmem:[%s5358_s3 + $0x24] sm:$0xf] %vm2721_vm3, %v2499_v55  ;;  %v1244_v4 = vadd.f32 %v3847_v36, %v1243_v0  ;;  %v1389_v5 = vadd.f32 %v3847_v36, %v1388_v1 }
  0xe0   :  { %2789 = vst.msk [vmem:[%s5358_s3 + $0x10c] sm:$0xf] %vm2721_vm3, %v2557_v57  ;;  %vm1922_vm12 = vcmp.ge.f32.partialorder %v1531_v62, 0.0  ;;  %v2153_v6 = vmul.f32 0.01, %v1531_v62  ;;  %vm1980_vm13 = vcmp.ge.f32.partialorder %v1676_v63, 0.0 }
  0xe1   :  { %v2211_v7 = vmul.f32 0.01, %v1676_v63  ;;  %vm1807_vm14 = vcmp.ge.f32.partialorder %v1244_v4, 0.0  ;;  %v2038_v8 = vmul.f32 0.01, %v1244_v4  ;;  %vm1865_vm15 = vcmp.ge.f32.partialorder %v1389_v5, 0.0  ;;  %3446 = vmatmul.msk.bf16.gmra.mxu0 %vm860_vm0, %v3562_v60  ;;  %3475 = vmatmul.msk.bf16.gmra.mxu1 %vm860_vm0, %v3591_v61 }
  0xe2   :  { %v2384_v9 = vsel %vm1922_vm12, %v1531_v62, %v2153_v6  ;;  %v2096_v10 = vmul.f32 0.01, %v1389_v5  ;;  %3504 = vmatmul.msk.bf16.gmra.mxu2 %vm860_vm0, %v3620_v2  ;;  %3533 = vmatmul.msk.bf16.gmra.mxu3 %vm860_vm0, %v3649_v3 }
  0xe3   :  { %v2615_v11 = vpack.c.bf16 %v2384_v9, %v2384_v9  ;;  %v2442_v12 = vsel %vm1980_vm13, %v1676_v63, %v2211_v7  ;;  %v2269_v13 = vsel %vm1807_vm14, %v1244_v4, %v2038_v8 }
  0xe4   :  { %v2673_v14 = vpack.c.bf16 %v2442_v12, %v2442_v12  ;;  %v2500_v15 = vpack.c.bf16 %v2269_v13, %v2269_v13  ;;  %v2327_v16 = vsel %vm1865_vm15, %v1389_v5, %v2096_v10 }
  0xe5   :  { %2847 = vst.msk [vmem:[%s5358_s3 + $0x1f4] sm:$0xf] %vm2721_vm3, %v2615_v11  ;;  %v2558_v17 = vpack.c.bf16 %v2327_v16, %v2327_v16  ;;  %v1533_v18 = vpop.f32.mrf.mxu2  ;;  %v1678_v19 = vpop.f32.mrf.mxu3 }
  0xe6   :  { %2905 = vst.msk [vmem:[%s5358_s3 + $0x2dc] sm:$0xf] %vm2721_vm3, %v2673_v14  ;;  %v1534_v20 = vadd.f32 %v3847_v36, %v1533_v18  ;;  %v1679_v21 = vadd.f32 %v3847_v36, %v1678_v19  ;;  %v1245_v22 = vpop.f32.mrf.mxu0  ;;  %v1390_v23 = vpop.f32.mrf.mxu1 }
  0xe7   :  { %2732 = vst.msk [vmem:[%s5358_s3 + $0x28] sm:$0xf] %vm2721_vm3, %v2500_v15  ;;  %v1246_v24 = vadd.f32 %v3847_v36, %v1245_v22  ;;  %v1391_v25 = vadd.f32 %v3847_v36, %v1390_v23  ;;  %v3593_v22 = vld [vmem:[%s5357_s0 + $0x160] sm:$0xff] }
  0xe8   :  { %2790 = vst.msk [vmem:[%s5358_s3 + $0x110] sm:$0xf] %vm2721_vm3, %v2558_v17  ;;  %vm1923_vm1 = vcmp.ge.f32.partialorder %v1534_v20, 0.0  ;;  %v2154_v26 = vmul.f32 0.01, %v1534_v20  ;;  %vm1981_vm2 = vcmp.ge.f32.partialorder %v1679_v21, 0.0 }
  0xe9   :  { %v2212_v27 = vmul.f32 0.01, %v1679_v21  ;;  %vm1808_vm4 = vcmp.ge.f32.partialorder %v1246_v24, 0.0  ;;  %v2039_v28 = vmul.f32 0.01, %v1246_v24  ;;  %vm1866_vm5 = vcmp.ge.f32.partialorder %v1391_v25, 0.0 }
  0xea   :  { %v2385_v29 = vsel %vm1923_vm1, %v1534_v20, %v2154_v26  ;;  %v2097_v30 = vmul.f32 0.01, %v1391_v25 }
  0xeb   :  { %v2616_v31 = vpack.c.bf16 %v2385_v29, %v2385_v29  ;;  %v2443_v32 = vsel %vm1981_vm2, %v1679_v21, %v2212_v27  ;;  %v2270_v33 = vsel %vm1808_vm4, %v1246_v24, %v2039_v28  ;;  %v3564_v21 = vld [vmem:[%s5357_s0 + $0x78] sm:$0xff]  ;;  %v3622_v27 = vld [vmem:[%s5357_s0 + $0x248] sm:$0xff]  ;;  %v3651_v28 = vld [vmem:[%s5357_s0 + $0x330] sm:$0xff] }
  0xec   :  { %v2674_v34 = vpack.c.bf16 %v2443_v32, %v2443_v32  ;;  %v2501_v35 = vpack.c.bf16 %v2270_v33, %v2270_v33  ;;  %v2328_v37 = vsel %vm1866_vm5, %v1391_v25, %v2097_v30 }
  0xed   :  { %2848 = vst.msk [vmem:[%s5358_s3 + $0x1f8] sm:$0xf] %vm2721_vm3, %v2616_v31  ;;  %v2559_v38 = vpack.c.bf16 %v2328_v37, %v2328_v37  ;;  %v1535_v39 = vpop.f32.mrf.mxu2  ;;  %v1680_v40 = vpop.f32.mrf.mxu3 }
  0xee   :  { %2906 = vst.msk [vmem:[%s5358_s3 + $0x2e0] sm:$0xf] %vm2721_vm3, %v2674_v34  ;;  %v1536_v43 = vadd.f32 %v3847_v36, %v1535_v39  ;;  %v1681_v44 = vadd.f32 %v3847_v36, %v1680_v40  ;;  %v1248_v45 = vpop.f32.mrf.mxu0  ;;  %v1393_v46 = vpop.f32.mrf.mxu1 }
  0xef   :  { %2733 = vst.msk [vmem:[%s5358_s3 + $0x2c] sm:$0xf] %vm2721_vm3, %v2501_v35  ;;  %v1249_v49 = vadd.f32 %v3847_v36, %v1248_v45  ;;  %v1394_v50 = vadd.f32 %v3847_v36, %v1393_v46 }
  0xf0   :  { %2791 = vst.msk [vmem:[%s5358_s3 + $0x114] sm:$0xf] %vm2721_vm3, %v2559_v38  ;;  %vm1924_vm6 = vcmp.ge.f32.partialorder %v1536_v43, 0.0  ;;  %v2155_v51 = vmul.f32 0.01, %v1536_v43  ;;  %vm1982_vm7 = vcmp.ge.f32.partialorder %v1681_v44, 0.0 }
  0xf1   :  { %v2213_v52 = vmul.f32 0.01, %v1681_v44  ;;  %vm1809_vm8 = vcmp.ge.f32.partialorder %v1249_v49, 0.0  ;;  %v2040_v53 = vmul.f32 0.01, %v1249_v49  ;;  %vm1867_vm9 = vcmp.ge.f32.partialorder %v1394_v50, 0.0  ;;  %3447 = vmatmul.msk.bf16.gmra.mxu0 %vm860_vm0, %v3563_v41  ;;  %3476 = vmatmul.msk.bf16.gmra.mxu1 %vm860_vm0, %v3592_v42 }
  0xf2   :  { %v2386_v54 = vsel %vm1924_vm6, %v1536_v43, %v2155_v51  ;;  %v2098_v55 = vmul.f32 0.01, %v1394_v50  ;;  %3505 = vmatmul.msk.bf16.gmra.mxu2 %vm860_vm0, %v3621_v47  ;;  %3534 = vmatmul.msk.bf16.gmra.mxu3 %vm860_vm0, %v3650_v48 }
  0xf3   :  { %v2617_v56 = vpack.c.bf16 %v2386_v54, %v2386_v54  ;;  %v2444_v57 = vsel %vm1982_vm7, %v1681_v44, %v2213_v52  ;;  %v2271_v58 = vsel %vm1809_vm8, %v1249_v49, %v2040_v53 }
  0xf4   :  { %v2675_v59 = vpack.c.bf16 %v2444_v57, %v2444_v57  ;;  %v2502_v60 = vpack.c.bf16 %v2271_v58, %v2271_v58  ;;  %v2329_v61 = vsel %vm1867_vm9, %v1394_v50, %v2098_v55 }
  0xf5   :  { %2849 = vst.msk [vmem:[%s5358_s3 + $0x1fc] sm:$0xf] %vm2721_vm3, %v2617_v56  ;;  %v2560_v62 = vpack.c.bf16 %v2329_v61, %v2329_v61  ;;  %v1538_v63 = vpop.f32.mrf.mxu2  ;;  %v1683_v0 = vpop.f32.mrf.mxu3 }
  0xf6   :  { %2907 = vst.msk [vmem:[%s5358_s3 + $0x2e4] sm:$0xf] %vm2721_vm3, %v2675_v59  ;;  %v1539_v1 = vadd.f32 %v3847_v36, %v1538_v63  ;;  %v1684_v2 = vadd.f32 %v3847_v36, %v1683_v0  ;;  %v1250_v3 = vpop.f32.mrf.mxu0  ;;  %v1395_v4 = vpop.f32.mrf.mxu1 }
  0xf7   :  { %2734 = vst.msk [vmem:[%s5358_s3 + $0x30] sm:$0xf] %vm2721_vm3, %v2502_v60  ;;  %v1251_v5 = vadd.f32 %v3847_v36, %v1250_v3  ;;  %v1396_v6 = vadd.f32 %v3847_v36, %v1395_v4  ;;  %v3594_v3 = vld [vmem:[%s5357_s0 + $0x168] sm:$0xff] }
  0xf8   :  { %2792 = vst.msk [vmem:[%s5358_s3 + $0x118] sm:$0xf] %vm2721_vm3, %v2560_v62  ;;  %vm1925_vm10 = vcmp.ge.f32.partialorder %v1539_v1, 0.0  ;;  %v2156_v7 = vmul.f32 0.01, %v1539_v1  ;;  %vm1983_vm11 = vcmp.ge.f32.partialorder %v1684_v2, 0.0 }
  0xf9   :  { %v2214_v8 = vmul.f32 0.01, %v1684_v2  ;;  %vm1810_vm12 = vcmp.ge.f32.partialorder %v1251_v5, 0.0  ;;  %v2041_v9 = vmul.f32 0.01, %v1251_v5  ;;  %vm1868_vm13 = vcmp.ge.f32.partialorder %v1396_v6, 0.0 }
  0xfa   :  { %v2387_v10 = vsel %vm1925_vm10, %v1539_v1, %v2156_v7  ;;  %v2099_v11 = vmul.f32 0.01, %v1396_v6 }
  0xfb   :  { %v2618_v12 = vpack.c.bf16 %v2387_v10, %v2387_v10  ;;  %v2445_v13 = vsel %vm1983_vm11, %v1684_v2, %v2214_v8  ;;  %v2272_v14 = vsel %vm1810_vm12, %v1251_v5, %v2041_v9  ;;  %v3565_v2 = vld [vmem:[%s5357_s0 + $0x80] sm:$0xff]  ;;  %v3623_v8 = vld [vmem:[%s5357_s0 + $0x250] sm:$0xff]  ;;  %v3652_v9 = vld [vmem:[%s5357_s0 + $0x338] sm:$0xff] }
  0xfc   :  { %v2676_v15 = vpack.c.bf16 %v2445_v13, %v2445_v13  ;;  %v2503_v16 = vpack.c.bf16 %v2272_v14, %v2272_v14  ;;  %v2330_v17 = vsel %vm1868_vm13, %v1396_v6, %v2099_v11 }
  0xfd   :  { %2850 = vst.msk [vmem:[%s5358_s3 + $0x200] sm:$0xf] %vm2721_vm3, %v2618_v12  ;;  %v2561_v18 = vpack.c.bf16 %v2330_v17, %v2330_v17  ;;  %v1540_v19 = vpop.f32.mrf.mxu2  ;;  %v1685_v20 = vpop.f32.mrf.mxu3 }
  0xfe   :  { %2908 = vst.msk [vmem:[%s5358_s3 + $0x2e8] sm:$0xf] %vm2721_vm3, %v2676_v15  ;;  %v1541_v23 = vadd.f32 %v3847_v36, %v1540_v19  ;;  %v1686_v24 = vadd.f32 %v3847_v36, %v1685_v20  ;;  %v1253_v25 = vpop.f32.mrf.mxu0  ;;  %v1398_v26 = vpop.f32.mrf.mxu1 }
  0xff   :  { %2735 = vst.msk [vmem:[%s5358_s3 + $0x34] sm:$0xf] %vm2721_vm3, %v2503_v16  ;;  %v1254_v29 = vadd.f32 %v3847_v36, %v1253_v25  ;;  %v1399_v30 = vadd.f32 %v3847_v36, %v1398_v26  ;;  %v4318_v25 = vld [vmem:[%s5356_s2] ss:$0 sm:$0xff] }
 0x100   :  { %2793 = vst.msk [vmem:[%s5358_s3 + $0x11c] sm:$0xf] %vm2721_vm3, %v2561_v18  ;;  %vm1926_vm14 = vcmp.ge.f32.partialorder %v1541_v23, 0.0  ;;  %v2157_v31 = vmul.f32 0.01, %v1541_v23  ;;  %vm1984_vm15 = vcmp.ge.f32.partialorder %v1686_v24, 0.0 }
 0x101   :  { %v2215_v32 = vmul.f32 0.01, %v1686_v24  ;;  %vm1811_vm1 = vcmp.ge.f32.partialorder %v1254_v29, 0.0  ;;  %v2042_v33 = vmul.f32 0.01, %v1254_v29  ;;  %vm1869_vm2 = vcmp.ge.f32.partialorder %v1399_v30, 0.0  ;;  %3448 = vmatmul.msk.bf16.gmra.mxu0 %vm860_vm0, %v3564_v21  ;;  %3477 = vmatmul.msk.bf16.gmra.mxu1 %vm860_vm0, %v3593_v22 }
 0x102   :  { %v2388_v34 = vsel %vm1926_vm14, %v1541_v23, %v2157_v31  ;;  %v2100_v35 = vmul.f32 0.01, %v1399_v30  ;;  %3506 = vmatmul.msk.bf16.gmra.mxu2 %vm860_vm0, %v3622_v27  ;;  %3535 = vmatmul.msk.bf16.gmra.mxu3 %vm860_vm0, %v3651_v28 }
 0x103   :  { %v2619_v37 = vpack.c.bf16 %v2388_v34, %v2388_v34  ;;  %v2446_v38 = vsel %vm1984_vm15, %v1686_v24, %v2215_v32  ;;  %v2273_v39 = vsel %vm1811_vm1, %v1254_v29, %v2042_v33 }
 0x104   :  { %v2677_v40 = vpack.c.bf16 %v2446_v38, %v2446_v38  ;;  %v2504_v41 = vpack.c.bf16 %v2273_v39, %v2273_v39  ;;  %v2331_v42 = vsel %vm1869_vm2, %v1399_v30, %v2100_v35 }
 0x105   :  { %2851 = vst.msk [vmem:[%s5358_s3 + $0x204] sm:$0xf] %vm2721_vm3, %v2619_v37  ;;  %v2562_v43 = vpack.c.bf16 %v2331_v42, %v2331_v42  ;;  %v1543_v44 = vpop.f32.mrf.mxu2  ;;  %v1688_v45 = vpop.f32.mrf.mxu3 }
 0x106   :  { %2909 = vst.msk [vmem:[%s5358_s3 + $0x2ec] sm:$0xf] %vm2721_vm3, %v2677_v40  ;;  %v1544_v46 = vadd.f32 %v3847_v36, %v1543_v44  ;;  %v1689_v47 = vadd.f32 %v3847_v36, %v1688_v45  ;;  %v1255_v48 = vpop.f32.mrf.mxu0  ;;  %v1400_v49 = vpop.f32.mrf.mxu1 }
 0x107   :  { %2736 = vst.msk [vmem:[%s5358_s3 + $0x38] sm:$0xf] %vm2721_vm3, %v2504_v41  ;;  %v1256_v50 = vadd.f32 %v3847_v36, %v1255_v48  ;;  %v1401_v51 = vadd.f32 %v3847_v36, %v1400_v49  ;;  %v3595_v48 = vld [vmem:[%s5357_s0 + $0x170] sm:$0xff] }
 0x108   :  { %2794 = vst.msk [vmem:[%s5358_s3 + $0x120] sm:$0xf] %vm2721_vm3, %v2562_v43  ;;  %vm1927_vm4 = vcmp.ge.f32.partialorder %v1544_v46, 0.0  ;;  %v2158_v52 = vmul.f32 0.01, %v1544_v46  ;;  %vm1985_vm5 = vcmp.ge.f32.partialorder %v1689_v47, 0.0 }
 0x109   :  { %v2216_v53 = vmul.f32 0.01, %v1689_v47  ;;  %vm1812_vm6 = vcmp.ge.f32.partialorder %v1256_v50, 0.0  ;;  %v2043_v54 = vmul.f32 0.01, %v1256_v50  ;;  %vm1870_vm7 = vcmp.ge.f32.partialorder %v1401_v51, 0.0 }
 0x10a   :  { %v2389_v55 = vsel %vm1927_vm4, %v1544_v46, %v2158_v52  ;;  %v2101_v56 = vmul.f32 0.01, %v1401_v51 }
 0x10b   :  { %v2620_v57 = vpack.c.bf16 %v2389_v55, %v2389_v55  ;;  %v2447_v58 = vsel %vm1985_vm5, %v1689_v47, %v2216_v53  ;;  %v2274_v59 = vsel %vm1812_vm6, %v1256_v50, %v2043_v54  ;;  %v3566_v47 = vld [vmem:[%s5357_s0 + $0x88] sm:$0xff]  ;;  %v3624_v53 = vld [vmem:[%s5357_s0 + $0x258] sm:$0xff]  ;;  %v3653_v54 = vld [vmem:[%s5357_s0 + $0x340] sm:$0xff] }
 0x10c   :  { %v2678_v60 = vpack.c.bf16 %v2447_v58, %v2447_v58  ;;  %v2505_v61 = vpack.c.bf16 %v2274_v59, %v2274_v59  ;;  %v2332_v62 = vsel %vm1870_vm7, %v1401_v51, %v2101_v56 }
 0x10d   :  { %2852 = vst.msk [vmem:[%s5358_s3 + $0x208] sm:$0xf] %vm2721_vm3, %v2620_v57  ;;  %v2563_v63 = vpack.c.bf16 %v2332_v62, %v2332_v62  ;;  %v1545_v0 = vpop.f32.mrf.mxu2  ;;  %v1690_v1 = vpop.f32.mrf.mxu3 }
 0x10e   :  { %2910 = vst.msk [vmem:[%s5358_s3 + $0x2f0] sm:$0xf] %vm2721_vm3, %v2678_v60  ;;  %v1546_v4 = vadd.f32 %v3847_v36, %v1545_v0  ;;  %v1691_v5 = vadd.f32 %v3847_v36, %v1690_v1  ;;  %v1258_v6 = vpop.f32.mrf.mxu0  ;;  %v1403_v7 = vpop.f32.mrf.mxu1 }
 0x10f   :  { %2737 = vst.msk [vmem:[%s5358_s3 + $0x3c] sm:$0xf] %vm2721_vm3, %v2505_v61  ;;  %v1259_v10 = vadd.f32 %v3847_v36, %v1258_v6  ;;  %v1404_v11 = vadd.f32 %v3847_v36, %v1403_v7 }
 0x110   :  { %2795 = vst.msk [vmem:[%s5358_s3 + $0x124] sm:$0xf] %vm2721_vm3, %v2563_v63  ;;  %vm1928_vm8 = vcmp.ge.f32.partialorder %v1546_v4, 0.0  ;;  %v2159_v12 = vmul.f32 0.01, %v1546_v4  ;;  %vm1986_vm9 = vcmp.ge.f32.partialorder %v1691_v5, 0.0 }
 0x111   :  { %v2217_v13 = vmul.f32 0.01, %v1691_v5  ;;  %vm1813_vm10 = vcmp.ge.f32.partialorder %v1259_v10, 0.0  ;;  %v2044_v14 = vmul.f32 0.01, %v1259_v10  ;;  %vm1871_vm11 = vcmp.ge.f32.partialorder %v1404_v11, 0.0  ;;  %3449 = vmatmul.msk.bf16.gmra.mxu0 %vm860_vm0, %v3565_v2  ;;  %3478 = vmatmul.msk.bf16.gmra.mxu1 %vm860_vm0, %v3594_v3 }
 0x112   :  { %v2390_v15 = vsel %vm1928_vm8, %v1546_v4, %v2159_v12  ;;  %v2102_v16 = vmul.f32 0.01, %v1404_v11  ;;  %3507 = vmatmul.msk.bf16.gmra.mxu2 %vm860_vm0, %v3623_v8  ;;  %3536 = vmatmul.msk.bf16.gmra.mxu3 %vm860_vm0, %v3652_v9 }
 0x113   :  { %v2621_v36 = vpack.c.bf16 %v2390_v15, %v2390_v15  ;;  %v2448_v17 = vsel %vm1986_vm9, %v1691_v5, %v2217_v13  ;;  %v2275_v18 = vsel %vm1813_vm10, %v1259_v10, %v2044_v14 }
 0x114   :  { %v2679_v19 = vpack.c.bf16 %v2448_v17, %v2448_v17  ;;  %v2506_v20 = vpack.c.bf16 %v2275_v18, %v2275_v18  ;;  %v2333_v21 = vsel %vm1871_vm11, %v1404_v11, %v2102_v16 }
 0x115   :  { %2853 = vst.msk [vmem:[%s5358_s3 + $0x20c] sm:$0xf] %vm2721_vm3, %v2621_v36  ;;  %v2564_v22 = vpack.c.bf16 %v2333_v21, %v2333_v21  ;;  %v1548_v23 = vpop.f32.mrf.mxu2  ;;  %v1693_v24 = vpop.f32.mrf.mxu3 }
 0x116   :  { %2911 = vst.msk [vmem:[%s5358_s3 + $0x2f4] sm:$0xf] %vm2721_vm3, %v2679_v19  ;;  %v1549_v26 = vadd.f32 %v4318_v25, %v1548_v23  ;;  %v1694_v27 = vadd.f32 %v4318_v25, %v1693_v24  ;;  %v1260_v28 = vpop.f32.mrf.mxu0  ;;  %v1405_v29 = vpop.f32.mrf.mxu1 }
 0x117   :  { %2738 = vst.msk [vmem:[%s5358_s3 + $0x40] sm:$0xf] %vm2721_vm3, %v2506_v20  ;;  %v1261_v30 = vadd.f32 %v4318_v25, %v1260_v28  ;;  %v1406_v31 = vadd.f32 %v4318_v25, %v1405_v29  ;;  %v3596_v28 = vld [vmem:[%s5357_s0 + $0x178] sm:$0xff] }
 0x118   :  { %2796 = vst.msk [vmem:[%s5358_s3 + $0x128] sm:$0xf] %vm2721_vm3, %v2564_v22  ;;  %vm1929_vm12 = vcmp.ge.f32.partialorder %v1549_v26, 0.0  ;;  %v2160_v32 = vmul.f32 0.01, %v1549_v26  ;;  %vm1987_vm13 = vcmp.ge.f32.partialorder %v1694_v27, 0.0 }
 0x119   :  { %v2218_v33 = vmul.f32 0.01, %v1694_v27  ;;  %vm1814_vm14 = vcmp.ge.f32.partialorder %v1261_v30, 0.0  ;;  %v2045_v34 = vmul.f32 0.01, %v1261_v30  ;;  %vm1872_vm15 = vcmp.ge.f32.partialorder %v1406_v31, 0.0 }
 0x11a   :  { %v2391_v35 = vsel %vm1929_vm12, %v1549_v26, %v2160_v32  ;;  %v2103_v37 = vmul.f32 0.01, %v1406_v31 }
 0x11b   :  { %v2622_v38 = vpack.c.bf16 %v2391_v35, %v2391_v35  ;;  %v2449_v39 = vsel %vm1987_vm13, %v1694_v27, %v2218_v33  ;;  %v2276_v40 = vsel %vm1814_vm14, %v1261_v30, %v2045_v34  ;;  %v3567_v27 = vld [vmem:[%s5357_s0 + $0x90] sm:$0xff]  ;;  %v3625_v33 = vld [vmem:[%s5357_s0 + $0x260] sm:$0xff]  ;;  %v3654_v34 = vld [vmem:[%s5357_s0 + $0x348] sm:$0xff] }
 0x11c   :  { %v2680_v41 = vpack.c.bf16 %v2449_v39, %v2449_v39  ;;  %v2507_v42 = vpack.c.bf16 %v2276_v40, %v2276_v40  ;;  %v2334_v43 = vsel %vm1872_vm15, %v1406_v31, %v2103_v37 }
 0x11d   :  { %2854 = vst.msk [vmem:[%s5358_s3 + $0x210] sm:$0xf] %vm2721_vm3, %v2622_v38  ;;  %v2565_v44 = vpack.c.bf16 %v2334_v43, %v2334_v43  ;;  %v1550_v45 = vpop.f32.mrf.mxu2  ;;  %v1695_v46 = vpop.f32.mrf.mxu3 }
 0x11e   :  { %2912 = vst.msk [vmem:[%s5358_s3 + $0x2f8] sm:$0xf] %vm2721_vm3, %v2680_v41  ;;  %v1551_v49 = vadd.f32 %v4318_v25, %v1550_v45  ;;  %v1696_v50 = vadd.f32 %v4318_v25, %v1695_v46  ;;  %v1263_v51 = vpop.f32.mrf.mxu0  ;;  %v1408_v52 = vpop.f32.mrf.mxu1 }
 0x11f   :  { %2739 = vst.msk [vmem:[%s5358_s3 + $0x44] sm:$0xf] %vm2721_vm3, %v2507_v42  ;;  %v1264_v55 = vadd.f32 %v4318_v25, %v1263_v51  ;;  %v1409_v56 = vadd.f32 %v4318_v25, %v1408_v52 }
 0x120   :  { %2797 = vst.msk [vmem:[%s5358_s3 + $0x12c] sm:$0xf] %vm2721_vm3, %v2565_v44  ;;  %vm1930_vm1 = vcmp.ge.f32.partialorder %v1551_v49, 0.0  ;;  %v2161_v57 = vmul.f32 0.01, %v1551_v49  ;;  %vm1988_vm2 = vcmp.ge.f32.partialorder %v1696_v50, 0.0 }
 0x121   :  { %v2219_v58 = vmul.f32 0.01, %v1696_v50  ;;  %vm1815_vm4 = vcmp.ge.f32.partialorder %v1264_v55, 0.0  ;;  %v2046_v59 = vmul.f32 0.01, %v1264_v55  ;;  %vm1873_vm5 = vcmp.ge.f32.partialorder %v1409_v56, 0.0  ;;  %3450 = vmatmul.msk.bf16.gmra.mxu0 %vm860_vm0, %v3566_v47  ;;  %3479 = vmatmul.msk.bf16.gmra.mxu1 %vm860_vm0, %v3595_v48 }
 0x122   :  { %v2392_v60 = vsel %vm1930_vm1, %v1551_v49, %v2161_v57  ;;  %v2104_v61 = vmul.f32 0.01, %v1409_v56  ;;  %3508 = vmatmul.msk.bf16.gmra.mxu2 %vm860_vm0, %v3624_v53  ;;  %3537 = vmatmul.msk.bf16.gmra.mxu3 %vm860_vm0, %v3653_v54 }
 0x123   :  { %v2623_v62 = vpack.c.bf16 %v2392_v60, %v2392_v60  ;;  %v2450_v63 = vsel %vm1988_vm2, %v1696_v50, %v2219_v58  ;;  %v2277_v0 = vsel %vm1815_vm4, %v1264_v55, %v2046_v59 }
 0x124   :  { %v2681_v1 = vpack.c.bf16 %v2450_v63, %v2450_v63  ;;  %v2508_v2 = vpack.c.bf16 %v2277_v0, %v2277_v0  ;;  %v2335_v3 = vsel %vm1873_vm5, %v1409_v56, %v2104_v61 }
 0x125   :  { %2855 = vst.msk [vmem:[%s5358_s3 + $0x214] sm:$0xf] %vm2721_vm3, %v2623_v62  ;;  %v2566_v4 = vpack.c.bf16 %v2335_v3, %v2335_v3  ;;  %v1553_v5 = vpop.f32.mrf.mxu2  ;;  %v1698_v6 = vpop.f32.mrf.mxu3 }
 0x126   :  { %2913 = vst.msk [vmem:[%s5358_s3 + $0x2fc] sm:$0xf] %vm2721_vm3, %v2681_v1  ;;  %v1554_v7 = vadd.f32 %v4318_v25, %v1553_v5  ;;  %v1699_v8 = vadd.f32 %v4318_v25, %v1698_v6  ;;  %v1265_v9 = vpop.f32.mrf.mxu0  ;;  %v1410_v10 = vpop.f32.mrf.mxu1 }
 0x127   :  { %2740 = vst.msk [vmem:[%s5358_s3 + $0x48] sm:$0xf] %vm2721_vm3, %v2508_v2  ;;  %v1266_v11 = vadd.f32 %v4318_v25, %v1265_v9  ;;  %v1411_v12 = vadd.f32 %v4318_v25, %v1410_v10  ;;  %v3597_v9 = vld [vmem:[%s5357_s0 + $0x180] sm:$0xff] }
 0x128   :  { %2798 = vst.msk [vmem:[%s5358_s3 + $0x130] sm:$0xf] %vm2721_vm3, %v2566_v4  ;;  %vm1931_vm6 = vcmp.ge.f32.partialorder %v1554_v7, 0.0  ;;  %v2162_v13 = vmul.f32 0.01, %v1554_v7  ;;  %vm1989_vm7 = vcmp.ge.f32.partialorder %v1699_v8, 0.0 }
 0x129   :  { %v2220_v14 = vmul.f32 0.01, %v1699_v8  ;;  %vm1816_vm8 = vcmp.ge.f32.partialorder %v1266_v11, 0.0  ;;  %v2047_v15 = vmul.f32 0.01, %v1266_v11  ;;  %vm1874_vm9 = vcmp.ge.f32.partialorder %v1411_v12, 0.0 }
 0x12a   :  { %v2393_v16 = vsel %vm1931_vm6, %v1554_v7, %v2162_v13  ;;  %v2105_v36 = vmul.f32 0.01, %v1411_v12 }
 0x12b   :  { %v2624_v17 = vpack.c.bf16 %v2393_v16, %v2393_v16  ;;  %v2451_v18 = vsel %vm1989_vm7, %v1699_v8, %v2220_v14  ;;  %v2278_v19 = vsel %vm1816_vm8, %v1266_v11, %v2047_v15  ;;  %v3568_v8 = vld [vmem:[%s5357_s0 + $0x98] sm:$0xff]  ;;  %v3626_v14 = vld [vmem:[%s5357_s0 + $0x268] sm:$0xff]  ;;  %v3655_v15 = vld [vmem:[%s5357_s0 + $0x350] sm:$0xff] }
 0x12c   :  { %v2682_v20 = vpack.c.bf16 %v2451_v18, %v2451_v18  ;;  %v2509_v21 = vpack.c.bf16 %v2278_v19, %v2278_v19  ;;  %v2336_v22 = vsel %vm1874_vm9, %v1411_v12, %v2105_v36 }
 0x12d   :  { %2856 = vst.msk [vmem:[%s5358_s3 + $0x218] sm:$0xf] %vm2721_vm3, %v2624_v17  ;;  %v2567_v23 = vpack.c.bf16 %v2336_v22, %v2336_v22  ;;  %v1555_v24 = vpop.f32.mrf.mxu2  ;;  %v1700_v26 = vpop.f32.mrf.mxu3 }
 0x12e   :  { %2914 = vst.msk [vmem:[%s5358_s3 + $0x300] sm:$0xf] %vm2721_vm3, %v2682_v20  ;;  %v1556_v29 = vadd.f32 %v4318_v25, %v1555_v24  ;;  %v1701_v30 = vadd.f32 %v4318_v25, %v1700_v26  ;;  %v1268_v31 = vpop.f32.mrf.mxu0  ;;  %v1413_v32 = vpop.f32.mrf.mxu1 }
 0x12f   :  { %2741 = vst.msk [vmem:[%s5358_s3 + $0x4c] sm:$0xf] %vm2721_vm3, %v2509_v21  ;;  %v1269_v35 = vadd.f32 %v4318_v25, %v1268_v31  ;;  %v1414_v37 = vadd.f32 %v4318_v25, %v1413_v32 }
 0x130   :  { %2799 = vst.msk [vmem:[%s5358_s3 + $0x134] sm:$0xf] %vm2721_vm3, %v2567_v23  ;;  %vm1932_vm10 = vcmp.ge.f32.partialorder %v1556_v29, 0.0  ;;  %v2163_v38 = vmul.f32 0.01, %v1556_v29  ;;  %vm1990_vm11 = vcmp.ge.f32.partialorder %v1701_v30, 0.0 }
 0x131   :  { %v2221_v39 = vmul.f32 0.01, %v1701_v30  ;;  %vm1817_vm12 = vcmp.ge.f32.partialorder %v1269_v35, 0.0  ;;  %v2048_v40 = vmul.f32 0.01, %v1269_v35  ;;  %vm1875_vm13 = vcmp.ge.f32.partialorder %v1414_v37, 0.0  ;;  %3451 = vmatmul.msk.bf16.gmra.mxu0 %vm860_vm0, %v3567_v27  ;;  %3480 = vmatmul.msk.bf16.gmra.mxu1 %vm860_vm0, %v3596_v28 }
 0x132   :  { %v2394_v41 = vsel %vm1932_vm10, %v1556_v29, %v2163_v38  ;;  %v2106_v42 = vmul.f32 0.01, %v1414_v37  ;;  %3509 = vmatmul.msk.bf16.gmra.mxu2 %vm860_vm0, %v3625_v33  ;;  %3538 = vmatmul.msk.bf16.gmra.mxu3 %vm860_vm0, %v3654_v34 }
 0x133   :  { %v2625_v43 = vpack.c.bf16 %v2394_v41, %v2394_v41  ;;  %v2452_v44 = vsel %vm1990_vm11, %v1701_v30, %v2221_v39  ;;  %v2279_v45 = vsel %vm1817_vm12, %v1269_v35, %v2048_v40 }
 0x134   :  { %v2683_v46 = vpack.c.bf16 %v2452_v44, %v2452_v44  ;;  %v2510_v47 = vpack.c.bf16 %v2279_v45, %v2279_v45  ;;  %v2337_v48 = vsel %vm1875_vm13, %v1414_v37, %v2106_v42 }
 0x135   :  { %2857 = vst.msk [vmem:[%s5358_s3 + $0x21c] sm:$0xf] %vm2721_vm3, %v2625_v43  ;;  %v2568_v49 = vpack.c.bf16 %v2337_v48, %v2337_v48  ;;  %v1558_v50 = vpop.f32.mrf.mxu2  ;;  %v1703_v51 = vpop.f32.mrf.mxu3 }
 0x136   :  { %2915 = vst.msk [vmem:[%s5358_s3 + $0x304] sm:$0xf] %vm2721_vm3, %v2683_v46  ;;  %v1559_v52 = vadd.f32 %v4318_v25, %v1558_v50  ;;  %v1704_v53 = vadd.f32 %v4318_v25, %v1703_v51  ;;  %v1270_v54 = vpop.f32.mrf.mxu0  ;;  %v1415_v55 = vpop.f32.mrf.mxu1 }
 0x137   :  { %2742 = vst.msk [vmem:[%s5358_s3 + $0x50] sm:$0xf] %vm2721_vm3, %v2510_v47  ;;  %v1271_v56 = vadd.f32 %v4318_v25, %v1270_v54  ;;  %v1416_v57 = vadd.f32 %v4318_v25, %v1415_v55  ;;  %v3598_v54 = vld [vmem:[%s5357_s0 + $0x188] sm:$0xff] }
 0x138   :  { %2800 = vst.msk [vmem:[%s5358_s3 + $0x138] sm:$0xf] %vm2721_vm3, %v2568_v49  ;;  %vm1933_vm14 = vcmp.ge.f32.partialorder %v1559_v52, 0.0  ;;  %v2164_v58 = vmul.f32 0.01, %v1559_v52  ;;  %vm1991_vm15 = vcmp.ge.f32.partialorder %v1704_v53, 0.0 }
 0x139   :  { %v2222_v59 = vmul.f32 0.01, %v1704_v53  ;;  %vm1818_vm1 = vcmp.ge.f32.partialorder %v1271_v56, 0.0  ;;  %v2049_v60 = vmul.f32 0.01, %v1271_v56  ;;  %vm1876_vm2 = vcmp.ge.f32.partialorder %v1416_v57, 0.0 }
 0x13a   :  { %v2395_v61 = vsel %vm1933_vm14, %v1559_v52, %v2164_v58  ;;  %v2107_v62 = vmul.f32 0.01, %v1416_v57 }
 0x13b   :  { %v2626_v63 = vpack.c.bf16 %v2395_v61, %v2395_v61  ;;  %v2453_v0 = vsel %vm1991_vm15, %v1704_v53, %v2222_v59  ;;  %v2280_v1 = vsel %vm1818_vm1, %v1271_v56, %v2049_v60  ;;  %v3569_v53 = vld [vmem:[%s5357_s0 + $0xa0] sm:$0xff]  ;;  %v3627_v59 = vld [vmem:[%s5357_s0 + $0x270] sm:$0xff]  ;;  %v3656_v60 = vld [vmem:[%s5357_s0 + $0x358] sm:$0xff] }
 0x13c   :  { %v2684_v2 = vpack.c.bf16 %v2453_v0, %v2453_v0  ;;  %v2511_v3 = vpack.c.bf16 %v2280_v1, %v2280_v1  ;;  %v2338_v4 = vsel %vm1876_vm2, %v1416_v57, %v2107_v62 }
 0x13d   :  { %2858 = vst.msk [vmem:[%s5358_s3 + $0x220] sm:$0xf] %vm2721_vm3, %v2626_v63  ;;  %v2569_v5 = vpack.c.bf16 %v2338_v4, %v2338_v4  ;;  %v1560_v6 = vpop.f32.mrf.mxu2  ;;  %v1705_v7 = vpop.f32.mrf.mxu3 }
 0x13e   :  { %2916 = vst.msk [vmem:[%s5358_s3 + $0x308] sm:$0xf] %vm2721_vm3, %v2684_v2  ;;  %v1561_v10 = vadd.f32 %v4318_v25, %v1560_v6  ;;  %v1706_v11 = vadd.f32 %v4318_v25, %v1705_v7  ;;  %v1273_v12 = vpop.f32.mrf.mxu0  ;;  %v1418_v13 = vpop.f32.mrf.mxu1 }
 0x13f   :  { %2743 = vst.msk [vmem:[%s5358_s3 + $0x54] sm:$0xf] %vm2721_vm3, %v2511_v3  ;;  %v1274_v16 = vadd.f32 %v4318_v25, %v1273_v12  ;;  %v1419_v36 = vadd.f32 %v4318_v25, %v1418_v13 }
 0x140   :  { %2801 = vst.msk [vmem:[%s5358_s3 + $0x13c] sm:$0xf] %vm2721_vm3, %v2569_v5  ;;  %vm1934_vm4 = vcmp.ge.f32.partialorder %v1561_v10, 0.0  ;;  %v2165_v17 = vmul.f32 0.01, %v1561_v10  ;;  %vm1992_vm5 = vcmp.ge.f32.partialorder %v1706_v11, 0.0 }
 0x141   :  { %v2223_v18 = vmul.f32 0.01, %v1706_v11  ;;  %vm1819_vm6 = vcmp.ge.f32.partialorder %v1274_v16, 0.0  ;;  %v2050_v19 = vmul.f32 0.01, %v1274_v16  ;;  %vm1877_vm7 = vcmp.ge.f32.partialorder %v1419_v36, 0.0  ;;  %3452 = vmatmul.msk.bf16.gmra.mxu0 %vm860_vm0, %v3568_v8  ;;  %3481 = vmatmul.msk.bf16.gmra.mxu1 %vm860_vm0, %v3597_v9 }
 0x142   :  { %v2396_v20 = vsel %vm1934_vm4, %v1561_v10, %v2165_v17  ;;  %v2108_v21 = vmul.f32 0.01, %v1419_v36  ;;  %3510 = vmatmul.msk.bf16.gmra.mxu2 %vm860_vm0, %v3626_v14  ;;  %3539 = vmatmul.msk.bf16.gmra.mxu3 %vm860_vm0, %v3655_v15 }
 0x143   :  { %v2627_v22 = vpack.c.bf16 %v2396_v20, %v2396_v20  ;;  %v2454_v23 = vsel %vm1992_vm5, %v1706_v11, %v2223_v18  ;;  %v2281_v24 = vsel %vm1819_vm6, %v1274_v16, %v2050_v19 }
 0x144   :  { %v2685_v26 = vpack.c.bf16 %v2454_v23, %v2454_v23  ;;  %v2512_v27 = vpack.c.bf16 %v2281_v24, %v2281_v24  ;;  %v2339_v28 = vsel %vm1877_vm7, %v1419_v36, %v2108_v21 }
 0x145   :  { %2859 = vst.msk [vmem:[%s5358_s3 + $0x224] sm:$0xf] %vm2721_vm3, %v2627_v22  ;;  %v2570_v29 = vpack.c.bf16 %v2339_v28, %v2339_v28  ;;  %v1563_v30 = vpop.f32.mrf.mxu2  ;;  %v1708_v31 = vpop.f32.mrf.mxu3 }
 0x146   :  { %2917 = vst.msk [vmem:[%s5358_s3 + $0x30c] sm:$0xf] %vm2721_vm3, %v2685_v26  ;;  %v1564_v32 = vadd.f32 %v4318_v25, %v1563_v30  ;;  %v1709_v33 = vadd.f32 %v4318_v25, %v1708_v31  ;;  %v1275_v34 = vpop.f32.mrf.mxu0  ;;  %v1420_v35 = vpop.f32.mrf.mxu1 }
 0x147   :  { %2744 = vst.msk [vmem:[%s5358_s3 + $0x58] sm:$0xf] %vm2721_vm3, %v2512_v27  ;;  %v1276_v37 = vadd.f32 %v4318_v25, %v1275_v34  ;;  %v1421_v38 = vadd.f32 %v4318_v25, %v1420_v35  ;;  %v3599_v34 = vld [vmem:[%s5357_s0 + $0x190] sm:$0xff] }
 0x148   :  { %2802 = vst.msk [vmem:[%s5358_s3 + $0x140] sm:$0xf] %vm2721_vm3, %v2570_v29  ;;  %vm1935_vm8 = vcmp.ge.f32.partialorder %v1564_v32, 0.0  ;;  %v2166_v39 = vmul.f32 0.01, %v1564_v32  ;;  %vm1993_vm9 = vcmp.ge.f32.partialorder %v1709_v33, 0.0 }
 0x149   :  { %v2224_v40 = vmul.f32 0.01, %v1709_v33  ;;  %vm1820_vm10 = vcmp.ge.f32.partialorder %v1276_v37, 0.0  ;;  %v2051_v41 = vmul.f32 0.01, %v1276_v37  ;;  %vm1878_vm11 = vcmp.ge.f32.partialorder %v1421_v38, 0.0 }
 0x14a   :  { %v2397_v42 = vsel %vm1935_vm8, %v1564_v32, %v2166_v39  ;;  %v2109_v43 = vmul.f32 0.01, %v1421_v38 }
 0x14b   :  { %v2628_v44 = vpack.c.bf16 %v2397_v42, %v2397_v42  ;;  %v2455_v45 = vsel %vm1993_vm9, %v1709_v33, %v2224_v40  ;;  %v2282_v46 = vsel %vm1820_vm10, %v1276_v37, %v2051_v41  ;;  %v3570_v33 = vld [vmem:[%s5357_s0 + $0xa8] sm:$0xff]  ;;  %v3628_v40 = vld [vmem:[%s5357_s0 + $0x278] sm:$0xff]  ;;  %v3657_v41 = vld [vmem:[%s5357_s0 + $0x360] sm:$0xff] }
 0x14c   :  { %v2686_v47 = vpack.c.bf16 %v2455_v45, %v2455_v45  ;;  %v2513_v48 = vpack.c.bf16 %v2282_v46, %v2282_v46  ;;  %v2340_v49 = vsel %vm1878_vm11, %v1421_v38, %v2109_v43 }
 0x14d   :  { %2860 = vst.msk [vmem:[%s5358_s3 + $0x228] sm:$0xf] %vm2721_vm3, %v2628_v44  ;;  %v2571_v50 = vpack.c.bf16 %v2340_v49, %v2340_v49  ;;  %v1565_v51 = vpop.f32.mrf.mxu2  ;;  %v1710_v52 = vpop.f32.mrf.mxu3 }
 0x14e   :  { %2918 = vst.msk [vmem:[%s5358_s3 + $0x310] sm:$0xf] %vm2721_vm3, %v2686_v47  ;;  %v1566_v55 = vadd.f32 %v4318_v25, %v1565_v51  ;;  %v1711_v56 = vadd.f32 %v4318_v25, %v1710_v52  ;;  %v1278_v57 = vpop.f32.mrf.mxu0  ;;  %v1423_v58 = vpop.f32.mrf.mxu1 }
 0x14f   :  { %2745 = vst.msk [vmem:[%s5358_s3 + $0x5c] sm:$0xf] %vm2721_vm3, %v2513_v48  ;;  %v1279_v61 = vadd.f32 %v4318_v25, %v1278_v57  ;;  %v1424_v62 = vadd.f32 %v4318_v25, %v1423_v58 }
 0x150   :  { %2803 = vst.msk [vmem:[%s5358_s3 + $0x144] sm:$0xf] %vm2721_vm3, %v2571_v50  ;;  %vm1936_vm12 = vcmp.ge.f32.partialorder %v1566_v55, 0.0  ;;  %v2167_v63 = vmul.f32 0.01, %v1566_v55  ;;  %vm1994_vm13 = vcmp.ge.f32.partialorder %v1711_v56, 0.0 }
 0x151   :  { %v2225_v0 = vmul.f32 0.01, %v1711_v56  ;;  %vm1821_vm14 = vcmp.ge.f32.partialorder %v1279_v61, 0.0  ;;  %v2052_v1 = vmul.f32 0.01, %v1279_v61  ;;  %vm1879_vm15 = vcmp.ge.f32.partialorder %v1424_v62, 0.0  ;;  %3453 = vmatmul.msk.bf16.gmra.mxu0 %vm860_vm0, %v3569_v53  ;;  %3482 = vmatmul.msk.bf16.gmra.mxu1 %vm860_vm0, %v3598_v54 }
 0x152   :  { %v2398_v2 = vsel %vm1936_vm12, %v1566_v55, %v2167_v63  ;;  %v2110_v3 = vmul.f32 0.01, %v1424_v62  ;;  %3511 = vmatmul.msk.bf16.gmra.mxu2 %vm860_vm0, %v3627_v59  ;;  %3540 = vmatmul.msk.bf16.gmra.mxu3 %vm860_vm0, %v3656_v60 }
 0x153   :  { %v2629_v4 = vpack.c.bf16 %v2398_v2, %v2398_v2  ;;  %v2456_v5 = vsel %vm1994_vm13, %v1711_v56, %v2225_v0  ;;  %v2283_v6 = vsel %vm1821_vm14, %v1279_v61, %v2052_v1 }
 0x154   :  { %v2687_v7 = vpack.c.bf16 %v2456_v5, %v2456_v5  ;;  %v2514_v8 = vpack.c.bf16 %v2283_v6, %v2283_v6  ;;  %v2341_v9 = vsel %vm1879_vm15, %v1424_v62, %v2110_v3 }
 0x155   :  { %2861 = vst.msk [vmem:[%s5358_s3 + $0x22c] sm:$0xf] %vm2721_vm3, %v2629_v4  ;;  %v2572_v10 = vpack.c.bf16 %v2341_v9, %v2341_v9  ;;  %v1568_v11 = vpop.f32.mrf.mxu2  ;;  %v1713_v12 = vpop.f32.mrf.mxu3 }
 0x156   :  { %2919 = vst.msk [vmem:[%s5358_s3 + $0x314] sm:$0xf] %vm2721_vm3, %v2687_v7  ;;  %v1569_v13 = vadd.f32 %v4318_v25, %v1568_v11  ;;  %v1714_v14 = vadd.f32 %v4318_v25, %v1713_v12  ;;  %v1280_v15 = vpop.f32.mrf.mxu0  ;;  %v1425_v16 = vpop.f32.mrf.mxu1 }
 0x157   :  { %2746 = vst.msk [vmem:[%s5358_s3 + $0x60] sm:$0xf] %vm2721_vm3, %v2514_v8  ;;  %v1281_v36 = vadd.f32 %v4318_v25, %v1280_v15  ;;  %v1426_v17 = vadd.f32 %v4318_v25, %v1425_v16  ;;  %v3600_v15 = vld [vmem:[%s5357_s0 + $0x198] sm:$0xff] }
 0x158   :  { %2804 = vst.msk [vmem:[%s5358_s3 + $0x148] sm:$0xf] %vm2721_vm3, %v2572_v10  ;;  %vm1937_vm1 = vcmp.ge.f32.partialorder %v1569_v13, 0.0  ;;  %v2168_v18 = vmul.f32 0.01, %v1569_v13  ;;  %vm1995_vm2 = vcmp.ge.f32.partialorder %v1714_v14, 0.0 }
 0x159   :  { %v2226_v19 = vmul.f32 0.01, %v1714_v14  ;;  %vm1822_vm4 = vcmp.ge.f32.partialorder %v1281_v36, 0.0  ;;  %v2053_v20 = vmul.f32 0.01, %v1281_v36  ;;  %vm1880_vm5 = vcmp.ge.f32.partialorder %v1426_v17, 0.0 }
 0x15a   :  { %v2399_v21 = vsel %vm1937_vm1, %v1569_v13, %v2168_v18  ;;  %v2111_v22 = vmul.f32 0.01, %v1426_v17 }
 0x15b   :  { %v2630_v23 = vpack.c.bf16 %v2399_v21, %v2399_v21  ;;  %v2457_v24 = vsel %vm1995_vm2, %v1714_v14, %v2226_v19  ;;  %v2284_v26 = vsel %vm1822_vm4, %v1281_v36, %v2053_v20  ;;  %v3571_v14 = vld [vmem:[%s5357_s0 + $0xb0] sm:$0xff]  ;;  %v3629_v19 = vld [vmem:[%s5357_s0 + $0x280] sm:$0xff]  ;;  %v3658_v20 = vld [vmem:[%s5357_s0 + $0x368] sm:$0xff] }
 0x15c   :  { %v2688_v27 = vpack.c.bf16 %v2457_v24, %v2457_v24  ;;  %v2515_v28 = vpack.c.bf16 %v2284_v26, %v2284_v26  ;;  %v2342_v29 = vsel %vm1880_vm5, %v1426_v17, %v2111_v22 }
 0x15d   :  { %2862 = vst.msk [vmem:[%s5358_s3 + $0x230] sm:$0xf] %vm2721_vm3, %v2630_v23  ;;  %v2573_v30 = vpack.c.bf16 %v2342_v29, %v2342_v29  ;;  %v1570_v31 = vpop.f32.mrf.mxu2  ;;  %v1715_v32 = vpop.f32.mrf.mxu3 }
 0x15e   :  { %2920 = vst.msk [vmem:[%s5358_s3 + $0x318] sm:$0xf] %vm2721_vm3, %v2688_v27  ;;  %v1571_v35 = vadd.f32 %v4318_v25, %v1570_v31  ;;  %v1716_v37 = vadd.f32 %v4318_v25, %v1715_v32  ;;  %v1283_v38 = vpop.f32.mrf.mxu0  ;;  %v1428_v39 = vpop.f32.mrf.mxu1 }
 0x15f   :  { %2747 = vst.msk [vmem:[%s5358_s3 + $0x64] sm:$0xf] %vm2721_vm3, %v2515_v28  ;;  %v1284_v42 = vadd.f32 %v4318_v25, %v1283_v38  ;;  %v1429_v43 = vadd.f32 %v4318_v25, %v1428_v39 }
 0x160   :  { %2805 = vst.msk [vmem:[%s5358_s3 + $0x14c] sm:$0xf] %vm2721_vm3, %v2573_v30  ;;  %vm1938_vm6 = vcmp.ge.f32.partialorder %v1571_v35, 0.0  ;;  %v2169_v44 = vmul.f32 0.01, %v1571_v35  ;;  %vm1996_vm7 = vcmp.ge.f32.partialorder %v1716_v37, 0.0 }
 0x161   :  { %v2227_v45 = vmul.f32 0.01, %v1716_v37  ;;  %vm1823_vm8 = vcmp.ge.f32.partialorder %v1284_v42, 0.0  ;;  %v2054_v46 = vmul.f32 0.01, %v1284_v42  ;;  %vm1881_vm9 = vcmp.ge.f32.partialorder %v1429_v43, 0.0  ;;  %3454 = vmatmul.msk.bf16.gmra.mxu0 %vm860_vm0, %v3570_v33  ;;  %3483 = vmatmul.msk.bf16.gmra.mxu1 %vm860_vm0, %v3599_v34 }
 0x162   :  { %v2400_v47 = vsel %vm1938_vm6, %v1571_v35, %v2169_v44  ;;  %v2112_v48 = vmul.f32 0.01, %v1429_v43  ;;  %3512 = vmatmul.msk.bf16.gmra.mxu2 %vm860_vm0, %v3628_v40  ;;  %3541 = vmatmul.msk.bf16.gmra.mxu3 %vm860_vm0, %v3657_v41 }
 0x163   :  { %v2631_v49 = vpack.c.bf16 %v2400_v47, %v2400_v47  ;;  %v2458_v50 = vsel %vm1996_vm7, %v1716_v37, %v2227_v45  ;;  %v2285_v51 = vsel %vm1823_vm8, %v1284_v42, %v2054_v46 }
 0x164   :  { %v2689_v52 = vpack.c.bf16 %v2458_v50, %v2458_v50  ;;  %v2516_v53 = vpack.c.bf16 %v2285_v51, %v2285_v51  ;;  %v2343_v54 = vsel %vm1881_vm9, %v1429_v43, %v2112_v48 }
 0x165   :  { %2863 = vst.msk [vmem:[%s5358_s3 + $0x234] sm:$0xf] %vm2721_vm3, %v2631_v49  ;;  %v2574_v55 = vpack.c.bf16 %v2343_v54, %v2343_v54  ;;  %v1573_v56 = vpop.f32.mrf.mxu2  ;;  %v1718_v57 = vpop.f32.mrf.mxu3 }
 0x166   :  { %2921 = vst.msk [vmem:[%s5358_s3 + $0x31c] sm:$0xf] %vm2721_vm3, %v2689_v52  ;;  %v1574_v58 = vadd.f32 %v4318_v25, %v1573_v56  ;;  %v1719_v59 = vadd.f32 %v4318_v25, %v1718_v57  ;;  %v1285_v60 = vpop.f32.mrf.mxu0  ;;  %v1430_v61 = vpop.f32.mrf.mxu1 }
 0x167   :  { %2748 = vst.msk [vmem:[%s5358_s3 + $0x68] sm:$0xf] %vm2721_vm3, %v2516_v53  ;;  %v1286_v62 = vadd.f32 %v4318_v25, %v1285_v60  ;;  %v1431_v63 = vadd.f32 %v4318_v25, %v1430_v61  ;;  %v3601_v60 = vld [vmem:[%s5357_s0 + $0x1a0] sm:$0xff] }
 0x168   :  { %2806 = vst.msk [vmem:[%s5358_s3 + $0x150] sm:$0xf] %vm2721_vm3, %v2574_v55  ;;  %vm1939_vm10 = vcmp.ge.f32.partialorder %v1574_v58, 0.0  ;;  %v2170_v0 = vmul.f32 0.01, %v1574_v58  ;;  %vm1997_vm11 = vcmp.ge.f32.partialorder %v1719_v59, 0.0 }
 0x169   :  { %v2228_v1 = vmul.f32 0.01, %v1719_v59  ;;  %vm1824_vm12 = vcmp.ge.f32.partialorder %v1286_v62, 0.0  ;;  %v2055_v2 = vmul.f32 0.01, %v1286_v62  ;;  %vm1882_vm13 = vcmp.ge.f32.partialorder %v1431_v63, 0.0 }
 0x16a   :  { %v2401_v3 = vsel %vm1939_vm10, %v1574_v58, %v2170_v0  ;;  %v2113_v4 = vmul.f32 0.01, %v1431_v63 }
 0x16b   :  { %v2632_v5 = vpack.c.bf16 %v2401_v3, %v2401_v3  ;;  %v2459_v6 = vsel %vm1997_vm11, %v1719_v59, %v2228_v1  ;;  %v2286_v7 = vsel %vm1824_vm12, %v1286_v62, %v2055_v2  ;;  %v3572_v59 = vld [vmem:[%s5357_s0 + $0xb8] sm:$0xff]  ;;  %v3630_v1 = vld [vmem:[%s5357_s0 + $0x288] sm:$0xff]  ;;  %v3659_v2 = vld [vmem:[%s5357_s0 + $0x370] sm:$0xff] }
 0x16c   :  { %v2690_v8 = vpack.c.bf16 %v2459_v6, %v2459_v6  ;;  %v2517_v9 = vpack.c.bf16 %v2286_v7, %v2286_v7  ;;  %v2344_v10 = vsel %vm1882_vm13, %v1431_v63, %v2113_v4 }
 0x16d   :  { %2864 = vst.msk [vmem:[%s5358_s3 + $0x238] sm:$0xf] %vm2721_vm3, %v2632_v5  ;;  %v2575_v11 = vpack.c.bf16 %v2344_v10, %v2344_v10  ;;  %v1575_v12 = vpop.f32.mrf.mxu2  ;;  %v1720_v13 = vpop.f32.mrf.mxu3 }
 0x16e   :  { %2922 = vst.msk [vmem:[%s5358_s3 + $0x320] sm:$0xf] %vm2721_vm3, %v2690_v8  ;;  %v1576_v16 = vadd.f32 %v4318_v25, %v1575_v12  ;;  %v1721_v36 = vadd.f32 %v4318_v25, %v1720_v13  ;;  %v1288_v17 = vpop.f32.mrf.mxu0  ;;  %v1433_v18 = vpop.f32.mrf.mxu1 }
 0x16f   :  { %2749 = vst.msk [vmem:[%s5358_s3 + $0x6c] sm:$0xf] %vm2721_vm3, %v2517_v9  ;;  %v1289_v21 = vadd.f32 %v4318_v25, %v1288_v17  ;;  %v1434_v22 = vadd.f32 %v4318_v25, %v1433_v18 }
 0x170   :  { %2807 = vst.msk [vmem:[%s5358_s3 + $0x154] sm:$0xf] %vm2721_vm3, %v2575_v11  ;;  %vm1940_vm14 = vcmp.ge.f32.partialorder %v1576_v16, 0.0  ;;  %v2171_v23 = vmul.f32 0.01, %v1576_v16  ;;  %vm1998_vm15 = vcmp.ge.f32.partialorder %v1721_v36, 0.0 }
 0x171   :  { %v2229_v24 = vmul.f32 0.01, %v1721_v36  ;;  %vm1825_vm1 = vcmp.ge.f32.partialorder %v1289_v21, 0.0  ;;  %v2056_v26 = vmul.f32 0.01, %v1289_v21  ;;  %vm1883_vm2 = vcmp.ge.f32.partialorder %v1434_v22, 0.0  ;;  %3455 = vmatmul.msk.bf16.gmra.mxu0 %vm860_vm0, %v3571_v14  ;;  %3484 = vmatmul.msk.bf16.gmra.mxu1 %vm860_vm0, %v3600_v15 }
 0x172   :  { %v2402_v27 = vsel %vm1940_vm14, %v1576_v16, %v2171_v23  ;;  %v2114_v28 = vmul.f32 0.01, %v1434_v22  ;;  %3513 = vmatmul.msk.bf16.gmra.mxu2 %vm860_vm0, %v3629_v19  ;;  %3542 = vmatmul.msk.bf16.gmra.mxu3 %vm860_vm0, %v3658_v20 }
 0x173   :  { %v2633_v29 = vpack.c.bf16 %v2402_v27, %v2402_v27  ;;  %v2460_v30 = vsel %vm1998_vm15, %v1721_v36, %v2229_v24  ;;  %v2287_v31 = vsel %vm1825_vm1, %v1289_v21, %v2056_v26 }
 0x174   :  { %v2691_v32 = vpack.c.bf16 %v2460_v30, %v2460_v30  ;;  %v2518_v33 = vpack.c.bf16 %v2287_v31, %v2287_v31  ;;  %v2345_v34 = vsel %vm1883_vm2, %v1434_v22, %v2114_v28 }
 0x175   :  { %2865 = vst.msk [vmem:[%s5358_s3 + $0x23c] sm:$0xf] %vm2721_vm3, %v2633_v29  ;;  %v2576_v35 = vpack.c.bf16 %v2345_v34, %v2345_v34  ;;  %v1578_v37 = vpop.f32.mrf.mxu2  ;;  %v1723_v38 = vpop.f32.mrf.mxu3 }
 0x176   :  { %2923 = vst.msk [vmem:[%s5358_s3 + $0x324] sm:$0xf] %vm2721_vm3, %v2691_v32  ;;  %v1579_v39 = vadd.f32 %v4318_v25, %v1578_v37  ;;  %v1724_v40 = vadd.f32 %v4318_v25, %v1723_v38  ;;  %v1290_v41 = vpop.f32.mrf.mxu0  ;;  %v1435_v42 = vpop.f32.mrf.mxu1 }
 0x177   :  { %2750 = vst.msk [vmem:[%s5358_s3 + $0x70] sm:$0xf] %vm2721_vm3, %v2518_v33  ;;  %v1291_v43 = vadd.f32 %v4318_v25, %v1290_v41  ;;  %v1436_v44 = vadd.f32 %v4318_v25, %v1435_v42  ;;  %v3602_v41 = vld [vmem:[%s5357_s0 + $0x1a8] sm:$0xff] }
 0x178   :  { %2808 = vst.msk [vmem:[%s5358_s3 + $0x158] sm:$0xf] %vm2721_vm3, %v2576_v35  ;;  %vm1941_vm4 = vcmp.ge.f32.partialorder %v1579_v39, 0.0  ;;  %v2172_v45 = vmul.f32 0.01, %v1579_v39  ;;  %vm1999_vm5 = vcmp.ge.f32.partialorder %v1724_v40, 0.0 }
 0x179   :  { %v2230_v46 = vmul.f32 0.01, %v1724_v40  ;;  %vm1826_vm6 = vcmp.ge.f32.partialorder %v1291_v43, 0.0  ;;  %v2057_v47 = vmul.f32 0.01, %v1291_v43  ;;  %vm1884_vm7 = vcmp.ge.f32.partialorder %v1436_v44, 0.0 }
 0x17a   :  { %v2403_v48 = vsel %vm1941_vm4, %v1579_v39, %v2172_v45  ;;  %v2115_v49 = vmul.f32 0.01, %v1436_v44 }
 0x17b   :  { %v2634_v50 = vpack.c.bf16 %v2403_v48, %v2403_v48  ;;  %v2461_v51 = vsel %vm1999_vm5, %v1724_v40, %v2230_v46  ;;  %v2288_v52 = vsel %vm1826_vm6, %v1291_v43, %v2057_v47  ;;  %v3573_v40 = vld [vmem:[%s5357_s0 + $0xc0] sm:$0xff]  ;;  %v3631_v46 = vld [vmem:[%s5357_s0 + $0x290] sm:$0xff]  ;;  %v3660_v47 = vld [vmem:[%s5357_s0 + $0x378] sm:$0xff] }
 0x17c   :  { %v2692_v53 = vpack.c.bf16 %v2461_v51, %v2461_v51  ;;  %v2519_v54 = vpack.c.bf16 %v2288_v52, %v2288_v52  ;;  %v2346_v55 = vsel %vm1884_vm7, %v1436_v44, %v2115_v49 }
 0x17d   :  { %2866 = vst.msk [vmem:[%s5358_s3 + $0x240] sm:$0xf] %vm2721_vm3, %v2634_v50  ;;  %v2577_v56 = vpack.c.bf16 %v2346_v55, %v2346_v55  ;;  %v1580_v57 = vpop.f32.mrf.mxu2  ;;  %v1725_v58 = vpop.f32.mrf.mxu3 }
 0x17e   :  { %2924 = vst.msk [vmem:[%s5358_s3 + $0x328] sm:$0xf] %vm2721_vm3, %v2692_v53  ;;  %v1581_v61 = vadd.f32 %v4318_v25, %v1580_v57  ;;  %v1726_v62 = vadd.f32 %v4318_v25, %v1725_v58  ;;  %v1293_v63 = vpop.f32.mrf.mxu0  ;;  %v1438_v0 = vpop.f32.mrf.mxu1 }
 0x17f   :  { %2751 = vst.msk [vmem:[%s5358_s3 + $0x74] sm:$0xf] %vm2721_vm3, %v2519_v54  ;;  %v1294_v3 = vadd.f32 %v4318_v25, %v1293_v63  ;;  %v1439_v4 = vadd.f32 %v4318_v25, %v1438_v0  ;;  %v4771_v63 = vld [vmem:[%s5356_s2] ss:$0 sm:$0xff] }
 0x180   :  { %2809 = vst.msk [vmem:[%s5358_s3 + $0x15c] sm:$0xf] %vm2721_vm3, %v2577_v56  ;;  %vm1942_vm8 = vcmp.ge.f32.partialorder %v1581_v61, 0.0  ;;  %v2173_v5 = vmul.f32 0.01, %v1581_v61  ;;  %vm2000_vm9 = vcmp.ge.f32.partialorder %v1726_v62, 0.0 }
 0x181   :  { %v2231_v6 = vmul.f32 0.01, %v1726_v62  ;;  %vm1827_vm10 = vcmp.ge.f32.partialorder %v1294_v3, 0.0  ;;  %v2058_v7 = vmul.f32 0.01, %v1294_v3  ;;  %vm1885_vm11 = vcmp.ge.f32.partialorder %v1439_v4, 0.0  ;;  %3456 = vmatmul.msk.bf16.gmra.mxu0 %vm860_vm0, %v3572_v59  ;;  %3485 = vmatmul.msk.bf16.gmra.mxu1 %vm860_vm0, %v3601_v60 }
 0x182   :  { %v2404_v8 = vsel %vm1942_vm8, %v1581_v61, %v2173_v5  ;;  %v2116_v9 = vmul.f32 0.01, %v1439_v4  ;;  %3514 = vmatmul.msk.bf16.gmra.mxu2 %vm860_vm0, %v3630_v1  ;;  %3543 = vmatmul.msk.bf16.gmra.mxu3 %vm860_vm0, %v3659_v2 }
 0x183   :  { %v2635_v10 = vpack.c.bf16 %v2404_v8, %v2404_v8  ;;  %v2462_v11 = vsel %vm2000_vm9, %v1726_v62, %v2231_v6  ;;  %v2289_v12 = vsel %vm1827_vm10, %v1294_v3, %v2058_v7 }
 0x184   :  { %v2693_v13 = vpack.c.bf16 %v2462_v11, %v2462_v11  ;;  %v2520_v14 = vpack.c.bf16 %v2289_v12, %v2289_v12  ;;  %v2347_v15 = vsel %vm1885_vm11, %v1439_v4, %v2116_v9 }
 0x185   :  { %2867 = vst.msk [vmem:[%s5358_s3 + $0x244] sm:$0xf] %vm2721_vm3, %v2635_v10  ;;  %v2578_v16 = vpack.c.bf16 %v2347_v15, %v2347_v15  ;;  %v1583_v36 = vpop.f32.mrf.mxu2  ;;  %v1728_v17 = vpop.f32.mrf.mxu3 }
 0x186   :  { %2925 = vst.msk [vmem:[%s5358_s3 + $0x32c] sm:$0xf] %vm2721_vm3, %v2693_v13  ;;  %v1584_v18 = vadd.f32 %v4318_v25, %v1583_v36  ;;  %v1729_v19 = vadd.f32 %v4318_v25, %v1728_v17  ;;  %v1295_v20 = vpop.f32.mrf.mxu0  ;;  %v1440_v21 = vpop.f32.mrf.mxu1 }
 0x187   :  { %2752 = vst.msk [vmem:[%s5358_s3 + $0x78] sm:$0xf] %vm2721_vm3, %v2520_v14  ;;  %v1296_v22 = vadd.f32 %v4318_v25, %v1295_v20  ;;  %v1441_v23 = vadd.f32 %v4318_v25, %v1440_v21  ;;  %v3603_v20 = vld [vmem:[%s5357_s0 + $0x1b0] sm:$0xff] }
 0x188   :  { %2810 = vst.msk [vmem:[%s5358_s3 + $0x160] sm:$0xf] %vm2721_vm3, %v2578_v16  ;;  %vm1943_vm12 = vcmp.ge.f32.partialorder %v1584_v18, 0.0  ;;  %v2174_v24 = vmul.f32 0.01, %v1584_v18  ;;  %vm2001_vm13 = vcmp.ge.f32.partialorder %v1729_v19, 0.0 }
 0x189   :  { %v2232_v26 = vmul.f32 0.01, %v1729_v19  ;;  %vm1828_vm14 = vcmp.ge.f32.partialorder %v1296_v22, 0.0  ;;  %v2059_v27 = vmul.f32 0.01, %v1296_v22  ;;  %vm1886_vm15 = vcmp.ge.f32.partialorder %v1441_v23, 0.0 }
 0x18a   :  { %v2405_v28 = vsel %vm1943_vm12, %v1584_v18, %v2174_v24  ;;  %v2117_v29 = vmul.f32 0.01, %v1441_v23 }
 0x18b   :  { %v2636_v30 = vpack.c.bf16 %v2405_v28, %v2405_v28  ;;  %v2463_v31 = vsel %vm2001_vm13, %v1729_v19, %v2232_v26  ;;  %v2290_v32 = vsel %vm1828_vm14, %v1296_v22, %v2059_v27  ;;  %v3574_v19 = vld [vmem:[%s5357_s0 + $0xc8] sm:$0xff]  ;;  %v3632_v26 = vld [vmem:[%s5357_s0 + $0x298] sm:$0xff]  ;;  %v3661_v27 = vld [vmem:[%s5357_s0 + $0x380] sm:$0xff] }
 0x18c   :  { %v2694_v33 = vpack.c.bf16 %v2463_v31, %v2463_v31  ;;  %v2521_v34 = vpack.c.bf16 %v2290_v32, %v2290_v32  ;;  %v2348_v35 = vsel %vm1886_vm15, %v1441_v23, %v2117_v29 }
 0x18d   :  { %2868 = vst.msk [vmem:[%s5358_s3 + $0x248] sm:$0xf] %vm2721_vm3, %v2636_v30  ;;  %v2579_v37 = vpack.c.bf16 %v2348_v35, %v2348_v35  ;;  %v1585_v38 = vpop.f32.mrf.mxu2  ;;  %v1730_v39 = vpop.f32.mrf.mxu3 }
 0x18e   :  { %2926 = vst.msk [vmem:[%s5358_s3 + $0x330] sm:$0xf] %vm2721_vm3, %v2694_v33  ;;  %v1586_v42 = vadd.f32 %v4318_v25, %v1585_v38  ;;  %v1731_v43 = vadd.f32 %v4318_v25, %v1730_v39  ;;  %v1298_v44 = vpop.f32.mrf.mxu0  ;;  %v1443_v45 = vpop.f32.mrf.mxu1 }
 0x18f   :  { %2753 = vst.msk [vmem:[%s5358_s3 + $0x7c] sm:$0xf] %vm2721_vm3, %v2521_v34  ;;  %v1299_v48 = vadd.f32 %v4318_v25, %v1298_v44  ;;  %v1444_v49 = vadd.f32 %v4318_v25, %v1443_v45 }
 0x190   :  { %2811 = vst.msk [vmem:[%s5358_s3 + $0x164] sm:$0xf] %vm2721_vm3, %v2579_v37  ;;  %vm1944_vm1 = vcmp.ge.f32.partialorder %v1586_v42, 0.0  ;;  %v2175_v50 = vmul.f32 0.01, %v1586_v42  ;;  %vm2002_vm2 = vcmp.ge.f32.partialorder %v1731_v43, 0.0 }
 0x191   :  { %v2233_v51 = vmul.f32 0.01, %v1731_v43  ;;  %vm1829_vm4 = vcmp.ge.f32.partialorder %v1299_v48, 0.0  ;;  %v2060_v52 = vmul.f32 0.01, %v1299_v48  ;;  %vm1887_vm5 = vcmp.ge.f32.partialorder %v1444_v49, 0.0  ;;  %3457 = vmatmul.msk.bf16.gmra.mxu0 %vm860_vm0, %v3573_v40  ;;  %3486 = vmatmul.msk.bf16.gmra.mxu1 %vm860_vm0, %v3602_v41 }
 0x192   :  { %v2406_v53 = vsel %vm1944_vm1, %v1586_v42, %v2175_v50  ;;  %v2118_v54 = vmul.f32 0.01, %v1444_v49  ;;  %3515 = vmatmul.msk.bf16.gmra.mxu2 %vm860_vm0, %v3631_v46  ;;  %3544 = vmatmul.msk.bf16.gmra.mxu3 %vm860_vm0, %v3660_v47 }
 0x193   :  { %v2637_v25 = vpack.c.bf16 %v2406_v53, %v2406_v53  ;;  %v2464_v55 = vsel %vm2002_vm2, %v1731_v43, %v2233_v51  ;;  %v2291_v56 = vsel %vm1829_vm4, %v1299_v48, %v2060_v52 }
 0x194   :  { %v2695_v57 = vpack.c.bf16 %v2464_v55, %v2464_v55  ;;  %v2522_v58 = vpack.c.bf16 %v2291_v56, %v2291_v56  ;;  %v2349_v59 = vsel %vm1887_vm5, %v1444_v49, %v2118_v54 }
 0x195   :  { %2869 = vst.msk [vmem:[%s5358_s3 + $0x24c] sm:$0xf] %vm2721_vm3, %v2637_v25  ;;  %v2580_v60 = vpack.c.bf16 %v2349_v59, %v2349_v59  ;;  %v1588_v61 = vpop.f32.mrf.mxu2  ;;  %v1733_v62 = vpop.f32.mrf.mxu3 }
 0x196   :  { %2927 = vst.msk [vmem:[%s5358_s3 + $0x334] sm:$0xf] %vm2721_vm3, %v2695_v57  ;;  %v1589_v0 = vadd.f32 %v4771_v63, %v1588_v61  ;;  %v1734_v1 = vadd.f32 %v4771_v63, %v1733_v62  ;;  %v1300_v2 = vpop.f32.mrf.mxu0  ;;  %v1445_v3 = vpop.f32.mrf.mxu1 }
 0x197   :  { %2754 = vst.msk [vmem:[%s5358_s3 + $0x80] sm:$0xf] %vm2721_vm3, %v2522_v58  ;;  %v1301_v4 = vadd.f32 %v4771_v63, %v1300_v2  ;;  %v1446_v5 = vadd.f32 %v4771_v63, %v1445_v3  ;;  %v3604_v2 = vld [vmem:[%s5357_s0 + $0x1b8] sm:$0xff] }
 0x198   :  { %2812 = vst.msk [vmem:[%s5358_s3 + $0x168] sm:$0xf] %vm2721_vm3, %v2580_v60  ;;  %vm1945_vm6 = vcmp.ge.f32.partialorder %v1589_v0, 0.0  ;;  %v2176_v6 = vmul.f32 0.01, %v1589_v0  ;;  %vm2003_vm7 = vcmp.ge.f32.partialorder %v1734_v1, 0.0 }
 0x199   :  { %v2234_v7 = vmul.f32 0.01, %v1734_v1  ;;  %vm1830_vm8 = vcmp.ge.f32.partialorder %v1301_v4, 0.0  ;;  %v2061_v8 = vmul.f32 0.01, %v1301_v4  ;;  %vm1888_vm9 = vcmp.ge.f32.partialorder %v1446_v5, 0.0 }
 0x19a   :  { %v2407_v9 = vsel %vm1945_vm6, %v1589_v0, %v2176_v6  ;;  %v2119_v10 = vmul.f32 0.01, %v1446_v5 }
 0x19b   :  { %v2638_v11 = vpack.c.bf16 %v2407_v9, %v2407_v9  ;;  %v2465_v12 = vsel %vm2003_vm7, %v1734_v1, %v2234_v7  ;;  %v2292_v13 = vsel %vm1830_vm8, %v1301_v4, %v2061_v8  ;;  %v3575_v1 = vld [vmem:[%s5357_s0 + $0xd0] sm:$0xff]  ;;  %v3633_v7 = vld [vmem:[%s5357_s0 + $0x2a0] sm:$0xff]  ;;  %v3662_v8 = vld [vmem:[%s5357_s0 + $0x388] sm:$0xff] }
 0x19c   :  { %v2696_v14 = vpack.c.bf16 %v2465_v12, %v2465_v12  ;;  %v2523_v15 = vpack.c.bf16 %v2292_v13, %v2292_v13  ;;  %v2350_v16 = vsel %vm1888_vm9, %v1446_v5, %v2119_v10 }
 0x19d   :  { %2870 = vst.msk [vmem:[%s5358_s3 + $0x250] sm:$0xf] %vm2721_vm3, %v2638_v11  ;;  %v2581_v36 = vpack.c.bf16 %v2350_v16, %v2350_v16  ;;  %v1590_v17 = vpop.f32.mrf.mxu2  ;;  %v1735_v18 = vpop.f32.mrf.mxu3 }
 0x19e   :  { %2928 = vst.msk [vmem:[%s5358_s3 + $0x338] sm:$0xf] %vm2721_vm3, %v2696_v14  ;;  %v1591_v21 = vadd.f32 %v4771_v63, %v1590_v17  ;;  %v1736_v22 = vadd.f32 %v4771_v63, %v1735_v18  ;;  %v1303_v23 = vpop.f32.mrf.mxu0  ;;  %v1448_v24 = vpop.f32.mrf.mxu1 }
 0x19f   :  { %2755 = vst.msk [vmem:[%s5358_s3 + $0x84] sm:$0xf] %vm2721_vm3, %v2523_v15  ;;  %v1304_v28 = vadd.f32 %v4771_v63, %v1303_v23  ;;  %v1449_v29 = vadd.f32 %v4771_v63, %v1448_v24 }
 0x1a0   :  { %2813 = vst.msk [vmem:[%s5358_s3 + $0x16c] sm:$0xf] %vm2721_vm3, %v2581_v36  ;;  %vm1946_vm10 = vcmp.ge.f32.partialorder %v1591_v21, 0.0  ;;  %v2177_v30 = vmul.f32 0.01, %v1591_v21  ;;  %vm2004_vm11 = vcmp.ge.f32.partialorder %v1736_v22, 0.0 }
 0x1a1   :  { %v2235_v31 = vmul.f32 0.01, %v1736_v22  ;;  %vm1831_vm12 = vcmp.ge.f32.partialorder %v1304_v28, 0.0  ;;  %v2062_v32 = vmul.f32 0.01, %v1304_v28  ;;  %vm1889_vm13 = vcmp.ge.f32.partialorder %v1449_v29, 0.0  ;;  %3458 = vmatmul.msk.bf16.gmra.mxu0 %vm860_vm0, %v3574_v19  ;;  %3487 = vmatmul.msk.bf16.gmra.mxu1 %vm860_vm0, %v3603_v20 }
 0x1a2   :  { %v2408_v33 = vsel %vm1946_vm10, %v1591_v21, %v2177_v30  ;;  %v2120_v34 = vmul.f32 0.01, %v1449_v29  ;;  %3516 = vmatmul.msk.bf16.gmra.mxu2 %vm860_vm0, %v3632_v26  ;;  %3545 = vmatmul.msk.bf16.gmra.mxu3 %vm860_vm0, %v3661_v27 }
 0x1a3   :  { %v2639_v35 = vpack.c.bf16 %v2408_v33, %v2408_v33  ;;  %v2466_v37 = vsel %vm2004_vm11, %v1736_v22, %v2235_v31  ;;  %v2293_v38 = vsel %vm1831_vm12, %v1304_v28, %v2062_v32 }
 0x1a4   :  { %v2697_v39 = vpack.c.bf16 %v2466_v37, %v2466_v37  ;;  %v2524_v40 = vpack.c.bf16 %v2293_v38, %v2293_v38  ;;  %v2351_v41 = vsel %vm1889_vm13, %v1449_v29, %v2120_v34 }
 0x1a5   :  { %2871 = vst.msk [vmem:[%s5358_s3 + $0x254] sm:$0xf] %vm2721_vm3, %v2639_v35  ;;  %v2582_v42 = vpack.c.bf16 %v2351_v41, %v2351_v41  ;;  %v1593_v43 = vpop.f32.mrf.mxu2  ;;  %v1738_v44 = vpop.f32.mrf.mxu3 }
 0x1a6   :  { %2929 = vst.msk [vmem:[%s5358_s3 + $0x33c] sm:$0xf] %vm2721_vm3, %v2697_v39  ;;  %v1594_v45 = vadd.f32 %v4771_v63, %v1593_v43  ;;  %v1739_v46 = vadd.f32 %v4771_v63, %v1738_v44  ;;  %v1305_v47 = vpop.f32.mrf.mxu0  ;;  %v1450_v48 = vpop.f32.mrf.mxu1 }
 0x1a7   :  { %2756 = vst.msk [vmem:[%s5358_s3 + $0x88] sm:$0xf] %vm2721_vm3, %v2524_v40  ;;  %v1306_v49 = vadd.f32 %v4771_v63, %v1305_v47  ;;  %v1451_v50 = vadd.f32 %v4771_v63, %v1450_v48  ;;  %v3605_v47 = vld [vmem:[%s5357_s0 + $0x1c0] sm:$0xff] }
 0x1a8   :  { %2814 = vst.msk [vmem:[%s5358_s3 + $0x170] sm:$0xf] %vm2721_vm3, %v2582_v42  ;;  %vm1947_vm14 = vcmp.ge.f32.partialorder %v1594_v45, 0.0  ;;  %v2178_v51 = vmul.f32 0.01, %v1594_v45  ;;  %vm2005_vm15 = vcmp.ge.f32.partialorder %v1739_v46, 0.0 }
 0x1a9   :  { %v2236_v52 = vmul.f32 0.01, %v1739_v46  ;;  %vm1832_vm1 = vcmp.ge.f32.partialorder %v1306_v49, 0.0  ;;  %v2063_v53 = vmul.f32 0.01, %v1306_v49  ;;  %vm1890_vm2 = vcmp.ge.f32.partialorder %v1451_v50, 0.0 }
 0x1aa   :  { %v2409_v54 = vsel %vm1947_vm14, %v1594_v45, %v2178_v51  ;;  %v2121_v25 = vmul.f32 0.01, %v1451_v50 }
 0x1ab   :  { %v2640_v55 = vpack.c.bf16 %v2409_v54, %v2409_v54  ;;  %v2467_v56 = vsel %vm2005_vm15, %v1739_v46, %v2236_v52  ;;  %v2294_v57 = vsel %vm1832_vm1, %v1306_v49, %v2063_v53  ;;  %v3576_v46 = vld [vmem:[%s5357_s0 + $0xd8] sm:$0xff]  ;;  %v3634_v52 = vld [vmem:[%s5357_s0 + $0x2a8] sm:$0xff]  ;;  %v3663_v53 = vld [vmem:[%s5357_s0 + $0x390] sm:$0xff] }
 0x1ac   :  { %v2698_v58 = vpack.c.bf16 %v2467_v56, %v2467_v56  ;;  %v2525_v59 = vpack.c.bf16 %v2294_v57, %v2294_v57  ;;  %v2352_v60 = vsel %vm1890_vm2, %v1451_v50, %v2121_v25 }
 0x1ad   :  { %2872 = vst.msk [vmem:[%s5358_s3 + $0x258] sm:$0xf] %vm2721_vm3, %v2640_v55  ;;  %v2583_v61 = vpack.c.bf16 %v2352_v60, %v2352_v60  ;;  %v1595_v62 = vpop.f32.mrf.mxu2  ;;  %v1740_v0 = vpop.f32.mrf.mxu3 }
 0x1ae   :  { %2930 = vst.msk [vmem:[%s5358_s3 + $0x340] sm:$0xf] %vm2721_vm3, %v2698_v58  ;;  %v1596_v3 = vadd.f32 %v4771_v63, %v1595_v62  ;;  %v1741_v4 = vadd.f32 %v4771_v63, %v1740_v0  ;;  %v1308_v5 = vpop.f32.mrf.mxu0  ;;  %v1453_v6 = vpop.f32.mrf.mxu1 }
 0x1af   :  { %2757 = vst.msk [vmem:[%s5358_s3 + $0x8c] sm:$0xf] %vm2721_vm3, %v2525_v59  ;;  %v1309_v9 = vadd.f32 %v4771_v63, %v1308_v5  ;;  %v1454_v10 = vadd.f32 %v4771_v63, %v1453_v6 }
 0x1b0   :  { %2815 = vst.msk [vmem:[%s5358_s3 + $0x174] sm:$0xf] %vm2721_vm3, %v2583_v61  ;;  %vm1948_vm4 = vcmp.ge.f32.partialorder %v1596_v3, 0.0  ;;  %v2179_v11 = vmul.f32 0.01, %v1596_v3  ;;  %vm2006_vm5 = vcmp.ge.f32.partialorder %v1741_v4, 0.0 }
 0x1b1   :  { %v2237_v12 = vmul.f32 0.01, %v1741_v4  ;;  %vm1833_vm6 = vcmp.ge.f32.partialorder %v1309_v9, 0.0  ;;  %v2064_v13 = vmul.f32 0.01, %v1309_v9  ;;  %vm1891_vm7 = vcmp.ge.f32.partialorder %v1454_v10, 0.0  ;;  %3459 = vmatmul.msk.bf16.gmra.mxu0 %vm860_vm0, %v3575_v1  ;;  %3488 = vmatmul.msk.bf16.gmra.mxu1 %vm860_vm0, %v3604_v2 }
 0x1b2   :  { %v2410_v14 = vsel %vm1948_vm4, %v1596_v3, %v2179_v11  ;;  %v2122_v15 = vmul.f32 0.01, %v1454_v10  ;;  %3517 = vmatmul.msk.bf16.gmra.mxu2 %vm860_vm0, %v3633_v7  ;;  %3546 = vmatmul.msk.bf16.gmra.mxu3 %vm860_vm0, %v3662_v8 }
 0x1b3   :  { %v2641_v16 = vpack.c.bf16 %v2410_v14, %v2410_v14  ;;  %v2468_v36 = vsel %vm2006_vm5, %v1741_v4, %v2237_v12  ;;  %v2295_v17 = vsel %vm1833_vm6, %v1309_v9, %v2064_v13  ;;  %v245_v12 = vld [vmem:[%s5357_s0 + $0x398] sm:$0xf] }
 0x1b4   :  { %v2699_v18 = vpack.c.bf16 %v2468_v36, %v2468_v36  ;;  %v2526_v19 = vpack.c.bf16 %v2295_v17, %v2295_v17  ;;  %v2353_v20 = vsel %vm1891_vm7, %v1454_v10, %v2122_v15  ;;  %v719_v17 = vunpack.c.l.b16 %v245_v12 }
 0x1b5   :  { %2873 = vst.msk [vmem:[%s5358_s3 + $0x25c] sm:$0xf] %vm2721_vm3, %v2641_v16  ;;  %v2584_v21 = vpack.c.bf16 %v2353_v20, %v2353_v20  ;;  %v1598_v22 = vpop.f32.mrf.mxu2  ;;  %v1743_v23 = vpop.f32.mrf.mxu3 }
 0x1b6   :  { %2931 = vst.msk [vmem:[%s5358_s3 + $0x344] sm:$0xf] %vm2721_vm3, %v2699_v18  ;;  %v1599_v24 = vadd.f32 %v4771_v63, %v1598_v22  ;;  %v1744_v26 = vadd.f32 %v4771_v63, %v1743_v23  ;;  %v1310_v27 = vpop.f32.mrf.mxu0  ;;  %v1455_v28 = vpop.f32.mrf.mxu1 }
 0x1b7   :  { %2758 = vst.msk [vmem:[%s5358_s3 + $0x90] sm:$0xf] %vm2721_vm3, %v2526_v19  ;;  %v1311_v29 = vadd.f32 %v4771_v63, %v1310_v27  ;;  %v1456_v30 = vadd.f32 %v4771_v63, %v1455_v28  ;;  %v3577_v28 = vld [vmem:[%s5357_s0 + $0xe0] sm:$0xff] }
 0x1b8   :  { %2816 = vst.msk [vmem:[%s5358_s3 + $0x178] sm:$0xf] %vm2721_vm3, %v2584_v21  ;;  %vm1949_vm8 = vcmp.ge.f32.partialorder %v1599_v24, 0.0  ;;  %v2180_v31 = vmul.f32 0.01, %v1599_v24  ;;  %vm2007_vm9 = vcmp.ge.f32.partialorder %v1744_v26, 0.0 }
 0x1b9   :  { %v2238_v32 = vmul.f32 0.01, %v1744_v26  ;;  %vm1834_vm10 = vcmp.ge.f32.partialorder %v1311_v29, 0.0  ;;  %v2065_v33 = vmul.f32 0.01, %v1311_v29  ;;  %vm1892_vm11 = vcmp.ge.f32.partialorder %v1456_v30, 0.0 }
 0x1ba   :  { %v2411_v34 = vsel %vm1949_vm8, %v1599_v24, %v2180_v31  ;;  %v2123_v35 = vmul.f32 0.01, %v1456_v30 }
 0x1bb   :  { %v2642_v37 = vpack.c.bf16 %v2411_v34, %v2411_v34  ;;  %v2469_v38 = vsel %vm2007_vm9, %v1744_v26, %v2238_v32  ;;  %v2296_v39 = vsel %vm1834_vm10, %v1311_v29, %v2065_v33  ;;  %v3606_v29 = vld [vmem:[%s5357_s0 + $0x1c8] sm:$0xff]  ;;  %v3635_v34 = vld [vmem:[%s5357_s0 + $0x2b0] sm:$0xff] }
 0x1bc   :  { %v2700_v40 = vpack.c.bf16 %v2469_v38, %v2469_v38  ;;  %v2527_v41 = vpack.c.bf16 %v2296_v39, %v2296_v39  ;;  %v2354_v42 = vsel %vm1892_vm11, %v1456_v30, %v2123_v35  ;;  %v835_v35 = vpack.c.b16 %v719_v17, %v719_v17 }
 0x1bd   :  { %2874 = vst.msk [vmem:[%s5358_s3 + $0x260] sm:$0xf] %vm2721_vm3, %v2642_v37  ;;  %v2585_v43 = vpack.c.bf16 %v2354_v42, %v2354_v42  ;;  %v1600_v44 = vpop.f32.mrf.mxu2  ;;  %v1745_v45 = vpop.f32.mrf.mxu3 }
 0x1be   :  { %2932 = vst.msk [vmem:[%s5358_s3 + $0x348] sm:$0xf] %vm2721_vm3, %v2700_v40  ;;  %v1601_v48 = vadd.f32 %v4771_v63, %v1600_v44  ;;  %v1746_v49 = vadd.f32 %v4771_v63, %v1745_v45  ;;  %v1313_v50 = vpop.f32.mrf.mxu0  ;;  %v1458_v51 = vpop.f32.mrf.mxu1 }
 0x1bf   :  { %2759 = vst.msk [vmem:[%s5358_s3 + $0x94] sm:$0xf] %vm2721_vm3, %v2527_v41  ;;  %v1314_v54 = vadd.f32 %v4771_v63, %v1313_v50  ;;  %v1459_v25 = vadd.f32 %v4771_v63, %v1458_v51 }
 0x1c0   :  { %2817 = vst.msk [vmem:[%s5358_s3 + $0x17c] sm:$0xf] %vm2721_vm3, %v2585_v43  ;;  %vm1950_vm12 = vcmp.ge.f32.partialorder %v1601_v48, 0.0  ;;  %v2181_v55 = vmul.f32 0.01, %v1601_v48  ;;  %vm2008_vm13 = vcmp.ge.f32.partialorder %v1746_v49, 0.0 }
 0x1c1   :  { %v2239_v56 = vmul.f32 0.01, %v1746_v49  ;;  %vm1835_vm14 = vcmp.ge.f32.partialorder %v1314_v54, 0.0  ;;  %v2066_v57 = vmul.f32 0.01, %v1314_v54  ;;  %vm1893_vm15 = vcmp.ge.f32.partialorder %v1459_v25, 0.0  ;;  %3460 = vmatmul.msk.bf16.gmra.mxu0 %vm860_vm0, %v3576_v46  ;;  %3489 = vmatmul.msk.bf16.gmra.mxu1 %vm860_vm0, %v3605_v47 }
 0x1c2   :  { %v2412_v58 = vsel %vm1950_vm12, %v1601_v48, %v2181_v55  ;;  %v2124_v59 = vmul.f32 0.01, %v1459_v25  ;;  %3518 = vmatmul.msk.bf16.gmra.mxu2 %vm860_vm0, %v3634_v52  ;;  %3547 = vmatmul.msk.bf16.gmra.mxu3 %vm860_vm0, %v3663_v53 }
 0x1c3   :  { %v2643_v60 = vpack.c.bf16 %v2412_v58, %v2412_v58  ;;  %v2470_v61 = vsel %vm2008_vm13, %v1746_v49, %v2239_v56  ;;  %v2297_v62 = vsel %vm1835_vm14, %v1314_v54, %v2066_v57 }
 0x1c4   :  { %v2701_v0 = vpack.c.bf16 %v2470_v61, %v2470_v61  ;;  %v2528_v1 = vpack.c.bf16 %v2297_v62, %v2297_v62  ;;  %v2355_v2 = vsel %vm1893_vm15, %v1459_v25, %v2124_v59 }
 0x1c5   :  { %2875 = vst.msk [vmem:[%s5358_s3 + $0x264] sm:$0xf] %vm2721_vm3, %v2643_v60  ;;  %v2586_v3 = vpack.c.bf16 %v2355_v2, %v2355_v2  ;;  %v1603_v4 = vpop.f32.mrf.mxu2  ;;  %v1748_v5 = vpop.f32.mrf.mxu3 }
 0x1c6   :  { %2933 = vst.msk [vmem:[%s5358_s3 + $0x34c] sm:$0xf] %vm2721_vm3, %v2701_v0  ;;  %v1604_v6 = vadd.f32 %v4771_v63, %v1603_v4  ;;  %v1749_v7 = vadd.f32 %v4771_v63, %v1748_v5  ;;  %v1315_v8 = vpop.f32.mrf.mxu0  ;;  %v1460_v9 = vpop.f32.mrf.mxu1 }
 0x1c7   :  { %2760 = vst.msk [vmem:[%s5358_s3 + $0x98] sm:$0xf] %vm2721_vm3, %v2528_v1  ;;  %v1316_v10 = vadd.f32 %v4771_v63, %v1315_v8  ;;  %v1461_v11 = vadd.f32 %v4771_v63, %v1460_v9 }
 0x1c8   :  { %2818 = vst.msk [vmem:[%s5358_s3 + $0x180] sm:$0xf] %vm2721_vm3, %v2586_v3  ;;  %vm1951_vm1 = vcmp.ge.f32.partialorder %v1604_v6, 0.0  ;;  %v2182_v13 = vmul.f32 0.01, %v1604_v6  ;;  %vm2009_vm2 = vcmp.ge.f32.partialorder %v1749_v7, 0.0 }
 0x1c9   :  { %v2240_v14 = vmul.f32 0.01, %v1749_v7  ;;  %vm1836_vm4 = vcmp.ge.f32.partialorder %v1316_v10, 0.0  ;;  %v2067_v15 = vmul.f32 0.01, %v1316_v10  ;;  %vm1894_vm5 = vcmp.ge.f32.partialorder %v1461_v11, 0.0 }
 0x1ca   :  { %v2413_v16 = vsel %vm1951_vm1, %v1604_v6, %v2182_v13  ;;  %v2125_v36 = vmul.f32 0.01, %v1461_v11 }
 0x1cb   :  { %v2644_v18 = vpack.c.bf16 %v2413_v16, %v2413_v16  ;;  %v2471_v19 = vsel %vm2009_vm2, %v1749_v7, %v2240_v14  ;;  %v2298_v20 = vsel %vm1836_vm4, %v1316_v10, %v2067_v15 }
 0x1cc   :  { %v2702_v21 = vpack.c.bf16 %v2471_v19, %v2471_v19  ;;  %v2529_v22 = vpack.c.bf16 %v2298_v20, %v2298_v20  ;;  %v2356_v23 = vsel %vm1894_vm5, %v1461_v11, %v2125_v36 }
 0x1cd   :  { %2876 = vst.msk [vmem:[%s5358_s3 + $0x268] sm:$0xf] %vm2721_vm3, %v2644_v18  ;;  %v2587_v24 = vpack.c.bf16 %v2356_v23, %v2356_v23  ;;  %v1605_v26 = vpop.f32.mrf.mxu2  ;;  %v1750_v27 = vpop.f32.mrf.mxu3 }
 0x1ce   :  { %2934 = vst.msk [vmem:[%s5358_s3 + $0x350] sm:$0xf] %vm2721_vm3, %v2702_v21  ;;  %v1606_v30 = vadd.f32 %v4771_v63, %v1605_v26  ;;  %v1751_v31 = vadd.f32 %v4771_v63, %v1750_v27  ;;  %v1318_v32 = vpop.f32.mrf.mxu0  ;;  %v1463_v33 = vpop.f32.mrf.mxu1 }
 0x1cf   :  { %2761 = vst.msk [vmem:[%s5358_s3 + $0x9c] sm:$0xf] %vm2721_vm3, %v2529_v22  ;;  %v1319_v37 = vadd.f32 %v4771_v63, %v1318_v32  ;;  %v1464_v38 = vadd.f32 %v4771_v63, %v1463_v33 }
 0x1d0   :  { %2819 = vst.msk [vmem:[%s5358_s3 + $0x184] sm:$0xf] %vm2721_vm3, %v2587_v24  ;;  %vm1952_vm6 = vcmp.ge.f32.partialorder %v1606_v30, 0.0  ;;  %v2183_v39 = vmul.f32 0.01, %v1606_v30  ;;  %vm2010_vm7 = vcmp.ge.f32.partialorder %v1751_v31, 0.0 }
 0x1d1   :  { %v2241_v40 = vmul.f32 0.01, %v1751_v31  ;;  %vm1837_vm8 = vcmp.ge.f32.partialorder %v1319_v37, 0.0  ;;  %v2068_v41 = vmul.f32 0.01, %v1319_v37  ;;  %vm1895_vm9 = vcmp.ge.f32.partialorder %v1464_v38, 0.0  ;;  %3461 = vmatmul.msk.bf16.gmra.mxu0 %vm860_vm0, %v3577_v28  ;;  %3490 = vmatmul.msk.bf16.gmra.mxu1 %vm860_vm0, %v3606_v29 }
 0x1d2   :  { %v2414_v42 = vsel %vm1952_vm6, %v1606_v30, %v2183_v39  ;;  %v2126_v43 = vmul.f32 0.01, %v1464_v38  ;;  %3519 = vmatmul.msk.bf16.gmra.mxu2 %vm860_vm0, %v3635_v34  ;;  %3548 = vmatmul.msk.bf16.gmra.mxu3 %vm860_vm0, %v835_v35 }
 0x1d3   :  { %v2645_v44 = vpack.c.bf16 %v2414_v42, %v2414_v42  ;;  %v2472_v45 = vsel %vm2010_vm7, %v1751_v31, %v2241_v40  ;;  %v2299_v46 = vsel %vm1837_vm8, %v1319_v37, %v2068_v41 }
 0x1d4   :  { %v2703_v47 = vpack.c.bf16 %v2472_v45, %v2472_v45  ;;  %v2530_v48 = vpack.c.bf16 %v2299_v46, %v2299_v46  ;;  %v2357_v49 = vsel %vm1895_vm9, %v1464_v38, %v2126_v43 }
 0x1d5   :  { %2877 = vst.msk [vmem:[%s5358_s3 + $0x26c] sm:$0xf] %vm2721_vm3, %v2645_v44  ;;  %v2588_v50 = vpack.c.bf16 %v2357_v49, %v2357_v49  ;;  %v1608_v51 = vpop.f32.mrf.mxu2  ;;  %v1753_v52 = vpop.f32.mrf.mxu3 }
 0x1d6   :  { %2935 = vst.msk [vmem:[%s5358_s3 + $0x354] sm:$0xf] %vm2721_vm3, %v2703_v47  ;;  %v1609_v53 = vadd.f32 %v4771_v63, %v1608_v51  ;;  %v1754_v54 = vadd.f32 %v4771_v63, %v1753_v52  ;;  %v1320_v25 = vpop.f32.mrf.mxu0  ;;  %v1465_v55 = vpop.f32.mrf.mxu1 }
 0x1d7   :  { %2762 = vst.msk [vmem:[%s5358_s3 + $0xa0] sm:$0xf] %vm2721_vm3, %v2530_v48  ;;  %v1321_v56 = vadd.f32 %v4771_v63, %v1320_v25  ;;  %v1466_v57 = vadd.f32 %v4771_v63, %v1465_v55 }
 0x1d8   :  { %2820 = vst.msk [vmem:[%s5358_s3 + $0x188] sm:$0xf] %vm2721_vm3, %v2588_v50  ;;  %vm1953_vm0 = vcmp.ge.f32.partialorder %v1609_v53, 0.0  ;;  %v2184_v58 = vmul.f32 0.01, %v1609_v53  ;;  %vm2011_vm10 = vcmp.ge.f32.partialorder %v1754_v54, 0.0 }
 0x1d9   :  { %v2242_v59 = vmul.f32 0.01, %v1754_v54  ;;  %vm1838_vm11 = vcmp.ge.f32.partialorder %v1321_v56, 0.0  ;;  %v2069_v60 = vmul.f32 0.01, %v1321_v56  ;;  %vm1896_vm12 = vcmp.ge.f32.partialorder %v1466_v57, 0.0 }
 0x1da   :  { %v2415_v61 = vsel %vm1953_vm0, %v1609_v53, %v2184_v58  ;;  %v2127_v62 = vmul.f32 0.01, %v1466_v57 }
 0x1db   :  { %v2646_v0 = vpack.c.bf16 %v2415_v61, %v2415_v61  ;;  %v2473_v1 = vsel %vm2011_vm10, %v1754_v54, %v2242_v59  ;;  %v2300_v2 = vsel %vm1838_vm11, %v1321_v56, %v2069_v60 }
 0x1dc   :  { %v2704_v3 = vpack.c.bf16 %v2473_v1, %v2473_v1  ;;  %v2531_v4 = vpack.c.bf16 %v2300_v2, %v2300_v2  ;;  %v2358_v5 = vsel %vm1896_vm12, %v1466_v57, %v2127_v62 }
 0x1dd   :  { %2878 = vst.msk [vmem:[%s5358_s3 + $0x270] sm:$0xf] %vm2721_vm3, %v2646_v0  ;;  %v2589_v6 = vpack.c.bf16 %v2358_v5, %v2358_v5  ;;  %v1610_v7 = vpop.f32.mrf.mxu2  ;;  %v1755_v8 = vpop.f32.mrf.mxu3 }
 0x1de   :  { %2936 = vst.msk [vmem:[%s5358_s3 + $0x358] sm:$0xf] %vm2721_vm3, %v2704_v3  ;;  %v1611_v9 = vadd.f32 %v4771_v63, %v1610_v7  ;;  %v1756_v10 = vadd.f32 %v4771_v63, %v1755_v8  ;;  %v1323_v11 = vpop.f32.mrf.mxu0  ;;  %v1468_v12 = vpop.f32.mrf.mxu1 }
 0x1df   :  { %2763 = vst.msk [vmem:[%s5358_s3 + $0xa4] sm:$0xf] %vm2721_vm3, %v2531_v4  ;;  %v1324_v13 = vadd.f32 %v4771_v63, %v1323_v11  ;;  %v1469_v14 = vadd.f32 %v4771_v63, %v1468_v12 }
 0x1e0   :  { %2821 = vst.msk [vmem:[%s5358_s3 + $0x18c] sm:$0xf] %vm2721_vm3, %v2589_v6  ;;  %vm1954_vm13 = vcmp.ge.f32.partialorder %v1611_v9, 0.0  ;;  %v2185_v15 = vmul.f32 0.01, %v1611_v9  ;;  %vm2012_vm14 = vcmp.ge.f32.partialorder %v1756_v10, 0.0 }
 0x1e1   :  { %v2243_v16 = vmul.f32 0.01, %v1756_v10  ;;  %vm1839_vm15 = vcmp.ge.f32.partialorder %v1324_v13, 0.0  ;;  %v2070_v36 = vmul.f32 0.01, %v1324_v13  ;;  %vm1897_vm1 = vcmp.ge.f32.partialorder %v1469_v14, 0.0 }
 0x1e2   :  { %v2416_v17 = vsel %vm1954_vm13, %v1611_v9, %v2185_v15  ;;  %v2128_v18 = vmul.f32 0.01, %v1469_v14 }
 0x1e3   :  { %v2647_v19 = vpack.c.bf16 %v2416_v17, %v2416_v17  ;;  %v2474_v20 = vsel %vm2012_vm14, %v1756_v10, %v2243_v16  ;;  %v2301_v21 = vsel %vm1839_vm15, %v1324_v13, %v2070_v36 }
 0x1e4   :  { %v2705_v22 = vpack.c.bf16 %v2474_v20, %v2474_v20  ;;  %v2532_v23 = vpack.c.bf16 %v2301_v21, %v2301_v21  ;;  %v2359_v24 = vsel %vm1897_vm1, %v1469_v14, %v2128_v18 }
 0x1e5   :  { %2879 = vst.msk [vmem:[%s5358_s3 + $0x274] sm:$0xf] %vm2721_vm3, %v2647_v19  ;;  %v2590_v26 = vpack.c.bf16 %v2359_v24, %v2359_v24  ;;  %v1613_v27 = vpop.f32.mrf.mxu2  ;;  %v1758_v28 = vpop.f32.mrf.mxu3 }
 0x1e6   :  { %2937 = vst.msk [vmem:[%s5358_s3 + $0x35c] sm:$0xf] %vm2721_vm3, %v2705_v22  ;;  %v1614_v29 = vadd.f32 %v4771_v63, %v1613_v27  ;;  %v1759_v30 = vadd.f32 %v4771_v63, %v1758_v28  ;;  %v1325_v31 = vpop.f32.mrf.mxu0  ;;  %v1470_v32 = vpop.f32.mrf.mxu1 }
 0x1e7   :  { %2764 = vst.msk [vmem:[%s5358_s3 + $0xa8] sm:$0xf] %vm2721_vm3, %v2532_v23  ;;  %v1326_v33 = vadd.f32 %v4771_v63, %v1325_v31  ;;  %v1471_v34 = vadd.f32 %v4771_v63, %v1470_v32 }
 0x1e8   :  { %2822 = vst.msk [vmem:[%s5358_s3 + $0x190] sm:$0xf] %vm2721_vm3, %v2590_v26  ;;  %vm1955_vm2 = vcmp.ge.f32.partialorder %v1614_v29, 0.0  ;;  %v2186_v35 = vmul.f32 0.01, %v1614_v29  ;;  %vm2013_vm4 = vcmp.ge.f32.partialorder %v1759_v30, 0.0 }
 0x1e9   :  { %v2244_v37 = vmul.f32 0.01, %v1759_v30  ;;  %vm1840_vm5 = vcmp.ge.f32.partialorder %v1326_v33, 0.0  ;;  %v2071_v38 = vmul.f32 0.01, %v1326_v33  ;;  %vm1898_vm6 = vcmp.ge.f32.partialorder %v1471_v34, 0.0 }
 0x1ea   :  { %v2417_v39 = vsel %vm1955_vm2, %v1614_v29, %v2186_v35  ;;  %v2129_v40 = vmul.f32 0.01, %v1471_v34 }
 0x1eb   :  { %v2648_v41 = vpack.c.bf16 %v2417_v39, %v2417_v39  ;;  %v2475_v42 = vsel %vm2013_vm4, %v1759_v30, %v2244_v37  ;;  %v2302_v43 = vsel %vm1840_vm5, %v1326_v33, %v2071_v38 }
 0x1ec   :  { %v2706_v44 = vpack.c.bf16 %v2475_v42, %v2475_v42  ;;  %v2533_v45 = vpack.c.bf16 %v2302_v43, %v2302_v43  ;;  %v2360_v46 = vsel %vm1898_vm6, %v1471_v34, %v2129_v40 }
 0x1ed   :  { %2880 = vst.msk [vmem:[%s5358_s3 + $0x278] sm:$0xf] %vm2721_vm3, %v2648_v41  ;;  %v2591_v47 = vpack.c.bf16 %v2360_v46, %v2360_v46  ;;  %v1615_v48 = vpop.f32.mrf.mxu2  ;;  %v1760_v49 = vpop.f32.mrf.mxu3 }
 0x1ee   :  { %2938 = vst.msk [vmem:[%s5358_s3 + $0x360] sm:$0xf] %vm2721_vm3, %v2706_v44  ;;  %v1616_v50 = vadd.f32 %v4771_v63, %v1615_v48  ;;  %v1761_v51 = vadd.f32 %v4771_v63, %v1760_v49  ;;  %v1328_v52 = vpop.f32.mrf.mxu0  ;;  %v1473_v53 = vpop.f32.mrf.mxu1 }
 0x1ef   :  { %2765 = vst.msk [vmem:[%s5358_s3 + $0xac] sm:$0xf] %vm2721_vm3, %v2533_v45  ;;  %v1329_v54 = vadd.f32 %v4771_v63, %v1328_v52  ;;  %v1474_v25 = vadd.f32 %v4771_v63, %v1473_v53 }
 0x1f0   :  { %2823 = vst.msk [vmem:[%s5358_s3 + $0x194] sm:$0xf] %vm2721_vm3, %v2591_v47  ;;  %vm1956_vm7 = vcmp.ge.f32.partialorder %v1616_v50, 0.0  ;;  %v2187_v55 = vmul.f32 0.01, %v1616_v50  ;;  %vm2014_vm8 = vcmp.ge.f32.partialorder %v1761_v51, 0.0 }
 0x1f1   :  { %v2245_v56 = vmul.f32 0.01, %v1761_v51  ;;  %vm1841_vm9 = vcmp.ge.f32.partialorder %v1329_v54, 0.0  ;;  %v2072_v57 = vmul.f32 0.01, %v1329_v54  ;;  %vm1899_vm0 = vcmp.ge.f32.partialorder %v1474_v25, 0.0 }
 0x1f2   :  { %v2418_v58 = vsel %vm1956_vm7, %v1616_v50, %v2187_v55  ;;  %v2130_v59 = vmul.f32 0.01, %v1474_v25 }
 0x1f3   :  { %v2649_v60 = vpack.c.bf16 %v2418_v58, %v2418_v58  ;;  %v2476_v61 = vsel %vm2014_vm8, %v1761_v51, %v2245_v56  ;;  %v2303_v62 = vsel %vm1841_vm9, %v1329_v54, %v2072_v57 }
 0x1f4   :  { %v2707_v0 = vpack.c.bf16 %v2476_v61, %v2476_v61  ;;  %v2534_v1 = vpack.c.bf16 %v2303_v62, %v2303_v62  ;;  %v2361_v2 = vsel %vm1899_vm0, %v1474_v25, %v2130_v59 }
 0x1f5   :  { %2881 = vst.msk [vmem:[%s5358_s3 + $0x27c] sm:$0xf] %vm2721_vm3, %v2649_v60  ;;  %v2592_v3 = vpack.c.bf16 %v2361_v2, %v2361_v2  ;;  %v1618_v4 = vpop.f32.mrf.mxu2  ;;  %v1763_v5 = vpop.f32.mrf.mxu3 }
 0x1f6   :  { %2939 = vst.msk [vmem:[%s5358_s3 + $0x364] sm:$0xf] %vm2721_vm3, %v2707_v0  ;;  %v1619_v6 = vadd.f32 %v4771_v63, %v1618_v4  ;;  %v1764_v7 = vadd.f32 %v4771_v63, %v1763_v5  ;;  %v1330_v8 = vpop.f32.mrf.mxu0  ;;  %v1475_v9 = vpop.f32.mrf.mxu1 }
 0x1f7   :  { %2766 = vst.msk [vmem:[%s5358_s3 + $0xb0] sm:$0xf] %vm2721_vm3, %v2534_v1  ;;  %v1331_v10 = vadd.f32 %v4771_v63, %v1330_v8  ;;  %v1476_v11 = vadd.f32 %v4771_v63, %v1475_v9 }
 0x1f8   :  { %2824 = vst.msk [vmem:[%s5358_s3 + $0x198] sm:$0xf] %vm2721_vm3, %v2592_v3  ;;  %vm1957_vm10 = vcmp.ge.f32.partialorder %v1619_v6, 0.0  ;;  %v2188_v12 = vmul.f32 0.01, %v1619_v6  ;;  %vm2015_vm11 = vcmp.ge.f32.partialorder %v1764_v7, 0.0 }
 0x1f9   :  { %v2246_v13 = vmul.f32 0.01, %v1764_v7  ;;  %vm1842_vm12 = vcmp.ge.f32.partialorder %v1331_v10, 0.0  ;;  %v2073_v14 = vmul.f32 0.01, %v1331_v10  ;;  %vm1900_vm13 = vcmp.ge.f32.partialorder %v1476_v11, 0.0 }
 0x1fa   :  { %v2419_v15 = vsel %vm1957_vm10, %v1619_v6, %v2188_v12  ;;  %v2131_v16 = vmul.f32 0.01, %v1476_v11 }
 0x1fb   :  { %v2650_v36 = vpack.c.bf16 %v2419_v15, %v2419_v15  ;;  %v2477_v17 = vsel %vm2015_vm11, %v1764_v7, %v2246_v13  ;;  %v2304_v18 = vsel %vm1842_vm12, %v1331_v10, %v2073_v14 }
 0x1fc   :  { %v2708_v19 = vpack.c.bf16 %v2477_v17, %v2477_v17  ;;  %v2535_v20 = vpack.c.bf16 %v2304_v18, %v2304_v18  ;;  %v2362_v21 = vsel %vm1900_vm13, %v1476_v11, %v2131_v16 }
 0x1fd   :  { %2882 = vst.msk [vmem:[%s5358_s3 + $0x280] sm:$0xf] %vm2721_vm3, %v2650_v36  ;;  %v2593_v22 = vpack.c.bf16 %v2362_v21, %v2362_v21  ;;  %v1620_v23 = vpop.f32.mrf.mxu2  ;;  %v1765_v24 = vpop.f32.mrf.mxu3 }
 0x1fe   :  { %2940 = vst.msk [vmem:[%s5358_s3 + $0x368] sm:$0xf] %vm2721_vm3, %v2708_v19  ;;  %v1621_v26 = vadd.f32 %v4771_v63, %v1620_v23  ;;  %v1766_v27 = vadd.f32 %v4771_v63, %v1765_v24  ;;  %v1333_v28 = vpop.f32.mrf.mxu0  ;;  %v1478_v29 = vpop.f32.mrf.mxu1 }
 0x1ff   :  { %2767 = vst.msk [vmem:[%s5358_s3 + $0xb4] sm:$0xf] %vm2721_vm3, %v2535_v20  ;;  %v1334_v30 = vadd.f32 %v4771_v63, %v1333_v28  ;;  %v1479_v31 = vadd.f32 %v4771_v63, %v1478_v29 }
 0x200   :  { %2825 = vst.msk [vmem:[%s5358_s3 + $0x19c] sm:$0xf] %vm2721_vm3, %v2593_v22  ;;  %vm1958_vm14 = vcmp.ge.f32.partialorder %v1621_v26, 0.0  ;;  %v2189_v32 = vmul.f32 0.01, %v1621_v26  ;;  %vm2016_vm15 = vcmp.ge.f32.partialorder %v1766_v27, 0.0 }
 0x201   :  { %v2247_v33 = vmul.f32 0.01, %v1766_v27  ;;  %vm1843_vm1 = vcmp.ge.f32.partialorder %v1334_v30, 0.0  ;;  %v2074_v34 = vmul.f32 0.01, %v1334_v30  ;;  %vm1901_vm2 = vcmp.ge.f32.partialorder %v1479_v31, 0.0 }
 0x202   :  { %v2420_v35 = vsel %vm1958_vm14, %v1621_v26, %v2189_v32  ;;  %v2132_v37 = vmul.f32 0.01, %v1479_v31 }
 0x203   :  { %v2651_v38 = vpack.c.bf16 %v2420_v35, %v2420_v35  ;;  %v2478_v39 = vsel %vm2016_vm15, %v1766_v27, %v2247_v33  ;;  %v2305_v40 = vsel %vm1843_vm1, %v1334_v30, %v2074_v34 }
 0x204   :  { %v2709_v41 = vpack.c.bf16 %v2478_v39, %v2478_v39  ;;  %v2536_v42 = vpack.c.bf16 %v2305_v40, %v2305_v40  ;;  %v2363_v43 = vsel %vm1901_vm2, %v1479_v31, %v2132_v37 }
 0x205   :  { %2883 = vst.msk [vmem:[%s5358_s3 + $0x284] sm:$0xf] %vm2721_vm3, %v2651_v38  ;;  %v2594_v44 = vpack.c.bf16 %v2363_v43, %v2363_v43  ;;  %v1623_v45 = vpop.f32.mrf.mxu2  ;;  %v1768_v46 = vpop.f32.mrf.mxu3 }
 0x206   :  { %2941 = vst.msk [vmem:[%s5358_s3 + $0x36c] sm:$0xf] %vm2721_vm3, %v2709_v41  ;;  %v1624_v47 = vadd.f32 %v4771_v63, %v1623_v45  ;;  %v1769_v48 = vadd.f32 %v4771_v63, %v1768_v46  ;;  %v1335_v49 = vpop.f32.mrf.mxu0  ;;  %v1480_v50 = vpop.f32.mrf.mxu1 }
 0x207   :  { %2768 = vst.msk [vmem:[%s5358_s3 + $0xb8] sm:$0xf] %vm2721_vm3, %v2536_v42  ;;  %v1336_v51 = vadd.f32 %v4771_v63, %v1335_v49  ;;  %v1481_v52 = vadd.f32 %v4771_v63, %v1480_v50 }
 0x208   :  { %2826 = vst.msk [vmem:[%s5358_s3 + $0x1a0] sm:$0xf] %vm2721_vm3, %v2594_v44  ;;  %vm1959_vm4 = vcmp.ge.f32.partialorder %v1624_v47, 0.0  ;;  %v2190_v53 = vmul.f32 0.01, %v1624_v47  ;;  %vm2017_vm5 = vcmp.ge.f32.partialorder %v1769_v48, 0.0 }
 0x209   :  { %v2248_v54 = vmul.f32 0.01, %v1769_v48  ;;  %vm1844_vm6 = vcmp.ge.f32.partialorder %v1336_v51, 0.0  ;;  %v2075_v25 = vmul.f32 0.01, %v1336_v51  ;;  %vm1902_vm7 = vcmp.ge.f32.partialorder %v1481_v52, 0.0 }
 0x20a   :  { %v2421_v55 = vsel %vm1959_vm4, %v1624_v47, %v2190_v53  ;;  %v2133_v56 = vmul.f32 0.01, %v1481_v52 }
 0x20b   :  { %v2652_v57 = vpack.c.bf16 %v2421_v55, %v2421_v55  ;;  %v2479_v58 = vsel %vm2017_vm5, %v1769_v48, %v2248_v54  ;;  %v2306_v59 = vsel %vm1844_vm6, %v1336_v51, %v2075_v25  ;;  %v5186_v48 = vld [vmem:[%s5356_s2] ss:$0 sm:$0xff] }
 0x20c   :  { %v2710_v60 = vpack.c.bf16 %v2479_v58, %v2479_v58  ;;  %v2537_v61 = vpack.c.bf16 %v2306_v59, %v2306_v59  ;;  %v2364_v62 = vsel %vm1902_vm7, %v1481_v52, %v2133_v56 }
 0x20d   :  { %2884 = vst.msk [vmem:[%s5358_s3 + $0x288] sm:$0xf] %vm2721_vm3, %v2652_v57  ;;  %v2595_v0 = vpack.c.bf16 %v2364_v62, %v2364_v62  ;;  %v1625_v1 = vpop.f32.mrf.mxu2  ;;  %v1770_v2 = vpop.f32.mrf.mxu3 }
 0x20e   :  { %2942 = vst.msk [vmem:[%s5358_s3 + $0x370] sm:$0xf] %vm2721_vm3, %v2710_v60  ;;  %v1626_v3 = vadd.f32 %v4771_v63, %v1625_v1  ;;  %v1771_v4 = vadd.f32 %v4771_v63, %v1770_v2  ;;  %v1338_v5 = vpop.f32.mrf.mxu0  ;;  %v1483_v6 = vpop.f32.mrf.mxu1 }
 0x20f   :  { %2769 = vst.msk [vmem:[%s5358_s3 + $0xbc] sm:$0xf] %vm2721_vm3, %v2537_v61  ;;  %v1339_v7 = vadd.f32 %v4771_v63, %v1338_v5  ;;  %v1484_v8 = vadd.f32 %v4771_v63, %v1483_v6 }
 0x210   :  { %2827 = vst.msk [vmem:[%s5358_s3 + $0x1a4] sm:$0xf] %vm2721_vm3, %v2595_v0  ;;  %vm1960_vm8 = vcmp.ge.f32.partialorder %v1626_v3, 0.0  ;;  %v2191_v9 = vmul.f32 0.01, %v1626_v3  ;;  %vm2018_vm9 = vcmp.ge.f32.partialorder %v1771_v4, 0.0 }
 0x211   :  { %v2249_v10 = vmul.f32 0.01, %v1771_v4  ;;  %vm1845_vm0 = vcmp.ge.f32.partialorder %v1339_v7, 0.0  ;;  %v2076_v11 = vmul.f32 0.01, %v1339_v7  ;;  %vm1903_vm10 = vcmp.ge.f32.partialorder %v1484_v8, 0.0 }
 0x212   :  { %v2422_v12 = vsel %vm1960_vm8, %v1626_v3, %v2191_v9  ;;  %v2134_v13 = vmul.f32 0.01, %v1484_v8 }
 0x213   :  { %v2653_v14 = vpack.c.bf16 %v2422_v12, %v2422_v12  ;;  %v2480_v15 = vsel %vm2018_vm9, %v1771_v4, %v2249_v10  ;;  %v2307_v16 = vsel %vm1845_vm0, %v1339_v7, %v2076_v11 }
 0x214   :  { %v2711_v36 = vpack.c.bf16 %v2480_v15, %v2480_v15  ;;  %v2538_v17 = vpack.c.bf16 %v2307_v16, %v2307_v16  ;;  %v2365_v18 = vsel %vm1903_vm10, %v1484_v8, %v2134_v13 }
 0x215   :  { %2885 = vst.msk [vmem:[%s5358_s3 + $0x28c] sm:$0xf] %vm2721_vm3, %v2653_v14  ;;  %v2596_v19 = vpack.c.bf16 %v2365_v18, %v2365_v18  ;;  %v1628_v20 = vpop.f32.mrf.mxu2  ;;  %v1773_v21 = vpop.f32.mrf.mxu3 }
 0x216   :  { %2943 = vst.msk [vmem:[%s5358_s3 + $0x374] sm:$0xf] %vm2721_vm3, %v2711_v36  ;;  %v1629_v22 = vadd.f32 %v4771_v63, %v1628_v20  ;;  %v1774_v23 = vadd.f32 %v4771_v63, %v1773_v21  ;;  %v1340_v24 = vpop.f32.mrf.mxu0  ;;  %v1485_v26 = vpop.f32.mrf.mxu1 }
 0x217   :  { %2770 = vst.msk [vmem:[%s5358_s3 + $0xc0] sm:$0xf] %vm2721_vm3, %v2538_v17  ;;  %v1341_v27 = vadd.f32 %v4771_v63, %v1340_v24  ;;  %v1486_v28 = vadd.f32 %v4771_v63, %v1485_v26 }
 0x218   :  { %2828 = vst.msk [vmem:[%s5358_s3 + $0x1a8] sm:$0xf] %vm2721_vm3, %v2596_v19  ;;  %vm1961_vm11 = vcmp.ge.f32.partialorder %v1629_v22, 0.0  ;;  %v2192_v29 = vmul.f32 0.01, %v1629_v22  ;;  %vm2019_vm12 = vcmp.ge.f32.partialorder %v1774_v23, 0.0 }
 0x219   :  { %v2250_v30 = vmul.f32 0.01, %v1774_v23  ;;  %vm1846_vm13 = vcmp.ge.f32.partialorder %v1341_v27, 0.0  ;;  %v2077_v31 = vmul.f32 0.01, %v1341_v27  ;;  %vm1904_vm14 = vcmp.ge.f32.partialorder %v1486_v28, 0.0 }
 0x21a   :  { %v2423_v32 = vsel %vm1961_vm11, %v1629_v22, %v2192_v29  ;;  %v2135_v33 = vmul.f32 0.01, %v1486_v28 }
 0x21b   :  { %v2654_v34 = vpack.c.bf16 %v2423_v32, %v2423_v32  ;;  %v2481_v35 = vsel %vm2019_vm12, %v1774_v23, %v2250_v30  ;;  %v2308_v37 = vsel %vm1846_vm13, %v1341_v27, %v2077_v31 }
 0x21c   :  { %v2712_v38 = vpack.c.bf16 %v2481_v35, %v2481_v35  ;;  %v2539_v39 = vpack.c.bf16 %v2308_v37, %v2308_v37  ;;  %v2366_v40 = vsel %vm1904_vm14, %v1486_v28, %v2135_v33 }
 0x21d   :  { %2886 = vst.msk [vmem:[%s5358_s3 + $0x290] sm:$0xf] %vm2721_vm3, %v2654_v34  ;;  %v2597_v41 = vpack.c.bf16 %v2366_v40, %v2366_v40  ;;  %v1630_v42 = vpop.f32.mrf.mxu2  ;;  %v1775_v43 = vpop.f32.mrf.mxu3 }
 0x21e   :  { %2944 = vst.msk [vmem:[%s5358_s3 + $0x378] sm:$0xf] %vm2721_vm3, %v2712_v38  ;;  %v1631_v44 = vadd.f32 %v4771_v63, %v1630_v42  ;;  %v1776_v45 = vadd.f32 %v4771_v63, %v1775_v43  ;;  %v1343_v46 = vpop.f32.mrf.mxu0  ;;  %v1488_v47 = vpop.f32.mrf.mxu1 }
 0x21f   :  { %2771 = vst.msk [vmem:[%s5358_s3 + $0xc4] sm:$0xf] %vm2721_vm3, %v2539_v39  ;;  %v1344_v49 = vadd.f32 %v5186_v48, %v1343_v46  ;;  %v1489_v50 = vadd.f32 %v5186_v48, %v1488_v47 }
 0x220   :  { %2829 = vst.msk [vmem:[%s5358_s3 + $0x1ac] sm:$0xf] %vm2721_vm3, %v2597_v41  ;;  %vm1962_vm15 = vcmp.ge.f32.partialorder %v1631_v44, 0.0  ;;  %v2193_v63 = vmul.f32 0.01, %v1631_v44  ;;  %vm2020_vm1 = vcmp.ge.f32.partialorder %v1776_v45, 0.0 }
 0x221   :  { %v2251_v51 = vmul.f32 0.01, %v1776_v45  ;;  %vm1847_vm2 = vcmp.ge.f32.partialorder %v1344_v49, 0.0  ;;  %v2078_v52 = vmul.f32 0.01, %v1344_v49  ;;  %vm1905_vm4 = vcmp.ge.f32.partialorder %v1489_v50, 0.0 }
 0x222   :  { %v2424_v53 = vsel %vm1962_vm15, %v1631_v44, %v2193_v63  ;;  %v2136_v54 = vmul.f32 0.01, %v1489_v50 }
 0x223   :  { %v2655_v25 = vpack.c.bf16 %v2424_v53, %v2424_v53  ;;  %v2482_v55 = vsel %vm2020_vm1, %v1776_v45, %v2251_v51  ;;  %v2309_v56 = vsel %vm1847_vm2, %v1344_v49, %v2078_v52 }
 0x224   :  { %v2713_v57 = vpack.c.bf16 %v2482_v55, %v2482_v55  ;;  %v2540_v58 = vpack.c.bf16 %v2309_v56, %v2309_v56  ;;  %v2367_v59 = vsel %vm1905_vm4, %v1489_v50, %v2136_v54 }
 0x225   :  { %2887 = vst.msk [vmem:[%s5358_s3 + $0x294] sm:$0xf] %vm2721_vm3, %v2655_v25  ;;  %v2598_v60 = vpack.c.bf16 %v2367_v59, %v2367_v59  ;;  %v1633_v61 = vpop.f32.mrf.mxu2  ;;  %v1778_v62 = vpop.f32.mrf.mxu3 }
 0x226   :  { %2945 = vst.msk [vmem:[%s5358_s3 + $0x37c] sm:$0xf] %vm2721_vm3, %v2713_v57  ;;  %v1634_v0 = vadd.f32 %v5186_v48, %v1633_v61  ;;  %v1779_v1 = vadd.f32 %v5186_v48, %v1778_v62  ;;  %v1345_v2 = vpop.f32.mrf.mxu0  ;;  %v1490_v3 = vpop.f32.mrf.mxu1 }
 0x227   :  { %2772 = vst.msk [vmem:[%s5358_s3 + $0xc8] sm:$0xf] %vm2721_vm3, %v2540_v58  ;;  %v1346_v4 = vadd.f32 %v5186_v48, %v1345_v2  ;;  %v1491_v5 = vadd.f32 %v5186_v48, %v1490_v3 }
 0x228   :  { %2830 = vst.msk [vmem:[%s5358_s3 + $0x1b0] sm:$0xf] %vm2721_vm3, %v2598_v60  ;;  %vm1963_vm5 = vcmp.ge.f32.partialorder %v1634_v0, 0.0  ;;  %v2194_v6 = vmul.f32 0.01, %v1634_v0  ;;  %vm2021_vm6 = vcmp.ge.f32.partialorder %v1779_v1, 0.0 }
 0x229   :  { %v2252_v7 = vmul.f32 0.01, %v1779_v1  ;;  %vm1848_vm7 = vcmp.ge.f32.partialorder %v1346_v4, 0.0  ;;  %v2079_v8 = vmul.f32 0.01, %v1346_v4  ;;  %vm1906_vm8 = vcmp.ge.f32.partialorder %v1491_v5, 0.0 }
 0x22a   :  { %v2425_v9 = vsel %vm1963_vm5, %v1634_v0, %v2194_v6  ;;  %v2137_v10 = vmul.f32 0.01, %v1491_v5 }
 0x22b   :  { %v2656_v11 = vpack.c.bf16 %v2425_v9, %v2425_v9  ;;  %v2483_v12 = vsel %vm2021_vm6, %v1779_v1, %v2252_v7  ;;  %v2310_v13 = vsel %vm1848_vm7, %v1346_v4, %v2079_v8 }
 0x22c   :  { %v2714_v14 = vpack.c.bf16 %v2483_v12, %v2483_v12  ;;  %v2541_v15 = vpack.c.bf16 %v2310_v13, %v2310_v13  ;;  %v2368_v16 = vsel %vm1906_vm8, %v1491_v5, %v2137_v10 }
 0x22d   :  { %2888 = vst.msk [vmem:[%s5358_s3 + $0x298] sm:$0xf] %vm2721_vm3, %v2656_v11  ;;  %v2599_v36 = vpack.c.bf16 %v2368_v16, %v2368_v16  ;;  %v1635_v17 = vpop.f32.mrf.mxu2  ;;  %v1780_v18 = vpop.f32.mrf.mxu3 }
 0x22e   :  { %2946 = vst.msk [vmem:[%s5358_s3 + $0x380] sm:$0xf] %vm2721_vm3, %v2714_v14  ;;  %v1636_v19 = vadd.f32 %v5186_v48, %v1635_v17  ;;  %v1781_v20 = vadd.f32 %v5186_v48, %v1780_v18  ;;  %v1348_v21 = vpop.f32.mrf.mxu0  ;;  %v1493_v22 = vpop.f32.mrf.mxu1 }
 0x22f   :  { %2773 = vst.msk [vmem:[%s5358_s3 + $0xcc] sm:$0xf] %vm2721_vm3, %v2541_v15  ;;  %v1349_v23 = vadd.f32 %v5186_v48, %v1348_v21  ;;  %v1494_v24 = vadd.f32 %v5186_v48, %v1493_v22 }
 0x230   :  { %2831 = vst.msk [vmem:[%s5358_s3 + $0x1b4] sm:$0xf] %vm2721_vm3, %v2599_v36  ;;  %vm1964_vm9 = vcmp.ge.f32.partialorder %v1636_v19, 0.0  ;;  %v2195_v26 = vmul.f32 0.01, %v1636_v19  ;;  %vm2022_vm0 = vcmp.ge.f32.partialorder %v1781_v20, 0.0 }
 0x231   :  { %v2253_v27 = vmul.f32 0.01, %v1781_v20  ;;  %vm1849_vm10 = vcmp.ge.f32.partialorder %v1349_v23, 0.0  ;;  %v2080_v28 = vmul.f32 0.01, %v1349_v23  ;;  %vm1907_vm11 = vcmp.ge.f32.partialorder %v1494_v24, 0.0 }
 0x232   :  { %v2426_v29 = vsel %vm1964_vm9, %v1636_v19, %v2195_v26  ;;  %v2138_v30 = vmul.f32 0.01, %v1494_v24 }
 0x233   :  { %v2657_v31 = vpack.c.bf16 %v2426_v29, %v2426_v29  ;;  %v2484_v32 = vsel %vm2022_vm0, %v1781_v20, %v2253_v27  ;;  %v2311_v33 = vsel %vm1849_vm10, %v1349_v23, %v2080_v28 }
 0x234   :  { %v2715_v34 = vpack.c.bf16 %v2484_v32, %v2484_v32  ;;  %v2542_v35 = vpack.c.bf16 %v2311_v33, %v2311_v33  ;;  %v2369_v37 = vsel %vm1907_vm11, %v1494_v24, %v2138_v30 }
 0x235   :  { %2889 = vst.msk [vmem:[%s5358_s3 + $0x29c] sm:$0xf] %vm2721_vm3, %v2657_v31  ;;  %v2600_v38 = vpack.c.bf16 %v2369_v37, %v2369_v37  ;;  %v1638_v39 = vpop.f32.mrf.mxu2  ;;  %v1783_v40 = vpop.f32.mrf.mxu3 }
 0x236   :  { %2947 = vst.msk [vmem:[%s5358_s3 + $0x384] sm:$0xf] %vm2721_vm3, %v2715_v34  ;;  %v1639_v41 = vadd.f32 %v5186_v48, %v1638_v39  ;;  %v1784_v42 = vadd.f32 %v5186_v48, %v1783_v40  ;;  %v1350_v43 = vpop.f32.mrf.mxu0  ;;  %v1495_v44 = vpop.f32.mrf.mxu1 }
 0x237   :  { %2774 = vst.msk [vmem:[%s5358_s3 + $0xd0] sm:$0xf] %vm2721_vm3, %v2542_v35  ;;  %v1351_v45 = vadd.f32 %v5186_v48, %v1350_v43  ;;  %v1496_v46 = vadd.f32 %v5186_v48, %v1495_v44 }
 0x238   :  { %2832 = vst.msk [vmem:[%s5358_s3 + $0x1b8] sm:$0xf] %vm2721_vm3, %v2600_v38  ;;  %vm1965_vm12 = vcmp.ge.f32.partialorder %v1639_v41, 0.0  ;;  %v2196_v47 = vmul.f32 0.01, %v1639_v41  ;;  %vm2023_vm13 = vcmp.ge.f32.partialorder %v1784_v42, 0.0 }
 0x239   :  { %v2254_v49 = vmul.f32 0.01, %v1784_v42  ;;  %vm1850_vm14 = vcmp.ge.f32.partialorder %v1351_v45, 0.0  ;;  %v2081_v50 = vmul.f32 0.01, %v1351_v45  ;;  %vm1908_vm15 = vcmp.ge.f32.partialorder %v1496_v46, 0.0 }
 0x23a   :  { %v2427_v63 = vsel %vm1965_vm12, %v1639_v41, %v2196_v47  ;;  %v2139_v51 = vmul.f32 0.01, %v1496_v46 }
 0x23b   :  { %v2658_v52 = vpack.c.bf16 %v2427_v63, %v2427_v63  ;;  %v2485_v53 = vsel %vm2023_vm13, %v1784_v42, %v2254_v49  ;;  %v2312_v54 = vsel %vm1850_vm14, %v1351_v45, %v2081_v50 }
 0x23c   :  { %v2716_v25 = vpack.c.bf16 %v2485_v53, %v2485_v53  ;;  %v2543_v55 = vpack.c.bf16 %v2312_v54, %v2312_v54  ;;  %v2370_v56 = vsel %vm1908_vm15, %v1496_v46, %v2139_v51 }
 0x23d   :  { %2890 = vst.msk [vmem:[%s5358_s3 + $0x2a0] sm:$0xf] %vm2721_vm3, %v2658_v52  ;;  %v2601_v57 = vpack.c.bf16 %v2370_v56, %v2370_v56  ;;  %v1640_v58 = vpop.f32.mrf.mxu2  ;;  %v1785_v59 = vpop.f32.mrf.mxu3 }
 0x23e   :  { %2948 = vst.msk [vmem:[%s5358_s3 + $0x388] sm:$0xf] %vm2721_vm3, %v2716_v25  ;;  %v1641_v60 = vadd.f32 %v5186_v48, %v1640_v58  ;;  %v1786_v61 = vadd.f32 %v5186_v48, %v1785_v59  ;;  %v1353_v62 = vpop.f32.mrf.mxu0  ;;  %v1498_v0 = vpop.f32.mrf.mxu1 }
 0x23f   :  { %2775 = vst.msk [vmem:[%s5358_s3 + $0xd4] sm:$0xf] %vm2721_vm3, %v2543_v55  ;;  %v1354_v1 = vadd.f32 %v5186_v48, %v1353_v62  ;;  %v1499_v2 = vadd.f32 %v5186_v48, %v1498_v0 }
 0x240   :  { %2833 = vst.msk [vmem:[%s5358_s3 + $0x1bc] sm:$0xf] %vm2721_vm3, %v2601_v57  ;;  %vm1966_vm1 = vcmp.ge.f32.partialorder %v1641_v60, 0.0  ;;  %v2197_v3 = vmul.f32 0.01, %v1641_v60  ;;  %vm2024_vm2 = vcmp.ge.f32.partialorder %v1786_v61, 0.0 }
 0x241   :  { %v2255_v4 = vmul.f32 0.01, %v1786_v61  ;;  %vm1851_vm4 = vcmp.ge.f32.partialorder %v1354_v1, 0.0  ;;  %v2082_v5 = vmul.f32 0.01, %v1354_v1  ;;  %vm1909_vm5 = vcmp.ge.f32.partialorder %v1499_v2, 0.0 }
 0x242   :  { %v2428_v6 = vsel %vm1966_vm1, %v1641_v60, %v2197_v3  ;;  %v2140_v7 = vmul.f32 0.01, %v1499_v2 }
 0x243   :  { %v2659_v8 = vpack.c.bf16 %v2428_v6, %v2428_v6  ;;  %v2486_v9 = vsel %vm2024_vm2, %v1786_v61, %v2255_v4  ;;  %v2313_v10 = vsel %vm1851_vm4, %v1354_v1, %v2082_v5 }
 0x244   :  { %v2717_v11 = vpack.c.bf16 %v2486_v9, %v2486_v9  ;;  %v2544_v12 = vpack.c.bf16 %v2313_v10, %v2313_v10  ;;  %v2371_v13 = vsel %vm1909_vm5, %v1499_v2, %v2140_v7 }
 0x245   :  { %2891 = vst.msk [vmem:[%s5358_s3 + $0x2a4] sm:$0xf] %vm2721_vm3, %v2659_v8  ;;  %v2602_v14 = vpack.c.bf16 %v2371_v13, %v2371_v13  ;;  %v1643_v15 = vpop.f32.mrf.mxu2  ;;  %v1788_v16 = vpop.f32.mrf.mxu3 }
 0x246   :  { %2949 = vst.msk [vmem:[%s5358_s3 + $0x38c] sm:$0xf] %vm2721_vm3, %v2717_v11  ;;  %v1644_v36 = vadd.f32 %v5186_v48, %v1643_v15  ;;  %v1789_v17 = vadd.f32 %v5186_v48, %v1788_v16  ;;  %v1355_v18 = vpop.f32.mrf.mxu0  ;;  %v1500_v19 = vpop.f32.mrf.mxu1 }
 0x247   :  { %2776 = vst.msk [vmem:[%s5358_s3 + $0xd8] sm:$0xf] %vm2721_vm3, %v2544_v12  ;;  %v1356_v20 = vadd.f32 %v5186_v48, %v1355_v18  ;;  %v1501_v21 = vadd.f32 %v5186_v48, %v1500_v19 }
 0x248   :  { %2834 = vst.msk [vmem:[%s5358_s3 + $0x1c0] sm:$0xf] %vm2721_vm3, %v2602_v14  ;;  %vm1967_vm6 = vcmp.ge.f32.partialorder %v1644_v36, 0.0  ;;  %v2198_v22 = vmul.f32 0.01, %v1644_v36  ;;  %vm2025_vm7 = vcmp.ge.f32.partialorder %v1789_v17, 0.0 }
 0x249   :  { %v2256_v23 = vmul.f32 0.01, %v1789_v17  ;;  %vm1852_vm8 = vcmp.ge.f32.partialorder %v1356_v20, 0.0  ;;  %v2083_v24 = vmul.f32 0.01, %v1356_v20  ;;  %vm1910_vm9 = vcmp.ge.f32.partialorder %v1501_v21, 0.0 }
 0x24a   :  { %v2429_v26 = vsel %vm1967_vm6, %v1644_v36, %v2198_v22  ;;  %v2141_v27 = vmul.f32 0.01, %v1501_v21 }
 0x24b   :  { %v2660_v28 = vpack.c.bf16 %v2429_v26, %v2429_v26  ;;  %v2487_v29 = vsel %vm2025_vm7, %v1789_v17, %v2256_v23  ;;  %v2314_v30 = vsel %vm1852_vm8, %v1356_v20, %v2083_v24 }
 0x24c   :  { %v2718_v31 = vpack.c.bf16 %v2487_v29, %v2487_v29  ;;  %v2545_v32 = vpack.c.bf16 %v2314_v30, %v2314_v30  ;;  %v2372_v33 = vsel %vm1910_vm9, %v1501_v21, %v2141_v27 }
 0x24d   :  { %2892 = vst.msk [vmem:[%s5358_s3 + $0x2a8] sm:$0xf] %vm2721_vm3, %v2660_v28  ;;  %v2603_v34 = vpack.c.bf16 %v2372_v33, %v2372_v33  ;;  %v1645_v35 = vpop.f32.mrf.mxu2  ;;  %v1790_v37 = vpop.f32.mrf.mxu3 }
 0x24e   :  { %2950 = vst.msk [vmem:[%s5358_s3 + $0x390] sm:$0xf] %vm2721_vm3, %v2718_v31  ;;  %v1646_v38 = vadd.f32 %v5186_v48, %v1645_v35  ;;  %v1791_v39 = vadd.f32 %v5186_v48, %v1790_v37  ;;  %v1358_v40 = vpop.f32.mrf.mxu0  ;;  %v1503_v41 = vpop.f32.mrf.mxu1 }
 0x24f   :  { %2777 = vst.msk [vmem:[%s5358_s3 + $0xdc] sm:$0xf] %vm2721_vm3, %v2545_v32  ;;  %v1359_v42 = vadd.f32 %v5186_v48, %v1358_v40  ;;  %v1504_v43 = vadd.f32 %v5186_v48, %v1503_v41 }
 0x250   :  { %2835 = vst.msk [vmem:[%s5358_s3 + $0x1c4] sm:$0xf] %vm2721_vm3, %v2603_v34  ;;  %vm1968_vm0 = vcmp.ge.f32.partialorder %v1646_v38, 0.0  ;;  %v2199_v44 = vmul.f32 0.01, %v1646_v38  ;;  %vm2026_vm10 = vcmp.ge.f32.partialorder %v1791_v39, 0.0 }
 0x251   :  { %v2257_v45 = vmul.f32 0.01, %v1791_v39  ;;  %vm1853_vm11 = vcmp.ge.f32.partialorder %v1359_v42, 0.0  ;;  %v2084_v46 = vmul.f32 0.01, %v1359_v42  ;;  %vm1911_vm12 = vcmp.ge.f32.partialorder %v1504_v43, 0.0 }
 0x252   :  { %v2430_v47 = vsel %vm1968_vm0, %v1646_v38, %v2199_v44  ;;  %v2142_v49 = vmul.f32 0.01, %v1504_v43 }
 0x253   :  { %v2661_v50 = vpack.c.bf16 %v2430_v47, %v2430_v47  ;;  %v2488_v63 = vsel %vm2026_vm10, %v1791_v39, %v2257_v45  ;;  %v2315_v51 = vsel %vm1853_vm11, %v1359_v42, %v2084_v46 }
 0x254   :  { %v2719_v52 = vpack.c.bf16 %v2488_v63, %v2488_v63  ;;  %v2546_v53 = vpack.c.bf16 %v2315_v51, %v2315_v51  ;;  %v2373_v54 = vsel %vm1911_vm12, %v1504_v43, %v2142_v49 }
 0x255   :  { %2893 = vst.msk [vmem:[%s5358_s3 + $0x2ac] sm:$0xf] %vm2721_vm3, %v2661_v50  ;;  %v2604_v25 = vpack.c.bf16 %v2373_v54, %v2373_v54  ;;  %v1648_v55 = vpop.f32.mrf.mxu2  ;;  %v1793_v56 = vpop.f32.mrf.mxu3 }
 0x256   :  { %2951 = vst.msk [vmem:[%s5358_s3 + $0x394] sm:$0xf] %vm2721_vm3, %v2719_v52  ;;  %v1649_v57 = vadd.f32 %v5186_v48, %v1648_v55  ;;  %v1794_v58 = vadd.f32 %v5186_v48, %v1793_v56  ;;  %v1360_v59 = vpop.f32.mrf.mxu0  ;;  %v1505_v60 = vpop.f32.mrf.mxu1 }
 0x257   :  { %2778 = vst.msk [vmem:[%s5358_s3 + $0xe0] sm:$0xf] %vm2721_vm3, %v2546_v53  ;;  %v1361_v61 = vadd.f32 %v5186_v48, %v1360_v59  ;;  %v1506_v62 = vadd.f32 %v5186_v48, %v1505_v60 }
 0x258   :  { %2836 = vst.msk [vmem:[%s5358_s3 + $0x1c8] sm:$0xf] %vm2721_vm3, %v2604_v25  ;;  %vm1969_vm13 = vcmp.ge.f32.partialorder %v1649_v57, 0.0  ;;  %v2200_v0 = vmul.f32 0.01, %v1649_v57  ;;  %vm2027_vm14 = vcmp.ge.f32.partialorder %v1794_v58, 0.0 }
 0x259   :  { %v2258_v1 = vmul.f32 0.01, %v1794_v58  ;;  %vm1854_vm15 = vcmp.ge.f32.partialorder %v1361_v61, 0.0  ;;  %v2085_v2 = vmul.f32 0.01, %v1361_v61  ;;  %vm1912_vm1 = vcmp.ge.f32.partialorder %v1506_v62, 0.0 }
 0x25a   :  { %v2431_v3 = vsel %vm1969_vm13, %v1649_v57, %v2200_v0  ;;  %v2143_v4 = vmul.f32 0.01, %v1506_v62 }
 0x25b   :  { %v2662_v5 = vpack.c.bf16 %v2431_v3, %v2431_v3  ;;  %v2489_v6 = vsel %vm2027_vm14, %v1794_v58, %v2258_v1  ;;  %v2316_v7 = vsel %vm1854_vm15, %v1361_v61, %v2085_v2 }
 0x25c   :  { %v2720_v8 = vpack.c.bf16 %v2489_v6, %v2489_v6  ;;  %v2547_v9 = vpack.c.bf16 %v2316_v7, %v2316_v7  ;;  %v2374_v10 = vsel %vm1912_vm1, %v1506_v62, %v2143_v4 }
 0x25d   :  { %2894 = vst.msk [vmem:[%s5358_s3 + $0x2b0] sm:$0xf] %vm2721_vm3, %v2662_v5  ;;  %v2605_v11 = vpack.c.bf16 %v2374_v10, %v2374_v10  ;;  %v1650_v12 = vpop.f32.mrf.mxu2  ;;  %v1795_v13 = vpop.f32.mrf.mxu3 }
 0x25e   :  { %2952 = vst.msk [vmem:[%s5358_s3 + $0x398] sm:$0xf] %vm2721_vm3, %v2720_v8  ;;  %v1651_v14 = vadd.f32 %v5186_v48, %v1650_v12 }
 0x25f   :  { %2779 = vst.msk [vmem:[%s5358_s3 + $0xe4] sm:$0xf] %vm2721_vm3, %v2547_v9 }
 0x260   :  { %2837 = vst.msk [vmem:[%s5358_s3 + $0x1cc] sm:$0xf] %vm2721_vm3, %v2605_v11  ;;  %vm1970_vm2 = vcmp.ge.f32.partialorder %v1651_v14, 0.0  ;;  %v2201_v15 = vmul.f32 0.01, %v1651_v14 }
 0x262   :  { %v2432_v16 = vsel %vm1970_vm2, %v1651_v14, %v2201_v15 }
 0x263   :  { %v2663_v36 = vpack.c.bf16 %v2432_v16, %v2432_v16 }
 0x265   :  { %2895 = vst.msk [vmem:[%s5358_s3 + $0x2b4] sm:$0xf] %vm2721_vm3, %v2663_v36 }

// kernel: actor_forward.4
= control target key start
LH: loop header
LB: loop body
LE: loop exit
PB: predicated region body
PF: predicated region fallthrough
CT: control target
= control target key end

     0   :  { %vm884_vm1 = vcmask 257024   ;;  %s1875_s1 = inlined_call_operand.vmem [shape: bf16[256,32], index: 1, kind: input, shape index: {}]   ;;  %s1876_s2 = inlined_call_operand.vmem [shape: f32[1,32], index: 2, kind: input, shape index: {}]   ;;  %s1877_s0 = inlined_call_operand.vmem [shape: bf16[378,256], index: 0, kind: input, shape index: {}]   ;;  %s1878_s3 = inlined_call_operand.vmem [shape: bf16[378,32], index: 3, kind: output, shape index: {}]  }
   0x1   :  { %v1249_v0 = vld [vmem:[%s1875_s1 + $0x38] sm:$0xff]  ;;  %v1248_v2 = vld [vmem:[%s1875_s1 + $0x30] sm:$0xff]  ;;  %v1247_v4 = vld [vmem:[%s1875_s1 + $0x28] sm:$0xff] }
   0x2   :  { %v1257_v1 = vld [vmem:[%s1875_s1 + $0x78] sm:$0xff]  ;;  %434 = vmatpush.bf16.msra.mxu0 %v1249_v0  ;;  %1258 = vmatpush.bf16.msra.mxu2 %v1249_v0  ;;  %v1256_v3 = vld [vmem:[%s1875_s1 + $0x70] sm:$0xff]  ;;  %v1255_v5 = vld [vmem:[%s1875_s1 + $0x68] sm:$0xff] }
   0x3   :  { %563 = vmatpush.bf16.msra.mxu1 %v1257_v1  ;;  %1266 = vmatpush.bf16.msra.mxu3 %v1257_v1  ;;  %v1246_v6 = vld [vmem:[%s1875_s1 + $0x20] sm:$0xff]  ;;  %v1245_v8 = vld [vmem:[%s1875_s1 + $0x18] sm:$0xff]  ;;  %v1244_v10 = vld [vmem:[%s1875_s1 + $0x10] sm:$0xff] }
   0x4   :  { %v1254_v7 = vld [vmem:[%s1875_s1 + $0x60] sm:$0xff]  ;;  %v1253_v9 = vld [vmem:[%s1875_s1 + $0x58] sm:$0xff]  ;;  %v1252_v11 = vld [vmem:[%s1875_s1 + $0x50] sm:$0xff] }
   0x5   :  { %v1243_v12 = vld [vmem:[%s1875_s1 + $0x8] sm:$0xff]  ;;  %v1242_v14 = vld [vmem:[%s1875_s1] sm:$0xff]  ;;  %v948_v28 = vld [vmem:[%s1877_s0 + $0x10] sm:$0xf] }
   0x6   :  { %435 = vmatpush.bf16.msra.mxu0 %v1248_v2  ;;  %1259 = vmatpush.bf16.msra.mxu2 %v1248_v2  ;;  %v1251_v13 = vld [vmem:[%s1875_s1 + $0x48] sm:$0xff]  ;;  %v1250_v15 = vld [vmem:[%s1875_s1 + $0x40] sm:$0xff]  ;;  %v1197_v29 = vld [vmem:[%s1877_s0 + $0x14] sm:$0xf0] }
   0x7   :  { %564 = vmatpush.bf16.msra.mxu1 %v1256_v3  ;;  %1267 = vmatpush.bf16.msra.mxu3 %v1256_v3  ;;  %v940_v16 = vld [vmem:[%s1877_s0] sm:$0xf]  ;;  %v1195_v17 = vld [vmem:[%s1877_s0 + $0x4] sm:$0xf0]  ;;  %v1194_v20 = vld [vmem:[%s1877_s0 + $0x4] sm:$0xf]  ;;  %v949_v36 = vor.u32 %v1197_v29, %v948_v28 }
   0x8   :  { %v1036_v18 = vld [vmem:[%s1877_s0 + $0xc0] sm:$0xf]  ;;  %v1219_v19 = vld [vmem:[%s1877_s0 + $0xc4] sm:$0xf0]  ;;  %v942_v21 = vld [vmem:[%s1877_s0 + $0x8] sm:$0xf0]  ;;  %v941_v24 = vor.u32 %v1195_v17, %v940_v16 }
   0x9   :  { %v1218_v22 = vld [vmem:[%s1877_s0 + $0xc4] sm:$0xf]  ;;  %v1038_v23 = vld [vmem:[%s1877_s0 + $0xc8] sm:$0xf0]  ;;  %v1037_v25 = vor.u32 %v1219_v19, %v1036_v18  ;;  %v945_v26 = vor.u32 %v1194_v20, %v942_v21  ;;  %v1044_v30 = vld [vmem:[%s1877_s0 + $0xd0] sm:$0xf] }
   0xa   :  { %436 = vmatpush.bf16.msra.mxu0 %v1247_v4  ;;  %1260 = vmatpush.bf16.msra.mxu2 %v1247_v4  ;;  %v1041_v27 = vor.u32 %v1218_v22, %v1038_v23  ;;  %v1221_v31 = vld [vmem:[%s1877_s0 + $0xd4] sm:$0xf0]  ;;  %v1196_v32 = vld [vmem:[%s1877_s0 + $0x14] sm:$0xf]  ;;  %v950_v33 = vld [vmem:[%s1877_s0 + $0x18] sm:$0xf0] }
   0xb   :  { %565 = vmatpush.bf16.msra.mxu1 %v1255_v5  ;;  %1268 = vmatpush.bf16.msra.mxu3 %v1255_v5  ;;  %v1220_v34 = vld [vmem:[%s1877_s0 + $0xd4] sm:$0xf]  ;;  %v1046_v35 = vld [vmem:[%s1877_s0 + $0xd8] sm:$0xf0]  ;;  %v1045_v37 = vor.u32 %v1221_v31, %v1044_v30  ;;  %v953_v38 = vor.u32 %v1196_v32, %v950_v33  ;;  %v956_v40 = vld [vmem:[%s1877_s0 + $0x20] sm:$0xf] }
   0xc   :  { %v1049_v39 = vor.u32 %v1220_v34, %v1046_v35  ;;  %v1199_v41 = vld [vmem:[%s1877_s0 + $0x24] sm:$0xf0]  ;;  %v1052_v42 = vld [vmem:[%s1877_s0 + $0xe0] sm:$0xf]  ;;  %v1198_v44 = vld [vmem:[%s1877_s0 + $0x24] sm:$0xf] }
   0xd   :  { %v1223_v43 = vld [vmem:[%s1877_s0 + $0xe4] sm:$0xf0]  ;;  %v958_v45 = vld [vmem:[%s1877_s0 + $0x28] sm:$0xf0]  ;;  %v1222_v46 = vld [vmem:[%s1877_s0 + $0xe4] sm:$0xf]  ;;  %v957_v48 = vor.u32 %v1199_v41, %v956_v40 }
   0xe   :  { %437 = vmatpush.bf16.msra.mxu0 %v1246_v6  ;;  %1261 = vmatpush.bf16.msra.mxu2 %v1246_v6  ;;  %v1054_v47 = vld [vmem:[%s1877_s0 + $0xe8] sm:$0xf0]  ;;  %v1053_v49 = vor.u32 %v1223_v43, %v1052_v42  ;;  %v961_v50 = vor.u32 %v1198_v44, %v958_v45  ;;  %v964_v52 = vld [vmem:[%s1877_s0 + $0x30] sm:$0xf]  ;;  %v1201_v53 = vld [vmem:[%s1877_s0 + $0x34] sm:$0xf0] }
   0xf   :  { %566 = vmatpush.bf16.msra.mxu1 %v1254_v7  ;;  %1269 = vmatpush.bf16.msra.mxu3 %v1254_v7  ;;  %v1057_v51 = vor.u32 %v1222_v46, %v1054_v47  ;;  %v1060_v54 = vld [vmem:[%s1877_s0 + $0xf0] sm:$0xf]  ;;  %v1225_v55 = vld [vmem:[%s1877_s0 + $0xf4] sm:$0xf0]  ;;  %v1200_v56 = vld [vmem:[%s1877_s0 + $0x34] sm:$0xf]  ;;  %v965_v60 = vor.u32 %v1201_v53, %v964_v52 }
  0x10   :  { %v966_v57 = vld [vmem:[%s1877_s0 + $0x38] sm:$0xf0]  ;;  %v1224_v58 = vld [vmem:[%s1877_s0 + $0xf4] sm:$0xf]  ;;  %v1061_v61 = vor.u32 %v1225_v55, %v1060_v54  ;;  %v972_v0 = vld [vmem:[%s1877_s0 + $0x40] sm:$0xf] }
  0x11   :  { %v1062_v59 = vld [vmem:[%s1877_s0 + $0xf8] sm:$0xf0]  ;;  %v969_v62 = vor.u32 %v1200_v56, %v966_v57  ;;  %v1203_v1 = vld [vmem:[%s1877_s0 + $0x44] sm:$0xf0]  ;;  %v1068_v2 = vld [vmem:[%s1877_s0 + $0x100] sm:$0xf] }
  0x12   :  { %438 = vmatpush.bf16.msra.mxu0 %v1245_v8  ;;  %1262 = vmatpush.bf16.msra.mxu2 %v1245_v8  ;;  %v1065_v63 = vor.u32 %v1224_v58, %v1062_v59  ;;  %v1227_v3 = vld [vmem:[%s1877_s0 + $0x104] sm:$0xf0]  ;;  %v1202_v4 = vld [vmem:[%s1877_s0 + $0x44] sm:$0xf]  ;;  %v974_v5 = vld [vmem:[%s1877_s0 + $0x48] sm:$0xf0]  ;;  %v973_v8 = vor.u32 %v1203_v1, %v972_v0 }
  0x13   :  { %567 = vmatpush.bf16.msra.mxu1 %v1253_v9  ;;  %1270 = vmatpush.bf16.msra.mxu3 %v1253_v9  ;;  %v1226_v6 = vld [vmem:[%s1877_s0 + $0x104] sm:$0xf]  ;;  %v1070_v7 = vld [vmem:[%s1877_s0 + $0x108] sm:$0xf0]  ;;  %v1069_v9 = vor.u32 %v1227_v3, %v1068_v2  ;;  %v1204_v16 = vld [vmem:[%s1877_s0 + $0x54] sm:$0xf] }
  0x14   :  { %v982_v17 = vld [vmem:[%s1877_s0 + $0x58] sm:$0xf0]  ;;  %v1228_v18 = vld [vmem:[%s1877_s0 + $0x114] sm:$0xf]  ;;  %v1206_v28 = vld [vmem:[%s1877_s0 + $0x64] sm:$0xf] }
  0x15   :  { %v1078_v19 = vld [vmem:[%s1877_s0 + $0x118] sm:$0xf0]  ;;  %v985_v22 = vor.u32 %v1204_v16, %v982_v17  ;;  %v990_v29 = vld [vmem:[%s1877_s0 + $0x68] sm:$0xf0]  ;;  %v1230_v30 = vld [vmem:[%s1877_s0 + $0x124] sm:$0xf] }
  0x16   :  { %439 = vmatpush.bf16.msra.mxu0 %v1244_v10  ;;  %1263 = vmatpush.bf16.msra.mxu2 %v1244_v10  ;;  %v977_v10 = vor.u32 %v1202_v4, %v974_v5  ;;  %v1081_v23 = vor.u32 %v1228_v18, %v1078_v19  ;;  %v1086_v31 = vld [vmem:[%s1877_s0 + $0x128] sm:$0xf0]  ;;  %v993_v34 = vor.u32 %v1206_v28, %v990_v29  ;;  %v1208_v40 = vld [vmem:[%s1877_s0 + $0x74] sm:$0xf]  ;;  %v998_v41 = vld [vmem:[%s1877_s0 + $0x78] sm:$0xf0] }
  0x17   :  { %568 = vmatpush.bf16.msra.mxu1 %v1252_v11  ;;  %1271 = vmatpush.bf16.msra.mxu3 %v1252_v11  ;;  %v1073_v11 = vor.u32 %v1226_v6, %v1070_v7  ;;  %v1089_v35 = vor.u32 %v1230_v30, %v1086_v31  ;;  %v1232_v42 = vld [vmem:[%s1877_s0 + $0x134] sm:$0xf]  ;;  %v1094_v43 = vld [vmem:[%s1877_s0 + $0x138] sm:$0xf0]  ;;  %v1001_v46 = vor.u32 %v1208_v40, %v998_v41  ;;  %v1235_v52 = vld [vmem:[%s1877_s0 + $0x144] sm:$0xf0] }
  0x18   :  { %v1097_v47 = vor.u32 %v1232_v42, %v1094_v43  ;;  %v1210_v53 = vld [vmem:[%s1877_s0 + $0x84] sm:$0xf]  ;;  %v1006_v54 = vld [vmem:[%s1877_s0 + $0x88] sm:$0xf0]  ;;  %v1237_v16 = vld [vmem:[%s1877_s0 + $0x154] sm:$0xf0] }
  0x19   :  { %v1234_v55 = vld [vmem:[%s1877_s0 + $0x144] sm:$0xf]  ;;  %v1102_v56 = vld [vmem:[%s1877_s0 + $0x148] sm:$0xf0]  ;;  %v1212_v17 = vld [vmem:[%s1877_s0 + $0x94] sm:$0xf] }
  0x1a   :  { %440 = vmatpush.bf16.msra.mxu0 %v1243_v12  ;;  %1264 = vmatpush.bf16.msra.mxu2 %v1243_v12  ;;  %v980_v12 = vld [vmem:[%s1877_s0 + $0x50] sm:$0xf]  ;;  %v1014_v18 = vld [vmem:[%s1877_s0 + $0x98] sm:$0xf0]  ;;  %v1236_v19 = vld [vmem:[%s1877_s0 + $0x154] sm:$0xf] }
  0x1b   :  { %569 = vmatpush.bf16.msra.mxu1 %v1251_v13  ;;  %1272 = vmatpush.bf16.msra.mxu3 %v1251_v13  ;;  %v1205_v13 = vld [vmem:[%s1877_s0 + $0x54] sm:$0xf0] }
  0x1c   :  { %v981_v20 = vor.u32 %v1205_v13, %v980_v12  ;;  %v1213_v12 = vld [vmem:[%s1877_s0 + $0x94] sm:$0xf0]  ;;  %v1108_v13 = vld [vmem:[%s1877_s0 + $0x150] sm:$0xf] }
  0x1d   :  { %v1109_v29 = vor.u32 %v1237_v16, %v1108_v13 }
  0x1e   :  { %441 = vmatpush.bf16.msra.mxu0 %v1242_v14  ;;  %1265 = vmatpush.bf16.msra.mxu2 %v1242_v14  ;;  %v1076_v14 = vld [vmem:[%s1877_s0 + $0x110] sm:$0xf] }
  0x1f   :  { %570 = vmatpush.bf16.msra.mxu1 %v1250_v15  ;;  %1273 = vmatpush.bf16.msra.mxu3 %v1250_v15  ;;  %v1229_v15 = vld [vmem:[%s1877_s0 + $0x114] sm:$0xf0] }
  0x20   :  { %v1077_v21 = vor.u32 %v1229_v15, %v1076_v14 }
  0x21   :  { %442 = vmatmul.bf16.vlgmr.msra.gmra.mxu0 %v941_v24  ;;  %502 = vmatmul.bf16.vlgmr.msra.gmra.mxu2 %v1037_v25  ;;  %v988_v24 = vld [vmem:[%s1877_s0 + $0x60] sm:$0xf]  ;;  %v1207_v25 = vld [vmem:[%s1877_s0 + $0x64] sm:$0xf0] }
  0x22   :  { %571 = vmatmul.bf16.vlgmr.msra.gmra.mxu1 %v945_v26  ;;  %631 = vmatmul.bf16.vlgmr.msra.gmra.mxu3 %v1041_v27  ;;  %v1084_v26 = vld [vmem:[%s1877_s0 + $0x120] sm:$0xf]  ;;  %v1231_v27 = vld [vmem:[%s1877_s0 + $0x124] sm:$0xf0]  ;;  %v989_v32 = vor.u32 %v1207_v25, %v988_v24 }
  0x23   :  { %v1085_v33 = vor.u32 %v1231_v27, %v1084_v26 }
  0x31   :  { %447 = vmatmul.bf16.gmra.mxu0 %v949_v36  ;;  %507 = vmatmul.bf16.gmra.mxu2 %v1045_v37  ;;  %v996_v36 = vld [vmem:[%s1877_s0 + $0x70] sm:$0xf]  ;;  %v1209_v37 = vld [vmem:[%s1877_s0 + $0x74] sm:$0xf0] }
  0x32   :  { %576 = vmatmul.bf16.gmra.mxu1 %v953_v38  ;;  %636 = vmatmul.bf16.gmra.mxu3 %v1049_v39  ;;  %v1092_v38 = vld [vmem:[%s1877_s0 + $0x130] sm:$0xf]  ;;  %v1233_v39 = vld [vmem:[%s1877_s0 + $0x134] sm:$0xf0]  ;;  %v997_v44 = vor.u32 %v1209_v37, %v996_v36 }
  0x33   :  { %v1093_v45 = vor.u32 %v1233_v39, %v1092_v38 }
  0x41   :  { %452 = vmatmul.bf16.gmra.mxu0 %v957_v48  ;;  %512 = vmatmul.bf16.gmra.mxu2 %v1053_v49  ;;  %v1538_v48 = vld [vmem:[%s1876_s2] ss:$0 sm:$0xff] }
  0x42   :  { %581 = vmatmul.bf16.gmra.mxu1 %v961_v50  ;;  %641 = vmatmul.bf16.gmra.mxu3 %v1057_v51  ;;  %v1004_v49 = vld [vmem:[%s1877_s0 + $0x80] sm:$0xf]  ;;  %v1211_v50 = vld [vmem:[%s1877_s0 + $0x84] sm:$0xf0] }
  0x43   :  { %v1100_v51 = vld [vmem:[%s1877_s0 + $0x140] sm:$0xf]  ;;  %v1005_v57 = vor.u32 %v1211_v50, %v1004_v49 }
  0x44   :  { %v1101_v58 = vor.u32 %v1235_v52, %v1100_v51  ;;  %v1020_v52 = vld [vmem:[%s1877_s0 + $0xa0] sm:$0xf] }
  0x51   :  { %457 = vmatmul.bf16.gmra.mxu0 %v965_v60  ;;  %517 = vmatmul.bf16.gmra.mxu2 %v1061_v61  ;;  %v1009_v60 = vor.u32 %v1210_v53, %v1006_v54  ;;  %v1105_v61 = vor.u32 %v1234_v55, %v1102_v56  ;;  %v1215_v53 = vld [vmem:[%s1877_s0 + $0xa4] sm:$0xf0]  ;;  %v1116_v54 = vld [vmem:[%s1877_s0 + $0x160] sm:$0xf] }
  0x52   :  { %586 = vmatmul.bf16.gmra.mxu1 %v969_v62  ;;  %646 = vmatmul.bf16.gmra.mxu3 %v1065_v63 }
  0x61   :  { %462 = vmatmul.bf16.gmra.mxu0 %v973_v8  ;;  %522 = vmatmul.bf16.gmra.mxu2 %v1069_v9 }
  0x62   :  { %591 = vmatmul.bf16.gmra.mxu1 %v977_v10  ;;  %651 = vmatmul.bf16.gmra.mxu3 %v1073_v11  ;;  %v1012_v11 = vld [vmem:[%s1877_s0 + $0x90] sm:$0xf] }
  0x63   :  { %v1013_v28 = vor.u32 %v1213_v12, %v1012_v11 }
  0x71   :  { %467 = vmatmul.bf16.gmra.mxu0 %v981_v20  ;;  %527 = vmatmul.bf16.gmra.mxu2 %v1077_v21 }
  0x72   :  { %596 = vmatmul.bf16.gmra.mxu1 %v985_v22  ;;  %656 = vmatmul.bf16.gmra.mxu3 %v1081_v23  ;;  %v1110_v22 = vld [vmem:[%s1877_s0 + $0x158] sm:$0xf0] }
  0x81   :  { %472 = vmatmul.bf16.gmra.mxu0 %v989_v32  ;;  %532 = vmatmul.bf16.gmra.mxu2 %v1085_v33  ;;  %v1017_v32 = vor.u32 %v1212_v17, %v1014_v18  ;;  %v1113_v33 = vor.u32 %v1236_v19, %v1110_v22 }
  0x82   :  { %601 = vmatmul.bf16.gmra.mxu1 %v993_v34  ;;  %661 = vmatmul.bf16.gmra.mxu3 %v1089_v35 }
  0x91   :  { %477 = vmatmul.bf16.gmra.mxu0 %v997_v44  ;;  %537 = vmatmul.bf16.gmra.mxu2 %v1093_v45 }
  0x92   :  { %606 = vmatmul.bf16.gmra.mxu1 %v1001_v46  ;;  %666 = vmatmul.bf16.gmra.mxu3 %v1097_v47 }
  0x9e   :  { %v443_v59 = vpop.f32.mrf.mxu0 }
  0x9f   :  { %v444_v62 = vadd.f32 %v1538_v48, %v443_v59  ;;  %v572_v63 = vpop.f32.mrf.mxu1  ;;  %v1022_v59 = vld [vmem:[%s1877_s0 + $0xa8] sm:$0xf0] }
  0xa1   :  { %v573_v0 = vadd.f32 %v572_v63, %v444_v62  ;;  %482 = vmatmul.bf16.gmra.mxu0 %v1005_v57  ;;  %542 = vmatmul.bf16.gmra.mxu2 %v1101_v58  ;;  %v1239_v57 = vld [vmem:[%s1877_s0 + $0x164] sm:$0xf0]  ;;  %v1214_v58 = vld [vmem:[%s1877_s0 + $0xa4] sm:$0xf]  ;;  %v1118_v63 = vld [vmem:[%s1877_s0 + $0x168] sm:$0xf0] }
  0xa2   :  { %611 = vmatmul.bf16.gmra.mxu1 %v1009_v60  ;;  %671 = vmatmul.bf16.gmra.mxu3 %v1105_v61  ;;  %v1238_v60 = vld [vmem:[%s1877_s0 + $0x164] sm:$0xf] }
  0xa3   :  { %vm692_vm0 = vcmp.ge.f32.partialorder %v573_v0, 0.0  ;;  %v740_v1 = vmul.f32 0.01, %v573_v0 }
  0xa4   :  { %v503_v2 = vpop.f32.mrf.mxu2 }
  0xa5   :  { %v788_v3 = vsel %vm692_vm0, %v573_v0, %v740_v1  ;;  %v504_v4 = vadd.f32 %v1538_v48, %v503_v2  ;;  %v632_v5 = vpop.f32.mrf.mxu3 }
  0xa6   :  { %v836_v6 = vpack.c.bf16 %v788_v3, %v788_v3  ;;  %v445_v7 = vpop.f32.mrf.mxu0 }
  0xa7   :  { %v633_v8 = vadd.f32 %v632_v5, %v504_v4  ;;  %v446_v9 = vadd.f32 %v1538_v48, %v445_v7  ;;  %v574_v10 = vpop.f32.mrf.mxu1  ;;  %v1021_v5 = vor.u32 %v1215_v53, %v1020_v52 }
  0xa8   :  { %885 = vst.msk [vmem:[%s1878_s3] sm:$0xf] %vm884_vm1, %v836_v6  ;;  %v1117_v6 = vor.u32 %v1239_v57, %v1116_v54 }
  0xa9   :  { %vm716_vm2 = vcmp.ge.f32.partialorder %v633_v8, 0.0  ;;  %v764_v14 = vmul.f32 0.01, %v633_v8  ;;  %v575_v15 = vadd.f32 %v574_v10, %v446_v9  ;;  %v1025_v9 = vor.u32 %v1214_v58, %v1022_v59 }
  0xaa   :  { %v1121_v10 = vor.u32 %v1238_v60, %v1118_v63 }
  0xab   :  { %v812_v20 = vsel %vm716_vm2, %v633_v8, %v764_v14  ;;  %vm693_vm3 = vcmp.ge.f32.partialorder %v575_v15, 0.0  ;;  %v741_v21 = vmul.f32 0.01, %v575_v15 }
  0xac   :  { %v860_v23 = vpack.c.bf16 %v812_v20, %v812_v20  ;;  %v505_v24 = vpop.f32.mrf.mxu2 }
  0xad   :  { %v789_v25 = vsel %vm693_vm3, %v575_v15, %v741_v21  ;;  %v506_v26 = vadd.f32 %v1538_v48, %v505_v24  ;;  %v634_v27 = vpop.f32.mrf.mxu3 }
  0xae   :  { %909 = vst.msk [vmem:[%s1878_s3 + $0x60] sm:$0xf] %vm884_vm1, %v860_v23  ;;  %v837_v30 = vpack.c.bf16 %v789_v25, %v789_v25  ;;  %v448_v31 = vpop.f32.mrf.mxu0 }
  0xaf   :  { %v635_v34 = vadd.f32 %v634_v27, %v506_v26  ;;  %v449_v35 = vadd.f32 %v1538_v48, %v448_v31  ;;  %v577_v36 = vpop.f32.mrf.mxu1 }
  0xb0   :  { %886 = vst.msk [vmem:[%s1878_s3 + $0x4] sm:$0xf] %vm884_vm1, %v837_v30  ;;  %v1124_v30 = vld [vmem:[%s1877_s0 + $0x170] sm:$0xf] }
  0xb1   :  { %vm717_vm4 = vcmp.ge.f32.partialorder %v635_v34, 0.0  ;;  %v765_v37 = vmul.f32 0.01, %v635_v34  ;;  %v578_v38 = vadd.f32 %v577_v36, %v449_v35  ;;  %487 = vmatmul.bf16.gmra.mxu0 %v1013_v28  ;;  %547 = vmatmul.bf16.gmra.mxu2 %v1109_v29  ;;  %v1028_v28 = vld [vmem:[%s1877_s0 + $0xb0] sm:$0xf] }
  0xb2   :  { %616 = vmatmul.bf16.gmra.mxu1 %v1017_v32  ;;  %676 = vmatmul.bf16.gmra.mxu3 %v1113_v33  ;;  %v1217_v29 = vld [vmem:[%s1877_s0 + $0xb4] sm:$0xf0]  ;;  %v1030_v35 = vld [vmem:[%s1877_s0 + $0xb8] sm:$0xf0]  ;;  %v1240_v36 = vld [vmem:[%s1877_s0 + $0x174] sm:$0xf] }
  0xb3   :  { %v813_v39 = vsel %vm717_vm4, %v635_v34, %v765_v37  ;;  %vm694_vm5 = vcmp.ge.f32.partialorder %v578_v38, 0.0  ;;  %v742_v40 = vmul.f32 0.01, %v578_v38  ;;  %v1241_v33 = vld [vmem:[%s1877_s0 + $0x174] sm:$0x10] }
  0xb4   :  { %v861_v41 = vpack.c.bf16 %v813_v39, %v813_v39  ;;  %v508_v42 = vpop.f32.mrf.mxu2  ;;  %v1216_v34 = vld [vmem:[%s1877_s0 + $0xb4] sm:$0xf]  ;;  %v1126_v39 = vld [vmem:[%s1877_s0 + $0x178] sm:$0x10] }
  0xb5   :  { %v790_v43 = vsel %vm694_vm5, %v578_v38, %v742_v40  ;;  %v509_v44 = vadd.f32 %v1538_v48, %v508_v42  ;;  %v637_v45 = vpop.f32.mrf.mxu3 }
  0xb6   :  { %910 = vst.msk [vmem:[%s1878_s3 + $0x64] sm:$0xf] %vm884_vm1, %v861_v41  ;;  %v838_v46 = vpack.c.bf16 %v790_v43, %v790_v43  ;;  %v450_v47 = vpop.f32.mrf.mxu0 }
  0xb7   :  { %v638_v49 = vadd.f32 %v637_v45, %v509_v44  ;;  %v451_v50 = vadd.f32 %v1538_v48, %v450_v47  ;;  %v579_v51 = vpop.f32.mrf.mxu1  ;;  %v1029_v45 = vor.u32 %v1217_v29, %v1028_v28 }
  0xb8   :  { %887 = vst.msk [vmem:[%s1878_s3 + $0x8] sm:$0xf] %vm884_vm1, %v838_v46  ;;  %v1125_v46 = vor.u32 %v1241_v33, %v1124_v30 }
  0xb9   :  { %vm718_vm6 = vcmp.ge.f32.partialorder %v638_v49, 0.0  ;;  %v766_v55 = vmul.f32 0.01, %v638_v49  ;;  %v580_v56 = vadd.f32 %v579_v51, %v451_v50  ;;  %v1033_v50 = vor.u32 %v1216_v34, %v1030_v35 }
  0xba   :  { %v1129_v51 = vor.u32 %v1240_v36, %v1126_v39 }
  0xbb   :  { %v814_v61 = vsel %vm718_vm6, %v638_v49, %v766_v55  ;;  %vm695_vm7 = vcmp.ge.f32.partialorder %v580_v56, 0.0  ;;  %v743_v62 = vmul.f32 0.01, %v580_v56 }
  0xbc   :  { %v862_v0 = vpack.c.bf16 %v814_v61, %v814_v61  ;;  %v510_v1 = vpop.f32.mrf.mxu2 }
  0xbd   :  { %v791_v2 = vsel %vm695_vm7, %v580_v56, %v743_v62  ;;  %v511_v3 = vadd.f32 %v1538_v48, %v510_v1  ;;  %v639_v4 = vpop.f32.mrf.mxu3 }
  0xbe   :  { %911 = vst.msk [vmem:[%s1878_s3 + $0x68] sm:$0xf] %vm884_vm1, %v862_v0  ;;  %v839_v7 = vpack.c.bf16 %v791_v2, %v791_v2  ;;  %v453_v8 = vpop.f32.mrf.mxu0 }
  0xbf   :  { %v640_v11 = vadd.f32 %v639_v4, %v511_v3  ;;  %v454_v12 = vadd.f32 %v1538_v48, %v453_v8  ;;  %v582_v13 = vpop.f32.mrf.mxu1 }
  0xc0   :  { %888 = vst.msk [vmem:[%s1878_s3 + $0xc] sm:$0xf] %vm884_vm1, %v839_v7 }
  0xc1   :  { %vm719_vm8 = vcmp.ge.f32.partialorder %v640_v11, 0.0  ;;  %v767_v14 = vmul.f32 0.01, %v640_v11  ;;  %v583_v15 = vadd.f32 %v582_v13, %v454_v12  ;;  %492 = vmatmul.bf16.gmra.mxu0 %v1021_v5  ;;  %552 = vmatmul.bf16.gmra.mxu2 %v1117_v6 }
  0xc2   :  { %621 = vmatmul.bf16.gmra.mxu1 %v1025_v9  ;;  %681 = vmatmul.bf16.gmra.mxu3 %v1121_v10 }
  0xc3   :  { %v815_v16 = vsel %vm719_vm8, %v640_v11, %v767_v14  ;;  %vm696_vm9 = vcmp.ge.f32.partialorder %v583_v15, 0.0  ;;  %v744_v17 = vmul.f32 0.01, %v583_v15 }
  0xc4   :  { %v863_v18 = vpack.c.bf16 %v815_v16, %v815_v16  ;;  %v513_v19 = vpop.f32.mrf.mxu2 }
  0xc5   :  { %v792_v20 = vsel %vm696_vm9, %v583_v15, %v744_v17  ;;  %v514_v21 = vadd.f32 %v1538_v48, %v513_v19  ;;  %v642_v22 = vpop.f32.mrf.mxu3 }
  0xc6   :  { %912 = vst.msk [vmem:[%s1878_s3 + $0x6c] sm:$0xf] %vm884_vm1, %v863_v18  ;;  %v840_v23 = vpack.c.bf16 %v792_v20, %v792_v20  ;;  %v455_v24 = vpop.f32.mrf.mxu0 }
  0xc7   :  { %v643_v25 = vadd.f32 %v642_v22, %v514_v21  ;;  %v456_v26 = vadd.f32 %v1538_v48, %v455_v24  ;;  %v584_v27 = vpop.f32.mrf.mxu1 }
  0xc8   :  { %889 = vst.msk [vmem:[%s1878_s3 + $0x10] sm:$0xf] %vm884_vm1, %v840_v23 }
  0xc9   :  { %vm720_vm10 = vcmp.ge.f32.partialorder %v643_v25, 0.0  ;;  %v768_v31 = vmul.f32 0.01, %v643_v25  ;;  %v585_v32 = vadd.f32 %v584_v27, %v456_v26 }
  0xcb   :  { %v816_v37 = vsel %vm720_vm10, %v643_v25, %v768_v31  ;;  %vm697_vm11 = vcmp.ge.f32.partialorder %v585_v32, 0.0  ;;  %v745_v38 = vmul.f32 0.01, %v585_v32 }
  0xcc   :  { %v864_v40 = vpack.c.bf16 %v816_v37, %v816_v37  ;;  %v515_v41 = vpop.f32.mrf.mxu2 }
  0xcd   :  { %v793_v42 = vsel %vm697_vm11, %v585_v32, %v745_v38  ;;  %v516_v43 = vadd.f32 %v1538_v48, %v515_v41  ;;  %v644_v44 = vpop.f32.mrf.mxu3 }
  0xce   :  { %913 = vst.msk [vmem:[%s1878_s3 + $0x70] sm:$0xf] %vm884_vm1, %v864_v40  ;;  %v841_v47 = vpack.c.bf16 %v793_v42, %v793_v42  ;;  %v458_v49 = vpop.f32.mrf.mxu0 }
  0xcf   :  { %v645_v52 = vadd.f32 %v644_v44, %v516_v43  ;;  %v459_v53 = vadd.f32 %v1538_v48, %v458_v49  ;;  %v587_v54 = vpop.f32.mrf.mxu1 }
  0xd0   :  { %890 = vst.msk [vmem:[%s1878_s3 + $0x14] sm:$0xf] %vm884_vm1, %v841_v47 }
  0xd1   :  { %vm721_vm12 = vcmp.ge.f32.partialorder %v645_v52, 0.0  ;;  %v769_v55 = vmul.f32 0.01, %v645_v52  ;;  %v588_v56 = vadd.f32 %v587_v54, %v459_v53  ;;  %497 = vmatmul.bf16.gmra.mxu0 %v1029_v45  ;;  %557 = vmatmul.bf16.gmra.mxu2 %v1125_v46 }
  0xd2   :  { %626 = vmatmul.bf16.gmra.mxu1 %v1033_v50  ;;  %686 = vmatmul.bf16.gmra.mxu3 %v1129_v51 }
  0xd3   :  { %v817_v57 = vsel %vm721_vm12, %v645_v52, %v769_v55  ;;  %vm698_vm13 = vcmp.ge.f32.partialorder %v588_v56, 0.0  ;;  %v746_v58 = vmul.f32 0.01, %v588_v56 }
  0xd4   :  { %v865_v59 = vpack.c.bf16 %v817_v57, %v817_v57  ;;  %v518_v60 = vpop.f32.mrf.mxu2 }
  0xd5   :  { %v794_v61 = vsel %vm698_vm13, %v588_v56, %v746_v58  ;;  %v519_v62 = vadd.f32 %v1538_v48, %v518_v60  ;;  %v647_v63 = vpop.f32.mrf.mxu3 }
  0xd6   :  { %914 = vst.msk [vmem:[%s1878_s3 + $0x74] sm:$0xf] %vm884_vm1, %v865_v59  ;;  %v842_v0 = vpack.c.bf16 %v794_v61, %v794_v61  ;;  %v460_v1 = vpop.f32.mrf.mxu0 }
  0xd7   :  { %v648_v2 = vadd.f32 %v647_v63, %v519_v62  ;;  %v461_v3 = vadd.f32 %v1538_v48, %v460_v1  ;;  %v589_v4 = vpop.f32.mrf.mxu1 }
  0xd8   :  { %891 = vst.msk [vmem:[%s1878_s3 + $0x18] sm:$0xf] %vm884_vm1, %v842_v0 }
  0xd9   :  { %vm722_vm14 = vcmp.ge.f32.partialorder %v648_v2, 0.0  ;;  %v770_v5 = vmul.f32 0.01, %v648_v2  ;;  %v590_v6 = vadd.f32 %v589_v4, %v461_v3 }
  0xdb   :  { %v818_v7 = vsel %vm722_vm14, %v648_v2, %v770_v5  ;;  %vm699_vm15 = vcmp.ge.f32.partialorder %v590_v6, 0.0  ;;  %v747_v8 = vmul.f32 0.01, %v590_v6 }
  0xdc   :  { %v866_v9 = vpack.c.bf16 %v818_v7, %v818_v7  ;;  %v520_v10 = vpop.f32.mrf.mxu2 }
  0xdd   :  { %v795_v11 = vsel %vm699_vm15, %v590_v6, %v747_v8  ;;  %v521_v12 = vadd.f32 %v1538_v48, %v520_v10  ;;  %v649_v13 = vpop.f32.mrf.mxu3 }
  0xde   :  { %915 = vst.msk [vmem:[%s1878_s3 + $0x78] sm:$0xf] %vm884_vm1, %v866_v9  ;;  %v843_v14 = vpack.c.bf16 %v795_v11, %v795_v11  ;;  %v463_v15 = vpop.f32.mrf.mxu0 }
  0xdf   :  { %v650_v16 = vadd.f32 %v649_v13, %v521_v12  ;;  %v464_v17 = vadd.f32 %v1538_v48, %v463_v15  ;;  %v592_v18 = vpop.f32.mrf.mxu1 }
  0xe0   :  { %892 = vst.msk [vmem:[%s1878_s3 + $0x1c] sm:$0xf] %vm884_vm1, %v843_v14 }
  0xe1   :  { %vm723_vm0 = vcmp.ge.f32.partialorder %v650_v16, 0.0  ;;  %v771_v19 = vmul.f32 0.01, %v650_v16  ;;  %v593_v20 = vadd.f32 %v592_v18, %v464_v17 }
  0xe3   :  { %v819_v21 = vsel %vm723_vm0, %v650_v16, %v771_v19  ;;  %vm700_vm2 = vcmp.ge.f32.partialorder %v593_v20, 0.0  ;;  %v748_v22 = vmul.f32 0.01, %v593_v20 }
  0xe4   :  { %v867_v23 = vpack.c.bf16 %v819_v21, %v819_v21  ;;  %v523_v24 = vpop.f32.mrf.mxu2 }
  0xe5   :  { %v796_v25 = vsel %vm700_vm2, %v593_v20, %v748_v22  ;;  %v524_v26 = vadd.f32 %v1538_v48, %v523_v24  ;;  %v652_v27 = vpop.f32.mrf.mxu3 }
  0xe6   :  { %916 = vst.msk [vmem:[%s1878_s3 + $0x7c] sm:$0xf] %vm884_vm1, %v867_v23  ;;  %v844_v28 = vpack.c.bf16 %v796_v25, %v796_v25  ;;  %v465_v29 = vpop.f32.mrf.mxu0 }
  0xe7   :  { %v653_v30 = vadd.f32 %v652_v27, %v524_v26  ;;  %v466_v31 = vadd.f32 %v1538_v48, %v465_v29  ;;  %v594_v32 = vpop.f32.mrf.mxu1 }
  0xe8   :  { %893 = vst.msk [vmem:[%s1878_s3 + $0x20] sm:$0xf] %vm884_vm1, %v844_v28 }
  0xe9   :  { %vm724_vm3 = vcmp.ge.f32.partialorder %v653_v30, 0.0  ;;  %v772_v33 = vmul.f32 0.01, %v653_v30  ;;  %v595_v34 = vadd.f32 %v594_v32, %v466_v31 }
  0xeb   :  { %v820_v35 = vsel %vm724_vm3, %v653_v30, %v772_v33  ;;  %vm701_vm4 = vcmp.ge.f32.partialorder %v595_v34, 0.0  ;;  %v749_v36 = vmul.f32 0.01, %v595_v34 }
  0xec   :  { %v868_v37 = vpack.c.bf16 %v820_v35, %v820_v35  ;;  %v525_v38 = vpop.f32.mrf.mxu2 }
  0xed   :  { %v797_v39 = vsel %vm701_vm4, %v595_v34, %v749_v36  ;;  %v526_v40 = vadd.f32 %v1538_v48, %v525_v38  ;;  %v654_v41 = vpop.f32.mrf.mxu3 }
  0xee   :  { %917 = vst.msk [vmem:[%s1878_s3 + $0x80] sm:$0xf] %vm884_vm1, %v868_v37  ;;  %v845_v42 = vpack.c.bf16 %v797_v39, %v797_v39  ;;  %v468_v43 = vpop.f32.mrf.mxu0 }
  0xef   :  { %v655_v44 = vadd.f32 %v654_v41, %v526_v40  ;;  %v469_v45 = vadd.f32 %v1538_v48, %v468_v43  ;;  %v597_v46 = vpop.f32.mrf.mxu1 }
  0xf0   :  { %894 = vst.msk [vmem:[%s1878_s3 + $0x24] sm:$0xf] %vm884_vm1, %v845_v42 }
  0xf1   :  { %vm725_vm5 = vcmp.ge.f32.partialorder %v655_v44, 0.0  ;;  %v773_v47 = vmul.f32 0.01, %v655_v44  ;;  %v598_v49 = vadd.f32 %v597_v46, %v469_v45 }
  0xf3   :  { %v821_v50 = vsel %vm725_vm5, %v655_v44, %v773_v47  ;;  %vm702_vm6 = vcmp.ge.f32.partialorder %v598_v49, 0.0  ;;  %v750_v51 = vmul.f32 0.01, %v598_v49 }
  0xf4   :  { %v869_v52 = vpack.c.bf16 %v821_v50, %v821_v50  ;;  %v528_v53 = vpop.f32.mrf.mxu2 }
  0xf5   :  { %v798_v54 = vsel %vm702_vm6, %v598_v49, %v750_v51  ;;  %v529_v55 = vadd.f32 %v1538_v48, %v528_v53  ;;  %v657_v56 = vpop.f32.mrf.mxu3 }
  0xf6   :  { %918 = vst.msk [vmem:[%s1878_s3 + $0x84] sm:$0xf] %vm884_vm1, %v869_v52  ;;  %v846_v57 = vpack.c.bf16 %v798_v54, %v798_v54  ;;  %v470_v58 = vpop.f32.mrf.mxu0 }
  0xf7   :  { %v658_v59 = vadd.f32 %v657_v56, %v529_v55  ;;  %v471_v60 = vadd.f32 %v1538_v48, %v470_v58  ;;  %v599_v61 = vpop.f32.mrf.mxu1 }
  0xf8   :  { %895 = vst.msk [vmem:[%s1878_s3 + $0x28] sm:$0xf] %vm884_vm1, %v846_v57 }
  0xf9   :  { %vm726_vm7 = vcmp.ge.f32.partialorder %v658_v59, 0.0  ;;  %v774_v62 = vmul.f32 0.01, %v658_v59  ;;  %v600_v63 = vadd.f32 %v599_v61, %v471_v60 }
  0xfb   :  { %v822_v0 = vsel %vm726_vm7, %v658_v59, %v774_v62  ;;  %vm703_vm8 = vcmp.ge.f32.partialorder %v600_v63, 0.0  ;;  %v751_v1 = vmul.f32 0.01, %v600_v63 }
  0xfc   :  { %v870_v2 = vpack.c.bf16 %v822_v0, %v822_v0  ;;  %v530_v3 = vpop.f32.mrf.mxu2 }
  0xfd   :  { %v799_v4 = vsel %vm703_vm8, %v600_v63, %v751_v1  ;;  %v531_v5 = vadd.f32 %v1538_v48, %v530_v3  ;;  %v659_v6 = vpop.f32.mrf.mxu3 }
  0xfe   :  { %919 = vst.msk [vmem:[%s1878_s3 + $0x88] sm:$0xf] %vm884_vm1, %v870_v2  ;;  %v847_v7 = vpack.c.bf16 %v799_v4, %v799_v4  ;;  %v473_v8 = vpop.f32.mrf.mxu0 }
  0xff   :  { %v660_v9 = vadd.f32 %v659_v6, %v531_v5  ;;  %v474_v10 = vadd.f32 %v1538_v48, %v473_v8  ;;  %v602_v11 = vpop.f32.mrf.mxu1 }
 0x100   :  { %896 = vst.msk [vmem:[%s1878_s3 + $0x2c] sm:$0xf] %vm884_vm1, %v847_v7 }
 0x101   :  { %vm727_vm9 = vcmp.ge.f32.partialorder %v660_v9, 0.0  ;;  %v775_v12 = vmul.f32 0.01, %v660_v9  ;;  %v603_v13 = vadd.f32 %v602_v11, %v474_v10 }
 0x103   :  { %v823_v14 = vsel %vm727_vm9, %v660_v9, %v775_v12  ;;  %vm704_vm10 = vcmp.ge.f32.partialorder %v603_v13, 0.0  ;;  %v752_v15 = vmul.f32 0.01, %v603_v13 }
 0x104   :  { %v871_v16 = vpack.c.bf16 %v823_v14, %v823_v14  ;;  %v533_v17 = vpop.f32.mrf.mxu2 }
 0x105   :  { %v800_v18 = vsel %vm704_vm10, %v603_v13, %v752_v15  ;;  %v534_v19 = vadd.f32 %v1538_v48, %v533_v17  ;;  %v662_v20 = vpop.f32.mrf.mxu3 }
 0x106   :  { %920 = vst.msk [vmem:[%s1878_s3 + $0x8c] sm:$0xf] %vm884_vm1, %v871_v16  ;;  %v848_v21 = vpack.c.bf16 %v800_v18, %v800_v18  ;;  %v475_v22 = vpop.f32.mrf.mxu0 }
 0x107   :  { %v663_v23 = vadd.f32 %v662_v20, %v534_v19  ;;  %v476_v24 = vadd.f32 %v1538_v48, %v475_v22  ;;  %v604_v25 = vpop.f32.mrf.mxu1 }
 0x108   :  { %897 = vst.msk [vmem:[%s1878_s3 + $0x30] sm:$0xf] %vm884_vm1, %v848_v21 }
 0x109   :  { %vm728_vm11 = vcmp.ge.f32.partialorder %v663_v23, 0.0  ;;  %v776_v26 = vmul.f32 0.01, %v663_v23  ;;  %v605_v27 = vadd.f32 %v604_v25, %v476_v24 }
 0x10b   :  { %v824_v28 = vsel %vm728_vm11, %v663_v23, %v776_v26  ;;  %vm705_vm12 = vcmp.ge.f32.partialorder %v605_v27, 0.0  ;;  %v753_v29 = vmul.f32 0.01, %v605_v27 }
 0x10c   :  { %v872_v30 = vpack.c.bf16 %v824_v28, %v824_v28  ;;  %v535_v31 = vpop.f32.mrf.mxu2 }
 0x10d   :  { %v801_v32 = vsel %vm705_vm12, %v605_v27, %v753_v29  ;;  %v536_v33 = vadd.f32 %v1538_v48, %v535_v31  ;;  %v664_v34 = vpop.f32.mrf.mxu3 }
 0x10e   :  { %921 = vst.msk [vmem:[%s1878_s3 + $0x90] sm:$0xf] %vm884_vm1, %v872_v30  ;;  %v849_v35 = vpack.c.bf16 %v801_v32, %v801_v32  ;;  %v478_v36 = vpop.f32.mrf.mxu0 }
 0x10f   :  { %v665_v37 = vadd.f32 %v664_v34, %v536_v33  ;;  %v479_v38 = vadd.f32 %v1538_v48, %v478_v36  ;;  %v607_v39 = vpop.f32.mrf.mxu1 }
 0x110   :  { %898 = vst.msk [vmem:[%s1878_s3 + $0x34] sm:$0xf] %vm884_vm1, %v849_v35 }
 0x111   :  { %vm729_vm13 = vcmp.ge.f32.partialorder %v665_v37, 0.0  ;;  %v777_v40 = vmul.f32 0.01, %v665_v37  ;;  %v608_v41 = vadd.f32 %v607_v39, %v479_v38 }
 0x113   :  { %v825_v42 = vsel %vm729_vm13, %v665_v37, %v777_v40  ;;  %vm706_vm14 = vcmp.ge.f32.partialorder %v608_v41, 0.0  ;;  %v754_v43 = vmul.f32 0.01, %v608_v41 }
 0x114   :  { %v873_v44 = vpack.c.bf16 %v825_v42, %v825_v42  ;;  %v538_v45 = vpop.f32.mrf.mxu2 }
 0x115   :  { %v802_v46 = vsel %vm706_vm14, %v608_v41, %v754_v43  ;;  %v539_v47 = vadd.f32 %v1538_v48, %v538_v45  ;;  %v667_v49 = vpop.f32.mrf.mxu3 }
 0x116   :  { %922 = vst.msk [vmem:[%s1878_s3 + $0x94] sm:$0xf] %vm884_vm1, %v873_v44  ;;  %v850_v50 = vpack.c.bf16 %v802_v46, %v802_v46  ;;  %v480_v51 = vpop.f32.mrf.mxu0 }
 0x117   :  { %v668_v52 = vadd.f32 %v667_v49, %v539_v47  ;;  %v481_v53 = vadd.f32 %v1538_v48, %v480_v51  ;;  %v609_v54 = vpop.f32.mrf.mxu1 }
 0x118   :  { %899 = vst.msk [vmem:[%s1878_s3 + $0x38] sm:$0xf] %vm884_vm1, %v850_v50 }
 0x119   :  { %vm730_vm15 = vcmp.ge.f32.partialorder %v668_v52, 0.0  ;;  %v778_v55 = vmul.f32 0.01, %v668_v52  ;;  %v610_v56 = vadd.f32 %v609_v54, %v481_v53 }
 0x11b   :  { %v826_v57 = vsel %vm730_vm15, %v668_v52, %v778_v55  ;;  %vm707_vm0 = vcmp.ge.f32.partialorder %v610_v56, 0.0  ;;  %v755_v58 = vmul.f32 0.01, %v610_v56 }
 0x11c   :  { %v874_v59 = vpack.c.bf16 %v826_v57, %v826_v57  ;;  %v540_v60 = vpop.f32.mrf.mxu2 }
 0x11d   :  { %v803_v61 = vsel %vm707_vm0, %v610_v56, %v755_v58  ;;  %v541_v62 = vadd.f32 %v1538_v48, %v540_v60  ;;  %v669_v63 = vpop.f32.mrf.mxu3 }
 0x11e   :  { %923 = vst.msk [vmem:[%s1878_s3 + $0x98] sm:$0xf] %vm884_vm1, %v874_v59  ;;  %v851_v0 = vpack.c.bf16 %v803_v61, %v803_v61  ;;  %v483_v1 = vpop.f32.mrf.mxu0 }
 0x11f   :  { %v670_v2 = vadd.f32 %v669_v63, %v541_v62  ;;  %v484_v3 = vadd.f32 %v1538_v48, %v483_v1  ;;  %v612_v4 = vpop.f32.mrf.mxu1 }
 0x120   :  { %900 = vst.msk [vmem:[%s1878_s3 + $0x3c] sm:$0xf] %vm884_vm1, %v851_v0 }
 0x121   :  { %vm731_vm2 = vcmp.ge.f32.partialorder %v670_v2, 0.0  ;;  %v779_v5 = vmul.f32 0.01, %v670_v2  ;;  %v613_v6 = vadd.f32 %v612_v4, %v484_v3 }
 0x123   :  { %v827_v7 = vsel %vm731_vm2, %v670_v2, %v779_v5  ;;  %vm708_vm3 = vcmp.ge.f32.partialorder %v613_v6, 0.0  ;;  %v756_v8 = vmul.f32 0.01, %v613_v6 }
 0x124   :  { %v875_v9 = vpack.c.bf16 %v827_v7, %v827_v7  ;;  %v543_v10 = vpop.f32.mrf.mxu2 }
 0x125   :  { %v804_v11 = vsel %vm708_vm3, %v613_v6, %v756_v8  ;;  %v544_v12 = vadd.f32 %v1538_v48, %v543_v10  ;;  %v672_v13 = vpop.f32.mrf.mxu3 }
 0x126   :  { %924 = vst.msk [vmem:[%s1878_s3 + $0x9c] sm:$0xf] %vm884_vm1, %v875_v9  ;;  %v852_v14 = vpack.c.bf16 %v804_v11, %v804_v11  ;;  %v485_v15 = vpop.f32.mrf.mxu0 }
 0x127   :  { %v673_v16 = vadd.f32 %v672_v13, %v544_v12  ;;  %v486_v17 = vadd.f32 %v1538_v48, %v485_v15  ;;  %v614_v18 = vpop.f32.mrf.mxu1 }
 0x128   :  { %901 = vst.msk [vmem:[%s1878_s3 + $0x40] sm:$0xf] %vm884_vm1, %v852_v14 }
 0x129   :  { %vm732_vm4 = vcmp.ge.f32.partialorder %v673_v16, 0.0  ;;  %v780_v19 = vmul.f32 0.01, %v673_v16  ;;  %v615_v20 = vadd.f32 %v614_v18, %v486_v17 }
 0x12b   :  { %v828_v21 = vsel %vm732_vm4, %v673_v16, %v780_v19  ;;  %vm709_vm5 = vcmp.ge.f32.partialorder %v615_v20, 0.0  ;;  %v757_v22 = vmul.f32 0.01, %v615_v20  ;;  %vm932_vm4 = vcmask 253952  }
 0x12c   :  { %v876_v23 = vpack.c.bf16 %v828_v21, %v828_v21  ;;  %v545_v24 = vpop.f32.mrf.mxu2 }
 0x12d   :  { %v805_v25 = vsel %vm709_vm5, %v615_v20, %v757_v22  ;;  %v546_v26 = vadd.f32 %v1538_v48, %v545_v24  ;;  %v674_v27 = vpop.f32.mrf.mxu3 }
 0x12e   :  { %925 = vst.msk [vmem:[%s1878_s3 + $0xa0] sm:$0xf] %vm884_vm1, %v876_v23  ;;  %v853_v28 = vpack.c.bf16 %v805_v25, %v805_v25  ;;  %v488_v29 = vpop.f32.mrf.mxu0 }
 0x12f   :  { %v675_v30 = vadd.f32 %v674_v27, %v546_v26  ;;  %v489_v31 = vadd.f32 %v1538_v48, %v488_v29  ;;  %v617_v32 = vpop.f32.mrf.mxu1 }
 0x130   :  { %902 = vst.msk [vmem:[%s1878_s3 + $0x44] sm:$0xf] %vm884_vm1, %v853_v28 }
 0x131   :  { %vm733_vm6 = vcmp.ge.f32.partialorder %v675_v30, 0.0  ;;  %v781_v33 = vmul.f32 0.01, %v675_v30  ;;  %v618_v34 = vadd.f32 %v617_v32, %v489_v31 }
 0x133   :  { %v829_v35 = vsel %vm733_vm6, %v675_v30, %v781_v33  ;;  %vm710_vm7 = vcmp.ge.f32.partialorder %v618_v34, 0.0  ;;  %v758_v36 = vmul.f32 0.01, %v618_v34 }
 0x134   :  { %v877_v37 = vpack.c.bf16 %v829_v35, %v829_v35  ;;  %v548_v38 = vpop.f32.mrf.mxu2 }
 0x135   :  { %v806_v39 = vsel %vm710_vm7, %v618_v34, %v758_v36  ;;  %v549_v40 = vadd.f32 %v1538_v48, %v548_v38  ;;  %v677_v41 = vpop.f32.mrf.mxu3 }
 0x136   :  { %926 = vst.msk [vmem:[%s1878_s3 + $0xa4] sm:$0xf] %vm884_vm1, %v877_v37  ;;  %v854_v42 = vpack.c.bf16 %v806_v39, %v806_v39  ;;  %v490_v43 = vpop.f32.mrf.mxu0 }
 0x137   :  { %v678_v44 = vadd.f32 %v677_v41, %v549_v40  ;;  %v491_v45 = vadd.f32 %v1538_v48, %v490_v43  ;;  %v619_v46 = vpop.f32.mrf.mxu1 }
 0x138   :  { %903 = vst.msk [vmem:[%s1878_s3 + $0x48] sm:$0xf] %vm884_vm1, %v854_v42 }
 0x139   :  { %vm734_vm8 = vcmp.ge.f32.partialorder %v678_v44, 0.0  ;;  %v782_v47 = vmul.f32 0.01, %v678_v44  ;;  %v620_v49 = vadd.f32 %v619_v46, %v491_v45 }
 0x13b   :  { %v830_v50 = vsel %vm734_vm8, %v678_v44, %v782_v47  ;;  %vm711_vm9 = vcmp.ge.f32.partialorder %v620_v49, 0.0  ;;  %v759_v51 = vmul.f32 0.01, %v620_v49 }
 0x13c   :  { %v878_v52 = vpack.c.bf16 %v830_v50, %v830_v50  ;;  %v550_v53 = vpop.f32.mrf.mxu2 }
 0x13d   :  { %v807_v54 = vsel %vm711_vm9, %v620_v49, %v759_v51  ;;  %v551_v55 = vadd.f32 %v1538_v48, %v550_v53  ;;  %v679_v56 = vpop.f32.mrf.mxu3 }
 0x13e   :  { %927 = vst.msk [vmem:[%s1878_s3 + $0xa8] sm:$0xf] %vm884_vm1, %v878_v52  ;;  %v855_v57 = vpack.c.bf16 %v807_v54, %v807_v54  ;;  %v493_v58 = vpop.f32.mrf.mxu0 }
 0x13f   :  { %v680_v59 = vadd.f32 %v679_v56, %v551_v55  ;;  %v494_v60 = vadd.f32 %v1538_v48, %v493_v58  ;;  %v622_v61 = vpop.f32.mrf.mxu1 }
 0x140   :  { %904 = vst.msk [vmem:[%s1878_s3 + $0x4c] sm:$0xf] %vm884_vm1, %v855_v57 }
 0x141   :  { %vm735_vm10 = vcmp.ge.f32.partialorder %v680_v59, 0.0  ;;  %v783_v62 = vmul.f32 0.01, %v680_v59  ;;  %v623_v63 = vadd.f32 %v622_v61, %v494_v60 }
 0x143   :  { %v831_v0 = vsel %vm735_vm10, %v680_v59, %v783_v62  ;;  %vm712_vm11 = vcmp.ge.f32.partialorder %v623_v63, 0.0  ;;  %v760_v1 = vmul.f32 0.01, %v623_v63 }
 0x144   :  { %v879_v2 = vpack.c.bf16 %v831_v0, %v831_v0  ;;  %v553_v3 = vpop.f32.mrf.mxu2 }
 0x145   :  { %v808_v4 = vsel %vm712_vm11, %v623_v63, %v760_v1  ;;  %v554_v5 = vadd.f32 %v1538_v48, %v553_v3  ;;  %v682_v6 = vpop.f32.mrf.mxu3 }
 0x146   :  { %928 = vst.msk [vmem:[%s1878_s3 + $0xac] sm:$0xf] %vm884_vm1, %v879_v2  ;;  %v856_v7 = vpack.c.bf16 %v808_v4, %v808_v4  ;;  %v495_v8 = vpop.f32.mrf.mxu0 }
 0x147   :  { %v683_v9 = vadd.f32 %v682_v6, %v554_v5  ;;  %v496_v10 = vadd.f32 %v1538_v48, %v495_v8  ;;  %v624_v11 = vpop.f32.mrf.mxu1 }
 0x148   :  { %905 = vst.msk [vmem:[%s1878_s3 + $0x50] sm:$0xf] %vm884_vm1, %v856_v7 }
 0x149   :  { %vm736_vm12 = vcmp.ge.f32.partialorder %v683_v9, 0.0  ;;  %v784_v12 = vmul.f32 0.01, %v683_v9  ;;  %v625_v13 = vadd.f32 %v624_v11, %v496_v10 }
 0x14b   :  { %v832_v14 = vsel %vm736_vm12, %v683_v9, %v784_v12  ;;  %vm713_vm13 = vcmp.ge.f32.partialorder %v625_v13, 0.0  ;;  %v761_v15 = vmul.f32 0.01, %v625_v13 }
 0x14c   :  { %v880_v16 = vpack.c.bf16 %v832_v14, %v832_v14  ;;  %v555_v17 = vpop.f32.mrf.mxu2 }
 0x14d   :  { %v809_v18 = vsel %vm713_vm13, %v625_v13, %v761_v15  ;;  %v556_v19 = vadd.f32 %v1538_v48, %v555_v17  ;;  %v684_v20 = vpop.f32.mrf.mxu3 }
 0x14e   :  { %929 = vst.msk [vmem:[%s1878_s3 + $0xb0] sm:$0xf] %vm884_vm1, %v880_v16  ;;  %v857_v21 = vpack.c.bf16 %v809_v18, %v809_v18  ;;  %v498_v22 = vpop.f32.mrf.mxu0 }
 0x14f   :  { %v685_v23 = vadd.f32 %v684_v20, %v556_v19  ;;  %v499_v24 = vadd.f32 %v1538_v48, %v498_v22  ;;  %v627_v25 = vpop.f32.mrf.mxu1 }
 0x150   :  { %906 = vst.msk [vmem:[%s1878_s3 + $0x54] sm:$0xf] %vm884_vm1, %v857_v21 }
 0x151   :  { %vm737_vm14 = vcmp.ge.f32.partialorder %v685_v23, 0.0  ;;  %v785_v26 = vmul.f32 0.01, %v685_v23  ;;  %v628_v27 = vadd.f32 %v627_v25, %v499_v24 }
 0x153   :  { %v833_v28 = vsel %vm737_vm14, %v685_v23, %v785_v26  ;;  %vm714_vm15 = vcmp.ge.f32.partialorder %v628_v27, 0.0  ;;  %v762_v29 = vmul.f32 0.01, %v628_v27 }
 0x154   :  { %v881_v30 = vpack.c.bf16 %v833_v28, %v833_v28  ;;  %v558_v31 = vpop.f32.mrf.mxu2 }
 0x155   :  { %v810_v32 = vsel %vm714_vm15, %v628_v27, %v762_v29  ;;  %v559_v33 = vadd.f32 %v1538_v48, %v558_v31  ;;  %v687_v34 = vpop.f32.mrf.mxu3 }
 0x156   :  { %930 = vst.msk [vmem:[%s1878_s3 + $0xb4] sm:$0xf] %vm884_vm1, %v881_v30  ;;  %v858_v35 = vpack.c.bf16 %v810_v32, %v810_v32  ;;  %v500_v36 = vpop.f32.mrf.mxu0 }
 0x157   :  { %v688_v37 = vadd.f32 %v687_v34, %v559_v33  ;;  %v501_v38 = vadd.f32 %v1538_v48, %v500_v36  ;;  %v629_v39 = vpop.f32.mrf.mxu1 }
 0x158   :  { %907 = vst.msk [vmem:[%s1878_s3 + $0x58] sm:$0xf] %vm884_vm1, %v858_v35 }
 0x159   :  { %vm738_vm0 = vcmp.ge.f32.partialorder %v688_v37, 0.0  ;;  %v786_v40 = vmul.f32 0.01, %v688_v37  ;;  %v630_v41 = vadd.f32 %v629_v39, %v501_v38 }
 0x15b   :  { %v834_v42 = vsel %vm738_vm0, %v688_v37, %v786_v40  ;;  %vm715_vm2 = vcmp.ge.f32.partialorder %v630_v41, 0.0  ;;  %v763_v43 = vmul.f32 0.01, %v630_v41 }
 0x15c   :  { %v882_v44 = vpack.c.bf16 %v834_v42, %v834_v42  ;;  %v560_v45 = vpop.f32.mrf.mxu2 }
 0x15d   :  { %v811_v46 = vsel %vm715_vm2, %v630_v41, %v763_v43  ;;  %v561_v47 = vadd.f32 %v1538_v48, %v560_v45  ;;  %v689_v50 = vpop.f32.mrf.mxu3 }
 0x15e   :  { %931 = vst.msk [vmem:[%s1878_s3 + $0xb8] sm:$0xf] %vm884_vm1, %v882_v44  ;;  %v859_v49 = vpack.c.bf16 %v811_v46, %v811_v46 }
 0x15f   :  { %v690_v51 = vadd.f32 %v689_v50, %v561_v47 }
 0x160   :  { %908 = vst.msk [vmem:[%s1878_s3 + $0x5c] sm:$0xf] %vm884_vm1, %v859_v49 }
 0x161   :  { %vm739_vm3 = vcmp.ge.f32.partialorder %v690_v51, 0.0  ;;  %v787_v52 = vmul.f32 0.01, %v690_v51 }
 0x163   :  { %v835_v53 = vsel %vm739_vm3, %v690_v51, %v787_v52 }
 0x164   :  { %v883_v54 = vpack.c.bf16 %v835_v53, %v835_v53 }
 0x166   :  { %933 = vst.msk [vmem:[%s1878_s3 + $0xbc] sm:$0x1] %vm932_vm4, %v883_v54 }

// kernel: actor_forward.5
= control target key start
LH: loop header
LB: loop body
LE: loop exit
PB: predicated region body
PF: predicated region fallthrough
CT: control target
= control target key end

     0   :  { %s15236_s0 = inlined_call_operand.vmem [shape: bf16[2,6048], index: 0, kind: input, shape index: {}]   ;;  %s15237_s1 = inlined_call_operand.vmem [shape: f32[2,16], index: 1, kind: input, shape index: {}]   ;;  %s15238_s2 = inlined_call_operand.vmem [shape: bf16[6048,256], index: 2, kind: input, shape index: {}]   ;;  %s15239_s3 = inlined_call_operand.vmem [shape: bf16[256,64], index: 3, kind: input, shape index: {}]   ;;  %s15240_s4 = inlined_call_operand.vmem [shape: bf16[16,64], index: 4, kind: input, shape index: {}]   ;;  %s15241_s5 = inlined_call_operand.vmem [shape: bf16[64,64], index: 5, kind: input, shape index: {}]   ;;  %s15242_s6 = inlined_call_operand.vmem [shape: bf16[64,8], index: 6, kind: input, shape index: {}]   ;;  %s15243_s7 = inlined_call_operand.vmem [shape: f32[9,256], index: 7, kind: input, shape index: {}]   ;;  %s15244_s8 = inlined_call_operand.vmem [shape: f32[2,8], index: 8, kind: input, shape index: {}]   ;;  %s15245_s9 = inlined_call_operand.hbm [shape: f32[2,8], index: 9, kind: output, shape index: {}]  }
   0x1   :  { %v6385_v0 = vld [vmem:[%s15238_s2 + $0x70] sm:$0xf]  ;;  %v9473_v1 = vld [vmem:[%s15238_s2 + $0x74] sm:$0xf0]  ;;  %v6377_v11 = vld [vmem:[%s15238_s2 + $0x60] sm:$0xf] }
   0x2   :  { %v6449_v2 = vld [vmem:[%s15238_s2 + $0xf0] sm:$0xf]  ;;  %v6386_v3 = vor.u32 %v9473_v1, %v6385_v0  ;;  %v9489_v4 = vld [vmem:[%s15238_s2 + $0xf4] sm:$0xf0]  ;;  %v9471_v13 = vld [vmem:[%s15238_s2 + $0x64] sm:$0xf0] }
   0x3   :  { %v6513_v5 = vld [vmem:[%s15238_s2 + $0x170] sm:$0xf]  ;;  %v9505_v6 = vld [vmem:[%s15238_s2 + $0x174] sm:$0xf0]  ;;  %v6450_v7 = vor.u32 %v9489_v4, %v6449_v2  ;;  %v6441_v14 = vld [vmem:[%s15238_s2 + $0xe0] sm:$0xf]  ;;  %v6378_v16 = vor.u32 %v9471_v13, %v6377_v11 }
   0x4   :  { %v6514_v8 = vor.u32 %v9505_v6, %v6513_v5  ;;  %v6577_v9 = vld [vmem:[%s15238_s2 + $0x1f0] sm:$0xf]  ;;  %v9521_v10 = vld [vmem:[%s15238_s2 + $0x1f4] sm:$0xf0]  ;;  %4691 = vmatpush.bf16.msra.mxu0 %v6386_v3  ;;  %v9487_v15 = vld [vmem:[%s15238_s2 + $0xe4] sm:$0xf0] }
   0x5   :  { %v6578_v12 = vor.u32 %v9521_v10, %v6577_v9  ;;  %4704 = vmatpush.bf16.msra.mxu1 %v6450_v7  ;;  %v6442_v17 = vor.u32 %v9487_v15, %v6441_v14  ;;  %v6505_v18 = vld [vmem:[%s15238_s2 + $0x160] sm:$0xf]  ;;  %v9503_v19 = vld [vmem:[%s15238_s2 + $0x164] sm:$0xf0]  ;;  %v6369_v23 = vld [vmem:[%s15238_s2 + $0x50] sm:$0xf] }
   0x6   :  { %4717 = vmatpush.bf16.msra.mxu2 %v6514_v8  ;;  %v6569_v20 = vld [vmem:[%s15238_s2 + $0x1e0] sm:$0xf]  ;;  %v6506_v21 = vor.u32 %v9503_v19, %v6505_v18  ;;  %v9519_v22 = vld [vmem:[%s15238_s2 + $0x1e4] sm:$0xf0]  ;;  %v9469_v24 = vld [vmem:[%s15238_s2 + $0x54] sm:$0xf0] }
   0x7   :  { %4730 = vmatpush.bf16.msra.mxu3 %v6578_v12  ;;  %v6570_v25 = vor.u32 %v9519_v22, %v6569_v20  ;;  %v6433_v26 = vld [vmem:[%s15238_s2 + $0xd0] sm:$0xf]  ;;  %v9485_v27 = vld [vmem:[%s15238_s2 + $0xd4] sm:$0xf0]  ;;  %v6370_v29 = vor.u32 %v9469_v24, %v6369_v23  ;;  %v6361_v35 = vld [vmem:[%s15238_s2 + $0x40] sm:$0xf] }
   0x8   :  { %v6497_v28 = vld [vmem:[%s15238_s2 + $0x150] sm:$0xf]  ;;  %4692 = vmatpush.bf16.msra.mxu0 %v6378_v16  ;;  %v9501_v30 = vld [vmem:[%s15238_s2 + $0x154] sm:$0xf0]  ;;  %v6434_v33 = vor.u32 %v9485_v27, %v6433_v26  ;;  %v9467_v36 = vld [vmem:[%s15238_s2 + $0x44] sm:$0xf0] }
   0x9   :  { %v6561_v31 = vld [vmem:[%s15238_s2 + $0x1d0] sm:$0xf]  ;;  %v9517_v32 = vld [vmem:[%s15238_s2 + $0x1d4] sm:$0xf0]  ;;  %4705 = vmatpush.bf16.msra.mxu1 %v6442_v17  ;;  %v6498_v34 = vor.u32 %v9501_v30, %v6497_v28  ;;  %v6425_v37 = vld [vmem:[%s15238_s2 + $0xc0] sm:$0xf]  ;;  %v6362_v44 = vor.u32 %v9467_v36, %v6361_v35 }
   0xa   :  { %4718 = vmatpush.bf16.msra.mxu2 %v6506_v21  ;;  %v6562_v38 = vor.u32 %v9517_v32, %v6561_v31  ;;  %v9483_v39 = vld [vmem:[%s15238_s2 + $0xc4] sm:$0xf0]  ;;  %v6489_v40 = vld [vmem:[%s15238_s2 + $0x140] sm:$0xf]  ;;  %v6353_v47 = vld [vmem:[%s15238_s2 + $0x30] sm:$0xf] }
   0xb   :  { %4731 = vmatpush.bf16.msra.mxu3 %v6570_v25  ;;  %v9499_v41 = vld [vmem:[%s15238_s2 + $0x144] sm:$0xf0]  ;;  %v6553_v42 = vld [vmem:[%s15238_s2 + $0x1c0] sm:$0xf]  ;;  %v6426_v45 = vor.u32 %v9483_v39, %v6425_v37  ;;  %v9465_v48 = vld [vmem:[%s15238_s2 + $0x34] sm:$0xf0] }
   0xc   :  { %v9515_v43 = vld [vmem:[%s15238_s2 + $0x1c4] sm:$0xf0]  ;;  %4693 = vmatpush.bf16.msra.mxu0 %v6370_v29  ;;  %v6490_v46 = vor.u32 %v9499_v41, %v6489_v40  ;;  %v6417_v49 = vld [vmem:[%s15238_s2 + $0xb0] sm:$0xf]  ;;  %v9481_v51 = vld [vmem:[%s15238_s2 + $0xb4] sm:$0xf0]  ;;  %v6354_v56 = vor.u32 %v9465_v48, %v6353_v47 }
   0xd   :  { %4706 = vmatpush.bf16.msra.mxu1 %v6434_v33  ;;  %v6554_v50 = vor.u32 %v9515_v43, %v6553_v42  ;;  %v6481_v52 = vld [vmem:[%s15238_s2 + $0x130] sm:$0xf]  ;;  %v9497_v53 = vld [vmem:[%s15238_s2 + $0x134] sm:$0xf0]  ;;  %v6418_v57 = vor.u32 %v9481_v51, %v6417_v49  ;;  %v6345_v59 = vld [vmem:[%s15238_s2 + $0x20] sm:$0xf] }
   0xe   :  { %4719 = vmatpush.bf16.msra.mxu2 %v6498_v34  ;;  %v6545_v54 = vld [vmem:[%s15238_s2 + $0x1b0] sm:$0xf]  ;;  %v9513_v55 = vld [vmem:[%s15238_s2 + $0x1b4] sm:$0xf0]  ;;  %v6482_v58 = vor.u32 %v9497_v53, %v6481_v52  ;;  %v9463_v60 = vld [vmem:[%s15238_s2 + $0x24] sm:$0xf0] }
   0xf   :  { %4732 = vmatpush.bf16.msra.mxu3 %v6562_v38  ;;  %v6409_v61 = vld [vmem:[%s15238_s2 + $0xa0] sm:$0xf]  ;;  %v6546_v62 = vor.u32 %v9513_v55, %v6545_v54  ;;  %v9479_v63 = vld [vmem:[%s15238_s2 + $0xa4] sm:$0xf0]  ;;  %v6346_v4 = vor.u32 %v9463_v60, %v6345_v59  ;;  %v6337_v7 = vld [vmem:[%s15238_s2 + $0x10] sm:$0xf] }
  0x10   :  { %4694 = vmatpush.bf16.msra.mxu0 %v6362_v44  ;;  %v6473_v0 = vld [vmem:[%s15238_s2 + $0x120] sm:$0xf]  ;;  %v9495_v1 = vld [vmem:[%s15238_s2 + $0x124] sm:$0xf0]  ;;  %v6410_v5 = vor.u32 %v9479_v63, %v6409_v61  ;;  %v9461_v8 = vld [vmem:[%s15238_s2 + $0x14] sm:$0xf0] }
  0x11   :  { %4707 = vmatpush.bf16.msra.mxu1 %v6426_v45  ;;  %v6537_v2 = vld [vmem:[%s15238_s2 + $0x1a0] sm:$0xf]  ;;  %v9511_v3 = vld [vmem:[%s15238_s2 + $0x1a4] sm:$0xf0]  ;;  %v6474_v6 = vor.u32 %v9495_v1, %v6473_v0  ;;  %v6401_v9 = vld [vmem:[%s15238_s2 + $0x90] sm:$0xf]  ;;  %v6338_v16 = vor.u32 %v9461_v8, %v6337_v7 }
  0x12   :  { %4720 = vmatpush.bf16.msra.mxu2 %v6490_v46  ;;  %v6538_v10 = vor.u32 %v9511_v3, %v6537_v2  ;;  %v9477_v11 = vld [vmem:[%s15238_s2 + $0x94] sm:$0xf0]  ;;  %v6465_v12 = vld [vmem:[%s15238_s2 + $0x110] sm:$0xf]  ;;  %v6329_v17 = vld [vmem:[%s15238_s2] sm:$0xf] }
  0x13   :  { %4733 = vmatpush.bf16.msra.mxu3 %v6554_v50  ;;  %v9493_v13 = vld [vmem:[%s15238_s2 + $0x114] sm:$0xf0]  ;;  %v6529_v14 = vld [vmem:[%s15238_s2 + $0x190] sm:$0xf]  ;;  %v9459_v18 = vld [vmem:[%s15238_s2 + $0x4] sm:$0xf0]  ;;  %v6402_v19 = vor.u32 %v9477_v11, %v6401_v9 }
  0x14   :  { %4695 = vmatpush.bf16.msra.mxu0 %v6354_v56  ;;  %v9509_v15 = vld [vmem:[%s15238_s2 + $0x194] sm:$0xf0]  ;;  %v6466_v20 = vor.u32 %v9493_v13, %v6465_v12  ;;  %v6393_v21 = vld [vmem:[%s15238_s2 + $0x80] sm:$0xf]  ;;  %v9475_v22 = vld [vmem:[%s15238_s2 + $0x84] sm:$0xf0]  ;;  %v6330_v31 = vor.u32 %v9459_v18, %v6329_v17 }
  0x15   :  { %4708 = vmatpush.bf16.msra.mxu1 %v6418_v57  ;;  %v6457_v23 = vld [vmem:[%s15238_s2 + $0x100] sm:$0xf]  ;;  %v6530_v24 = vor.u32 %v9509_v15, %v6529_v14  ;;  %v9491_v25 = vld [vmem:[%s15238_s2 + $0x104] sm:$0xf0]  ;;  %v6641_v28 = vld [vmem:[%s15238_s2 + $0x270] sm:$0xf]  ;;  %v6394_v35 = vor.u32 %v9475_v22, %v6393_v21 }
  0x16   :  { %4721 = vmatpush.bf16.msra.mxu2 %v6482_v58  ;;  %v6521_v26 = vld [vmem:[%s15238_s2 + $0x180] sm:$0xf]  ;;  %v9507_v27 = vld [vmem:[%s15238_s2 + $0x184] sm:$0xf0]  ;;  %v9537_v29 = vld [vmem:[%s15238_s2 + $0x274] sm:$0xf0]  ;;  %v6458_v36 = vor.u32 %v9491_v25, %v6457_v23 }
  0x17   :  { %4734 = vmatpush.bf16.msra.mxu3 %v6546_v62  ;;  %v6705_v30 = vld [vmem:[%s15238_s2 + $0x2f0] sm:$0xf]  ;;  %v9553_v32 = vld [vmem:[%s15238_s2 + $0x2f4] sm:$0xf0]  ;;  %v6522_v39 = vor.u32 %v9507_v27, %v6521_v26  ;;  %v6642_v40 = vor.u32 %v9537_v29, %v6641_v28  ;;  %v6633_v43 = vld [vmem:[%s15238_s2 + $0x260] sm:$0xf] }
  0x18   :  { %4696 = vmatpush.bf16.msra.mxu0 %v6346_v4  ;;  %v6769_v33 = vld [vmem:[%s15238_s2 + $0x370] sm:$0xf]  ;;  %v9569_v34 = vld [vmem:[%s15238_s2 + $0x374] sm:$0xf0]  ;;  %v6706_v41 = vor.u32 %v9553_v32, %v6705_v30  ;;  %v9535_v44 = vld [vmem:[%s15238_s2 + $0x264] sm:$0xf0] }
  0x19   :  { %4709 = vmatpush.bf16.msra.mxu1 %v6410_v5  ;;  %v6833_v37 = vld [vmem:[%s15238_s2 + $0x3f0] sm:$0xf]  ;;  %v9585_v38 = vld [vmem:[%s15238_s2 + $0x3f4] sm:$0xf0]  ;;  %v6770_v42 = vor.u32 %v9569_v34, %v6769_v33  ;;  %v6697_v45 = vld [vmem:[%s15238_s2 + $0x2e0] sm:$0xf]  ;;  %v6634_v52 = vor.u32 %v9535_v44, %v6633_v43 }
  0x1a   :  { %4722 = vmatpush.bf16.msra.mxu2 %v6474_v6  ;;  %v6834_v46 = vor.u32 %v9585_v38, %v6833_v37  ;;  %v9551_v47 = vld [vmem:[%s15238_s2 + $0x2e4] sm:$0xf0]  ;;  %v6761_v48 = vld [vmem:[%s15238_s2 + $0x360] sm:$0xf]  ;;  %v6625_v53 = vld [vmem:[%s15238_s2 + $0x250] sm:$0xf] }
  0x1b   :  { %4735 = vmatpush.bf16.msra.mxu3 %v6538_v10  ;;  %v9567_v49 = vld [vmem:[%s15238_s2 + $0x364] sm:$0xf0]  ;;  %v6825_v50 = vld [vmem:[%s15238_s2 + $0x3e0] sm:$0xf]  ;;  %v9533_v54 = vld [vmem:[%s15238_s2 + $0x254] sm:$0xf0]  ;;  %v6698_v55 = vor.u32 %v9551_v47, %v6697_v45 }
  0x1c   :  { %4697 = vmatpush.bf16.msra.mxu0 %v6338_v16  ;;  %v9583_v51 = vld [vmem:[%s15238_s2 + $0x3e4] sm:$0xf0]  ;;  %v6762_v56 = vor.u32 %v9567_v49, %v6761_v48  ;;  %v6689_v57 = vld [vmem:[%s15238_s2 + $0x2d0] sm:$0xf]  ;;  %v9549_v58 = vld [vmem:[%s15238_s2 + $0x2d4] sm:$0xf0]  ;;  %v6626_v1 = vor.u32 %v9533_v54, %v6625_v53 }
  0x1d   :  { %4710 = vmatpush.bf16.msra.mxu1 %v6402_v19  ;;  %v37_v59 = vld [vmem:[%s15236_s0] sm:$0xff]  ;;  %v6826_v60 = vor.u32 %v9583_v51, %v6825_v50  ;;  %v6753_v61 = vld [vmem:[%s15238_s2 + $0x350] sm:$0xf]  ;;  %v9565_v62 = vld [vmem:[%s15238_s2 + $0x354] sm:$0xf0]  ;;  %v6690_v2 = vor.u32 %v9549_v58, %v6689_v57 }
  0x1e   :  { %4723 = vmatpush.bf16.msra.mxu2 %v6466_v20  ;;  %802 = vst [vmem:[#allocation1] ss:$9 sm:$0xff] %v37_v59  ;;  %v6817_v63 = vld [vmem:[%s15238_s2 + $0x3d0] sm:$0xf]  ;;  %v9581_v0 = vld [vmem:[%s15238_s2 + $0x3d4] sm:$0xf0]  ;;  %v6754_v3 = vor.u32 %v9565_v62, %v6753_v61 }
  0x1f   :  { %4736 = vmatpush.bf16.msra.mxu3 %v6530_v24  ;;  %v6617_v4 = vld [vmem:[%s15238_s2 + $0x240] sm:$0xf]  ;;  %v9531_v5 = vld [vmem:[%s15238_s2 + $0x244] sm:$0xf0]  ;;  %v6818_v7 = vor.u32 %v9581_v0, %v6817_v63  ;;  %v6609_v13 = vld [vmem:[%s15238_s2 + $0x230] sm:$0xf] }
  0x20   :  { %4698 = vmatpush.bf16.msra.mxu0 %v6330_v31  ;;  %v6681_v6 = vld [vmem:[%s15238_s2 + $0x2c0] sm:$0xf]  ;;  %v9547_v8 = vld [vmem:[%s15238_s2 + $0x2c4] sm:$0xf0]  ;;  %v6618_v14 = vor.u32 %v9531_v5, %v6617_v4  ;;  %v9529_v15 = vld [vmem:[%s15238_s2 + $0x234] sm:$0xf0] }
  0x21   :  { %4711 = vmatpush.bf16.msra.mxu1 %v6394_v35  ;;  %v6745_v9 = vld [vmem:[%s15238_s2 + $0x340] sm:$0xf]  ;;  %v9563_v10 = vld [vmem:[%s15238_s2 + $0x344] sm:$0xf0]  ;;  %v6673_v16 = vld [vmem:[%s15238_s2 + $0x2b0] sm:$0xf]  ;;  %v6682_v18 = vor.u32 %v9547_v8, %v6681_v6  ;;  %v6610_v29 = vor.u32 %v9529_v15, %v6609_v13 }
  0x22   :  { %4724 = vmatpush.bf16.msra.mxu2 %v6458_v36  ;;  %v6809_v11 = vld [vmem:[%s15238_s2 + $0x3c0] sm:$0xf]  ;;  %v9579_v12 = vld [vmem:[%s15238_s2 + $0x3c4] sm:$0xf0]  ;;  %v9545_v17 = vld [vmem:[%s15238_s2 + $0x2b4] sm:$0xf0]  ;;  %v6746_v19 = vor.u32 %v9563_v10, %v6745_v9 }
  0x23   :  { %4737 = vmatpush.bf16.msra.mxu3 %v6522_v39  ;;  %v6810_v23 = vor.u32 %v9579_v12, %v6809_v11  ;;  %v6737_v24 = vld [vmem:[%s15238_s2 + $0x330] sm:$0xf]  ;;  %v9561_v25 = vld [vmem:[%s15238_s2 + $0x334] sm:$0xf0]  ;;  %v6674_v30 = vor.u32 %v9545_v17, %v6673_v16  ;;  %v6601_v32 = vld [vmem:[%s15238_s2 + $0x220] sm:$0xf] }
  0x24   :  { %4743 = vmatpush.bf16.msrb.mxu0 %v6642_v40  ;;  %v6801_v27 = vld [vmem:[%s15238_s2 + $0x3b0] sm:$0xf]  ;;  %v9577_v28 = vld [vmem:[%s15238_s2 + $0x3b4] sm:$0xf0]  ;;  %v6738_v31 = vor.u32 %v9561_v25, %v6737_v24  ;;  %v9527_v33 = vld [vmem:[%s15238_s2 + $0x224] sm:$0xf0] }
  0x25   :  { %4756 = vmatpush.bf16.msrb.mxu1 %v6706_v41  ;;  %v10644_v20 = vld [vmem:[#allocation1 + $0x12] sm:$0xff]  ;;  %v10646_v21 = vld [vmem:[#allocation1] sm:$0xff]  ;;  %v10657_v26 = vld [vmem:[#allocation1 + $0x9] sm:$0xff]  ;;  %v6802_v35 = vor.u32 %v9577_v28, %v6801_v27  ;;  %v6602_v41 = vor.u32 %v9527_v33, %v6601_v32 }
  0x26   :  { %4769 = vmatpush.bf16.msrb.mxu2 %v6770_v42  ;;  %v10648_v22 = vld [vmem:[#allocation1 + $0x1b] sm:$0xff]  ;;  %4699 = vmatmul.bf16.vlgmr.msra.gmra.mxu0 %v10646_v21  ;;  %v9543_v36 = vld [vmem:[%s15238_s2 + $0x2a4] sm:$0xf0]  ;;  %v6593_v42 = vld [vmem:[%s15238_s2 + $0x210] sm:$0xf] }
  0x27   :  { %4782 = vmatpush.bf16.msrb.mxu3 %v6834_v46  ;;  %4725 = vmatmul.bf16.vlgmr.msra.gmra.mxu2 %v10644_v20  ;;  %v6665_v34 = vld [vmem:[%s15238_s2 + $0x2a0] sm:$0xf]  ;;  %v9559_v38 = vld [vmem:[%s15238_s2 + $0x324] sm:$0xf0]  ;;  %v9525_v45 = vld [vmem:[%s15238_s2 + $0x214] sm:$0xf0] }
  0x28   :  { %4744 = vmatpush.bf16.msrb.mxu0 %v6634_v52  ;;  %4738 = vmatmul.bf16.vlgmr.msra.gmra.mxu3 %v10648_v22  ;;  %v6729_v37 = vld [vmem:[%s15238_s2 + $0x320] sm:$0xf]  ;;  %v9575_v40 = vld [vmem:[%s15238_s2 + $0x3a4] sm:$0xf0]  ;;  %v6666_v43 = vor.u32 %v9543_v36, %v6665_v34  ;;  %v6657_v46 = vld [vmem:[%s15238_s2 + $0x290] sm:$0xf] }
  0x29   :  { %4757 = vmatpush.bf16.msrb.mxu1 %v6698_v55  ;;  %v6793_v39 = vld [vmem:[%s15238_s2 + $0x3a0] sm:$0xf]  ;;  %v6730_v44 = vor.u32 %v9559_v38, %v6729_v37  ;;  %v9541_v47 = vld [vmem:[%s15238_s2 + $0x294] sm:$0xf0]  ;;  %v6721_v49 = vld [vmem:[%s15238_s2 + $0x310] sm:$0xf]  ;;  %v6594_v55 = vor.u32 %v9525_v45, %v6593_v42 }
  0x2a   :  { %4770 = vmatpush.bf16.msrb.mxu2 %v6762_v56  ;;  %4712 = vmatmul.bf16.vlgmr.msra.gmra.mxu1 %v10657_v26  ;;  %v6794_v48 = vor.u32 %v9575_v40, %v6793_v39  ;;  %v9557_v50 = vld [vmem:[%s15238_s2 + $0x314] sm:$0xf0]  ;;  %v6785_v51 = vld [vmem:[%s15238_s2 + $0x390] sm:$0xf]  ;;  %v6585_v53 = vld [vmem:[%s15238_s2 + $0x200] sm:$0xf]  ;;  %v6658_v62 = vor.u32 %v9541_v47, %v6657_v46 }
  0x2b   :  { %4783 = vmatpush.bf16.msrb.mxu3 %v6826_v60  ;;  %v9573_v52 = vld [vmem:[%s15238_s2 + $0x394] sm:$0xf0]  ;;  %v9523_v54 = vld [vmem:[%s15238_s2 + $0x204] sm:$0xf0]  ;;  %v6649_v56 = vld [vmem:[%s15238_s2 + $0x280] sm:$0xf]  ;;  %v6722_v63 = vor.u32 %v9557_v50, %v6721_v49 }
  0x2c   :  { %4745 = vmatpush.bf16.msrb.mxu0 %v6626_v1  ;;  %v9539_v57 = vld [vmem:[%s15238_s2 + $0x284] sm:$0xf0]  ;;  %v6713_v58 = vld [vmem:[%s15238_s2 + $0x300] sm:$0xf]  ;;  %v10734_v60 = vld [vmem:[#allocation1 + $0x36] sm:$0xff]  ;;  %v6586_v9 = vor.u32 %v9523_v54, %v6585_v53 }
  0x2d   :  { %4758 = vmatpush.bf16.msrb.mxu1 %v6690_v2  ;;  %v9555_v59 = vld [vmem:[%s15238_s2 + $0x304] sm:$0xf0]  ;;  %v10741_v1 = vld [vmem:[#allocation1 + $0x3f] sm:$0xff]  ;;  %v10743_v2 = vld [vmem:[#allocation1 + $0x2d] sm:$0xff]  ;;  %v6650_v13 = vor.u32 %v9539_v57, %v6649_v56 }
  0x2e   :  { %4771 = vmatpush.bf16.msrb.mxu2 %v6754_v3  ;;  %v38_v61 = vld [vmem:[%s15236_s0 + $0x8] sm:$0xff]  ;;  %v6786_v3 = vor.u32 %v9573_v52, %v6785_v51  ;;  %v6777_v4 = vld [vmem:[%s15238_s2 + $0x380] sm:$0xf]  ;;  %v6897_v6 = vld [vmem:[%s15238_s2 + $0x470] sm:$0xf] }
  0x2f   :  { %4784 = vmatpush.bf16.msrb.mxu3 %v6818_v7  ;;  %v10739_v0 = vld [vmem:[#allocation1 + $0x24] sm:$0xff]  ;;  %v9601_v7 = vld [vmem:[%s15238_s2 + $0x474] sm:$0xf0]  ;;  %v6961_v8 = vld [vmem:[%s15238_s2 + $0x4f0] sm:$0xf] }
  0x30   :  { %4746 = vmatpush.bf16.msrb.mxu0 %v6618_v14  ;;  %v9571_v5 = vld [vmem:[%s15238_s2 + $0x384] sm:$0xf0]  ;;  %812 = vst [vmem:[#allocation1] ss:$9 sm:$0xff] %v38_v61  ;;  %v9617_v10 = vld [vmem:[%s15238_s2 + $0x4f4] sm:$0xf0]  ;;  %v6714_v14 = vor.u32 %v9555_v59, %v6713_v58 }
  0x31   :  { %4759 = vmatpush.bf16.msrb.mxu1 %v6682_v18  ;;  %v7025_v11 = vld [vmem:[%s15238_s2 + $0x570] sm:$0xf]  ;;  %v9633_v12 = vld [vmem:[%s15238_s2 + $0x574] sm:$0xf0]  ;;  %v6778_v17 = vor.u32 %v9571_v5, %v6777_v4  ;;  %v6898_v18 = vor.u32 %v9601_v7, %v6897_v6  ;;  %v6889_v24 = vld [vmem:[%s15238_s2 + $0x460] sm:$0xf] }
  0x32   :  { %4772 = vmatpush.bf16.msrb.mxu2 %v6746_v19  ;;  %v7089_v15 = vld [vmem:[%s15238_s2 + $0x5f0] sm:$0xf]  ;;  %v9649_v16 = vld [vmem:[%s15238_s2 + $0x5f4] sm:$0xf0]  ;;  %v6962_v19 = vor.u32 %v9617_v10, %v6961_v8  ;;  %v9599_v25 = vld [vmem:[%s15238_s2 + $0x464] sm:$0xf0] }
  0x33   :  { %4785 = vmatpush.bf16.msrb.mxu3 %v6810_v23  ;;  %v7026_v23 = vor.u32 %v9633_v12, %v7025_v11  ;;  %v6953_v27 = vld [vmem:[%s15238_s2 + $0x4e0] sm:$0xf]  ;;  %v7090_v28 = vor.u32 %v9649_v16, %v7089_v15  ;;  %v9647_v33 = vld [vmem:[%s15238_s2 + $0x5e4] sm:$0xf0]  ;;  %v6890_v34 = vor.u32 %v9599_v25, %v6889_v24  ;;  %v6881_v37 = vld [vmem:[%s15238_s2 + $0x450] sm:$0xf] }
  0x34   :  { %4747 = vmatpush.bf16.msrb.mxu0 %v6610_v29  ;;  %v9615_v29 = vld [vmem:[%s15238_s2 + $0x4e4] sm:$0xf0]  ;;  %v7081_v32 = vld [vmem:[%s15238_s2 + $0x5e0] sm:$0xf]  ;;  %v9597_v38 = vld [vmem:[%s15238_s2 + $0x454] sm:$0xf0] }
  0x35   :  { %4760 = vmatpush.bf16.msrb.mxu1 %v6674_v30  ;;  %v7017_v30 = vld [vmem:[%s15238_s2 + $0x560] sm:$0xf]  ;;  %v6945_v39 = vld [vmem:[%s15238_s2 + $0x4d0] sm:$0xf]  ;;  %v7082_v40 = vor.u32 %v9647_v33, %v7081_v32  ;;  %v9645_v45 = vld [vmem:[%s15238_s2 + $0x5d4] sm:$0xf0]  ;;  %v6882_v46 = vor.u32 %v9597_v38, %v6881_v37 }
  0x36   :  { %4773 = vmatpush.bf16.msrb.mxu2 %v6738_v31  ;;  %v9631_v31 = vld [vmem:[%s15238_s2 + $0x564] sm:$0xf0]  ;;  %v7009_v42 = vld [vmem:[%s15238_s2 + $0x550] sm:$0xf]  ;;  %v6873_v49 = vld [vmem:[%s15238_s2 + $0x440] sm:$0xf] }
  0x37   :  { %4786 = vmatpush.bf16.msrb.mxu3 %v6802_v35  ;;  %v6954_v35 = vor.u32 %v9615_v29, %v6953_v27  ;;  %v7018_v36 = vor.u32 %v9631_v31, %v7017_v30  ;;  %v9595_v50 = vld [vmem:[%s15238_s2 + $0x444] sm:$0xf0]  ;;  %v6937_v51 = vld [vmem:[%s15238_s2 + $0x4c0] sm:$0xf]  ;;  %v9609_v5 = vld [vmem:[%s15238_s2 + $0x4b4] sm:$0xf0] }
  0x38   :  { %4748 = vmatpush.bf16.msrb.mxu0 %v6602_v41  ;;  %v9613_v41 = vld [vmem:[%s15238_s2 + $0x4d4] sm:$0xf0]  ;;  %v9611_v53 = vld [vmem:[%s15238_s2 + $0x4c4] sm:$0xf0]  ;;  %v7001_v54 = vld [vmem:[%s15238_s2 + $0x540] sm:$0xf]  ;;  %v6874_v58 = vor.u32 %v9595_v50, %v6873_v49 }
  0x39   :  { %4761 = vmatpush.bf16.msrb.mxu1 %v6666_v43  ;;  %v9629_v43 = vld [vmem:[%s15238_s2 + $0x554] sm:$0xf0]  ;;  %v6946_v47 = vor.u32 %v9613_v41, %v6945_v39  ;;  %v7065_v56 = vld [vmem:[%s15238_s2 + $0x5c0] sm:$0xf]  ;;  %v9643_v57 = vld [vmem:[%s15238_s2 + $0x5c4] sm:$0xf0]  ;;  %v6938_v59 = vor.u32 %v9611_v53, %v6937_v51 }
  0x3a   :  { %4774 = vmatpush.bf16.msrb.mxu2 %v6730_v44  ;;  %v7073_v44 = vld [vmem:[%s15238_s2 + $0x5d0] sm:$0xf]  ;;  %v7066_v4 = vor.u32 %v9643_v57, %v7065_v56  ;;  %v9625_v7 = vld [vmem:[%s15238_s2 + $0x534] sm:$0xf0]  ;;  %v6921_v15 = vld [vmem:[%s15238_s2 + $0x4a0] sm:$0xf] }
  0x3b   :  { %4787 = vmatpush.bf16.msrb.mxu3 %v6794_v48  ;;  %v7010_v48 = vor.u32 %v9629_v43, %v7009_v42  ;;  %v7074_v52 = vor.u32 %v9645_v45, %v7073_v44  ;;  %v6993_v6 = vld [vmem:[%s15238_s2 + $0x530] sm:$0xf]  ;;  %v9639_v24 = vld [vmem:[%s15238_s2 + $0x5a4] sm:$0xf0]  ;;  %v9589_v30 = vld [vmem:[%s15238_s2 + $0x414] sm:$0xf0] }
  0x3c   :  { %4749 = vmatpush.bf16.msrb.mxu0 %v6594_v55  ;;  %v9627_v55 = vld [vmem:[%s15238_s2 + $0x544] sm:$0xf0]  ;;  %v7057_v8 = vld [vmem:[%s15238_s2 + $0x5b0] sm:$0xf]  ;;  %v6994_v12 = vor.u32 %v9625_v7, %v6993_v6  ;;  %v9605_v33 = vld [vmem:[%s15238_s2 + $0x494] sm:$0xf0] }
  0x3d   :  { %4762 = vmatpush.bf16.msrb.mxu1 %v6658_v62  ;;  %v7002_v61 = vor.u32 %v9627_v55, %v7001_v54  ;;  %v6865_v62 = vld [vmem:[%s15238_s2 + $0x430] sm:$0xf]  ;;  %v9637_v37 = vld [vmem:[%s15238_s2 + $0x594] sm:$0xf0]  ;;  %v6841_v39 = vld [vmem:[%s15238_s2 + $0x400] sm:$0xf] }
  0x3e   :  { %4775 = vmatpush.bf16.msrb.mxu2 %v6722_v63  ;;  %v9593_v63 = vld [vmem:[%s15238_s2 + $0x434] sm:$0xf0]  ;;  %v6849_v29 = vld [vmem:[%s15238_s2 + $0x410] sm:$0xf]  ;;  %v6905_v43 = vld [vmem:[%s15238_s2 + $0x480] sm:$0xf] }
  0x3f   :  { %4788 = vmatpush.bf16.msrb.mxu3 %v6786_v3  ;;  %v6929_v3 = vld [vmem:[%s15238_s2 + $0x4b0] sm:$0xf]  ;;  %v6866_v10 = vor.u32 %v9593_v63, %v6865_v62  ;;  %v6850_v38 = vor.u32 %v9589_v30, %v6849_v29  ;;  %v9603_v44 = vld [vmem:[%s15238_s2 + $0x484] sm:$0xf0]  ;;  %v6969_v45 = vld [vmem:[%s15238_s2 + $0x500] sm:$0xf] }
  0x40   :  { %4750 = vmatpush.bf16.msrb.mxu0 %v6586_v9  ;;  %v9641_v9 = vld [vmem:[%s15238_s2 + $0x5b4] sm:$0xf0]  ;;  %v6930_v11 = vor.u32 %v9609_v5, %v6929_v3  ;;  %v6913_v31 = vld [vmem:[%s15238_s2 + $0x490] sm:$0xf]  ;;  %v9635_v49 = vld [vmem:[%s15238_s2 + $0x584] sm:$0xf0]  ;;  %v6906_v57 = vor.u32 %v9603_v44, %v6905_v43 }
  0x41   :  { %4763 = vmatpush.bf16.msrb.mxu1 %v6650_v13  ;;  %v6857_v13 = vld [vmem:[%s15238_s2 + $0x420] sm:$0xf]  ;;  %v7058_v16 = vor.u32 %v9641_v9, %v7057_v8  ;;  %v6914_v41 = vor.u32 %v9605_v33, %v6913_v31  ;;  %v7153_v50 = vld [vmem:[%s15238_s2 + $0x670] sm:$0xf]  ;;  %v9665_v51 = vld [vmem:[%s15238_s2 + $0x674] sm:$0xf0] }
  0x42   :  { %4776 = vmatpush.bf16.msrb.mxu2 %v6714_v14  ;;  %v9591_v14 = vld [vmem:[%s15238_s2 + $0x424] sm:$0xf0]  ;;  %v9681_v54 = vld [vmem:[%s15238_s2 + $0x6f4] sm:$0xf0]  ;;  %v7281_v55 = vld [vmem:[%s15238_s2 + $0x770] sm:$0xf]  ;;  %v7154_v63 = vor.u32 %v9665_v51, %v7153_v50 }
  0x43   :  { %4789 = vmatpush.bf16.msrb.mxu3 %v6778_v17  ;;  %4751 = vmatmul.bf16.vlgmr.msrb.gmra.mxu0 %v10739_v0  ;;  %v9607_v17 = vld [vmem:[%s15238_s2 + $0x4a4] sm:$0xf0]  ;;  %v6858_v25 = vor.u32 %v9591_v14, %v6857_v13  ;;  %v9697_v56 = vld [vmem:[%s15238_s2 + $0x774] sm:$0xf0]  ;;  %v7145_v5 = vld [vmem:[%s15238_s2 + $0x660] sm:$0xf] }
  0x44   :  { %4795 = vmatpush.bf16.msra.mxu0 %v6898_v18  ;;  %4764 = vmatmul.bf16.vlgmr.msrb.gmra.mxu1 %v10743_v2  ;;  %v6985_v18 = vld [vmem:[%s15238_s2 + $0x520] sm:$0xf]  ;;  %v6922_v27 = vor.u32 %v9607_v17, %v6921_v15  ;;  %v9663_v6 = vld [vmem:[%s15238_s2 + $0x664] sm:$0xf0]  ;;  %v10997_v15 = vld [vmem:[#allocation1 + $0x12] sm:$0xff] }
  0x45   :  { %4808 = vmatpush.bf16.msra.mxu1 %v6962_v19  ;;  %4777 = vmatmul.bf16.vlgmr.msrb.gmra.mxu2 %v10734_v60  ;;  %v9623_v19 = vld [vmem:[%s15238_s2 + $0x524] sm:$0xf0]  ;;  %v7209_v7 = vld [vmem:[%s15238_s2 + $0x6e0] sm:$0xf]  ;;  %v9677_v29 = vld [vmem:[%s15238_s2 + $0x6d4] sm:$0xf0] }
  0x46   :  { %4821 = vmatpush.bf16.msra.mxu2 %v7026_v23  ;;  %4790 = vmatmul.bf16.vlgmr.msrb.gmra.mxu3 %v10741_v1  ;;  %v7049_v23 = vld [vmem:[%s15238_s2 + $0x5a0] sm:$0xf]  ;;  %v9679_v9 = vld [vmem:[%s15238_s2 + $0x6e4] sm:$0xf0]  ;;  %v7265_v30 = vld [vmem:[%s15238_s2 + $0x750] sm:$0xf] }
  0x47   :  { %4834 = vmatpush.bf16.msra.mxu3 %v7090_v28  ;;  %v6986_v28 = vor.u32 %v9623_v19, %v6985_v18  ;;  %v7050_v32 = vor.u32 %v9639_v24, %v7049_v23  ;;  %v7337_v13 = vld [vmem:[%s15238_s2 + $0x7e0] sm:$0xf]  ;;  %v9711_v14 = vld [vmem:[%s15238_s2 + $0x7e4] sm:$0xf0]  ;;  %v7146_v18 = vor.u32 %v9663_v6, %v7145_v5  ;;  %v7210_v19 = vor.u32 %v9679_v9, %v7209_v7  ;;  %v7137_v24 = vld [vmem:[%s15238_s2 + $0x650] sm:$0xf] }
  0x48   :  { %4796 = vmatpush.bf16.msra.mxu0 %v6890_v34  ;;  %v6977_v34 = vld [vmem:[%s15238_s2 + $0x510] sm:$0xf]  ;;  %v11001_v17 = vld [vmem:[#allocation1 + $0x1b] sm:$0xff]  ;;  %v9691_v43 = vld [vmem:[%s15238_s2 + $0x744] sm:$0xf0] }
  0x49   :  { %4809 = vmatpush.bf16.msra.mxu1 %v6954_v35  ;;  %v9621_v35 = vld [vmem:[%s15238_s2 + $0x514] sm:$0xf0]  ;;  %v7321_v44 = vld [vmem:[%s15238_s2 + $0x7c0] sm:$0xf] }
  0x4a   :  { %4822 = vmatpush.bf16.msra.mxu2 %v7018_v36  ;;  %v7041_v36 = vld [vmem:[%s15238_s2 + $0x590] sm:$0xf]  ;;  %v6978_v42 = vor.u32 %v9621_v35, %v6977_v34  ;;  %v9693_v31 = vld [vmem:[%s15238_s2 + $0x754] sm:$0xf0]  ;;  %v7129_v35 = vld [vmem:[%s15238_s2 + $0x640] sm:$0xf] }
  0x4b   :  { %4835 = vmatpush.bf16.msra.mxu3 %v7082_v40  ;;  %v9587_v40 = vld [vmem:[%s15238_s2 + $0x404] sm:$0xf0]  ;;  %v9709_v33 = vld [vmem:[%s15238_s2 + $0x7d4] sm:$0xf0] }
  0x4c   :  { %4797 = vmatpush.bf16.msra.mxu0 %v6882_v46  ;;  %v7042_v46 = vor.u32 %v9637_v37, %v7041_v36  ;;  %v6842_v53 = vor.u32 %v9587_v40, %v6841_v39  ;;  %v7266_v37 = vor.u32 %v9693_v31, %v7265_v30  ;;  %v7193_v39 = vld [vmem:[%s15238_s2 + $0x6c0] sm:$0xf]  ;;  %v9675_v40 = vld [vmem:[%s15238_s2 + $0x6c4] sm:$0xf0] }
  0x4d   :  { %4810 = vmatpush.bf16.msra.mxu1 %v6946_v47  ;;  %v9619_v47 = vld [vmem:[%s15238_s2 + $0x504] sm:$0xf0] }
  0x4e   :  { %4823 = vmatpush.bf16.msra.mxu2 %v7010_v48  ;;  %v7033_v48 = vld [vmem:[%s15238_s2 + $0x580] sm:$0xf] }
  0x4f   :  { %4836 = vmatpush.bf16.msra.mxu3 %v7074_v52  ;;  %v7217_v52 = vld [vmem:[%s15238_s2 + $0x6f0] sm:$0xf]  ;;  %v7034_v62 = vor.u32 %v9635_v49, %v7033_v48 }
  0x50   :  { %4798 = vmatpush.bf16.msra.mxu0 %v6874_v58  ;;  %v6970_v58 = vor.u32 %v9619_v47, %v6969_v45  ;;  %v7218_v3 = vor.u32 %v9681_v54, %v7217_v52  ;;  %v9707_v45 = vld [vmem:[%s15238_s2 + $0x7c4] sm:$0xf0] }
  0x51   :  { %4811 = vmatpush.bf16.msra.mxu1 %v6938_v59  ;;  %v7345_v59 = vld [vmem:[%s15238_s2 + $0x7f0] sm:$0xf] }
  0x52   :  { %4824 = vmatpush.bf16.msra.mxu2 %v7002_v61  ;;  %v9713_v61 = vld [vmem:[%s15238_s2 + $0x7f4] sm:$0xf0] }
  0x53   :  { %4837 = vmatpush.bf16.msra.mxu3 %v7066_v4  ;;  %v7282_v4 = vor.u32 %v9697_v56, %v7281_v55  ;;  %v7346_v8 = vor.u32 %v9713_v61, %v7345_v59 }
  0x54   :  { %4799 = vmatpush.bf16.msra.mxu0 %v6866_v10  ;;  %v7273_v10 = vld [vmem:[%s15238_s2 + $0x760] sm:$0xf] }
  0x55   :  { %4812 = vmatpush.bf16.msra.mxu1 %v6930_v11  ;;  %v9695_v11 = vld [vmem:[%s15238_s2 + $0x764] sm:$0xf0] }
  0x56   :  { %4825 = vmatpush.bf16.msra.mxu2 %v6994_v12  ;;  %v10989_v12 = vld [vmem:[#allocation1] sm:$0xff]  ;;  %v7274_v23 = vor.u32 %v9695_v11, %v7273_v10 }
  0x57   :  { %4838 = vmatpush.bf16.msra.mxu3 %v7058_v16  ;;  %v10999_v16 = vld [vmem:[#allocation1 + $0x9] sm:$0xff] }
  0x58   :  { %4800 = vmatpush.bf16.msra.mxu0 %v6858_v25  ;;  %v9661_v25 = vld [vmem:[%s15238_s2 + $0x654] sm:$0xf0] }
  0x59   :  { %4813 = vmatpush.bf16.msra.mxu1 %v6922_v27  ;;  %v7201_v27 = vld [vmem:[%s15238_s2 + $0x6d0] sm:$0xf]  ;;  %v7138_v34 = vor.u32 %v9661_v25, %v7137_v24 }
  0x5a   :  { %4826 = vmatpush.bf16.msra.mxu2 %v6986_v28  ;;  %v7338_v28 = vor.u32 %v9711_v14, %v7337_v13  ;;  %v7202_v36 = vor.u32 %v9677_v29, %v7201_v27 }
  0x5b   :  { %4839 = vmatpush.bf16.msra.mxu3 %v7050_v32  ;;  %v7329_v32 = vld [vmem:[%s15238_s2 + $0x7d0] sm:$0xf] }
  0x5c   :  { %4801 = vmatpush.bf16.msra.mxu0 %v6850_v38  ;;  %v9659_v38 = vld [vmem:[%s15238_s2 + $0x644] sm:$0xf0] }
  0x5d   :  { %4814 = vmatpush.bf16.msra.mxu1 %v6914_v41  ;;  %v7330_v41 = vor.u32 %v9709_v33, %v7329_v32 }
  0x5e   :  { %4827 = vmatpush.bf16.msra.mxu2 %v6978_v42  ;;  %v7257_v42 = vld [vmem:[%s15238_s2 + $0x740] sm:$0xf] }
  0x5f   :  { %4840 = vmatpush.bf16.msra.mxu3 %v7042_v46 }
  0x60   :  { %4802 = vmatpush.bf16.msra.mxu0 %v6842_v53 }
  0x61   :  { %4815 = vmatpush.bf16.msra.mxu1 %v6906_v57 }
  0x62   :  { %4828 = vmatpush.bf16.msra.mxu2 %v6970_v58 }
  0x63   :  { %4841 = vmatpush.bf16.msra.mxu3 %v7034_v62  ;;  %4803 = vmatmul.bf16.vlgmr.msra.gmra.mxu0 %v10989_v12 }
  0x64   :  { %4847 = vmatpush.bf16.msrb.mxu0 %v7154_v63  ;;  %4816 = vmatmul.bf16.vlgmr.msra.gmra.mxu1 %v10999_v16 }
  0x65   :  { %4860 = vmatpush.bf16.msrb.mxu1 %v7218_v3  ;;  %4829 = vmatmul.bf16.vlgmr.msra.gmra.mxu2 %v10997_v15 }
  0x66   :  { %4873 = vmatpush.bf16.msrb.mxu2 %v7282_v4  ;;  %4842 = vmatmul.bf16.vlgmr.msra.gmra.mxu3 %v11001_v17 }
  0x67   :  { %4886 = vmatpush.bf16.msrb.mxu3 %v7346_v8 }
  0x68   :  { %4848 = vmatpush.bf16.msrb.mxu0 %v7146_v18 }
  0x69   :  { %4861 = vmatpush.bf16.msrb.mxu1 %v7210_v19 }
  0x6a   :  { %4874 = vmatpush.bf16.msrb.mxu2 %v7274_v23 }
  0x6b   :  { %4887 = vmatpush.bf16.msrb.mxu3 %v7338_v28 }
  0x6c   :  { %14 = vsyncpa [#allocation3], 0  ;;  %4849 = vmatpush.bf16.msrb.mxu0 %v7138_v34  ;;  %v7130_v46 = vor.u32 %v9659_v38, %v7129_v35  ;;  %v7194_v47 = vor.u32 %v9675_v40, %v7193_v39  ;;  %v7258_v48 = vor.u32 %v9691_v43, %v7257_v42  ;;  %v7121_v49 = vld [vmem:[%s15238_s2 + $0x630] sm:$0xf]  ;;  %v9657_v50 = vld [vmem:[%s15238_s2 + $0x634] sm:$0xf0]  ;;  %v7322_v52 = vor.u32 %v9707_v45, %v7321_v44 }
  0x6d   :  { %4862 = vmatpush.bf16.msrb.mxu1 %v7202_v36  ;;  %v7185_v51 = vld [vmem:[%s15238_s2 + $0x6b0] sm:$0xf]  ;;  %v9673_v53 = vld [vmem:[%s15238_s2 + $0x6b4] sm:$0xf0]  ;;  %v7122_v58 = vor.u32 %v9657_v50, %v7121_v49  ;;  %v7113_v62 = vld [vmem:[%s15238_s2 + $0x620] sm:$0xf] }
  0x6e   :  { %4875 = vmatpush.bf16.msrb.mxu2 %v7266_v37  ;;  %v7249_v54 = vld [vmem:[%s15238_s2 + $0x730] sm:$0xf]  ;;  %v9689_v55 = vld [vmem:[%s15238_s2 + $0x734] sm:$0xf0]  ;;  %v7186_v59 = vor.u32 %v9673_v53, %v7185_v51  ;;  %v9655_v63 = vld [vmem:[%s15238_s2 + $0x624] sm:$0xf0] }
  0x6f   :  { %4888 = vmatpush.bf16.msrb.mxu3 %v7330_v41  ;;  %v7313_v56 = vld [vmem:[%s15238_s2 + $0x7b0] sm:$0xf]  ;;  %v9705_v57 = vld [vmem:[%s15238_s2 + $0x7b4] sm:$0xf0]  ;;  %v7250_v61 = vor.u32 %v9689_v55, %v7249_v54  ;;  %v7177_v3 = vld [vmem:[%s15238_s2 + $0x6a0] sm:$0xf]  ;;  %v7114_v10 = vor.u32 %v9655_v63, %v7113_v62 }
  0x70   :  { %4850 = vmatpush.bf16.msrb.mxu0 %v7130_v46  ;;  %v7314_v4 = vor.u32 %v9705_v57, %v7313_v56  ;;  %v9671_v5 = vld [vmem:[%s15238_s2 + $0x6a4] sm:$0xf0]  ;;  %v7241_v6 = vld [vmem:[%s15238_s2 + $0x720] sm:$0xf]  ;;  %v7105_v11 = vld [vmem:[%s15238_s2 + $0x610] sm:$0xf] }
  0x71   :  { %4863 = vmatpush.bf16.msrb.mxu1 %v7194_v47  ;;  %v9687_v7 = vld [vmem:[%s15238_s2 + $0x724] sm:$0xf0]  ;;  %v7305_v8 = vld [vmem:[%s15238_s2 + $0x7a0] sm:$0xf]  ;;  %v7178_v13 = vor.u32 %v9671_v5, %v7177_v3  ;;  %v9653_v18 = vld [vmem:[%s15238_s2 + $0x614] sm:$0xf0] }
  0x72   :  { %4876 = vmatpush.bf16.msrb.mxu2 %v7258_v48  ;;  %v9703_v9 = vld [vmem:[%s15238_s2 + $0x7a4] sm:$0xf0]  ;;  %v7242_v14 = vor.u32 %v9687_v7, %v7241_v6  ;;  %v7169_v19 = vld [vmem:[%s15238_s2 + $0x690] sm:$0xf]  ;;  %v9669_v23 = vld [vmem:[%s15238_s2 + $0x694] sm:$0xf0]  ;;  %v7106_v32 = vor.u32 %v9653_v18, %v7105_v11 }
  0x73   :  { %4889 = vmatpush.bf16.msrb.mxu3 %v7322_v52  ;;  %v7306_v24 = vor.u32 %v9703_v9, %v7305_v8  ;;  %v7233_v25 = vld [vmem:[%s15238_s2 + $0x710] sm:$0xf]  ;;  %v9685_v27 = vld [vmem:[%s15238_s2 + $0x714] sm:$0xf0]  ;;  %v7097_v30 = vld [vmem:[%s15238_s2 + $0x600] sm:$0xf]  ;;  %v7170_v37 = vor.u32 %v9669_v23, %v7169_v19 }
  0x74   :  { %4851 = vmatpush.bf16.msrb.mxu0 %v7122_v58  ;;  %v7297_v28 = vld [vmem:[%s15238_s2 + $0x790] sm:$0xf]  ;;  %v9701_v29 = vld [vmem:[%s15238_s2 + $0x794] sm:$0xf0]  ;;  %v9651_v31 = vld [vmem:[%s15238_s2 + $0x604] sm:$0xf0]  ;;  %v7234_v38 = vor.u32 %v9685_v27, %v7233_v25 }
  0x75   :  { %4864 = vmatpush.bf16.msrb.mxu1 %v7186_v59  ;;  %v7161_v33 = vld [vmem:[%s15238_s2 + $0x680] sm:$0xf]  ;;  %v9667_v34 = vld [vmem:[%s15238_s2 + $0x684] sm:$0xf0]  ;;  %v7409_v41 = vld [vmem:[%s15238_s2 + $0x870] sm:$0xf]  ;;  %v7298_v43 = vor.u32 %v9701_v29, %v7297_v28  ;;  %v7098_v51 = vor.u32 %v9651_v31, %v7097_v30 }
  0x76   :  { %4877 = vmatpush.bf16.msrb.mxu2 %v7250_v61  ;;  %v7225_v35 = vld [vmem:[%s15238_s2 + $0x700] sm:$0xf]  ;;  %v9683_v36 = vld [vmem:[%s15238_s2 + $0x704] sm:$0xf0]  ;;  %v9729_v42 = vld [vmem:[%s15238_s2 + $0x874] sm:$0xf0]  ;;  %v7162_v54 = vor.u32 %v9667_v34, %v7161_v33 }
  0x77   :  { %4890 = vmatpush.bf16.msrb.mxu3 %v7314_v4  ;;  %v7289_v39 = vld [vmem:[%s15238_s2 + $0x780] sm:$0xf]  ;;  %v9699_v40 = vld [vmem:[%s15238_s2 + $0x784] sm:$0xf0]  ;;  %v7473_v44 = vld [vmem:[%s15238_s2 + $0x8f0] sm:$0xf]  ;;  %v7226_v55 = vor.u32 %v9683_v36, %v7225_v35  ;;  %v7410_v59 = vor.u32 %v9729_v42, %v7409_v41 }
  0x78   :  { %4852 = vmatpush.bf16.msrb.mxu0 %v7114_v10  ;;  %v9745_v45 = vld [vmem:[%s15238_s2 + $0x8f4] sm:$0xf0]  ;;  %v11163_v46 = vld [vmem:[#allocation1 + $0x24] sm:$0xff]  ;;  %v11167_v48 = vld [vmem:[#allocation1 + $0x2d] sm:$0xff]  ;;  %v7290_v58 = vor.u32 %v9699_v40, %v7289_v39  ;;  %vm4688_vm0 = vcmask 261120   ;;  %vm5989_vm2 = vcmask 130048  }
  0x79   :  { %4865 = vmatpush.bf16.msrb.mxu1 %v7178_v13  ;;  %v11165_v47 = vld [vmem:[#allocation1 + $0x36] sm:$0xff]  ;;  %v11169_v49 = vld [vmem:[#allocation1 + $0x3f] sm:$0xff]  ;;  %v7537_v52 = vld [vmem:[%s15238_s2 + $0x970] sm:$0xf]  ;;  %v7474_v61 = vor.u32 %v9745_v45, %v7473_v44  ;;  %vm6136_vm4 = vcmask 517120   ;;  %vm6204_vm10 = vcmask 523264  }
  0x7a   :  { %4878 = vmatpush.bf16.msrb.mxu2 %v7242_v14  ;;  %v39_v50 = vld [vmem:[%s15236_s0 + $0x10] sm:$0xff]  ;;  %v9761_v53 = vld [vmem:[%s15238_s2 + $0x974] sm:$0xf0]  ;;  %v7401_v63 = vld [vmem:[%s15238_s2 + $0x860] sm:$0xf]  ;;  %vm6309_vm15 = vcmask 58368  }
  0x7b   :  { %4891 = vmatpush.bf16.msrb.mxu3 %v7306_v24  ;;  %822 = vst [vmem:[#allocation1] ss:$9 sm:$0xff] %v39_v50  ;;  %v7601_v56 = vld [vmem:[%s15238_s2 + $0x9f0] sm:$0xf]  ;;  %v9777_v57 = vld [vmem:[%s15238_s2 + $0x9f4] sm:$0xf0]  ;;  %v7538_v62 = vor.u32 %v9761_v53, %v7537_v52 }
  0x7c   :  { %4853 = vmatpush.bf16.msrb.mxu0 %v7106_v32  ;;  %v9727_v3 = vld [vmem:[%s15238_s2 + $0x864] sm:$0xf0]  ;;  %v7465_v4 = vld [vmem:[%s15238_s2 + $0x8e0] sm:$0xf]  ;;  %v7602_v5 = vor.u32 %v9777_v57, %v7601_v56  ;;  %v7393_v18 = vld [vmem:[%s15238_s2 + $0x850] sm:$0xf] }
  0x7d   :  { %4866 = vmatpush.bf16.msrb.mxu1 %v7170_v37  ;;  %v9743_v6 = vld [vmem:[%s15238_s2 + $0x8e4] sm:$0xf0]  ;;  %v7529_v7 = vld [vmem:[%s15238_s2 + $0x960] sm:$0xf]  ;;  %v7402_v11 = vor.u32 %v9727_v3, %v7401_v63  ;;  %v9725_v19 = vld [vmem:[%s15238_s2 + $0x854] sm:$0xf0] }
  0x7e   :  { %4879 = vmatpush.bf16.msrb.mxu2 %v7234_v38  ;;  %v9759_v8 = vld [vmem:[%s15238_s2 + $0x964] sm:$0xf0]  ;;  %v7593_v9 = vld [vmem:[%s15238_s2 + $0x9e0] sm:$0xf]  ;;  %v7466_v13 = vor.u32 %v9743_v6, %v7465_v4  ;;  %v7457_v23 = vld [vmem:[%s15238_s2 + $0x8d0] sm:$0xf]  ;;  %v7394_v31 = vor.u32 %v9725_v19, %v7393_v18 }
  0x7f   :  { %4892 = vmatpush.bf16.msrb.mxu3 %v7298_v43  ;;  %v9775_v10 = vld [vmem:[%s15238_s2 + $0x9e4] sm:$0xf0]  ;;  %v7530_v14 = vor.u32 %v9759_v8, %v7529_v7  ;;  %v9741_v25 = vld [vmem:[%s15238_s2 + $0x8d4] sm:$0xf0]  ;;  %v7521_v27 = vld [vmem:[%s15238_s2 + $0x950] sm:$0xf] }
  0x80   :  { %4854 = vmatpush.bf16.msrb.mxu0 %v7098_v51  ;;  %v7594_v24 = vor.u32 %v9775_v10, %v7593_v9  ;;  %v9757_v28 = vld [vmem:[%s15238_s2 + $0x954] sm:$0xf0]  ;;  %v7585_v29 = vld [vmem:[%s15238_s2 + $0x9d0] sm:$0xf]  ;;  %v7458_v32 = vor.u32 %v9741_v25, %v7457_v23  ;;  %v7385_v34 = vld [vmem:[%s15238_s2 + $0x840] sm:$0xf] }
  0x81   :  { %4867 = vmatpush.bf16.msrb.mxu1 %v7162_v54  ;;  %v9773_v30 = vld [vmem:[%s15238_s2 + $0x9d4] sm:$0xf0]  ;;  %v7522_v33 = vor.u32 %v9757_v28, %v7521_v27  ;;  %v9723_v35 = vld [vmem:[%s15238_s2 + $0x844] sm:$0xf0]  ;;  %v7449_v36 = vld [vmem:[%s15238_s2 + $0x8c0] sm:$0xf] }
  0x82   :  { %4880 = vmatpush.bf16.msrb.mxu2 %v7226_v55  ;;  %v7586_v37 = vor.u32 %v9773_v30, %v7585_v29  ;;  %v9739_v38 = vld [vmem:[%s15238_s2 + $0x8c4] sm:$0xf0]  ;;  %v7513_v39 = vld [vmem:[%s15238_s2 + $0x940] sm:$0xf]  ;;  %v7386_v43 = vor.u32 %v9723_v35, %v7385_v34  ;;  %v7377_v50 = vld [vmem:[%s15238_s2 + $0x830] sm:$0xf] }
  0x83   :  { %4893 = vmatpush.bf16.msrb.mxu3 %v7290_v58  ;;  %4855 = vmatmul.bf16.vlgmr.msrb.gmra.mxu0 %v11163_v46  ;;  %v9755_v40 = vld [vmem:[%s15238_s2 + $0x944] sm:$0xf0]  ;;  %v7577_v41 = vld [vmem:[%s15238_s2 + $0x9c0] sm:$0xf]  ;;  %v7450_v44 = vor.u32 %v9739_v38, %v7449_v36  ;;  %v9721_v51 = vld [vmem:[%s15238_s2 + $0x834] sm:$0xf0] }
  0x84   :  { %4899 = vmatpush.bf16.msra.mxu0 %v7410_v59  ;;  %4868 = vmatmul.bf16.vlgmr.msrb.gmra.mxu1 %v11167_v48  ;;  %v9771_v42 = vld [vmem:[%s15238_s2 + $0x9c4] sm:$0xf0]  ;;  %v7514_v45 = vor.u32 %v9755_v40, %v7513_v39  ;;  %v7441_v52 = vld [vmem:[%s15238_s2 + $0x8b0] sm:$0xf]  ;;  %v9737_v54 = vld [vmem:[%s15238_s2 + $0x8b4] sm:$0xf0]  ;;  %v7378_v59 = vor.u32 %v9721_v51, %v7377_v50 }
  0x85   :  { %4912 = vmatpush.bf16.msra.mxu1 %v7474_v61  ;;  %4881 = vmatmul.bf16.vlgmr.msrb.gmra.mxu2 %v11165_v47  ;;  %v7578_v53 = vor.u32 %v9771_v42, %v7577_v41  ;;  %v7505_v55 = vld [vmem:[%s15238_s2 + $0x930] sm:$0xf]  ;;  %v9753_v56 = vld [vmem:[%s15238_s2 + $0x934] sm:$0xf0]  ;;  %v7442_v61 = vor.u32 %v9737_v54, %v7441_v52  ;;  %v7369_v63 = vld [vmem:[%s15238_s2 + $0x820] sm:$0xf] }
  0x86   :  { %4925 = vmatpush.bf16.msra.mxu2 %v7538_v62  ;;  %4894 = vmatmul.bf16.vlgmr.msrb.gmra.mxu3 %v11169_v49  ;;  %v7569_v57 = vld [vmem:[%s15238_s2 + $0x9b0] sm:$0xf]  ;;  %v9769_v58 = vld [vmem:[%s15238_s2 + $0x9b4] sm:$0xf0]  ;;  %v7506_v62 = vor.u32 %v9753_v56, %v7505_v55  ;;  %v9719_v3 = vld [vmem:[%s15238_s2 + $0x824] sm:$0xf0] }
  0x87   :  { %4938 = vmatpush.bf16.msra.mxu3 %v7602_v5  ;;  %v7433_v4 = vld [vmem:[%s15238_s2 + $0x8a0] sm:$0xf]  ;;  %v7570_v5 = vor.u32 %v9769_v58, %v7569_v57  ;;  %v9735_v6 = vld [vmem:[%s15238_s2 + $0x8a4] sm:$0xf0]  ;;  %v7361_v18 = vld [vmem:[%s15238_s2 + $0x810] sm:$0xf] }
  0x88   :  { %4900 = vmatpush.bf16.msra.mxu0 %v7402_v11  ;;  %v7497_v7 = vld [vmem:[%s15238_s2 + $0x920] sm:$0xf]  ;;  %v9751_v8 = vld [vmem:[%s15238_s2 + $0x924] sm:$0xf0]  ;;  %v7370_v11 = vor.u32 %v9719_v3, %v7369_v63  ;;  %v9717_v19 = vld [vmem:[%s15238_s2 + $0x814] sm:$0xf0] }
  0x89   :  { %4913 = vmatpush.bf16.msra.mxu1 %v7466_v13  ;;  %v7561_v9 = vld [vmem:[%s15238_s2 + $0x9a0] sm:$0xf]  ;;  %v9767_v10 = vld [vmem:[%s15238_s2 + $0x9a4] sm:$0xf0]  ;;  %v7434_v13 = vor.u32 %v9735_v6, %v7433_v4  ;;  %v7425_v23 = vld [vmem:[%s15238_s2 + $0x890] sm:$0xf] }
  0x8a   :  { %4926 = vmatpush.bf16.msra.mxu2 %v7530_v14  ;;  %v7498_v14 = vor.u32 %v9751_v8, %v7497_v7  ;;  %v9733_v25 = vld [vmem:[%s15238_s2 + $0x894] sm:$0xf0]  ;;  %v7489_v27 = vld [vmem:[%s15238_s2 + $0x910] sm:$0xf]  ;;  %v7417_v36 = vld [vmem:[%s15238_s2 + $0x880] sm:$0xf] }
  0x8b   :  { %4939 = vmatpush.bf16.msra.mxu3 %v7594_v24  ;;  %v7562_v24 = vor.u32 %v9767_v10, %v7561_v9  ;;  %v9749_v28 = vld [vmem:[%s15238_s2 + $0x914] sm:$0xf0]  ;;  %v7553_v29 = vld [vmem:[%s15238_s2 + $0x990] sm:$0xf]  ;;  %v7426_v34 = vor.u32 %v9733_v25, %v7425_v23  ;;  %v7481_v38 = vld [vmem:[%s15238_s2 + $0x900] sm:$0xf] }
  0x8c   :  { %4901 = vmatpush.bf16.msra.mxu0 %v7394_v31  ;;  %v9765_v30 = vld [vmem:[%s15238_s2 + $0x994] sm:$0xf0]  ;;  %v7362_v31 = vor.u32 %v9717_v19, %v7361_v18  ;;  %v7490_v35 = vor.u32 %v9749_v28, %v7489_v27  ;;  %v9747_v40 = vld [vmem:[%s15238_s2 + $0x904] sm:$0xf0]  ;;  %v7545_v41 = vld [vmem:[%s15238_s2 + $0x980] sm:$0xf] }
  0x8d   :  { %4914 = vmatpush.bf16.msra.mxu1 %v7458_v32  ;;  %v7353_v32 = vld [vmem:[%s15238_s2 + $0x800] sm:$0xf]  ;;  %v7554_v39 = vor.u32 %v9765_v30, %v7553_v29  ;;  %v9763_v42 = vld [vmem:[%s15238_s2 + $0x984] sm:$0xf0]  ;;  %v9809_v51 = vld [vmem:[%s15238_s2 + $0xaf4] sm:$0xf0]  ;;  %v7482_v55 = vor.u32 %v9747_v40, %v7481_v38 }
  0x8e   :  { %4927 = vmatpush.bf16.msra.mxu2 %v7522_v33  ;;  %v9715_v33 = vld [vmem:[%s15238_s2 + $0x804] sm:$0xf0]  ;;  %v7793_v52 = vld [vmem:[%s15238_s2 + $0xb70] sm:$0xf]  ;;  %v9841_v57 = vld [vmem:[%s15238_s2 + $0xbf4] sm:$0xf0]  ;;  %v7546_v58 = vor.u32 %v9763_v42, %v7545_v41 }
  0x8f   :  { %4940 = vmatpush.bf16.msra.mxu3 %v7586_v37  ;;  %v9731_v37 = vld [vmem:[%s15238_s2 + $0x884] sm:$0xf0]  ;;  %v7354_v50 = vor.u32 %v9715_v33, %v7353_v32  ;;  %v7857_v56 = vld [vmem:[%s15238_s2 + $0xbf0] sm:$0xf]  ;;  %v7657_v63 = vld [vmem:[%s15238_s2 + $0xa60] sm:$0xf] }
  0x90   :  { %4902 = vmatpush.bf16.msra.mxu0 %v7386_v43  ;;  %v7665_v43 = vld [vmem:[%s15238_s2 + $0xa70] sm:$0xf]  ;;  %v7418_v54 = vor.u32 %v9731_v37, %v7417_v36  ;;  %v9791_v3 = vld [vmem:[%s15238_s2 + $0xa64] sm:$0xf0]  ;;  %v7721_v4 = vld [vmem:[%s15238_s2 + $0xae0] sm:$0xf] }
  0x91   :  { %4915 = vmatpush.bf16.msra.mxu1 %v7450_v44  ;;  %v9793_v44 = vld [vmem:[%s15238_s2 + $0xa74] sm:$0xf0]  ;;  %v9807_v6 = vld [vmem:[%s15238_s2 + $0xae4] sm:$0xf0]  ;;  %v7785_v7 = vld [vmem:[%s15238_s2 + $0xb60] sm:$0xf]  ;;  %v7658_v19 = vor.u32 %v9791_v3, %v7657_v63 }
  0x92   :  { %4928 = vmatpush.bf16.msra.mxu2 %v7514_v45  ;;  %v7729_v45 = vld [vmem:[%s15238_s2 + $0xaf0] sm:$0xf]  ;;  %v9823_v8 = vld [vmem:[%s15238_s2 + $0xb64] sm:$0xf0]  ;;  %v11400_v9 = vld [vmem:[#allocation1] sm:$0xff]  ;;  %v7722_v23 = vor.u32 %v9807_v6, %v7721_v4 }
  0x93   :  { %4941 = vmatpush.bf16.msra.mxu3 %v7578_v53  ;;  %v9825_v53 = vld [vmem:[%s15238_s2 + $0xb74] sm:$0xf0]  ;;  %v7849_v10 = vld [vmem:[%s15238_s2 + $0xbe0] sm:$0xf]  ;;  %v7649_v25 = vld [vmem:[%s15238_s2 + $0xa50] sm:$0xf] }
  0x94   :  { %4903 = vmatpush.bf16.msra.mxu0 %v7378_v59  ;;  %v7666_v59 = vor.u32 %v9793_v44, %v7665_v43  ;;  %v11412_v18 = vld [vmem:[#allocation1 + $0x1b] sm:$0xff]  ;;  %v7713_v28 = vld [vmem:[%s15238_s2 + $0xad0] sm:$0xf]  ;;  %v9803_v42 = vld [vmem:[%s15238_s2 + $0xac4] sm:$0xf0] }
  0x95   :  { %4916 = vmatpush.bf16.msra.mxu1 %v7442_v61  ;;  %v7730_v61 = vor.u32 %v9809_v51, %v7729_v45  ;;  %v9789_v27 = vld [vmem:[%s15238_s2 + $0xa54] sm:$0xf0]  ;;  %v7841_v33 = vld [vmem:[%s15238_s2 + $0xbd0] sm:$0xf]  ;;  %v7641_v38 = vld [vmem:[%s15238_s2 + $0xa40] sm:$0xf] }
  0x96   :  { %4929 = vmatpush.bf16.msra.mxu2 %v7506_v62  ;;  %v7794_v62 = vor.u32 %v9825_v53, %v7793_v52  ;;  %v9805_v30 = vld [vmem:[%s15238_s2 + $0xad4] sm:$0xf0]  ;;  %v7705_v40 = vld [vmem:[%s15238_s2 + $0xac0] sm:$0xf]  ;;  %v9819_v44 = vld [vmem:[%s15238_s2 + $0xb44] sm:$0xf0] }
  0x97   :  { %4942 = vmatpush.bf16.msra.mxu3 %v7570_v5  ;;  %v7858_v5 = vor.u32 %v9841_v57, %v7857_v56  ;;  %v9821_v32 = vld [vmem:[%s15238_s2 + $0xb54] sm:$0xf0]  ;;  %v7714_v36 = vor.u32 %v9805_v30, %v7713_v28  ;;  %v7769_v43 = vld [vmem:[%s15238_s2 + $0xb40] sm:$0xf]  ;;  %v7633_v52 = vld [vmem:[%s15238_s2 + $0xa30] sm:$0xf]  ;;  %v7706_v53 = vor.u32 %v9803_v42, %v7705_v40 }
  0x98   :  { %4904 = vmatpush.bf16.msra.mxu0 %v7370_v11  ;;  %v9839_v11 = vld [vmem:[%s15238_s2 + $0xbe4] sm:$0xf0]  ;;  %v7833_v45 = vld [vmem:[%s15238_s2 + $0xbc0] sm:$0xf]  ;;  %v7697_v56 = vld [vmem:[%s15238_s2 + $0xab0] sm:$0xf] }
  0x99   :  { %4917 = vmatpush.bf16.msra.mxu1 %v7434_v13  ;;  %v11408_v13 = vld [vmem:[#allocation1 + $0x12] sm:$0xff]  ;;  %v7850_v29 = vor.u32 %v9839_v11, %v7849_v10  ;;  %v7689_v10 = vld [vmem:[%s15238_s2 + $0xaa0] sm:$0xf]  ;;  %v9831_v28 = vld [vmem:[%s15238_s2 + $0xba4] sm:$0xf0] }
  0x9a   :  { %4930 = vmatpush.bf16.msra.mxu2 %v7498_v14  ;;  %v11410_v14 = vld [vmem:[#allocation1 + $0x9] sm:$0xff]  ;;  %v9801_v57 = vld [vmem:[%s15238_s2 + $0xab4] sm:$0xf0] }
  0x9b   :  { %4943 = vmatpush.bf16.msra.mxu3 %v7562_v24  ;;  %v7786_v24 = vor.u32 %v9823_v8, %v7785_v7  ;;  %v7825_v63 = vld [vmem:[%s15238_s2 + $0xbb0] sm:$0xf]  ;;  %v9833_v3 = vld [vmem:[%s15238_s2 + $0xbb4] sm:$0xf0]  ;;  %v7698_v6 = vor.u32 %v9801_v57, %v7697_v56  ;;  %v9783_v8 = vld [vmem:[%s15238_s2 + $0xa24] sm:$0xf0] }
  0x9c   :  { %4905 = vmatpush.bf16.msra.mxu0 %v7362_v31  ;;  %v7777_v31 = vld [vmem:[%s15238_s2 + $0xb50] sm:$0xf] }
  0x9d   :  { %4918 = vmatpush.bf16.msra.mxu1 %v7426_v34  ;;  %v9837_v34 = vld [vmem:[%s15238_s2 + $0xbd4] sm:$0xf0]  ;;  %v7778_v37 = vor.u32 %v9821_v32, %v7777_v31  ;;  %v7617_v30 = vld [vmem:[%s15238_s2 + $0xa10] sm:$0xf] }
  0x9e   :  { %4931 = vmatpush.bf16.msra.mxu2 %v7490_v35  ;;  %v7650_v35 = vor.u32 %v9789_v27, %v7649_v25  ;;  %v7842_v41 = vor.u32 %v9837_v34, %v7841_v33  ;;  %v9815_v25 = vld [vmem:[%s15238_s2 + $0xb24] sm:$0xf0]  ;;  %v7817_v27 = vld [vmem:[%s15238_s2 + $0xba0] sm:$0xf]  ;;  %v9781_v34 = vld [vmem:[%s15238_s2 + $0xa14] sm:$0xf0] }
  0x9f   :  { %4944 = vmatpush.bf16.msra.mxu3 %v7554_v39  ;;  %v9787_v39 = vld [vmem:[%s15238_s2 + $0xa44] sm:$0xf0]  ;;  %v7745_v40 = vld [vmem:[%s15238_s2 + $0xb10] sm:$0xf] }
  0xa0   :  { %4906 = vmatpush.bf16.msra.mxu0 %v7354_v50  ;;  %v9835_v50 = vld [vmem:[%s15238_s2 + $0xbc4] sm:$0xf0]  ;;  %v7642_v51 = vor.u32 %v9787_v39, %v7641_v38  ;;  %v7818_v39 = vor.u32 %v9831_v28, %v7817_v27  ;;  %v7809_v42 = vld [vmem:[%s15238_s2 + $0xb90] sm:$0xf]  ;;  %v9889_v27 = vld [vmem:[%s15238_s2 + $0xd74] sm:$0xf0] }
  0xa1   :  { %4919 = vmatpush.bf16.msra.mxu1 %v7418_v54  ;;  %v7770_v54 = vor.u32 %v9819_v44, %v7769_v43  ;;  %v9829_v43 = vld [vmem:[%s15238_s2 + $0xb94] sm:$0xf0]  ;;  %v7609_v44 = vld [vmem:[%s15238_s2 + $0xa00] sm:$0xf] }
  0xa2   :  { %4932 = vmatpush.bf16.msra.mxu2 %v7482_v55  ;;  %v9785_v55 = vld [vmem:[%s15238_s2 + $0xa34] sm:$0xf0] }
  0xa3   :  { %4945 = vmatpush.bf16.msra.mxu3 %v7546_v58  ;;  %4907 = vmatmul.bf16.vlgmr.msra.gmra.mxu0 %v11400_v9  ;;  %v7834_v58 = vor.u32 %v9835_v50, %v7833_v45  ;;  %v7634_v4 = vor.u32 %v9785_v55, %v7633_v52  ;;  %v4700_v31 = vpop.f32.mrf.mxu0  ;;  %v9779_v45 = vld [vmem:[%s15238_s2 + $0xa04] sm:$0xf0]  ;;  %v7673_v52 = vld [vmem:[%s15238_s2 + $0xa80] sm:$0xf] }
  0xa4   :  { %4951 = vmatpush.bf16.msrb.mxu0 %v7666_v59  ;;  %4920 = vmatmul.bf16.vlgmr.msra.gmra.mxu1 %v11410_v14  ;;  %v7761_v59 = vld [vmem:[%s15238_s2 + $0xb30] sm:$0xf]  ;;  %v9811_v55 = vld [vmem:[%s15238_s2 + $0xb04] sm:$0xf0] }
  0xa5   :  { %4964 = vmatpush.bf16.msrb.mxu1 %v7730_v61  ;;  %4933 = vmatmul.bf16.vlgmr.msra.gmra.mxu2 %v11408_v13  ;;  %v9817_v61 = vld [vmem:[%s15238_s2 + $0xb34] sm:$0xf0] }
  0xa6   :  { %4977 = vmatpush.bf16.msrb.mxu2 %v7794_v62  ;;  %4946 = vmatmul.bf16.vlgmr.msra.gmra.mxu3 %v11412_v18  ;;  %v34_v62 = vld [vmem:[%s15243_s7] sm:$0xff]  ;;  %v7762_v7 = vor.u32 %v9817_v61, %v7761_v59  ;;  %v9827_v59 = vld [vmem:[%s15238_s2 + $0xb84] sm:$0xf0]  ;;  %v7921_v61 = vld [vmem:[%s15238_s2 + $0xc70] sm:$0xf] }
  0xa7   :  { %4990 = vmatpush.bf16.msrb.mxu3 %v7858_v5  ;;  %v7625_v5 = vld [vmem:[%s15238_s2 + $0xa20] sm:$0xf]  ;;  %v799_v11 = vperm.slane %v34_v62, 0  ;;  %v4713_v38 = vpop.f32.mrf.mxu1  ;;  %v9857_v62 = vld [vmem:[%s15238_s2 + $0xc74] sm:$0xf0] }
  0xa8   :  { %4952 = vmatpush.bf16.msrb.mxu0 %v7658_v19  ;;  %v7826_v19 = vor.u32 %v9833_v3, %v7825_v63  ;;  %v7810_v3 = vor.u32 %v9829_v43, %v7809_v42  ;;  %v9871_v43 = vld [vmem:[%s15238_s2 + $0xce4] sm:$0xf0] }
  0xa9   :  { %4965 = vmatpush.bf16.msrb.mxu1 %v7722_v23  ;;  %v9799_v23 = vld [vmem:[%s15238_s2 + $0xaa4] sm:$0xf0] }
  0xaa   :  { %4978 = vmatpush.bf16.msrb.mxu2 %v7786_v24  ;;  %v7753_v24 = vld [vmem:[%s15238_s2 + $0xb20] sm:$0xf]  ;;  %v7690_v32 = vor.u32 %v9799_v23, %v7689_v10  ;;  %v4726_v63 = vpop.f32.mrf.mxu2  ;;  %v40_v23 = vld [vmem:[%s15236_s0 + $0x18] sm:$0xff] }
  0xab   :  { %4991 = vmatpush.bf16.msrb.mxu3 %v7850_v29  ;;  %v7626_v29 = vor.u32 %v9783_v8, %v7625_v5  ;;  %v7754_v33 = vor.u32 %v9815_v25, %v7753_v24  ;;  %v9873_v5 = vld [vmem:[%s15238_s2 + $0xcf4] sm:$0xf0]  ;;  %v4739_v10 = vpop.f32.mrf.mxu3  ;;  %v7610_v24 = vor.u32 %v9779_v45, %v7609_v44  ;;  %v8049_v25 = vld [vmem:[%s15238_s2 + $0xd70] sm:$0xf]  ;;  %v8041_v44 = vld [vmem:[%s15238_s2 + $0xd60] sm:$0xf] }
  0xac   :  { %4953 = vmatpush.bf16.msrb.mxu0 %v7650_v35  ;;  %v7681_v35 = vld [vmem:[%s15238_s2 + $0xa90] sm:$0xf]  ;;  %v9887_v45 = vld [vmem:[%s15238_s2 + $0xd64] sm:$0xf0] }
  0xad   :  { %4966 = vmatpush.bf16.msrb.mxu1 %v7714_v36  ;;  %v9797_v36 = vld [vmem:[%s15238_s2 + $0xa94] sm:$0xf0] }
  0xae   :  { %4979 = vmatpush.bf16.msrb.mxu2 %v7778_v37  ;;  %v4701_v37 = vadd.f32 %v4700_v31, %v799_v11  ;;  %v7682_v56 = vor.u32 %v9797_v36, %v7681_v35  ;;  %v11581_v11 = vld [vmem:[#allocation1 + $0x2d] sm:$0xff]  ;;  %v7922_v36 = vor.u32 %v9857_v62, %v7921_v61  ;;  %v9869_v62 = vld [vmem:[%s15238_s2 + $0xcd4] sm:$0xf0] }
  0xaf   :  { %4992 = vmatpush.bf16.msrb.mxu3 %v7842_v41  ;;  %v9813_v41 = vld [vmem:[%s15238_s2 + $0xb14] sm:$0xf0] }
  0xb0   :  { %4954 = vmatpush.bf16.msrb.mxu0 %v7642_v51  ;;  %v4714_v50 = vadd.f32 %v4713_v38, %v4701_v37  ;;  %v7618_v51 = vor.u32 %v9781_v34, %v7617_v30  ;;  %v7746_v57 = vor.u32 %v9813_v41, %v7745_v40  ;;  %v4715_v34 = vpop.f32.mrf.mxu1  ;;  %v8050_v38 = vor.u32 %v9889_v27, %v8049_v25  ;;  %v9855_v40 = vld [vmem:[%s15238_s2 + $0xc64] sm:$0xf0]  ;;  %v7977_v41 = vld [vmem:[%s15238_s2 + $0xce0] sm:$0xf] }
  0xb1   :  { %4967 = vmatpush.bf16.msrb.mxu1 %v7706_v53  ;;  %v9795_v53 = vld [vmem:[%s15238_s2 + $0xa84] sm:$0xf0]  ;;  %v7961_v27 = vld [vmem:[%s15238_s2 + $0xcc0] sm:$0xf] }
  0xb2   :  { %4980 = vmatpush.bf16.msrb.mxu2 %v7770_v54  ;;  %v7737_v54 = vld [vmem:[%s15238_s2 + $0xb00] sm:$0xf]  ;;  %v4727_v8 = vadd.f32 %v4726_v63, %v4714_v50  ;;  %v7674_v30 = vor.u32 %v9795_v53, %v7673_v52  ;;  %v4728_v52 = vpop.f32.mrf.mxu2  ;;  %v8033_v63 = vld [vmem:[%s15238_s2 + $0xd50] sm:$0xf]  ;;  %v9851_v25 = vld [vmem:[%s15238_s2 + $0xc44] sm:$0xf0] }
  0xb3   :  { %4993 = vmatpush.bf16.msrb.mxu3 %v7834_v58  ;;  %v7801_v58 = vld [vmem:[%s15238_s2 + $0xb80] sm:$0xf]  ;;  %v7738_v31 = vor.u32 %v9811_v55, %v7737_v54  ;;  %v4741_v54 = vpop.f32.mrf.mxu3  ;;  %v7978_v55 = vor.u32 %v9871_v43, %v7977_v41  ;;  %v9899_v34 = vld [vmem:[%s15238_s2 + $0xdc4] sm:$0xf0]  ;;  %v7953_v41 = vld [vmem:[%s15238_s2 + $0xcb0] sm:$0xf] }
  0xb4   :  { %4955 = vmatpush.bf16.msrb.mxu0 %v7634_v4  ;;  %v7985_v4 = vld [vmem:[%s15238_s2 + $0xcf0] sm:$0xf]  ;;  %v11594_v28 = vadd.f32 %v4739_v10, %v4727_v8  ;;  %v7802_v35 = vor.u32 %v9827_v59, %v7801_v58  ;;  %v8105_v50 = vld [vmem:[%s15238_s2 + $0xde0] sm:$0xf]  ;;  %v9853_v58 = vld [vmem:[%s15238_s2 + $0xc54] sm:$0xf0] }
  0xb5   :  { %4968 = vmatpush.bf16.msrb.mxu1 %v7698_v6  ;;  %v11577_v6 = vld [vmem:[#allocation1 + $0x24] sm:$0xff]  ;;  %v7986_v37 = vor.u32 %v9873_v5, %v7985_v4  ;;  %v7969_v59 = vld [vmem:[%s15238_s2 + $0xcd0] sm:$0xf]  ;;  %v9901_v5 = vld [vmem:[%s15238_s2 + $0xdd4] sm:$0xf0] }
  0xb6   :  { %4981 = vmatpush.bf16.msrb.mxu2 %v7762_v7  ;;  %v11579_v7 = vld [vmem:[#allocation1 + $0x36] sm:$0xff]  ;;  %v8097_v4 = vld [vmem:[%s15238_s2 + $0xdd0] sm:$0xf]  ;;  %v7970_v10 = vor.u32 %v9869_v62, %v7969_v59  ;;  %v7945_v59 = vld [vmem:[%s15238_s2 + $0xca0] sm:$0xf] }
  0xb7   :  { %4994 = vmatpush.bf16.msrb.mxu3 %v7826_v19  ;;  %v11583_v19 = vld [vmem:[#allocation1 + $0x3f] sm:$0xff]  ;;  %v8081_v52 = vld [vmem:[%s15238_s2 + $0xdb0] sm:$0xf] }
  0xb8   :  { %4956 = vmatpush.bf16.msrb.mxu0 %v7626_v29  ;;  %v4702_v29 = vpop.f32.mrf.mxu0  ;;  %832 = vst [vmem:[#allocation1] ss:$9 sm:$0xff] %v40_v23 }
  0xb9   :  { %4969 = vmatpush.bf16.msrb.mxu1 %v7690_v32  ;;  %v8113_v32 = vld [vmem:[%s15238_s2 + $0xdf0] sm:$0xf]  ;;  %v8098_v29 = vor.u32 %v9901_v5, %v8097_v4  ;;  %v9879_v4 = vld [vmem:[%s15238_s2 + $0xd24] sm:$0xf0] }
  0xba   :  { %4982 = vmatpush.bf16.msrb.mxu2 %v7754_v33  ;;  %v9905_v33 = vld [vmem:[%s15238_s2 + $0xdf4] sm:$0xf0] }
  0xbb   :  { %4995 = vmatpush.bf16.msrb.mxu3 %v7818_v39  ;;  %v7913_v39 = vld [vmem:[%s15238_s2 + $0xc60] sm:$0xf]  ;;  %v8114_v42 = vor.u32 %v9905_v33, %v8113_v32  ;;  %v9883_v32 = vld [vmem:[%s15238_s2 + $0xd44] sm:$0xf0] }
  0xbc   :  { %4957 = vmatpush.bf16.msrb.mxu0 %v7618_v51  ;;  %v9903_v51 = vld [vmem:[%s15238_s2 + $0xde4] sm:$0xf0]  ;;  %v7914_v53 = vor.u32 %v9855_v40, %v7913_v39  ;;  %v8089_v33 = vld [vmem:[%s15238_s2 + $0xdc0] sm:$0xf]  ;;  %v7889_v39 = vld [vmem:[%s15238_s2 + $0xc30] sm:$0xf] }
  0xbd   :  { %4970 = vmatpush.bf16.msrb.mxu1 %v7682_v56  ;;  %v8042_v56 = vor.u32 %v9887_v45, %v8041_v44  ;;  %v8106_v61 = vor.u32 %v9903_v51, %v8105_v50  ;;  %v9849_v40 = vld [vmem:[%s15238_s2 + $0xc34] sm:$0xf0]  ;;  %v8090_v44 = vor.u32 %v9899_v34, %v8089_v33  ;;  %v8017_v50 = vld [vmem:[%s15238_s2 + $0xd30] sm:$0xf] }
  0xbe   :  { %4983 = vmatpush.bf16.msrb.mxu2 %v7746_v57  ;;  %v7905_v57 = vld [vmem:[%s15238_s2 + $0xc50] sm:$0xf]  ;;  %v9865_v45 = vld [vmem:[%s15238_s2 + $0xcb4] sm:$0xf0]  ;;  %v7890_v54 = vor.u32 %v9849_v40, %v7889_v39 }
  0xbf   :  { %4996 = vmatpush.bf16.msrb.mxu3 %v7810_v3  ;;  %v9885_v3 = vld [vmem:[%s15238_s2 + $0xd54] sm:$0xf0]  ;;  %v7906_v8 = vor.u32 %v9853_v58, %v7905_v57  ;;  %v7881_v57 = vld [vmem:[%s15238_s2 + $0xc20] sm:$0xf]  ;;  %v9847_v58 = vld [vmem:[%s15238_s2 + $0xc24] sm:$0xf0] }
  0xc0   :  { %4958 = vmatpush.bf16.msrb.mxu0 %v7610_v24  ;;  %v8034_v23 = vor.u32 %v9885_v3, %v8033_v63  ;;  %v7897_v24 = vld [vmem:[%s15238_s2 + $0xc40] sm:$0xf]  ;;  %v9881_v51 = vld [vmem:[%s15238_s2 + $0xd34] sm:$0xf0]  ;;  %v9863_v63 = vld [vmem:[%s15238_s2 + $0xca4] sm:$0xf0] }
  0xc1   :  { %4971 = vmatpush.bf16.msrb.mxu1 %v7674_v30  ;;  %v9867_v30 = vld [vmem:[%s15238_s2 + $0xcc4] sm:$0xf0]  ;;  %v4765_v43 = vpop.f32.mrf.mxu1  ;;  %v8009_v3 = vld [vmem:[%s15238_s2 + $0xd20] sm:$0xf]  ;;  %v7937_v33 = vld [vmem:[%s15238_s2 + $0xc90] sm:$0xf] }
  0xc2   :  { %4984 = vmatpush.bf16.msrb.mxu2 %v7738_v31  ;;  %v8025_v31 = vld [vmem:[%s15238_s2 + $0xd40] sm:$0xf]  ;;  %v8065_v39 = vld [vmem:[%s15238_s2 + $0xd90] sm:$0xf]  ;;  %v9893_v40 = vld [vmem:[%s15238_s2 + $0xd94] sm:$0xf0] }
  0xc3   :  { %4997 = vmatpush.bf16.msrb.mxu3 %v7802_v35  ;;  %4959 = vmatmul.bf16.vlgmr.msrb.gmra.mxu0 %v11577_v6  ;;  %v7898_v35 = vor.u32 %v9851_v25, %v7897_v24  ;;  %v7882_v24 = vor.u32 %v9847_v58, %v7881_v57  ;;  %v8177_v58 = vld [vmem:[%s15238_s2 + $0xe70] sm:$0xf] }
  0xc4   :  { %5003 = vmatpush.bf16.msra.mxu0 %v7922_v36  ;;  %4972 = vmatmul.bf16.vlgmr.msrb.gmra.mxu1 %v11581_v11  ;;  %v4752_v36 = vpop.f32.mrf.mxu0 }
  0xc5   :  { %5016 = vmatpush.bf16.msra.mxu1 %v7986_v37  ;;  %4985 = vmatmul.bf16.vlgmr.msrb.gmra.mxu2 %v11579_v7  ;;  %v7962_v37 = vor.u32 %v9867_v30, %v7961_v27  ;;  %v8010_v30 = vor.u32 %v9879_v4, %v8009_v3  ;;  %v8305_v3 = vld [vmem:[%s15238_s2 + $0xf70] sm:$0xf]  ;;  %v9953_v4 = vld [vmem:[%s15238_s2 + $0xf74] sm:$0xf0] }
  0xc6   :  { %5029 = vmatpush.bf16.msra.mxu2 %v8050_v38  ;;  %4998 = vmatmul.bf16.vlgmr.msrb.gmra.mxu3 %v11583_v19  ;;  %v8026_v38 = vor.u32 %v9883_v32, %v8025_v31  ;;  %v7873_v31 = vld [vmem:[%s15238_s2 + $0xc10] sm:$0xf]  ;;  %v9845_v32 = vld [vmem:[%s15238_s2 + $0xc14] sm:$0xf0] }
  0xc7   :  { %5042 = vmatpush.bf16.msra.mxu3 %v8114_v42  ;;  %v4753_v42 = vadd.f32 %v4752_v36, %v11594_v28  ;;  %v9897_v28 = vld [vmem:[%s15238_s2 + $0xdb4] sm:$0xf0] }
  0xc8   :  { %5004 = vmatpush.bf16.msra.mxu0 %v7914_v53  ;;  %v8082_v62 = vor.u32 %v9897_v28, %v8081_v52  ;;  %v9861_v36 = vld [vmem:[%s15238_s2 + $0xc94] sm:$0xf0]  ;;  %v7993_v52 = vld [vmem:[%s15238_s2 + $0xd00] sm:$0xf] }
  0xc9   :  { %5017 = vmatpush.bf16.msra.mxu1 %v7978_v55  ;;  %v4766_v53 = vadd.f32 %v4765_v43, %v4753_v42  ;;  %v7954_v55 = vor.u32 %v9865_v45, %v7953_v41  ;;  %v4767_v34 = vpop.f32.mrf.mxu1  ;;  %v7874_v41 = vor.u32 %v9845_v32, %v7873_v31  ;;  %v7865_v42 = vld [vmem:[%s15238_s2 + $0xc00] sm:$0xf]  ;;  %v9843_v43 = vld [vmem:[%s15238_s2 + $0xc04] sm:$0xf0] }
  0xca   :  { %5030 = vmatpush.bf16.msra.mxu2 %v8042_v56  ;;  %v8018_v56 = vor.u32 %v9881_v51, %v8017_v50  ;;  %v7929_v50 = vld [vmem:[%s15238_s2 + $0xc80] sm:$0xf]  ;;  %v9859_v51 = vld [vmem:[%s15238_s2 + $0xc84] sm:$0xf0] }
  0xcb   :  { %5043 = vmatpush.bf16.msra.mxu3 %v8106_v61  ;;  %v4778_v61 = vpop.f32.mrf.mxu2  ;;  %v8169_v31 = vld [vmem:[%s15238_s2 + $0xe60] sm:$0xf]  ;;  %v9919_v32 = vld [vmem:[%s15238_s2 + $0xe64] sm:$0xf0] }
  0xcc   :  { %5005 = vmatpush.bf16.msra.mxu0 %v7906_v8  ;;  %v4779_v5 = vadd.f32 %v4778_v61, %v4766_v53  ;;  %v4791_v8 = vpop.f32.mrf.mxu3  ;;  %v4754_v27 = vpop.f32.mrf.mxu0  ;;  %v8066_v53 = vor.u32 %v9893_v40, %v8065_v39  ;;  %v8241_v61 = vld [vmem:[%s15238_s2 + $0xef0] sm:$0xf]  ;;  %v8361_v39 = vld [vmem:[%s15238_s2 + $0xfe0] sm:$0xf]  ;;  %v9967_v40 = vld [vmem:[%s15238_s2 + $0xfe4] sm:$0xf0] }
  0xcd   :  { %5018 = vmatpush.bf16.msra.mxu1 %v7970_v10  ;;  %v8073_v10 = vld [vmem:[%s15238_s2 + $0xda0] sm:$0xf] }
  0xce   :  { %5031 = vmatpush.bf16.msra.mxu2 %v8034_v23  ;;  %v9895_v23 = vld [vmem:[%s15238_s2 + $0xda4] sm:$0xf0]  ;;  %v11727_v25 = vadd.f32 %v4791_v8, %v4779_v5  ;;  %v7930_v5 = vor.u32 %v9859_v51, %v7929_v50  ;;  %v8161_v51 = vld [vmem:[%s15238_s2 + $0xe50] sm:$0xf] }
  0xcf   :  { %5044 = vmatpush.bf16.msra.mxu3 %v8098_v29  ;;  %v7946_v29 = vor.u32 %v9863_v63, %v7945_v59  ;;  %v9921_v59 = vld [vmem:[%s15238_s2 + $0xe74] sm:$0xf0] }
  0xd0   :  { %5006 = vmatpush.bf16.msra.mxu0 %v7898_v35  ;;  %v8074_v35 = vor.u32 %v9895_v23, %v8073_v10  ;;  %v9937_v63 = vld [vmem:[%s15238_s2 + $0xef4] sm:$0xf0]  ;;  %v8369_v10 = vld [vmem:[%s15238_s2 + $0xff0] sm:$0xf]  ;;  %v8178_v27 = vor.u32 %v9921_v59, %v8177_v58 }
  0xd1   :  { %5019 = vmatpush.bf16.msra.mxu1 %v7962_v37  ;;  %v8001_v37 = vld [vmem:[%s15238_s2 + $0xd10] sm:$0xf]  ;;  %v9969_v23 = vld [vmem:[%s15238_s2 + $0xff4] sm:$0xf0] }
  0xd2   :  { %5032 = vmatpush.bf16.msra.mxu2 %v8026_v38  ;;  %v9877_v38 = vld [vmem:[%s15238_s2 + $0xd14] sm:$0xf0]  ;;  %v8370_v34 = vor.u32 %v9969_v23, %v8369_v10  ;;  %v8281_v10 = vld [vmem:[%s15238_s2 + $0xf40] sm:$0xf]  ;;  %v9947_v23 = vld [vmem:[%s15238_s2 + $0xf44] sm:$0xf0] }
  0xd3   :  { %5045 = vmatpush.bf16.msra.mxu3 %v8090_v44  ;;  %v7938_v44 = vor.u32 %v9861_v36, %v7937_v33  ;;  %v8002_v45 = vor.u32 %v9877_v38, %v8001_v37  ;;  %v4780_v28 = vpop.f32.mrf.mxu2  ;;  %v8233_v33 = vld [vmem:[%s15238_s2 + $0xee0] sm:$0xf]  ;;  %v9951_v37 = vld [vmem:[%s15238_s2 + $0xf64] sm:$0xf0]  ;;  %v9965_v58 = vld [vmem:[%s15238_s2 + $0xfd4] sm:$0xf0] }
  0xd4   :  { %5007 = vmatpush.bf16.msra.mxu0 %v7890_v54  ;;  %v9875_v54 = vld [vmem:[%s15238_s2 + $0xd04] sm:$0xf0]  ;;  %v4793_v57 = vpop.f32.mrf.mxu3  ;;  %v8297_v36 = vld [vmem:[%s15238_s2 + $0xf60] sm:$0xf]  ;;  %v8225_v28 = vld [vmem:[%s15238_s2 + $0xed0] sm:$0xf] }
  0xd5   :  { %5020 = vmatpush.bf16.msra.mxu1 %v7954_v55  ;;  %v8057_v55 = vld [vmem:[%s15238_s2 + $0xd80] sm:$0xf]  ;;  %v7994_v8 = vor.u32 %v9875_v54, %v7993_v52  ;;  %v8298_v50 = vor.u32 %v9951_v37, %v8297_v36  ;;  %v9917_v52 = vld [vmem:[%s15238_s2 + $0xe54] sm:$0xf0]  ;;  %v8353_v57 = vld [vmem:[%s15238_s2 + $0xfd0] sm:$0xf] }
  0xd6   :  { %5033 = vmatpush.bf16.msra.mxu2 %v8018_v56  ;;  %v9891_v56 = vld [vmem:[%s15238_s2 + $0xd84] sm:$0xf0]  ;;  %v11819_v38 = vld [vmem:[#allocation1] sm:$0xff]  ;;  %v9933_v54 = vld [vmem:[%s15238_s2 + $0xed4] sm:$0xf0]  ;;  %v8162_v59 = vor.u32 %v9917_v52, %v8161_v51 }
  0xd7   :  { %5046 = vmatpush.bf16.msra.mxu3 %v8082_v62  ;;  %v7866_v62 = vor.u32 %v9843_v43, %v7865_v42  ;;  %v11829_v42 = vld [vmem:[#allocation1 + $0x9] sm:$0xff]  ;;  %v11831_v43 = vld [vmem:[#allocation1 + $0x1b] sm:$0xff] }
  0xd8   :  { %5008 = vmatpush.bf16.msra.mxu0 %v7882_v24  ;;  %v8058_v24 = vor.u32 %v9891_v56, %v8057_v55  ;;  %v8289_v55 = vld [vmem:[%s15238_s2 + $0xf50] sm:$0xf]  ;;  %v9949_v56 = vld [vmem:[%s15238_s2 + $0xf54] sm:$0xf0] }
  0xd9   :  { %5021 = vmatpush.bf16.msra.mxu1 %v7946_v29  ;;  %v8242_v29 = vor.u32 %v9937_v63, %v8241_v61  ;;  %v8226_v61 = vor.u32 %v9933_v54, %v8225_v28  ;;  %v8153_v63 = vld [vmem:[%s15238_s2 + $0xe40] sm:$0xf]  ;;  %v9913_v36 = vld [vmem:[%s15238_s2 + $0xe34] sm:$0xf0]  ;;  %v8209_v37 = vld [vmem:[%s15238_s2 + $0xeb0] sm:$0xf] }
  0xda   :  { %5034 = vmatpush.bf16.msra.mxu2 %v8010_v30  ;;  %v8306_v30 = vor.u32 %v9953_v4, %v8305_v3  ;;  %v9915_v3 = vld [vmem:[%s15238_s2 + $0xe44] sm:$0xf0]  ;;  %v8217_v4 = vld [vmem:[%s15238_s2 + $0xec0] sm:$0xf]  ;;  %v9961_v51 = vld [vmem:[%s15238_s2 + $0xfb4] sm:$0xf0] }
  0xdb   :  { %5047 = vmatpush.bf16.msra.mxu3 %v8074_v35  ;;  %v9935_v35 = vld [vmem:[%s15238_s2 + $0xee4] sm:$0xf0]  ;;  %v8137_v54 = vld [vmem:[%s15238_s2 + $0xe20] sm:$0xf] }
  0xdc   :  { %5009 = vmatpush.bf16.msra.mxu0 %v7874_v41  ;;  %v11827_v41 = vld [vmem:[#allocation1 + $0x12] sm:$0xff] }
  0xdd   :  { %5022 = vmatpush.bf16.msra.mxu1 %v7938_v44  ;;  %v8170_v44 = vor.u32 %v9919_v32, %v8169_v31  ;;  %v8154_v31 = vor.u32 %v9915_v3, %v8153_v63 }
  0xde   :  { %5035 = vmatpush.bf16.msra.mxu2 %v8002_v45  ;;  %v8234_v45 = vor.u32 %v9935_v35, %v8233_v33  ;;  %v8145_v35 = vld [vmem:[%s15238_s2 + $0xe30] sm:$0xf] }
  0xdf   :  { %5048 = vmatpush.bf16.msra.mxu3 %v8066_v53  ;;  %v8362_v53 = vor.u32 %v9967_v40, %v8361_v39  ;;  %v9929_v40 = vld [vmem:[%s15238_s2 + $0xeb4] sm:$0xf0]  ;;  %v8146_v52 = vor.u32 %v9913_v36, %v8145_v35  ;;  %v8257_v35 = vld [vmem:[%s15238_s2 + $0xf10] sm:$0xf] }
  0xe0   :  { %5010 = vmatpush.bf16.msra.mxu0 %v7866_v62  ;;  %v8290_v62 = vor.u32 %v9949_v56, %v8289_v55  ;;  %v8210_v28 = vor.u32 %v9929_v40, %v8209_v37  ;;  %v9911_v55 = vld [vmem:[%s15238_s2 + $0xe24] sm:$0xf0]  ;;  %v8201_v56 = vld [vmem:[%s15238_s2 + $0xea0] sm:$0xf]  ;;  %v9941_v36 = vld [vmem:[%s15238_s2 + $0xf14] sm:$0xf0] }
  0xe1   :  { %5023 = vmatpush.bf16.msra.mxu1 %v7930_v5  ;;  %v8354_v5 = vor.u32 %v9965_v58, %v8353_v57  ;;  %v4817_v32 = vpop.f32.mrf.mxu1  ;;  %v8321_v37 = vld [vmem:[%s15238_s2 + $0xf90] sm:$0xf]  ;;  %v9907_v40 = vld [vmem:[%s15238_s2 + $0xe04] sm:$0xf0] }
  0xe2   :  { %5036 = vmatpush.bf16.msra.mxu2 %v7994_v8  ;;  %v9931_v8 = vld [vmem:[%s15238_s2 + $0xec4] sm:$0xf0] }
  0xe3   :  { %5049 = vmatpush.bf16.msra.mxu3 %v8058_v24  ;;  %5011 = vmatmul.bf16.vlgmr.msra.gmra.mxu0 %v11819_v38  ;;  %v4804_v24 = vpop.f32.mrf.mxu0  ;;  %v8218_v33 = vor.u32 %v9931_v8, %v8217_v4  ;;  %v8329_v4 = vld [vmem:[%s15238_s2 + $0xfa0] sm:$0xf] }
  0xe4   :  { %5055 = vmatpush.bf16.msrb.mxu0 %v8178_v27  ;;  %5024 = vmatmul.bf16.vlgmr.msra.gmra.mxu1 %v11829_v42  ;;  %v8345_v27 = vld [vmem:[%s15238_s2 + $0xfc0] sm:$0xf] }
  0xe5   :  { %5068 = vmatpush.bf16.msrb.mxu1 %v8242_v29  ;;  %5037 = vmatmul.bf16.vlgmr.msra.gmra.mxu2 %v11827_v41  ;;  %v9963_v29 = vld [vmem:[%s15238_s2 + $0xfc4] sm:$0xf0] }
  0xe6   :  { %5081 = vmatpush.bf16.msrb.mxu2 %v8306_v30  ;;  %5050 = vmatmul.bf16.vlgmr.msra.gmra.mxu3 %v11831_v43  ;;  %v4805_v30 = vadd.f32 %v4804_v24, %v11727_v25  ;;  %v8346_v25 = vor.u32 %v9963_v29, %v8345_v27 }
  0xe7   :  { %5094 = vmatpush.bf16.msrb.mxu3 %v8370_v34  ;;  %v8282_v34 = vor.u32 %v9947_v23, %v8281_v10  ;;  %v8138_v10 = vor.u32 %v9911_v55, %v8137_v54  ;;  %v8129_v23 = vld [vmem:[%s15238_s2 + $0xe10] sm:$0xf]  ;;  %v8313_v54 = vld [vmem:[%s15238_s2 + $0xf80] sm:$0xf]  ;;  %v9955_v55 = vld [vmem:[%s15238_s2 + $0xf84] sm:$0xf0] }
  0xe8   :  { %5056 = vmatpush.bf16.msrb.mxu0 %v8170_v44  ;;  %v4818_v39 = vadd.f32 %v4817_v32, %v4805_v30  ;;  %v8273_v44 = vld [vmem:[%s15238_s2 + $0xf30] sm:$0xf]  ;;  %v4830_v58 = vpop.f32.mrf.mxu2 }
  0xe9   :  { %5069 = vmatpush.bf16.msrb.mxu1 %v8234_v45  ;;  %v9945_v45 = vld [vmem:[%s15238_s2 + $0xf34] sm:$0xf0]  ;;  %v4843_v3 = vpop.f32.mrf.mxu3  ;;  %v4819_v24 = vpop.f32.mrf.mxu1  ;;  %v8193_v32 = vld [vmem:[%s15238_s2 + $0xe90] sm:$0xf] }
  0xea   :  { %5082 = vmatpush.bf16.msrb.mxu2 %v8298_v50  ;;  %v8337_v50 = vld [vmem:[%s15238_s2 + $0xfb0] sm:$0xf]  ;;  %v4831_v63 = vadd.f32 %v4830_v58, %v4818_v39  ;;  %v8121_v39 = vld [vmem:[%s15238_s2 + $0xe00] sm:$0xf] }
  0xeb   :  { %5095 = vmatpush.bf16.msrb.mxu3 %v8362_v53  ;;  %v8274_v53 = vor.u32 %v9945_v45, %v8273_v44  ;;  %v8338_v57 = vor.u32 %v9961_v51, %v8337_v50  ;;  %v4806_v8 = vpop.f32.mrf.mxu0  ;;  %v8185_v45 = vld [vmem:[%s15238_s2 + $0xe80] sm:$0xf]  ;;  %v9923_v50 = vld [vmem:[%s15238_s2 + $0xe84] sm:$0xf0]  ;;  %v8561_v24 = vld [vmem:[%s15238_s2 + $0x1170] sm:$0xf] }
  0xec   :  { %5057 = vmatpush.bf16.msrb.mxu0 %v8162_v59  ;;  %v9927_v59 = vld [vmem:[%s15238_s2 + $0xea4] sm:$0xf0]  ;;  %v11937_v27 = vadd.f32 %v4843_v3, %v4831_v63  ;;  %v8249_v51 = vld [vmem:[%s15238_s2 + $0xf00] sm:$0xf]  ;;  %v11998_v63 = vld [vmem:[#allocation1 + $0x36] sm:$0xff] }
  0xed   :  { %5070 = vmatpush.bf16.msrb.mxu1 %v8226_v61  ;;  %v8265_v61 = vld [vmem:[%s15238_s2 + $0xf20] sm:$0xf]  ;;  %v8202_v29 = vor.u32 %v9927_v59, %v8201_v56  ;;  %v8433_v56 = vld [vmem:[%s15238_s2 + $0x1070] sm:$0xf] }
  0xee   :  { %5083 = vmatpush.bf16.msrb.mxu2 %v8290_v62  ;;  %v9943_v62 = vld [vmem:[%s15238_s2 + $0xf24] sm:$0xf0]  ;;  %v8497_v59 = vld [vmem:[%s15238_s2 + $0x10f0] sm:$0xf] }
  0xef   :  { %5096 = vmatpush.bf16.msrb.mxu3 %v8354_v5  ;;  %v9959_v5 = vld [vmem:[%s15238_s2 + $0xfa4] sm:$0xf0]  ;;  %v8266_v30 = vor.u32 %v9943_v62, %v8265_v61  ;;  %v10001_v61 = vld [vmem:[%s15238_s2 + $0x10f4] sm:$0xf0] }
  0xf0   :  { %5058 = vmatpush.bf16.msrb.mxu0 %v8154_v31  ;;  %v9909_v31 = vld [vmem:[%s15238_s2 + $0xe14] sm:$0xf0]  ;;  %v11996_v62 = vld [vmem:[#allocation1 + $0x24] sm:$0xff]  ;;  %v4832_v3 = vpop.f32.mrf.mxu2 }
  0xf1   :  { %5071 = vmatpush.bf16.msrb.mxu1 %v8218_v33  ;;  %v9925_v33 = vld [vmem:[%s15238_s2 + $0xe94] sm:$0xf0]  ;;  %v8130_v44 = vor.u32 %v9909_v31, %v8129_v23  ;;  %v4845_v8 = vpop.f32.mrf.mxu3  ;;  %v8122_v23 = vor.u32 %v9907_v40, %v8121_v39  ;;  %v9983_v39 = vld [vmem:[%s15238_s2 + $0x1064] sm:$0xf0]  ;;  %v8489_v40 = vld [vmem:[%s15238_s2 + $0x10e0] sm:$0xf] }
  0xf2   :  { %5084 = vmatpush.bf16.msrb.mxu2 %v8282_v34  ;;  %v8330_v34 = vor.u32 %v9959_v5, %v8329_v4  ;;  %v12000_v4 = vld [vmem:[#allocation1 + $0x2d] sm:$0xff]  ;;  %v12002_v5 = vld [vmem:[#allocation1 + $0x3f] sm:$0xff]  ;;  %v10013_v8 = vld [vmem:[%s15238_s2 + $0x1154] sm:$0xf0] }
  0xf3   :  { %5097 = vmatpush.bf16.msrb.mxu3 %v8346_v25  ;;  %v9957_v25 = vld [vmem:[%s15238_s2 + $0xf94] sm:$0xf0]  ;;  %v8545_v3 = vld [vmem:[%s15238_s2 + $0x1150] sm:$0xf] }
  0xf4   :  { %5059 = vmatpush.bf16.msrb.mxu0 %v8146_v52  ;;  %v9939_v52 = vld [vmem:[%s15238_s2 + $0xf04] sm:$0xf0]  ;;  %v8322_v58 = vor.u32 %v9957_v25, %v8321_v37  ;;  %v8425_v25 = vld [vmem:[%s15238_s2 + $0x1060] sm:$0xf] }
  0xf5   :  { %5072 = vmatpush.bf16.msrb.mxu1 %v8210_v28  ;;  %v8194_v28 = vor.u32 %v9925_v33, %v8193_v32  ;;  %v8250_v31 = vor.u32 %v9939_v52, %v8249_v51  ;;  %v8625_v32 = vld [vmem:[%s15238_s2 + $0x11f0] sm:$0xf]  ;;  %v10033_v33 = vld [vmem:[%s15238_s2 + $0x11f4] sm:$0xf0]  ;;  %v10015_v51 = vld [vmem:[%s15238_s2 + $0x1164] sm:$0xf0] }
  0xf6   :  { %5085 = vmatpush.bf16.msrb.mxu2 %v8274_v53  ;;  %v8258_v53 = vor.u32 %v9941_v36, %v8257_v35  ;;  %v8498_v36 = vor.u32 %v10001_v61, %v8497_v59  ;;  %v8617_v52 = vld [vmem:[%s15238_s2 + $0x11e0] sm:$0xf]  ;;  %v9997_v61 = vld [vmem:[%s15238_s2 + $0x10d4] sm:$0xf0] }
  0xf7   :  { %5098 = vmatpush.bf16.msrb.mxu3 %v8338_v57  ;;  %v9985_v57 = vld [vmem:[%s15238_s2 + $0x1074] sm:$0xf0] }
  0xf8   :  { %5060 = vmatpush.bf16.msrb.mxu0 %v8138_v10  ;;  %v41_v10 = vld [vmem:[%s15236_s0 + $0x20] sm:$0xff]  ;;  %v8434_v35 = vor.u32 %v9985_v57, %v8433_v56  ;;  %v8417_v56 = vld [vmem:[%s15238_s2 + $0x1050] sm:$0xf]  ;;  %v9981_v57 = vld [vmem:[%s15238_s2 + $0x1054] sm:$0xf0] }
  0xf9   :  { %5073 = vmatpush.bf16.msrb.mxu1 %v8202_v29  ;;  %v10017_v29 = vld [vmem:[%s15238_s2 + $0x1174] sm:$0xf0]  ;;  %842 = vst [vmem:[#allocation1] ss:$9 sm:$0xff] %v41_v10  ;;  %v8609_v10 = vld [vmem:[%s15238_s2 + $0x11d0] sm:$0xf] }
  0xfa   :  { %5086 = vmatpush.bf16.msrb.mxu2 %v8266_v30  ;;  %v8186_v30 = vor.u32 %v9923_v50, %v8185_v45  ;;  %v8562_v37 = vor.u32 %v10017_v29, %v8561_v24  ;;  %v9999_v45 = vld [vmem:[%s15238_s2 + $0x10e4] sm:$0xf0]  ;;  %v8553_v50 = vld [vmem:[%s15238_s2 + $0x1160] sm:$0xf]  ;;  %v8418_v24 = vor.u32 %v9981_v57, %v8417_v56  ;;  %v9993_v56 = vld [vmem:[%s15238_s2 + $0x10b4] sm:$0xf0] }
  0xfb   :  { %5099 = vmatpush.bf16.msrb.mxu3 %v8330_v34  ;;  %v8314_v34 = vor.u32 %v9955_v55, %v8313_v54  ;;  %v8490_v54 = vor.u32 %v9999_v45, %v8489_v40  ;;  %v8554_v55 = vor.u32 %v10015_v51, %v8553_v50  ;;  %v10027_v40 = vld [vmem:[%s15238_s2 + $0x11c4] sm:$0xf0]  ;;  %v8529_v57 = vld [vmem:[%s15238_s2 + $0x1130] sm:$0xf] }
  0xfc   :  { %5061 = vmatpush.bf16.msrb.mxu0 %v8130_v44  ;;  %v8626_v44 = vor.u32 %v10033_v33, %v8625_v32  ;;  %v9979_v32 = vld [vmem:[%s15238_s2 + $0x1044] sm:$0xf0]  ;;  %v8473_v33 = vld [vmem:[%s15238_s2 + $0x10c0] sm:$0xf] }
  0xfd   :  { %5074 = vmatpush.bf16.msrb.mxu1 %v8194_v28  ;;  %v10031_v28 = vld [vmem:[%s15238_s2 + $0x11e4] sm:$0xf0] }
  0xfe   :  { %5087 = vmatpush.bf16.msrb.mxu2 %v8258_v53  ;;  %v8426_v53 = vor.u32 %v9983_v39, %v8425_v25  ;;  %v8618_v59 = vor.u32 %v10031_v28, %v8617_v52  ;;  %v8601_v39 = vld [vmem:[%s15238_s2 + $0x11c0] sm:$0xf]  ;;  %v8401_v28 = vld [vmem:[%s15238_s2 + $0x1030] sm:$0xf] }
  0xff   :  { %5100 = vmatpush.bf16.msrb.mxu3 %v8322_v58  ;;  %v8481_v58 = vld [vmem:[%s15238_s2 + $0x10d0] sm:$0xf] }
 0x100   :  { %5062 = vmatpush.bf16.msrb.mxu0 %v8122_v23  ;;  %v10029_v23 = vld [vmem:[%s15238_s2 + $0x11d4] sm:$0xf0]  ;;  %v8482_v29 = vor.u32 %v9997_v61, %v8481_v58  ;;  %v4856_v25 = vpop.f32.mrf.mxu0 }
 0x101   :  { %5075 = vmatpush.bf16.msrb.mxu1 %v8186_v30  ;;  %v8546_v30 = vor.u32 %v10013_v8, %v8545_v3  ;;  %v4869_v50 = vpop.f32.mrf.mxu1  ;;  %v10009_v58 = vld [vmem:[%s15238_s2 + $0x1134] sm:$0xf0] }
 0x102   :  { %5088 = vmatpush.bf16.msrb.mxu2 %v8250_v31  ;;  %v8409_v31 = vld [vmem:[%s15238_s2 + $0x1040] sm:$0xf]  ;;  %v10025_v61 = vld [vmem:[%s15238_s2 + $0x11b4] sm:$0xf0] }
 0x103   :  { %5101 = vmatpush.bf16.msrb.mxu3 %v8314_v34  ;;  %5063 = vmatmul.bf16.vlgmr.msrb.gmra.mxu0 %v11996_v62  ;;  %v8610_v34 = vor.u32 %v10029_v23, %v8609_v10  ;;  %v8410_v45 = vor.u32 %v9979_v32, %v8409_v31  ;;  %v8530_v10 = vor.u32 %v10009_v58, %v8529_v57  ;;  %v8393_v23 = vld [vmem:[%s15238_s2 + $0x1020] sm:$0xf]  ;;  %v9991_v32 = vld [vmem:[%s15238_s2 + $0x10a4] sm:$0xf0]  ;;  %v8577_v57 = vld [vmem:[%s15238_s2 + $0x1190] sm:$0xf] }
 0x104   :  { %5107 = vmatpush.bf16.msra.mxu0 %v8434_v35  ;;  %5076 = vmatmul.bf16.vlgmr.msrb.gmra.mxu1 %v12000_v4  ;;  %v9995_v35 = vld [vmem:[%s15238_s2 + $0x10c4] sm:$0xf0]  ;;  %v10021_v58 = vld [vmem:[%s15238_s2 + $0x1194] sm:$0xf0] }
 0x105   :  { %5120 = vmatpush.bf16.msra.mxu1 %v8498_v36  ;;  %5089 = vmatmul.bf16.vlgmr.msrb.gmra.mxu2 %v11998_v63  ;;  %v8537_v36 = vld [vmem:[%s15238_s2 + $0x1140] sm:$0xf]  ;;  %v8474_v51 = vor.u32 %v9995_v35, %v8473_v33 }
 0x106   :  { %5133 = vmatpush.bf16.msra.mxu2 %v8562_v37  ;;  %5102 = vmatmul.bf16.vlgmr.msrb.gmra.mxu3 %v12002_v5  ;;  %v10011_v37 = vld [vmem:[%s15238_s2 + $0x1144] sm:$0xf0]  ;;  %v8521_v33 = vld [vmem:[%s15238_s2 + $0x1120] sm:$0xf] }
 0x107   :  { %5146 = vmatpush.bf16.msra.mxu3 %v8626_v44  ;;  %v4857_v44 = vadd.f32 %v4856_v25, %v11937_v27  ;;  %v8538_v52 = vor.u32 %v10011_v37, %v8537_v36  ;;  %v8602_v27 = vor.u32 %v10027_v40, %v8601_v39  ;;  %v8585_v37 = vld [vmem:[%s15238_s2 + $0x11a0] sm:$0xf]  ;;  %v10023_v25 = vld [vmem:[%s15238_s2 + $0x11a4] sm:$0xf0] }
 0x108   :  { %5108 = vmatpush.bf16.msra.mxu0 %v8426_v53  ;;  %v9977_v53 = vld [vmem:[%s15238_s2 + $0x1034] sm:$0xf0]  ;;  %v4882_v31 = vpop.f32.mrf.mxu2  ;;  %v4858_v39 = vpop.f32.mrf.mxu0 }
 0x109   :  { %5121 = vmatpush.bf16.msra.mxu1 %v8490_v54  ;;  %v8465_v54 = vld [vmem:[%s15238_s2 + $0x10b0] sm:$0xf]  ;;  %v8402_v3 = vor.u32 %v9977_v53, %v8401_v28  ;;  %v4895_v36 = vpop.f32.mrf.mxu3  ;;  %v9973_v28 = vld [vmem:[%s15238_s2 + $0x1014] sm:$0xf0] }
 0x10a   :  { %5134 = vmatpush.bf16.msra.mxu2 %v8554_v55  ;;  %v4870_v55 = vadd.f32 %v4869_v50, %v4857_v44  ;;  %v8466_v8 = vor.u32 %v9993_v56, %v8465_v54  ;;  %v4871_v44 = vpop.f32.mrf.mxu1  ;;  %v8449_v53 = vld [vmem:[%s15238_s2 + $0x1090] sm:$0xf]  ;;  %v8586_v54 = vor.u32 %v10023_v25, %v8585_v37  ;;  %v10005_v56 = vld [vmem:[%s15238_s2 + $0x1114] sm:$0xf0] }
 0x10b   :  { %5147 = vmatpush.bf16.msra.mxu3 %v8618_v59  ;;  %v8593_v59 = vld [vmem:[%s15238_s2 + $0x11b0] sm:$0xf] }
 0x10c   :  { %5109 = vmatpush.bf16.msra.mxu0 %v8418_v24  ;;  %v9975_v24 = vld [vmem:[%s15238_s2 + $0x1024] sm:$0xf0]  ;;  %v4883_v35 = vadd.f32 %v4882_v31, %v4870_v55  ;;  %v8513_v55 = vld [vmem:[%s15238_s2 + $0x1110] sm:$0xf] }
 0x10d   :  { %5122 = vmatpush.bf16.msra.mxu1 %v8482_v29  ;;  %v8457_v29 = vld [vmem:[%s15238_s2 + $0x10a0] sm:$0xf]  ;;  %v8394_v40 = vor.u32 %v9975_v24, %v8393_v23  ;;  %v9987_v24 = vld [vmem:[%s15238_s2 + $0x1084] sm:$0xf0]  ;;  %v8753_v37 = vld [vmem:[%s15238_s2 + $0x12f0] sm:$0xf] }
 0x10e   :  { %5135 = vmatpush.bf16.msra.mxu2 %v8546_v30  ;;  %v8594_v30 = vor.u32 %v10025_v61, %v8593_v59  ;;  %v8458_v50 = vor.u32 %v9991_v32, %v8457_v29  ;;  %v8377_v61 = vld [vmem:[%s15238_s2 + $0x1000] sm:$0xf]  ;;  %v10003_v31 = vld [vmem:[%s15238_s2 + $0x1104] sm:$0xf0]  ;;  %v8817_v44 = vld [vmem:[%s15238_s2 + $0x1370] sm:$0xf] }
 0x10f   :  { %5148 = vmatpush.bf16.msra.mxu3 %v8610_v34  ;;  %v10007_v34 = vld [vmem:[%s15238_s2 + $0x1124] sm:$0xf0]  ;;  %v8441_v23 = vld [vmem:[%s15238_s2 + $0x1080] sm:$0xf] }
 0x110   :  { %5110 = vmatpush.bf16.msra.mxu0 %v8410_v45  ;;  %v12144_v45 = vadd.f32 %v4895_v36, %v4883_v35  ;;  %v8505_v29 = vld [vmem:[%s15238_s2 + $0x1100] sm:$0xf]  ;;  %v8689_v35 = vld [vmem:[%s15238_s2 + $0x1270] sm:$0xf]  ;;  %v10049_v36 = vld [vmem:[%s15238_s2 + $0x1274] sm:$0xf0] }
 0x111   :  { %5123 = vmatpush.bf16.msra.mxu1 %v8474_v51  ;;  %v8522_v51 = vor.u32 %v10007_v34, %v8521_v33  ;;  %v8569_v32 = vld [vmem:[%s15238_s2 + $0x1180] sm:$0xf]  ;;  %v10019_v33 = vld [vmem:[%s15238_s2 + $0x1184] sm:$0xf0]  ;;  %v4884_v34 = vpop.f32.mrf.mxu2  ;;  %v4897_v25 = vpop.f32.mrf.mxu3 }
 0x112   :  { %5136 = vmatpush.bf16.msra.mxu2 %v8538_v52  ;;  %v8385_v52 = vld [vmem:[%s15238_s2 + $0x1010] sm:$0xf] }
 0x113   :  { %5149 = vmatpush.bf16.msra.mxu3 %v8602_v27  ;;  %v9989_v27 = vld [vmem:[%s15238_s2 + $0x1094] sm:$0xf0]  ;;  %v8386_v59 = vor.u32 %v9973_v28, %v8385_v52  ;;  %v8506_v52 = vor.u32 %v10003_v31, %v8505_v29  ;;  %v8881_v28 = vld [vmem:[%s15238_s2 + $0x13f0] sm:$0xf]  ;;  %v10095_v29 = vld [vmem:[%s15238_s2 + $0x13e4] sm:$0xf0] }
 0x114   :  { %5111 = vmatpush.bf16.msra.mxu0 %v8402_v3  ;;  %v9971_v3 = vld [vmem:[%s15238_s2 + $0x1004] sm:$0xf0]  ;;  %v8737_v25 = vld [vmem:[%s15238_s2 + $0x12d0] sm:$0xf] }
 0x115   :  { %5124 = vmatpush.bf16.msra.mxu1 %v8466_v8  ;;  %v8450_v8 = vor.u32 %v9989_v27, %v8449_v53  ;;  %v8378_v39 = vor.u32 %v9971_v3, %v8377_v61  ;;  %v10097_v53 = vld [vmem:[%s15238_s2 + $0x13f4] sm:$0xf0]  ;;  %v8690_v27 = vor.u32 %v10049_v36, %v8689_v35  ;;  %v10063_v3 = vld [vmem:[%s15238_s2 + $0x12e4] sm:$0xf0]  ;;  %v8673_v36 = vld [vmem:[%s15238_s2 + $0x1250] sm:$0xf] }
 0x116   :  { %5137 = vmatpush.bf16.msra.mxu2 %v8530_v10  ;;  %v8514_v10 = vor.u32 %v10005_v56, %v8513_v55  ;;  %v8882_v61 = vor.u32 %v10097_v53, %v8881_v28  ;;  %v12246_v31 = vld [vmem:[#allocation1 + $0x9] sm:$0xff] }
 0x117   :  { %5150 = vmatpush.bf16.msra.mxu3 %v8594_v30  ;;  %v8578_v30 = vor.u32 %v10021_v58, %v8577_v57  ;;  %v8681_v57 = vld [vmem:[%s15238_s2 + $0x1260] sm:$0xf]  ;;  %v10047_v58 = vld [vmem:[%s15238_s2 + $0x1264] sm:$0xf0] }
 0x118   :  { %5112 = vmatpush.bf16.msra.mxu0 %v8394_v40  ;;  %v10065_v40 = vld [vmem:[%s15238_s2 + $0x12f4] sm:$0xf0] }
 0x119   :  { %5125 = vmatpush.bf16.msra.mxu1 %v8458_v50  ;;  %v10081_v50 = vld [vmem:[%s15238_s2 + $0x1374] sm:$0xf0]  ;;  %v8754_v55 = vor.u32 %v10065_v40, %v8753_v37 }
 0x11a   :  { %5138 = vmatpush.bf16.msra.mxu2 %v8522_v51  ;;  %v8442_v51 = vor.u32 %v9987_v24, %v8441_v23  ;;  %v8818_v56 = vor.u32 %v10081_v50, %v8817_v44  ;;  %v12236_v23 = vld [vmem:[#allocation1] sm:$0xff]  ;;  %v10045_v37 = vld [vmem:[%s15238_s2 + $0x1254] sm:$0xf0]  ;;  %v8801_v44 = vld [vmem:[%s15238_s2 + $0x1350] sm:$0xf] }
 0x11b   :  { %5151 = vmatpush.bf16.msra.mxu3 %v8586_v54  ;;  %v8570_v54 = vor.u32 %v10019_v33, %v8569_v32  ;;  %v8873_v24 = vld [vmem:[%s15238_s2 + $0x13e0] sm:$0xf]  ;;  %v8682_v33 = vor.u32 %v10047_v58, %v8681_v57  ;;  %v10061_v40 = vld [vmem:[%s15238_s2 + $0x12d4] sm:$0xf0]  ;;  %v8674_v28 = vor.u32 %v10045_v37, %v8673_v36  ;;  %v10059_v58 = vld [vmem:[%s15238_s2 + $0x12c4] sm:$0xf0] }
 0x11c   :  { %5113 = vmatpush.bf16.msra.mxu0 %v8386_v59  ;;  %v8745_v59 = vld [vmem:[%s15238_s2 + $0x12e0] sm:$0xf]  ;;  %v10077_v50 = vld [vmem:[%s15238_s2 + $0x1354] sm:$0xf0]  ;;  %v8738_v53 = vor.u32 %v10061_v40, %v8737_v25  ;;  %v8657_v36 = vld [vmem:[%s15238_s2 + $0x1230] sm:$0xf] }
 0x11d   :  { %5126 = vmatpush.bf16.msra.mxu1 %v8450_v8  ;;  %v8809_v8 = vld [vmem:[%s15238_s2 + $0x1360] sm:$0xf]  ;;  %v8746_v34 = vor.u32 %v10063_v3, %v8745_v59  ;;  %v10041_v37 = vld [vmem:[%s15238_s2 + $0x1234] sm:$0xf0]  ;;  %v8721_v25 = vld [vmem:[%s15238_s2 + $0x12b0] sm:$0xf] }
 0x11e   :  { %5139 = vmatpush.bf16.msra.mxu2 %v8514_v10  ;;  %v10079_v10 = vld [vmem:[%s15238_s2 + $0x1364] sm:$0xf0]  ;;  %v12248_v32 = vld [vmem:[#allocation1 + $0x1b] sm:$0xff] }
 0x11f   :  { %5152 = vmatpush.bf16.msra.mxu3 %v8578_v30  ;;  %v12244_v30 = vld [vmem:[#allocation1 + $0x12] sm:$0xff]  ;;  %15249 = vst [vmem:[#allocation6_spill] sm:$0xff] %v12248_v32  ;;  %v8810_v35 = vor.u32 %v10079_v10, %v8809_v8  ;;  %v8793_v59 = vld [vmem:[%s15238_s2 + $0x1340] sm:$0xf]  ;;  %v10091_v10 = vld [vmem:[%s15238_s2 + $0x13c4] sm:$0xf0] }
 0x120   :  { %5114 = vmatpush.bf16.msra.mxu0 %v8378_v39  ;;  %15248 = vst [vmem:[#allocation5_spill] sm:$0xff] %v12244_v30  ;;  %v8874_v39 = vor.u32 %v10095_v29, %v8873_v24  ;;  %v4908_v3 = vpop.f32.mrf.mxu0  ;;  %v8857_v8 = vld [vmem:[%s15238_s2 + $0x13c0] sm:$0xf]  ;;  %v10057_v40 = vld [vmem:[%s15238_s2 + $0x12b4] sm:$0xf0] }
 0x121   :  { %5127 = vmatpush.bf16.msra.mxu1 %v8442_v51  ;;  %v8865_v51 = vld [vmem:[%s15238_s2 + $0x13d0] sm:$0xf]  ;;  %v4909_v24 = vadd.f32 %v4908_v3, %v12144_v45  ;;  %v8858_v45 = vor.u32 %v10091_v10, %v8857_v8  ;;  %v10071_v3 = vld [vmem:[%s15238_s2 + $0x1324] sm:$0xf0] }
 0x122   :  { %5140 = vmatpush.bf16.msra.mxu2 %v8506_v52  ;;  %v10093_v52 = vld [vmem:[%s15238_s2 + $0x13d4] sm:$0xf0] }
 0x123   :  { %5153 = vmatpush.bf16.msra.mxu3 %v8570_v54  ;;  %5115 = vmatmul.bf16.vlgmr.msra.gmra.mxu0 %v12236_v23  ;;  %v8802_v54 = vor.u32 %v10077_v50, %v8801_v44  ;;  %v8866_v57 = vor.u32 %v10093_v52, %v8865_v51  ;;  %v8785_v44 = vld [vmem:[%s15238_s2 + $0x1330] sm:$0xf]  ;;  %v10073_v50 = vld [vmem:[%s15238_s2 + $0x1334] sm:$0xf0] }
 0x124   :  { %5159 = vmatpush.bf16.msrb.mxu0 %v8690_v27  ;;  %5128 = vmatmul.bf16.vlgmr.msra.gmra.mxu1 %v12246_v31  ;;  %v8665_v27 = vld [vmem:[%s15238_s2 + $0x1240] sm:$0xf]  ;;  %v8849_v51 = vld [vmem:[%s15238_s2 + $0x13b0] sm:$0xf]  ;;  %v10089_v52 = vld [vmem:[%s15238_s2 + $0x13b4] sm:$0xf0] }
 0x125   :  { %5172 = vmatpush.bf16.msrb.mxu1 %v8754_v55  ;;  %5141 = vmatmul.bf16.vlgmr.msra.gmra.mxu2 %v12244_v30  ;;  %v10043_v55 = vld [vmem:[%s15238_s2 + $0x1244] sm:$0xf0] }
 0x126   :  { %5185 = vmatpush.bf16.msrb.mxu2 %v8818_v56  ;;  %5154 = vmatmul.bf16.vlgmr.msra.gmra.mxu3 %v12248_v32  ;;  %v8729_v56 = vld [vmem:[%s15238_s2 + $0x12c0] sm:$0xf]  ;;  %v8666_v29 = vor.u32 %v10043_v55, %v8665_v27  ;;  %v10039_v55 = vld [vmem:[%s15238_s2 + $0x1224] sm:$0xf0] }
 0x127   :  { %5198 = vmatpush.bf16.msrb.mxu3 %v8882_v61  ;;  %v10075_v61 = vld [vmem:[%s15238_s2 + $0x1344] sm:$0xf0]  ;;  %v8649_v27 = vld [vmem:[%s15238_s2 + $0x1220] sm:$0xf] }
 0x128   :  { %5160 = vmatpush.bf16.msrb.mxu0 %v8682_v33  ;;  %v4921_v33 = vpop.f32.mrf.mxu1 }
 0x129   :  { %5173 = vmatpush.bf16.msrb.mxu1 %v8746_v34  ;;  %v8730_v34 = vor.u32 %v10059_v58, %v8729_v56  ;;  %v8713_v56 = vld [vmem:[%s15238_s2 + $0x12a0] sm:$0xf]  ;;  %v4934_v58 = vpop.f32.mrf.mxu2  ;;  %v4947_v10 = vpop.f32.mrf.mxu3 }
 0x12a   :  { %5186 = vmatpush.bf16.msrb.mxu2 %v8810_v35  ;;  %v8794_v35 = vor.u32 %v10075_v61, %v8793_v59  ;;  %v10055_v59 = vld [vmem:[%s15238_s2 + $0x12a4] sm:$0xf0]  ;;  %v8777_v61 = vld [vmem:[%s15238_s2 + $0x1320] sm:$0xf] }
 0x12b   :  { %5199 = vmatpush.bf16.msrb.mxu3 %v8874_v39  ;;  %v4922_v39 = vadd.f32 %v4921_v33, %v4909_v24  ;;  %v8841_v24 = vld [vmem:[%s15238_s2 + $0x13a0] sm:$0xf]  ;;  %v4910_v33 = vpop.f32.mrf.mxu0 }
 0x12c   :  { %5161 = vmatpush.bf16.msrb.mxu0 %v8674_v28  ;;  %v8658_v28 = vor.u32 %v10041_v37, %v8657_v36 }
 0x12d   :  { %5174 = vmatpush.bf16.msrb.mxu1 %v8738_v53  ;;  %v8722_v53 = vor.u32 %v10057_v40, %v8721_v25  ;;  %v4935_v8 = vadd.f32 %v4934_v58, %v4922_v39  ;;  %v8714_v25 = vor.u32 %v10055_v59, %v8713_v56  ;;  %v10037_v39 = vld [vmem:[%s15238_s2 + $0x1214] sm:$0xf0]  ;;  %v8705_v40 = vld [vmem:[%s15238_s2 + $0x1290] sm:$0xf]  ;;  %v8697_v56 = vld [vmem:[%s15238_s2 + $0x1280] sm:$0xf] }
 0x12e   :  { %5187 = vmatpush.bf16.msrb.mxu2 %v8802_v54  ;;  %v8786_v54 = vor.u32 %v10073_v50, %v8785_v44  ;;  %v10053_v44 = vld [vmem:[%s15238_s2 + $0x1294] sm:$0xf0]  ;;  %v8761_v58 = vld [vmem:[%s15238_s2 + $0x1300] sm:$0xf]  ;;  %v10067_v59 = vld [vmem:[%s15238_s2 + $0x1304] sm:$0xf0] }
 0x12f   :  { %5200 = vmatpush.bf16.msrb.mxu3 %v8866_v57  ;;  %v8850_v57 = vor.u32 %v10089_v52, %v8849_v51  ;;  %v12354_v37 = vadd.f32 %v4947_v10, %v4935_v8  ;;  %v8769_v51 = vld [vmem:[%s15238_s2 + $0x1310] sm:$0xf]  ;;  %v10069_v52 = vld [vmem:[%s15238_s2 + $0x1314] sm:$0xf0]  ;;  %v8825_v8 = vld [vmem:[%s15238_s2 + $0x1380] sm:$0xf] }
 0x130   :  { %5162 = vmatpush.bf16.msrb.mxu0 %v8666_v29  ;;  %v10087_v29 = vld [vmem:[%s15238_s2 + $0x13a4] sm:$0xf0]  ;;  %v4923_v36 = vpop.f32.mrf.mxu1 }
 0x131   :  { %5175 = vmatpush.bf16.msrb.mxu1 %v8730_v34  ;;  %v8650_v34 = vor.u32 %v10039_v55, %v8649_v27  ;;  %v8842_v50 = vor.u32 %v10087_v29, %v8841_v24  ;;  %v10035_v27 = vld [vmem:[%s15238_s2 + $0x1204] sm:$0xf0]  ;;  %v8945_v24 = vld [vmem:[%s15238_s2 + $0x1470] sm:$0xf]  ;;  %v10113_v29 = vld [vmem:[%s15238_s2 + $0x1474] sm:$0xf0] }
 0x132   :  { %5188 = vmatpush.bf16.msrb.mxu2 %v8794_v35  ;;  %v8641_v35 = vld [vmem:[%s15238_s2 + $0x1210] sm:$0xf]  ;;  %v10083_v10 = vld [vmem:[%s15238_s2 + $0x1384] sm:$0xf0] }
 0x133   :  { %5201 = vmatpush.bf16.msrb.mxu3 %v8858_v45  ;;  %v8778_v45 = vor.u32 %v10071_v3, %v8777_v61  ;;  %v8642_v55 = vor.u32 %v10037_v39, %v8641_v35  ;;  %v8706_v61 = vor.u32 %v10053_v44, %v8705_v40  ;;  %v8770_v3 = vor.u32 %v10069_v52, %v8769_v51  ;;  %v10129_v35 = vld [vmem:[%s15238_s2 + $0x14f4] sm:$0xf0]  ;;  %v12413_v36 = vld [vmem:[#allocation1 + $0x24] sm:$0xff]  ;;  %v12417_v39 = vld [vmem:[#allocation1 + $0x2d] sm:$0xff]  ;;  %v4949_v44 = vpop.f32.mrf.mxu3 }
 0x134   :  { %5163 = vmatpush.bf16.msrb.mxu0 %v8658_v28  ;;  %v8833_v28 = vld [vmem:[%s15238_s2 + $0x1390] sm:$0xf]  ;;  %v12419_v40 = vld [vmem:[#allocation1 + $0x3f] sm:$0xff] }
 0x135   :  { %5176 = vmatpush.bf16.msrb.mxu1 %v8722_v53  ;;  %v10085_v53 = vld [vmem:[%s15238_s2 + $0x1394] sm:$0xf0]  ;;  %v9073_v52 = vld [vmem:[%s15238_s2 + $0x1570] sm:$0xf] }
 0x136   :  { %5189 = vmatpush.bf16.msrb.mxu2 %v8786_v54  ;;  %v8633_v54 = vld [vmem:[%s15238_s2 + $0x1200] sm:$0xf]  ;;  %v8834_v33 = vor.u32 %v10085_v53, %v8833_v28  ;;  %v10145_v28 = vld [vmem:[%s15238_s2 + $0x1574] sm:$0xf0]  ;;  %v9137_v44 = vld [vmem:[%s15238_s2 + $0x15f0] sm:$0xf] }
 0x137   :  { %5202 = vmatpush.bf16.msrb.mxu3 %v8850_v57  ;;  %v10051_v57 = vld [vmem:[%s15238_s2 + $0x1284] sm:$0xf0]  ;;  %v8634_v51 = vor.u32 %v10035_v27, %v8633_v54  ;;  %v10161_v54 = vld [vmem:[%s15238_s2 + $0x15f4] sm:$0xf0]  ;;  %v8826_v27 = vor.u32 %v10083_v10, %v8825_v8  ;;  %v9074_v32 = vor.u32 %v10145_v28, %v9073_v52  ;;  %v9129_v10 = vld [vmem:[%s15238_s2 + $0x15e0] sm:$0xf] }
 0x138   :  { %5164 = vmatpush.bf16.msrb.mxu0 %v8650_v34  ;;  %v9009_v34 = vld [vmem:[%s15238_s2 + $0x14f0] sm:$0xf]  ;;  %v8698_v53 = vor.u32 %v10051_v57, %v8697_v56  ;;  %v10111_v56 = vld [vmem:[%s15238_s2 + $0x1464] sm:$0xf0]  ;;  %v9001_v57 = vld [vmem:[%s15238_s2 + $0x14e0] sm:$0xf] }
 0x139   :  { %5177 = vmatpush.bf16.msrb.mxu1 %v8714_v25  ;;  %v12415_v25 = vld [vmem:[#allocation1 + $0x36] sm:$0xff]  ;;  %v9010_v30 = vor.u32 %v10129_v35, %v9009_v34  ;;  %v10143_v8 = vld [vmem:[%s15238_s2 + $0x1564] sm:$0xf0]  ;;  %v8929_v35 = vld [vmem:[%s15238_s2 + $0x1450] sm:$0xf] }
 0x13a   :  { %5190 = vmatpush.bf16.msrb.mxu2 %v8778_v45  ;;  %v4936_v45 = vpop.f32.mrf.mxu2  ;;  %v10141_v28 = vld [vmem:[%s15238_s2 + $0x1554] sm:$0xf0] }
 0x13b   :  { %5203 = vmatpush.bf16.msrb.mxu3 %v8842_v50  ;;  %v42_v50 = vld [vmem:[%s15236_s0 + $0x28] sm:$0xff]  ;;  %v8762_v45 = vor.u32 %v10067_v59, %v8761_v58  ;;  %v9138_v58 = vor.u32 %v10161_v54, %v9137_v44  ;;  %s6318_s0 = sshll.u32 %s15245_s9, 4  ;;  %s6319_s0 = int_to_ptr.hbm [resolvable:$true] %s6318_s0 }
 0x13c   :  { %5165 = vmatpush.bf16.msrb.mxu0 %v8642_v55  ;;  %852 = vst [vmem:[#allocation1] ss:$9 sm:$0xff] %v42_v50  ;;  %v8946_v55 = vor.u32 %v10113_v29, %v8945_v24  ;;  %v10127_v59 = vld [vmem:[%s15238_s2 + $0x14e4] sm:$0xf0]  ;;  %v10109_v50 = vld [vmem:[%s15238_s2 + $0x1454] sm:$0xf0] }
 0x13d   :  { %5178 = vmatpush.bf16.msrb.mxu1 %v8706_v61  ;;  %v8937_v61 = vld [vmem:[%s15238_s2 + $0x1460] sm:$0xf]  ;;  %v10159_v24 = vld [vmem:[%s15238_s2 + $0x15e4] sm:$0xf0]  ;;  %v8930_v44 = vor.u32 %v10109_v50, %v8929_v35 }
 0x13e   :  { %5191 = vmatpush.bf16.msrb.mxu2 %v8770_v3  ;;  %v9065_v3 = vld [vmem:[%s15238_s2 + $0x1560] sm:$0xf]  ;;  %v8938_v29 = vor.u32 %v10111_v56, %v8937_v61  ;;  %v9130_v52 = vor.u32 %v10159_v24, %v9129_v10  ;;  %v10107_v61 = vld [vmem:[%s15238_s2 + $0x1444] sm:$0xf0] }
 0x13f   :  { %5204 = vmatpush.bf16.msrb.mxu3 %v8834_v33  ;;  %v9002_v33 = vor.u32 %v10127_v59, %v9001_v57  ;;  %v9066_v34 = vor.u32 %v10143_v8, %v9065_v3  ;;  %v8985_v56 = vld [vmem:[%s15238_s2 + $0x14c0] sm:$0xf]  ;;  %v10139_v3 = vld [vmem:[%s15238_s2 + $0x1544] sm:$0xf0] }
 0x140   :  { %5166 = vmatpush.bf16.msrb.mxu0 %v8634_v51  ;;  %v8993_v51 = vld [vmem:[%s15238_s2 + $0x14d0] sm:$0xf]  ;;  %v9049_v59 = vld [vmem:[%s15238_s2 + $0x1540] sm:$0xf]  ;;  %v4960_v8 = vpop.f32.mrf.mxu0  ;;  %v10155_v24 = vld [vmem:[%s15238_s2 + $0x15c4] sm:$0xf0] }
 0x141   :  { %5179 = vmatpush.bf16.msrb.mxu1 %v8698_v53  ;;  %v9121_v53 = vld [vmem:[%s15238_s2 + $0x15d0] sm:$0xf]  ;;  %v9113_v10 = vld [vmem:[%s15238_s2 + $0x15c0] sm:$0xf]  ;;  %v9050_v50 = vor.u32 %v10139_v3, %v9049_v59 }
 0x142   :  { %5192 = vmatpush.bf16.msrb.mxu2 %v8762_v45  ;;  %v10157_v45 = vld [vmem:[%s15238_s2 + $0x15d4] sm:$0xf0] }
 0x143   :  { %5205 = vmatpush.bf16.msrb.mxu3 %v8826_v27  ;;  %5167 = vmatmul.bf16.vlgmr.msrb.gmra.mxu0 %v12413_v36  ;;  %v9122_v57 = vor.u32 %v10157_v45, %v9121_v53  ;;  %v9041_v53 = vld [vmem:[%s15238_s2 + $0x1530] sm:$0xf]  ;;  %v10137_v45 = vld [vmem:[%s15238_s2 + $0x1534] sm:$0xf0] }
 0x144   :  { %5211 = vmatpush.bf16.msra.mxu0 %v8946_v55  ;;  %5180 = vmatmul.bf16.vlgmr.msrb.gmra.mxu1 %v12417_v39  ;;  %v8921_v55 = vld [vmem:[%s15238_s2 + $0x1440] sm:$0xf] }
 0x145   :  { %5224 = vmatpush.bf16.msra.mxu1 %v9010_v30  ;;  %v10125_v30 = vld [vmem:[%s15238_s2 + $0x14d4] sm:$0xf0]  ;;  %5193 = vmatmul.bf16.vlgmr.msrb.gmra.mxu2 %v12415_v25 }
 0x146   :  { %5237 = vmatpush.bf16.msra.mxu2 %v9074_v32  ;;  %v9057_v32 = vld [vmem:[%s15238_s2 + $0x1550] sm:$0xf]  ;;  %5206 = vmatmul.bf16.vlgmr.msrb.gmra.mxu3 %v12419_v40  ;;  %v8994_v54 = vor.u32 %v10125_v30, %v8993_v51 }
 0x147   :  { %5250 = vmatpush.bf16.msra.mxu3 %v9138_v58  ;;  %v9058_v27 = vor.u32 %v10141_v28, %v9057_v32  ;;  %v10123_v58 = vld [vmem:[%s15238_s2 + $0x14c4] sm:$0xf0]  ;;  %v8913_v51 = vld [vmem:[%s15238_s2 + $0x1430] sm:$0xf]  ;;  %v10121_v28 = vld [vmem:[%s15238_s2 + $0x14b4] sm:$0xf0] }
 0x148   :  { %5212 = vmatpush.bf16.msra.mxu0 %v8938_v29  ;;  %v4961_v29 = vadd.f32 %v4960_v8, %v12354_v37  ;;  %v8986_v35 = vor.u32 %v10123_v58, %v8985_v56  ;;  %v8977_v30 = vld [vmem:[%s15238_s2 + $0x14b0] sm:$0xf]  ;;  %v9114_v37 = vor.u32 %v10155_v24, %v9113_v10  ;;  %v8905_v56 = vld [vmem:[%s15238_s2 + $0x1420] sm:$0xf]  ;;  %v4986_v3 = vpop.f32.mrf.mxu2  ;;  %v10119_v8 = vld [vmem:[%s15238_s2 + $0x14a4] sm:$0xf0] }
 0x149   :  { %5225 = vmatpush.bf16.msra.mxu1 %v9002_v33  ;;  %v8922_v33 = vor.u32 %v10107_v61, %v8921_v55  ;;  %v8978_v55 = vor.u32 %v10121_v28, %v8977_v30  ;;  %v9042_v61 = vor.u32 %v10137_v45, %v9041_v53  ;;  %v8969_v58 = vld [vmem:[%s15238_s2 + $0x14a0] sm:$0xf]  ;;  %v10135_v24 = vld [vmem:[%s15238_s2 + $0x1524] sm:$0xf0]  ;;  %v10101_v53 = vld [vmem:[%s15238_s2 + $0x1414] sm:$0xf0] }
 0x14a   :  { %5238 = vmatpush.bf16.msra.mxu2 %v9066_v34  ;;  %v4973_v34 = vpop.f32.mrf.mxu1  ;;  %v9033_v10 = vld [vmem:[%s15238_s2 + $0x1520] sm:$0xf]  ;;  %v8961_v45 = vld [vmem:[%s15238_s2 + $0x1490] sm:$0xf] }
 0x14b   :  { %5251 = vmatpush.bf16.msra.mxu3 %v9130_v52  ;;  %v10105_v52 = vld [vmem:[%s15238_s2 + $0x1434] sm:$0xf0]  ;;  %v4974_v32 = vadd.f32 %v4973_v34, %v4961_v29  ;;  %v9097_v34 = vld [vmem:[%s15238_s2 + $0x15a0] sm:$0xf]  ;;  %v9034_v28 = vor.u32 %v10135_v24, %v9033_v10  ;;  %v10115_v24 = vld [vmem:[%s15238_s2 + $0x1484] sm:$0xf0] }
 0x14c   :  { %5213 = vmatpush.bf16.msra.mxu0 %v8930_v44  ;;  %v9105_v44 = vld [vmem:[%s15238_s2 + $0x15b0] sm:$0xf]  ;;  %v8953_v10 = vld [vmem:[%s15238_s2 + $0x1480] sm:$0xf] }
 0x14d   :  { %5226 = vmatpush.bf16.msra.mxu1 %v8994_v54  ;;  %v10153_v54 = vld [vmem:[%s15238_s2 + $0x15b4] sm:$0xf0]  ;;  %v4987_v29 = vadd.f32 %v4986_v3, %v4974_v32  ;;  %v8897_v32 = vld [vmem:[%s15238_s2 + $0x1410] sm:$0xf] }
 0x14e   :  { %5239 = vmatpush.bf16.msra.mxu2 %v9058_v27  ;;  %v8914_v27 = vor.u32 %v10105_v52, %v8913_v51  ;;  %v9106_v59 = vor.u32 %v10153_v54, %v9105_v44  ;;  %v10117_v54 = vld [vmem:[%s15238_s2 + $0x1494] sm:$0xf0] }
 0x14f   :  { %5252 = vmatpush.bf16.msra.mxu3 %v9122_v57  ;;  %v10103_v57 = vld [vmem:[%s15238_s2 + $0x1424] sm:$0xf0]  ;;  %v8962_v3 = vor.u32 %v10117_v54, %v8961_v45  ;;  %v10193_v45 = vld [vmem:[%s15238_s2 + $0x16f4] sm:$0xf0] }
 0x150   :  { %5214 = vmatpush.bf16.msra.mxu0 %v8922_v33  ;;  %v4999_v33 = vpop.f32.mrf.mxu3  ;;  %v8906_v51 = vor.u32 %v10103_v57, %v8905_v56  ;;  %v10149_v56 = vld [vmem:[%s15238_s2 + $0x1594] sm:$0xf0]  ;;  %v8898_v57 = vor.u32 %v10101_v53, %v8897_v32 }
 0x151   :  { %5227 = vmatpush.bf16.msra.mxu1 %v8986_v35  ;;  %v10151_v35 = vld [vmem:[%s15238_s2 + $0x15a4] sm:$0xf0]  ;;  %v12561_v30 = vadd.f32 %v4999_v33, %v4987_v29  ;;  %v9017_v29 = vld [vmem:[%s15238_s2 + $0x1500] sm:$0xf]  ;;  %v10209_v54 = vld [vmem:[%s15238_s2 + $0x1774] sm:$0xf0] }
 0x152   :  { %5240 = vmatpush.bf16.msra.mxu2 %v9050_v50  ;;  %v4962_v50 = vpop.f32.mrf.mxu0  ;;  %v4975_v52 = vpop.f32.mrf.mxu1  ;;  %v9098_v44 = vor.u32 %v10151_v35, %v9097_v34  ;;  %v10131_v34 = vld [vmem:[%s15238_s2 + $0x1504] sm:$0xf0]  ;;  %v9081_v35 = vld [vmem:[%s15238_s2 + $0x1580] sm:$0xf] }
 0x153   :  { %5253 = vmatpush.bf16.msra.mxu3 %v9114_v37  ;;  %v8970_v37 = vor.u32 %v10119_v8, %v8969_v58  ;;  %v8889_v58 = vld [vmem:[%s15238_s2 + $0x1400] sm:$0xf]  ;;  %v10147_v50 = vld [vmem:[%s15238_s2 + $0x1584] sm:$0xf0]  ;;  %v9201_v52 = vld [vmem:[%s15238_s2 + $0x1670] sm:$0xf] }
 0x154   :  { %5215 = vmatpush.bf16.msra.mxu0 %v8914_v27  ;;  %v9025_v27 = vld [vmem:[%s15238_s2 + $0x1510] sm:$0xf] }
 0x155   :  { %5228 = vmatpush.bf16.msra.mxu1 %v8978_v55  ;;  %v10133_v55 = vld [vmem:[%s15238_s2 + $0x1514] sm:$0xf0] }
 0x156   :  { %5241 = vmatpush.bf16.msra.mxu2 %v9042_v61  ;;  %v9089_v61 = vld [vmem:[%s15238_s2 + $0x1590] sm:$0xf]  ;;  %v9026_v8 = vor.u32 %v10133_v55, %v9025_v27  ;;  %v8954_v27 = vor.u32 %v10115_v24, %v8953_v10  ;;  %v9018_v55 = vor.u32 %v10131_v34, %v9017_v29  ;;  %v9257_v10 = vld [vmem:[%s15238_s2 + $0x16e0] sm:$0xf] }
 0x157   :  { %5254 = vmatpush.bf16.msra.mxu3 %v9106_v59  ;;  %v10099_v59 = vld [vmem:[%s15238_s2 + $0x1404] sm:$0xf0]  ;;  %v9090_v33 = vor.u32 %v10149_v56, %v9089_v61  ;;  %v9345_v61 = vld [vmem:[%s15238_s2 + $0x1790] sm:$0xf]  ;;  %v10213_v56 = vld [vmem:[%s15238_s2 + $0x1794] sm:$0xf0] }
 0x158   :  { %5216 = vmatpush.bf16.msra.mxu0 %v8906_v51  ;;  %v4988_v51 = vpop.f32.mrf.mxu2  ;;  %v5001_v32 = vpop.f32.mrf.mxu3  ;;  %v8890_v53 = vor.u32 %v10099_v59, %v8889_v58  ;;  %v9346_v24 = vor.u32 %v10213_v56, %v9345_v61  ;;  %v855_v29 = vld [vmem:[#allocation1 + $0x12] sm:$0xff]  ;;  %v9321_v34 = vld [vmem:[%s15238_s2 + $0x1760] sm:$0xf] }
 0x159   :  { %5229 = vmatpush.bf16.msra.mxu1 %v8970_v37  ;;  %v10177_v37 = vld [vmem:[%s15238_s2 + $0x1674] sm:$0xf0]  ;;  %v853_v32 = vld [vmem:[#allocation1] sm:$0xff]  ;;  %v9249_v56 = vld [vmem:[%s15238_s2 + $0x16d0] sm:$0xf] }
 0x15a   :  { %5242 = vmatpush.bf16.msra.mxu2 %v9034_v28  ;;  %v9265_v28 = vld [vmem:[%s15238_s2 + $0x16f0] sm:$0xf]  ;;  %v9202_v58 = vor.u32 %v10177_v37, %v9201_v52  ;;  %v9337_v52 = vld [vmem:[%s15238_s2 + $0x1780] sm:$0xf]  ;;  %v10211_v37 = vld [vmem:[%s15238_s2 + $0x1784] sm:$0xf0] }
 0x15b   :  { %5255 = vmatpush.bf16.msra.mxu3 %v9098_v44  ;;  %v9329_v44 = vld [vmem:[%s15238_s2 + $0x1770] sm:$0xf]  ;;  %v9266_v59 = vor.u32 %v10193_v45, %v9265_v28  ;;  %v856_v28 = vld [vmem:[#allocation1 + $0x1b] sm:$0xff]  ;;  %v9472_v45 = vld [vmem:[%s15238_s2 + $0x74] sm:$0xf] }
 0x15c   :  { %5217 = vmatpush.bf16.msra.mxu0 %v8898_v57  ;;  %v9082_v57 = vor.u32 %v10147_v50, %v9081_v35  ;;  %v9330_v51 = vor.u32 %v10209_v54, %v9329_v44  ;;  %v10207_v35 = vld [vmem:[%s15238_s2 + $0x1764] sm:$0xf0]  ;;  %v6387_v44 = vld [vmem:[%s15238_s2 + $0x78] sm:$0xf0]  ;;  %v10173_v61 = vld [vmem:[%s15238_s2 + $0x1654] sm:$0xf0] }
 0x15d   :  { %5230 = vmatpush.bf16.msra.mxu1 %v8962_v3  ;;  %v9193_v3 = vld [vmem:[%s15238_s2 + $0x1660] sm:$0xf]  ;;  %v854_v50 = vld [vmem:[#allocation1 + $0x9] sm:$0xff] }
 0x15e   :  { %5243 = vmatpush.bf16.msra.mxu2 %v9026_v8  ;;  %v10175_v8 = vld [vmem:[%s15238_s2 + $0x1664] sm:$0xf0] }
 0x15f   :  { %5256 = vmatpush.bf16.msra.mxu3 %v9090_v33  ;;  %v10191_v33 = vld [vmem:[%s15238_s2 + $0x16e4] sm:$0xf0] }
 0x160   :  { %5218 = vmatpush.bf16.msra.mxu0 %v8890_v53  ;;  %v9194_v53 = vor.u32 %v10175_v8, %v9193_v3  ;;  %v9258_v54 = vor.u32 %v10191_v33, %v9257_v10  ;;  %v6390_v3 = vor.u32 %v9472_v45, %v6387_v44  ;;  %v6379_v10 = vld [vmem:[%s15238_s2 + $0x68] sm:$0xf0] }
 0x161   :  { %5231 = vmatpush.bf16.msra.mxu1 %v8954_v27  ;;  %v9322_v27 = vor.u32 %v10207_v35, %v9321_v34  ;;  %v10171_v34 = vld [vmem:[%s15238_s2 + $0x1644] sm:$0xf0]  ;;  %v9241_v35 = vld [vmem:[%s15238_s2 + $0x16c0] sm:$0xf] }
 0x162   :  { %5244 = vmatpush.bf16.msra.mxu2 %v9018_v55  ;;  %v9185_v55 = vld [vmem:[%s15238_s2 + $0x1650] sm:$0xf] }
 0x163   :  { %5257 = vmatpush.bf16.msra.mxu3 %v9082_v57  ;;  %5219 = vmatmul.bf16.vlgmr.msra.gmra.mxu0 %v853_v32  ;;  %v9338_v57 = vor.u32 %v10211_v37, %v9337_v52  ;;  %v9186_v8 = vor.u32 %v10173_v61, %v9185_v55  ;;  %v9470_v32 = vld [vmem:[%s15238_s2 + $0x64] sm:$0xf]  ;;  %v9305_v52 = vld [vmem:[%s15238_s2 + $0x1740] sm:$0xf]  ;;  %v10203_v37 = vld [vmem:[%s15238_s2 + $0x1744] sm:$0xf0] }
 0x164   :  { %5263 = vmatpush.bf16.msrb.mxu0 %v9202_v58  ;;  %v10189_v58 = vld [vmem:[%s15238_s2 + $0x16d4] sm:$0xf0]  ;;  %5232 = vmatmul.bf16.vlgmr.msra.gmra.mxu1 %v854_v50  ;;  %v10187_v50 = vld [vmem:[%s15238_s2 + $0x16c4] sm:$0xf0]  ;;  %v6371_v55 = vld [vmem:[%s15238_s2 + $0x58] sm:$0xf0] }
 0x165   :  { %5276 = vmatpush.bf16.msrb.mxu1 %v9266_v59  ;;  %v9313_v59 = vld [vmem:[%s15238_s2 + $0x1750] sm:$0xf]  ;;  %5245 = vmatmul.bf16.vlgmr.msra.gmra.mxu2 %v855_v29  ;;  %v9177_v29 = vld [vmem:[%s15238_s2 + $0x1640] sm:$0xf]  ;;  %v9242_v61 = vor.u32 %v10187_v50, %v9241_v35  ;;  %v10167_v50 = vld [vmem:[%s15238_s2 + $0x1624] sm:$0xf0] }
 0x166   :  { %5289 = vmatpush.bf16.msrb.mxu2 %v9330_v51  ;;  %v10205_v51 = vld [vmem:[%s15238_s2 + $0x1754] sm:$0xf0]  ;;  %5258 = vmatmul.bf16.vlgmr.msra.gmra.mxu3 %v856_v28  ;;  %v6382_v28 = vor.u32 %v9470_v32, %v6379_v10  ;;  %v9178_v44 = vor.u32 %v10171_v34, %v9177_v29  ;;  %v9161_v35 = vld [vmem:[%s15238_s2 + $0x1620] sm:$0xf] }
 0x167   :  { %5308 = vmatpush.bf16.msrb.mxu3 %v9346_v24  ;;  %v9250_v24 = vor.u32 %v10189_v58, %v9249_v56  ;;  %v9314_v33 = vor.u32 %v10205_v51, %v9313_v59  ;;  %v9306_v56 = vor.u32 %v10203_v37, %v9305_v52  ;;  %v9233_v58 = vld [vmem:[%s15238_s2 + $0x16b0] sm:$0xf]  ;;  %v10185_v51 = vld [vmem:[%s15238_s2 + $0x16b4] sm:$0xf0]  ;;  %v9225_v52 = vld [vmem:[%s15238_s2 + $0x16a0] sm:$0xf] }
 0x168   :  { %5264 = vmatpush.bf16.msrb.mxu0 %v9194_v53  ;;  %v5012_v53 = vpop.f32.mrf.mxu0  ;;  %v9234_v29 = vor.u32 %v10185_v51, %v9233_v58  ;;  %v5038_v37 = vpop.f32.mrf.mxu2 }
 0x169   :  { %5277 = vmatpush.bf16.msrb.mxu1 %v9258_v54  ;;  %v5013_v45 = vadd.f32 %v5012_v53, %v12561_v30  ;;  %v5025_v54 = vpop.f32.mrf.mxu1  ;;  %v10169_v30 = vld [vmem:[%s15238_s2 + $0x1634] sm:$0xf0]  ;;  %v9289_v53 = vld [vmem:[%s15238_s2 + $0x1720] sm:$0xf] }
 0x16a   :  { %5290 = vmatpush.bf16.msrb.mxu2 %v9322_v27  ;;  %v9468_v27 = vld [vmem:[%s15238_s2 + $0x54] sm:$0xf] }
 0x16b   :  { %5309 = vmatpush.bf16.msrb.mxu3 %v9338_v57  ;;  %v9169_v57 = vld [vmem:[%s15238_s2 + $0x1630] sm:$0xf]  ;;  %v5026_v59 = vadd.f32 %v5025_v54, %v5013_v45  ;;  %v6374_v32 = vor.u32 %v9468_v27, %v6371_v55  ;;  %v10199_v45 = vld [vmem:[%s15238_s2 + $0x1724] sm:$0xf0]  ;;  %v5051_v27 = vpop.f32.mrf.mxu3 }
 0x16c   :  { %5265 = vmatpush.bf16.msrb.mxu0 %v9186_v8  ;;  %v10201_v8 = vld [vmem:[%s15238_s2 + $0x1734] sm:$0xf0]  ;;  %v9170_v10 = vor.u32 %v10169_v30, %v9169_v57  ;;  %v6355_v57 = vld [vmem:[%s15238_s2 + $0x38] sm:$0xf0]  ;;  %v9153_v30 = vld [vmem:[%s15238_s2 + $0x1610] sm:$0xf] }
 0x16d   :  { %5278 = vmatpush.bf16.msrb.mxu1 %v9250_v24  ;;  %v9466_v24 = vld [vmem:[%s15238_s2 + $0x44] sm:$0xf] }
 0x16e   :  { %5291 = vmatpush.bf16.msrb.mxu2 %v9314_v33  ;;  %v6363_v33 = vld [vmem:[%s15238_s2 + $0x48] sm:$0xf0] }
 0x16f   :  { %5315 = vmatpush.bf16.msra.mxu3 %v6390_v3  ;;  %v9297_v3 = vld [vmem:[%s15238_s2 + $0x1730] sm:$0xf]  ;;  %v6366_v54 = vor.u32 %v9466_v24, %v6363_v33  ;;  %v10181_v24 = vld [vmem:[%s15238_s2 + $0x1694] sm:$0xf0] }
 0x170   :  { %5266 = vmatpush.bf16.msrb.mxu0 %v9178_v44  ;;  %v9298_v34 = vor.u32 %v10201_v8, %v9297_v3  ;;  %v5039_v44 = vadd.f32 %v5038_v37, %v5026_v59  ;;  %v5014_v55 = vpop.f32.mrf.mxu0  ;;  %v9290_v3 = vor.u32 %v10199_v45, %v9289_v53  ;;  %v10165_v8 = vld [vmem:[%s15238_s2 + $0x1614] sm:$0xf0]  ;;  %v9281_v33 = vld [vmem:[%s15238_s2 + $0x1710] sm:$0xf]  ;;  %v9145_v37 = vld [vmem:[%s15238_s2 + $0x1600] sm:$0xf] }
 0x171   :  { %5279 = vmatpush.bf16.msrb.mxu1 %v9242_v61  ;;  %v9162_v61 = vor.u32 %v10167_v50, %v9161_v35  ;;  %v5027_v58 = vpop.f32.mrf.mxu1  ;;  %v9462_v35 = vld [vmem:[%s15238_s2 + $0x24] sm:$0xf]  ;;  %v9154_v50 = vor.u32 %v10165_v8, %v9153_v30  ;;  %v10195_v55 = vld [vmem:[%s15238_s2 + $0x1704] sm:$0xf0] }
 0x172   :  { %5292 = vmatpush.bf16.msrb.mxu2 %v9306_v56  ;;  %v9464_v56 = vld [vmem:[%s15238_s2 + $0x34] sm:$0xf]  ;;  %v12765_v59 = vadd.f32 %v5051_v27, %v5039_v44  ;;  %v9209_v44 = vld [vmem:[%s15238_s2 + $0x1680] sm:$0xf]  ;;  %v6451_v58 = vld [vmem:[%s15238_s2 + $0xf8] sm:$0xf0] }
 0x173   :  { %5316 = vmatpush.bf16.msra.mxu3 %v6382_v28  ;;  %v10183_v28 = vld [vmem:[%s15238_s2 + $0x16a4] sm:$0xf0]  ;;  %v9273_v27 = vld [vmem:[%s15238_s2 + $0x1700] sm:$0xf]  ;;  %v5053_v8 = vpop.f32.mrf.mxu3 }
 0x174   :  { %5267 = vmatpush.bf16.msrb.mxu0 %v9170_v10  ;;  %v9226_v51 = vor.u32 %v10183_v28, %v9225_v52  ;;  %v860_v10 = vld [vmem:[#allocation1 + $0x3f] sm:$0xff]  ;;  %v6347_v52 = vld [vmem:[%s15238_s2 + $0x28] sm:$0xf0]  ;;  %v10163_v28 = vld [vmem:[%s15238_s2 + $0x1604] sm:$0xf0] }
 0x175   :  { %5280 = vmatpush.bf16.msrb.mxu1 %v9234_v29  ;;  %v10197_v29 = vld [vmem:[%s15238_s2 + $0x1714] sm:$0xf0]  ;;  %v6350_v30 = vor.u32 %v9462_v35, %v6347_v52  ;;  %v857_v8 = vld [vmem:[#allocation1 + $0x24] sm:$0xff] }
 0x176   :  { %5293 = vmatpush.bf16.msrb.mxu2 %v9298_v34  ;;  %v6358_v34 = vor.u32 %v9464_v56, %v6355_v57  ;;  %9351 = vmatmul.msk.bf16.vlgmr.msrb.gmra.mxu3 %vm4688_vm0, %v860_v10  ;;  %v9282_v45 = vor.u32 %v10197_v29, %v9281_v33  ;;  %v9488_v56 = vld [vmem:[%s15238_s2 + $0xf4] sm:$0xf]  ;;  %v5040_v57 = vpop.f32.mrf.mxu2  ;;  %v6339_v10 = vld [vmem:[%s15238_s2 + $0x18] sm:$0xf0] }
 0x177   :  { %5317 = vmatpush.bf16.msra.mxu3 %v6374_v32  ;;  %v9217_v32 = vld [vmem:[%s15238_s2 + $0x1690] sm:$0xf]  ;;  %v6579_v33 = vld [vmem:[%s15238_s2 + $0x1f8] sm:$0xf0]  ;;  %v6454_v35 = vor.u32 %v9488_v56, %v6451_v58  ;;  %v9536_v56 = vld [vmem:[%s15238_s2 + $0x274] sm:$0xf] }
 0x178   :  { %5268 = vmatpush.bf16.msrb.mxu0 %v9162_v61  ;;  %v9218_v53 = vor.u32 %v10181_v24, %v9217_v32  ;;  %v9460_v61 = vld [vmem:[%s15238_s2 + $0x14] sm:$0xf]  ;;  %v9146_v32 = vor.u32 %v10163_v28, %v9145_v37  ;;  %v9486_v37 = vld [vmem:[%s15238_s2 + $0xe4] sm:$0xf] }
 0x179   :  { %5281 = vmatpush.bf16.msrb.mxu1 %v9226_v51  ;;  %v9504_v51 = vld [vmem:[%s15238_s2 + $0x174] sm:$0xf]  ;;  %v6342_v28 = vor.u32 %v9460_v61, %v6339_v10 }
 0x17a   :  { %5294 = vmatpush.bf16.msrb.mxu2 %v9290_v3  ;;  %v6515_v3 = vld [vmem:[%s15238_s2 + $0x178] sm:$0xf0]  ;;  %v9520_v24 = vld [vmem:[%s15238_s2 + $0x1f4] sm:$0xf] }
 0x17b   :  { %5318 = vmatpush.bf16.msra.mxu3 %v6366_v54  ;;  %v10179_v54 = vld [vmem:[%s15238_s2 + $0x1684] sm:$0xf0]  ;;  %v6518_v52 = vor.u32 %v9504_v51, %v6515_v3  ;;  %v6582_v57 = vor.u32 %v9520_v24, %v6579_v33  ;;  %v859_v61 = vld [vmem:[#allocation1 + $0x36] sm:$0xff]  ;;  %v858_v58 = vld [vmem:[#allocation1 + $0x2d] sm:$0xff] }
 0x17c   :  { %5269 = vmatpush.bf16.msrb.mxu0 %v9154_v50  ;;  %v9210_v29 = vor.u32 %v10179_v54, %v9209_v44  ;;  %v9458_v50 = vld [vmem:[%s15238_s2 + $0x4] sm:$0xf]  ;;  %v6507_v44 = vld [vmem:[%s15238_s2 + $0x168] sm:$0xf0]  ;;  %v6435_v33 = vld [vmem:[%s15238_s2 + $0xd8] sm:$0xf0] }
 0x17d   :  { %5282 = vmatpush.bf16.msrb.mxu1 %v9218_v53  ;;  %v6443_v53 = vld [vmem:[%s15238_s2 + $0xe8] sm:$0xf0] }
 0x17e   :  { %5295 = vmatpush.bf16.msrb.mxu2 %v9282_v45  ;;  %v9502_v45 = vld [vmem:[%s15238_s2 + $0x164] sm:$0xf]  ;;  %v6331_v54 = vld [vmem:[%s15238_s2 + $0x8] sm:$0xf0]  ;;  %v6446_v51 = vor.u32 %v9486_v37, %v6443_v53 }
 0x17f   :  { %5319 = vmatpush.bf16.msra.mxu3 %v6358_v34  ;;  %v9274_v34 = vor.u32 %v10195_v55, %v9273_v27  ;;  %v9518_v27 = vld [vmem:[%s15238_s2 + $0x1e4] sm:$0xf]  ;;  %v6571_v55 = vld [vmem:[%s15238_s2 + $0x1e8] sm:$0xf0]  ;;  %v6510_v3 = vor.u32 %v9502_v45, %v6507_v44  ;;  %v6334_v10 = vor.u32 %v9458_v50, %v6331_v54  ;;  %v6563_v50 = vld [vmem:[%s15238_s2 + $0x1d8] sm:$0xf0] }
 0x180   :  { %5270 = vmatpush.bf16.msrb.mxu0 %v9146_v32  ;;  %v9484_v32 = vld [vmem:[%s15238_s2 + $0xd4] sm:$0xf]  ;;  %v6574_v24 = vor.u32 %v9518_v27, %v6571_v55  ;;  %v9534_v37 = vld [vmem:[%s15238_s2 + $0x264] sm:$0xf]  ;;  %v6427_v44 = vld [vmem:[%s15238_s2 + $0xc8] sm:$0xf0] }
 0x181   :  { %5283 = vmatpush.bf16.msrb.mxu1 %v9210_v29  ;;  %v9500_v29 = vld [vmem:[%s15238_s2 + $0x154] sm:$0xf]  ;;  %v9482_v53 = vld [vmem:[%s15238_s2 + $0xc4] sm:$0xf]  ;;  %v6491_v27 = vld [vmem:[%s15238_s2 + $0x148] sm:$0xf0] }
 0x182   :  { %5296 = vmatpush.bf16.msrb.mxu2 %v9274_v34  ;;  %v6499_v34 = vld [vmem:[%s15238_s2 + $0x158] sm:$0xf0]  ;;  %v9498_v54 = vld [vmem:[%s15238_s2 + $0x144] sm:$0xf] }
 0x183   :  { %5320 = vmatpush.bf16.msra.mxu3 %v6350_v30  ;;  %v6643_v30 = vld [vmem:[%s15238_s2 + $0x278] sm:$0xf0]  ;;  %5271 = vmatmul.bf16.vlgmr.msrb.gmra.mxu0 %v857_v8  ;;  %v6502_v8 = vor.u32 %v9500_v29, %v6499_v34 }
 0x184   :  { %5328 = vmatpush.bf16.msra.mxu0 %v6454_v35  ;;  %v6646_v35 = vor.u32 %v9536_v56, %v6643_v30  ;;  %5284 = vmatmul.bf16.vlgmr.msrb.gmra.mxu1 %v858_v58  ;;  %v6555_v56 = vld [vmem:[%s15238_s2 + $0x1c8] sm:$0xf0]  ;;  %v5064_v30 = vpop.f32.mrf.mxu0  ;;  %v9532_v58 = vld [vmem:[%s15238_s2 + $0x254] sm:$0xf]  ;;  %v6419_v34 = vld [vmem:[%s15238_s2 + $0xb8] sm:$0xf0] }
 0x185   :  { %5341 = vmatpush.bf16.msra.mxu1 %v6518_v52  ;;  %5297 = vmatmul.bf16.vlgmr.msrb.gmra.mxu2 %v859_v61  ;;  %v9516_v52 = vld [vmem:[%s15238_s2 + $0x1d4] sm:$0xf]  ;;  %v9514_v61 = vld [vmem:[%s15238_s2 + $0x1c4] sm:$0xf] }
 0x186   :  { %5354 = vmatpush.bf16.msra.mxu2 %v6582_v57  ;;  %v6438_v57 = vor.u32 %v9484_v32, %v6435_v33  ;;  %v6566_v45 = vor.u32 %v9516_v52, %v6563_v50  ;;  %v6430_v32 = vor.u32 %v9482_v53, %v6427_v44  ;;  %v9480_v33 = vld [vmem:[%s15238_s2 + $0xb4] sm:$0xf]  ;;  %v6558_v29 = vor.u32 %v9514_v61, %v6555_v56 }
 0x187   :  { %5321 = vmatpush.bf16.msra.mxu3 %v6342_v28  ;;  %v6635_v28 = vld [vmem:[%s15238_s2 + $0x268] sm:$0xf0] }
 0x188   :  { %5329 = vmatpush.bf16.msra.mxu0 %v6446_v51  ;;  %v6638_v55 = vor.u32 %v9534_v37, %v6635_v28  ;;  %v6627_v51 = vld [vmem:[%s15238_s2 + $0x258] sm:$0xf0]  ;;  %v9512_v37 = vld [vmem:[%s15238_s2 + $0x1b4] sm:$0xf]  ;;  %v5090_v61 = vpop.f32.mrf.mxu2 }
 0x189   :  { %5342 = vmatpush.bf16.msra.mxu1 %v6510_v3  ;;  %v5065_v3 = vadd.f32 %v5064_v30, %v12765_v59  ;;  %v6483_v59 = vld [vmem:[%s15238_s2 + $0x138] sm:$0xf0]  ;;  %v6630_v50 = vor.u32 %v9532_v58, %v6627_v51  ;;  %v9510_v30 = vld [vmem:[%s15238_s2 + $0x1a4] sm:$0xf]  ;;  %v6539_v58 = vld [vmem:[%s15238_s2 + $0x1a8] sm:$0xf0] }
 0x18a   :  { %5355 = vmatpush.bf16.msra.mxu2 %v6574_v24  ;;  %v5077_v24 = vpop.f32.mrf.mxu1  ;;  %v6547_v28 = vld [vmem:[%s15238_s2 + $0x1b8] sm:$0xf0] }
 0x18b   :  { %5322 = vmatpush.bf16.msra.mxu3 %v6334_v10  ;;  %v6494_v10 = vor.u32 %v9498_v54, %v6491_v27  ;;  %v5078_v52 = vadd.f32 %v5077_v24, %v5065_v3  ;;  %v6550_v44 = vor.u32 %v9512_v37, %v6547_v28  ;;  %v6411_v54 = vld [vmem:[%s15238_s2 + $0xa8] sm:$0xf0]  ;;  %v9494_v27 = vld [vmem:[%s15238_s2 + $0x124] sm:$0xf]  ;;  %v5103_v3 = vpop.f32.mrf.mxu3  ;;  %v9492_v37 = vld [vmem:[%s15238_s2 + $0x114] sm:$0xf] }
 0x18c   :  { %5330 = vmatpush.bf16.msra.mxu0 %v6438_v57  ;;  %v9530_v57 = vld [vmem:[%s15238_s2 + $0x244] sm:$0xf]  ;;  %v5066_v24 = vpop.f32.mrf.mxu0  ;;  %v6467_v28 = vld [vmem:[%s15238_s2 + $0x118] sm:$0xf0] }
 0x18d   :  { %5343 = vmatpush.bf16.msra.mxu1 %v6502_v8  ;;  %v6619_v8 = vld [vmem:[%s15238_s2 + $0x248] sm:$0xf0]  ;;  %v5091_v51 = vadd.f32 %v5090_v61, %v5078_v52  ;;  %v6542_v52 = vor.u32 %v9510_v30, %v6539_v58  ;;  %v9490_v61 = vld [vmem:[%s15238_s2 + $0x104] sm:$0xf]  ;;  %v6707_v24 = vld [vmem:[%s15238_s2 + $0x2f8] sm:$0xf0] }
 0x18e   :  { %5356 = vmatpush.bf16.msra.mxu2 %v6566_v45  ;;  %5323 = vmatmul.bf16.vlgmr.msra.gmra.mxu3 %v10646_v21  ;;  %v6422_v21 = vor.u32 %v9480_v33, %v6419_v34  ;;  %v9478_v45 = vld [vmem:[%s15238_s2 + $0xa4] sm:$0xf]  ;;  %v6622_v56 = vor.u32 %v9530_v57, %v6619_v8  ;;  %v9476_v34 = vld [vmem:[%s15238_s2 + $0x94] sm:$0xf]  ;;  %v6459_v30 = vld [vmem:[%s15238_s2 + $0x108] sm:$0xf0] }
 0x18f   :  { %5367 = vmatpush.bf16.msrb.mxu3 %v6646_v35  ;;  %v9496_v35 = vld [vmem:[%s15238_s2 + $0x134] sm:$0xf]  ;;  %v6414_v33 = vor.u32 %v9478_v45, %v6411_v54  ;;  %v6603_v45 = vld [vmem:[%s15238_s2 + $0x228] sm:$0xf0]  ;;  %v6470_v54 = vor.u32 %v9492_v37, %v6467_v28  ;;  %v9506_v58 = vld [vmem:[%s15238_s2 + $0x184] sm:$0xf]  ;;  %v6462_v37 = vor.u32 %v9490_v61, %v6459_v30 }
 0x190   :  { %5331 = vmatpush.bf16.msra.mxu0 %v6430_v32  ;;  %v6486_v53 = vor.u32 %v9496_v35, %v6483_v59  ;;  %v9528_v32 = vld [vmem:[%s15238_s2 + $0x234] sm:$0xf]  ;;  %v12962_v59 = vadd.f32 %v5103_v3, %v5091_v51  ;;  %v6523_v51 = vld [vmem:[%s15238_s2 + $0x188] sm:$0xf0] }
 0x191   :  { %5344 = vmatpush.bf16.msra.mxu1 %v6494_v10  ;;  %v6611_v10 = vld [vmem:[%s15238_s2 + $0x238] sm:$0xf0]  ;;  %v9508_v8 = vld [vmem:[%s15238_s2 + $0x194] sm:$0xf]  ;;  %v6763_v30 = vld [vmem:[%s15238_s2 + $0x368] sm:$0xf0] }
 0x192   :  { %5357 = vmatpush.bf16.msra.mxu2 %v6558_v29  ;;  %v5079_v35 = vpop.f32.mrf.mxu1  ;;  %v6614_v57 = vor.u32 %v9528_v32, %v6611_v10  ;;  %v9524_v32 = vld [vmem:[%s15238_s2 + $0x214] sm:$0xf] }
 0x193   :  { %5368 = vmatpush.bf16.msrb.mxu3 %v6638_v55  ;;  %v6475_v55 = vld [vmem:[%s15238_s2 + $0x128] sm:$0xf0]  ;;  %v9552_v10 = vld [vmem:[%s15238_s2 + $0x2f4] sm:$0xf]  ;;  %v6771_v35 = vld [vmem:[%s15238_s2 + $0x378] sm:$0xf0] }
 0x194   :  { %5332 = vmatpush.bf16.msra.mxu0 %v6422_v21  ;;  %v6478_v29 = vor.u32 %v9494_v27, %v6475_v55  ;;  %v6531_v21 = vld [vmem:[%s15238_s2 + $0x198] sm:$0xf0]  ;;  %v9474_v27 = vld [vmem:[%s15238_s2 + $0x84] sm:$0xf]  ;;  %v6395_v55 = vld [vmem:[%s15238_s2 + $0x88] sm:$0xf0] }
 0x195   :  { %5345 = vmatpush.bf16.msra.mxu1 %v6486_v53  ;;  %v9526_v53 = vld [vmem:[%s15238_s2 + $0x224] sm:$0xf]  ;;  %v9584_v28 = vld [vmem:[%s15238_s2 + $0x3f4] sm:$0xf] }
 0x196   :  { %5358 = vmatpush.bf16.msra.mxu2 %v6550_v44  ;;  %v6606_v3 = vor.u32 %v9526_v53, %v6603_v45  ;;  %v9522_v53 = vld [vmem:[%s15238_s2 + $0x204] sm:$0xf] }
 0x197   :  { %5369 = vmatpush.bf16.msrb.mxu3 %v6630_v50  ;;  %v6403_v50 = vld [vmem:[%s15238_s2 + $0x98] sm:$0xf0] }
 0x198   :  { %5333 = vmatpush.bf16.msra.mxu0 %v6414_v33  ;;  %v6406_v44 = vor.u32 %v9476_v34, %v6403_v50  ;;  %v5092_v33 = vpop.f32.mrf.mxu2  ;;  %v9568_v34 = vld [vmem:[%s15238_s2 + $0x374] sm:$0xf]  ;;  %v6398_v50 = vor.u32 %v9474_v27, %v6395_v55  ;;  %v9550_v27 = vld [vmem:[%s15238_s2 + $0x2e4] sm:$0xf]  ;;  %v6699_v55 = vld [vmem:[%s15238_s2 + $0x2e8] sm:$0xf0] }
 0x199   :  { %5346 = vmatpush.bf16.msra.mxu1 %v6478_v29  ;;  %v6595_v29 = vld [vmem:[%s15238_s2 + $0x218] sm:$0xf0] }
 0x19a   :  { %5359 = vmatpush.bf16.msra.mxu2 %v6542_v52  ;;  %v5105_v52 = vpop.f32.mrf.mxu3  ;;  %v6598_v45 = vor.u32 %v9524_v32, %v6595_v29  ;;  %v6899_v32 = vld [vmem:[%s15238_s2 + $0x478] sm:$0xf0]  ;;  %v9548_v29 = vld [vmem:[%s15238_s2 + $0x2d4] sm:$0xf] }
 0x19b   :  { %5370 = vmatpush.bf16.msrb.mxu3 %v6622_v56  ;;  %v6534_v56 = vor.u32 %v9508_v8, %v6531_v21  ;;  %v6526_v8 = vor.u32 %v9506_v58, %v6523_v51  ;;  %v6710_v21 = vor.u32 %v9552_v10, %v6707_v24  ;;  %v9582_v58 = vld [vmem:[%s15238_s2 + $0x3e4] sm:$0xf]  ;;  %v6827_v51 = vld [vmem:[%s15238_s2 + $0x3e8] sm:$0xf0]  ;;  %v6702_v10 = vor.u32 %v9550_v27, %v6699_v55 }
 0x19c   :  { %5334 = vmatpush.bf16.msra.mxu0 %v6406_v44  ;;  %v6774_v44 = vor.u32 %v9568_v34, %v6771_v35  ;;  %v6691_v34 = vld [vmem:[%s15238_s2 + $0x2d8] sm:$0xf0]  ;;  %v6830_v35 = vor.u32 %v9582_v58, %v6827_v51  ;;  %v9578_v55 = vld [vmem:[%s15238_s2 + $0x3c4] sm:$0xf] }
 0x19d   :  { %5347 = vmatpush.bf16.msra.mxu1 %v6470_v54  ;;  %v6587_v54 = vld [vmem:[%s15238_s2 + $0x208] sm:$0xf0] }
 0x19e   :  { %5360 = vmatpush.bf16.msra.mxu2 %v6534_v56  ;;  %v9566_v56 = vld [vmem:[%s15238_s2 + $0x364] sm:$0xf]  ;;  %v6590_v24 = vor.u32 %v9522_v53, %v6587_v54  ;;  %v6694_v53 = vor.u32 %v9548_v29, %v6691_v34 }
 0x19f   :  { %5371 = vmatpush.bf16.msrb.mxu3 %v6614_v57  ;;  %v6835_v57 = vld [vmem:[%s15238_s2 + $0x3f8] sm:$0xf0]  ;;  %v6766_v33 = vor.u32 %v9566_v56, %v6763_v30  ;;  %v9596_v56 = vld [vmem:[%s15238_s2 + $0x454] sm:$0xf] }
 0x1a0   :  { %v6838_v61 = vor.u32 %v9584_v28, %v6835_v57  ;;  %5335 = vmatpush.bf16.msra.mxu0 %v6398_v50  ;;  %v9564_v50 = vld [vmem:[%s15238_s2 + $0x354] sm:$0xf]  ;;  %v6819_v57 = vld [vmem:[%s15238_s2 + $0x3d8] sm:$0xf0]  ;;  %v5116_v58 = vpop.f32.mrf.mxu0 }
 0x1a1   :  { %5348 = vmatpush.bf16.msra.mxu1 %v6462_v37  ;;  %v6755_v37 = vld [vmem:[%s15238_s2 + $0x358] sm:$0xf0]  ;;  %v9580_v28 = vld [vmem:[%s15238_s2 + $0x3d4] sm:$0xf] }
 0x1a2   :  { %5361 = vmatpush.bf16.msra.mxu2 %v6526_v8  ;;  %v9598_v8 = vld [vmem:[%s15238_s2 + $0x464] sm:$0xf]  ;;  %v6822_v54 = vor.u32 %v9580_v28, %v6819_v57  ;;  %v6883_v30 = vld [vmem:[%s15238_s2 + $0x458] sm:$0xf0]  ;;  %v6875_v28 = vld [vmem:[%s15238_s2 + $0x448] sm:$0xf0] }
 0x1a3   :  { %5372 = vmatpush.bf16.msrb.mxu3 %v6606_v3  ;;  %v9600_v3 = vld [vmem:[%s15238_s2 + $0x474] sm:$0xf]  ;;  %5336 = vmatmul.bf16.vlgmr.msra.gmra.mxu0 %v10657_v26  ;;  %v6758_v26 = vor.u32 %v9564_v50, %v6755_v37  ;;  %v6886_v34 = vor.u32 %v9596_v56, %v6883_v30  ;;  %v6803_v50 = vld [vmem:[%s15238_s2 + $0x3b8] sm:$0xf0]  ;;  %v9594_v37 = vld [vmem:[%s15238_s2 + $0x444] sm:$0xf] }
 0x1a4   :  { %5380 = vmatpush.bf16.msrb.mxu0 %v6710_v21  ;;  %v6902_v52 = vor.u32 %v9600_v3, %v6899_v32  ;;  %v6891_v21 = vld [vmem:[%s15238_s2 + $0x468] sm:$0xf0]  ;;  %5349 = vmatmul.bf16.vlgmr.msra.gmra.mxu1 %v10644_v20  ;;  %v9562_v20 = vld [vmem:[%s15238_s2 + $0x344] sm:$0xf]  ;;  %v5117_v3 = vadd.f32 %v5116_v58, %v12962_v59  ;;  %v6739_v59 = vld [vmem:[%s15238_s2 + $0x338] sm:$0xf0] }
 0x1a5   :  { %5393 = vmatpush.bf16.msrb.mxu1 %v6774_v44  ;;  %5362 = vmatmul.bf16.vlgmr.msra.gmra.mxu2 %v10648_v22  ;;  %v6683_v44 = vld [vmem:[%s15238_s2 + $0x2c8] sm:$0xf0]  ;;  %v6894_v27 = vor.u32 %v9598_v8, %v6891_v21  ;;  %v9542_v21 = vld [vmem:[%s15238_s2 + $0x2a4] sm:$0xf] }
 0x1a6   :  { %5406 = vmatpush.bf16.msrb.mxu2 %v6838_v61  ;;  %v6747_v22 = vld [vmem:[%s15238_s2 + $0x348] sm:$0xf0] }
 0x1a7   :  { %5373 = vmatpush.bf16.msrb.mxu3 %v6598_v45  ;;  %v9546_v45 = vld [vmem:[%s15238_s2 + $0x2c4] sm:$0xf]  ;;  %v6811_v61 = vld [vmem:[%s15238_s2 + $0x3c8] sm:$0xf0]  ;;  %v6750_v32 = vor.u32 %v9562_v20, %v6747_v22 }
 0x1a8   :  { %5381 = vmatpush.bf16.msrb.mxu0 %v6702_v10  ;;  %v6686_v51 = vor.u32 %v9546_v45, %v6683_v44  ;;  %v5129_v10 = vpop.f32.mrf.mxu1  ;;  %v6814_v29 = vor.u32 %v9578_v55, %v6811_v61  ;;  %v6878_v45 = vor.u32 %v9594_v37, %v6875_v28  ;;  %v9558_v44 = vld [vmem:[%s15238_s2 + $0x324] sm:$0xf]  ;;  %v5142_v20 = vpop.f32.mrf.mxu2  ;;  %v6795_v22 = vld [vmem:[%s15238_s2 + $0x3a8] sm:$0xf0]  ;;  %v9592_v55 = vld [vmem:[%s15238_s2 + $0x434] sm:$0xf] }
 0x1a9   :  { %5394 = vmatpush.bf16.msrb.mxu1 %v6766_v33  ;;  %v6675_v33 = vld [vmem:[%s15238_s2 + $0x2b8] sm:$0xf0]  ;;  %v5155_v30 = vpop.f32.mrf.mxu3  ;;  %v6859_v37 = vld [vmem:[%s15238_s2 + $0x428] sm:$0xf0] }
 0x1aa   :  { %5407 = vmatpush.bf16.msrb.mxu2 %v6830_v35  ;;  %v9576_v35 = vld [vmem:[%s15238_s2 + $0x3b4] sm:$0xf]  ;;  %v6867_v61 = vld [vmem:[%s15238_s2 + $0x438] sm:$0xf0] }
 0x1ab   :  { %5374 = vmatpush.bf16.msrb.mxu3 %v6590_v24  ;;  %v9544_v24 = vld [vmem:[%s15238_s2 + $0x2b4] sm:$0xf] }
 0x1ac   :  { %5382 = vmatpush.bf16.msrb.mxu0 %v6694_v53  ;;  %v6678_v57 = vor.u32 %v9544_v24, %v6675_v33  ;;  %v6667_v53 = vld [vmem:[%s15238_s2 + $0x2a8] sm:$0xf0] }
 0x1ad   :  { %5395 = vmatpush.bf16.msrb.mxu1 %v6758_v26  ;;  %v6806_v26 = vor.u32 %v9576_v35, %v6803_v50  ;;  %v6670_v58 = vor.u32 %v9542_v21, %v6667_v53  ;;  %v9572_v35 = vld [vmem:[%s15238_s2 + $0x394] sm:$0xf]  ;;  %v9590_v50 = vld [vmem:[%s15238_s2 + $0x424] sm:$0xf] }
 0x1ae   :  { %5375 = vmatmul.bf16.vlgmr.msrb.gmra.mxu3 %v10739_v0  ;;  %5408 = vmatpush.bf16.msrb.mxu2 %v6822_v54  ;;  %v9560_v0 = vld [vmem:[%s15238_s2 + $0x334] sm:$0xf]  ;;  %v6731_v54 = vld [vmem:[%s15238_s2 + $0x328] sm:$0xf0]  ;;  %v9554_v53 = vld [vmem:[%s15238_s2 + $0x304] sm:$0xf] }
 0x1af   :  { %5419 = vmatpush.bf16.msra.mxu3 %v6902_v52  ;;  %v5130_v52 = vadd.f32 %v5129_v10, %v5117_v3  ;;  %v6742_v8 = vor.u32 %v9560_v0, %v6739_v59  ;;  %v6734_v3 = vor.u32 %v9558_v44, %v6731_v54  ;;  %v6659_v10 = vld [vmem:[%s15238_s2 + $0x298] sm:$0xf0]  ;;  %v9556_v0 = vld [vmem:[%s15238_s2 + $0x314] sm:$0xf]  ;;  %v6862_v54 = vor.u32 %v9590_v50, %v6859_v37  ;;  %v9586_v37 = vld [vmem:[%s15238_s2 + $0x404] sm:$0xf] }
 0x1b0   :  { %5383 = vmatpush.bf16.msrb.mxu0 %v6686_v51  ;;  %v5118_v51 = vpop.f32.mrf.mxu0  ;;  %v5131_v24 = vpop.f32.mrf.mxu1  ;;  %v6723_v59 = vld [vmem:[%s15238_s2 + $0x318] sm:$0xf0] }
 0x1b1   :  { %5396 = vmatpush.bf16.msrb.mxu1 %v6750_v32  ;;  %v5143_v56 = vadd.f32 %v5142_v20, %v5130_v52  ;;  %v9540_v32 = vld [vmem:[%s15238_s2 + $0x294] sm:$0xf]  ;;  %v6787_v52 = vld [vmem:[%s15238_s2 + $0x398] sm:$0xf0]  ;;  %v6726_v21 = vor.u32 %v9556_v0, %v6723_v59  ;;  %v9614_v59 = vld [vmem:[%s15238_s2 + $0x4e4] sm:$0xf] }
 0x1b2   :  { %5409 = vmatpush.bf16.msrb.mxu2 %v6814_v29  ;;  %v6662_v28 = vor.u32 %v9540_v32, %v6659_v10  ;;  %v6790_v44 = vor.u32 %v9572_v35, %v6787_v52  ;;  %v9616_v20 = vld [vmem:[%s15238_s2 + $0x4f4] sm:$0xf]  ;;  %v7027_v51 = vld [vmem:[%s15238_s2 + $0x578] sm:$0xf0]  ;;  %v5157_v10 = vpop.f32.mrf.mxu3  ;;  %v6955_v35 = vld [vmem:[%s15238_s2 + $0x4e8] sm:$0xf0] }
 0x1b3   :  { %5420 = vmatpush.bf16.msra.mxu3 %v6894_v27  ;;  %v9574_v27 = vld [vmem:[%s15238_s2 + $0x3a4] sm:$0xf]  ;;  %v13164_v33 = vadd.f32 %v5155_v30, %v5143_v56  ;;  %v9632_v56 = vld [vmem:[%s15238_s2 + $0x574] sm:$0xf]  ;;  %v5144_v30 = vpop.f32.mrf.mxu2  ;;  %v7091_v32 = vld [vmem:[%s15238_s2 + $0x5f8] sm:$0xf0] }
 0x1b4   :  { %5384 = vmatpush.bf16.msrb.mxu0 %v6678_v57  ;;  %v6798_v29 = vor.u32 %v9574_v27, %v6795_v22  ;;  %v9538_v57 = vld [vmem:[%s15238_s2 + $0x284] sm:$0xf]  ;;  %v6779_v27 = vld [vmem:[%s15238_s2 + $0x388] sm:$0xf0]  ;;  %v6963_v22 = vld [vmem:[%s15238_s2 + $0x4f8] sm:$0xf0]  ;;  %v7030_v52 = vor.u32 %v9632_v56, %v7027_v51 }
 0x1b5   :  { %5397 = vmatpush.bf16.msrb.mxu1 %v6742_v8  ;;  %v6651_v8 = vld [vmem:[%s15238_s2 + $0x288] sm:$0xf0]  ;;  %v7011_v30 = vld [vmem:[%s15238_s2 + $0x558] sm:$0xf0]  ;;  %v9610_v10 = vld [vmem:[%s15238_s2 + $0x4c4] sm:$0xf] }
 0x1b6   :  { %5410 = vmatpush.bf16.msrb.mxu2 %v6806_v26  ;;  %v6715_v26 = vld [vmem:[%s15238_s2 + $0x308] sm:$0xf0]  ;;  %v7075_v51 = vld [vmem:[%s15238_s2 + $0x5d8] sm:$0xf0] }
 0x1b7   :  { %5421 = vmatpush.bf16.msra.mxu3 %v6886_v34  ;;  %v6870_v34 = vor.u32 %v9592_v55, %v6867_v61  ;;  %v9588_v55 = vld [vmem:[%s15238_s2 + $0x414] sm:$0xf]  ;;  %v6851_v61 = vld [vmem:[%s15238_s2 + $0x418] sm:$0xf0]  ;;  %v6718_v24 = vor.u32 %v9554_v53, %v6715_v26  ;;  %v7083_v53 = vld [vmem:[%s15238_s2 + $0x5e8] sm:$0xf0]  ;;  %v6958_v26 = vor.u32 %v9614_v59, %v6955_v35 }
 0x1b8   :  { %5385 = vmatpush.bf16.msrb.mxu0 %v6670_v58  ;;  %v6654_v58 = vor.u32 %v9538_v57, %v6651_v8  ;;  %v6854_v0 = vor.u32 %v9588_v55, %v6851_v61  ;;  %v9630_v57 = vld [vmem:[%s15238_s2 + $0x564] sm:$0xf]  ;;  %v7019_v8 = vld [vmem:[%s15238_s2 + $0x568] sm:$0xf0]  ;;  %v9628_v61 = vld [vmem:[%s15238_s2 + $0x554] sm:$0xf] }
 0x1b9   :  { %5398 = vmatpush.bf16.msrb.mxu1 %v6734_v3  ;;  %v9648_v3 = vld [vmem:[%s15238_s2 + $0x5f4] sm:$0xf]  ;;  %v9642_v59 = vld [vmem:[%s15238_s2 + $0x5c4] sm:$0xf]  ;;  %v7067_v35 = vld [vmem:[%s15238_s2 + $0x5c8] sm:$0xf0] }
 0x1ba   :  { %5411 = vmatpush.bf16.msrb.mxu2 %v6798_v29  ;;  %v6966_v29 = vor.u32 %v9616_v20, %v6963_v22  ;;  %v7094_v50 = vor.u32 %v9648_v3, %v7091_v32  ;;  %v6947_v20 = vld [vmem:[%s15238_s2 + $0x4d8] sm:$0xf0]  ;;  %v7022_v22 = vor.u32 %v9630_v57, %v7019_v8  ;;  %v7147_v32 = vld [vmem:[%s15238_s2 + $0x668] sm:$0xf0]  ;;  %v9608_v57 = vld [vmem:[%s15238_s2 + $0x4b4] sm:$0xf] }
 0x1bb   :  { %5422 = vmatpush.bf16.msra.mxu3 %v6878_v45  ;;  %v9570_v45 = vld [vmem:[%s15238_s2 + $0x384] sm:$0xf]  ;;  %v6931_v8 = vld [vmem:[%s15238_s2 + $0x4b8] sm:$0xf0] }
 0x1bc   :  { %5386 = vmatpush.bf16.msrb.mxu0 %v6662_v28  ;;  %v6843_v28 = vld [vmem:[%s15238_s2 + $0x408] sm:$0xf0] }
 0x1bd   :  { %5399 = vmatpush.bf16.msrb.mxu1 %v6726_v21  ;;  %v9646_v21 = vld [vmem:[%s15238_s2 + $0x5e4] sm:$0xf] }
 0x1be   :  { %5412 = vmatpush.bf16.msrb.mxu2 %v6790_v44  ;;  %v7155_v44 = vld [vmem:[%s15238_s2 + $0x678] sm:$0xf0]  ;;  %v7086_v55 = vor.u32 %v9646_v21, %v7083_v53  ;;  %v7070_v53 = vor.u32 %v9642_v59, %v7067_v35  ;;  %v9604_v35 = vld [vmem:[%s15238_s2 + $0x494] sm:$0xf] }
 0x1bf   :  { %5423 = vmatpush.bf16.msra.mxu3 %v6870_v34  ;;  %v6782_v34 = vor.u32 %v9570_v45, %v6779_v27  ;;  %v9664_v45 = vld [vmem:[%s15238_s2 + $0x674] sm:$0xf] }
 0x1c0   :  { %5387 = vmatpush.bf16.msrb.mxu0 %v6654_v58  ;;  %v9612_v27 = vld [vmem:[%s15238_s2 + $0x4d4] sm:$0xf]  ;;  %v7158_v56 = vor.u32 %v9664_v45, %v7155_v44 }
 0x1c1   :  { %5400 = vmatpush.bf16.msrb.mxu1 %v6718_v24  ;;  %v9644_v58 = vld [vmem:[%s15238_s2 + $0x5d4] sm:$0xf]  ;;  %v6950_v3 = vor.u32 %v9612_v27, %v6947_v20 }
 0x1c2   :  { %5413 = vmatpush.bf16.msrb.mxu2 %v6782_v34  ;;  %v7078_v24 = vor.u32 %v9644_v58, %v7075_v51  ;;  %v9624_v45 = vld [vmem:[%s15238_s2 + $0x534] sm:$0xf] }
 0x1c3   :  { %5424 = vmatpush.bf16.msra.mxu3 %v6862_v54  ;;  %v6846_v54 = vor.u32 %v9586_v37, %v6843_v28  ;;  %5388 = vmatmul.bf16.vlgmr.msrb.gmra.mxu0 %v10743_v2  ;;  %v9662_v2 = vld [vmem:[%s15238_s2 + $0x664] sm:$0xf]  ;;  %v7139_v37 = vld [vmem:[%s15238_s2 + $0x658] sm:$0xf0]  ;;  %v5168_v28 = vpop.f32.mrf.mxu0  ;;  %v9640_v27 = vld [vmem:[%s15238_s2 + $0x5b4] sm:$0xf] }
 0x1c4   :  { %5432 = vmatpush.bf16.msra.mxu0 %v6966_v29  ;;  %5401 = vmatmul.bf16.vlgmr.msrb.gmra.mxu1 %v10734_v60  ;;  %v6939_v60 = vld [vmem:[%s15238_s2 + $0x4c8] sm:$0xf0]  ;;  %v9626_v29 = vld [vmem:[%s15238_s2 + $0x544] sm:$0xf]  ;;  %v7150_v34 = vor.u32 %v9662_v2, %v7147_v32 }
 0x1c5   :  { %5445 = vmatpush.bf16.msra.mxu1 %v7030_v52  ;;  %5414 = vmatmul.bf16.vlgmr.msrb.gmra.mxu2 %v10741_v1  ;;  %v7014_v1 = vor.u32 %v9628_v61, %v7011_v30  ;;  %v6942_v52 = vor.u32 %v9610_v10, %v6939_v60  ;;  %v7131_v61 = vld [vmem:[%s15238_s2 + $0x648] sm:$0xf0]  ;;  %v9638_v10 = vld [vmem:[%s15238_s2 + $0x5a4] sm:$0xf] }
 0x1c6   :  { %5458 = vmatpush.bf16.msra.mxu2 %v7094_v50  ;;  %v9660_v50 = vld [vmem:[%s15238_s2 + $0x654] sm:$0xf]  ;;  %v6923_v30 = vld [vmem:[%s15238_s2 + $0x4a8] sm:$0xf0] }
 0x1c7   :  { %5425 = vmatpush.bf16.msra.mxu3 %v6854_v0  ;;  %v7003_v0 = vld [vmem:[%s15238_s2 + $0x548] sm:$0xf0]  ;;  %v7142_v44 = vor.u32 %v9660_v50, %v7139_v37 }
 0x1c8   :  { %5433 = vmatpush.bf16.msra.mxu0 %v6958_v26  ;;  %v7006_v21 = vor.u32 %v9626_v29, %v7003_v0  ;;  %v5181_v26 = vpop.f32.mrf.mxu1  ;;  %v6987_v32 = vld [vmem:[%s15238_s2 + $0x528] sm:$0xf0]  ;;  %v9656_v29 = vld [vmem:[%s15238_s2 + $0x634] sm:$0xf] }
 0x1c9   :  { %5446 = vmatpush.bf16.msra.mxu1 %v7022_v22  ;;  %v6934_v22 = vor.u32 %v9608_v57, %v6931_v8  ;;  %v7051_v60 = vld [vmem:[%s15238_s2 + $0x5a8] sm:$0xf0]  ;;  %v5207_v59 = vpop.f32.mrf.mxu3  ;;  %v9620_v57 = vld [vmem:[%s15238_s2 + $0x514] sm:$0xf] }
 0x1ca   :  { %5459 = vmatpush.bf16.msra.mxu2 %v7086_v55  ;;  %v9658_v55 = vld [vmem:[%s15238_s2 + $0x644] sm:$0xf] }
 0x1cb   :  { %5426 = vmatpush.bf16.msra.mxu3 %v6846_v54  ;;  %v6995_v54 = vld [vmem:[%s15238_s2 + $0x538] sm:$0xf0]  ;;  %v7134_v2 = vor.u32 %v9658_v55, %v7131_v61  ;;  %v5170_v50 = vpop.f32.mrf.mxu0 }
 0x1cc   :  { %5434 = vmatpush.bf16.msra.mxu0 %v6950_v3  ;;  %v6998_v58 = vor.u32 %v9624_v45, %v6995_v54  ;;  %v9622_v3 = vld [vmem:[%s15238_s2 + $0x524] sm:$0xf]  ;;  %v7043_v45 = vld [vmem:[%s15238_s2 + $0x598] sm:$0xf0] }
 0x1cd   :  { %5447 = vmatpush.bf16.msra.mxu1 %v7014_v1  ;;  %v5194_v1 = vpop.f32.mrf.mxu2  ;;  %v6990_v37 = vor.u32 %v9622_v3, %v6987_v32  ;;  %v9654_v54 = vld [vmem:[%s15238_s2 + $0x624] sm:$0xf]  ;;  %v9652_v32 = vld [vmem:[%s15238_s2 + $0x614] sm:$0xf] }
 0x1ce   :  { %5427 = vmatmul.bf16.vlgmr.msra.gmra.mxu3 %v10989_v12  ;;  %5460 = vmatpush.bf16.msra.mxu2 %v7078_v24  ;;  %v5169_v12 = vadd.f32 %v5168_v28, %v13164_v33  ;;  %v7059_v33 = vld [vmem:[%s15238_s2 + $0x5b8] sm:$0xf0]  ;;  %v7054_v28 = vor.u32 %v9638_v10, %v7051_v60  ;;  %v9634_v3 = vld [vmem:[%s15238_s2 + $0x584] sm:$0xf] }
 0x1cf   :  { %5471 = vmatpush.bf16.msrb.mxu3 %v7158_v56  ;;  %v9606_v56 = vld [vmem:[%s15238_s2 + $0x4a4] sm:$0xf]  ;;  %v7062_v51 = vor.u32 %v9640_v27, %v7059_v33  ;;  %v7115_v27 = vld [vmem:[%s15238_s2 + $0x628] sm:$0xf0]  ;;  %v7107_v60 = vld [vmem:[%s15238_s2 + $0x618] sm:$0xf0] }
 0x1d0   :  { %5435 = vmatpush.bf16.msra.mxu0 %v6942_v52  ;;  %v5182_v20 = vadd.f32 %v5181_v26, %v5169_v12  ;;  %v6926_v24 = vor.u32 %v9606_v56, %v6923_v30  ;;  %v6915_v52 = vld [vmem:[%s15238_s2 + $0x498] sm:$0xf0]  ;;  %v5183_v8 = vpop.f32.mrf.mxu1  ;;  %v9636_v26 = vld [vmem:[%s15238_s2 + $0x594] sm:$0xf]  ;;  %v9602_v33 = vld [vmem:[%s15238_s2 + $0x484] sm:$0xf] }
 0x1d1   :  { %5448 = vmatpush.bf16.msra.mxu1 %v7006_v21  ;;  %v7046_v61 = vor.u32 %v9636_v26, %v7043_v45  ;;  %v6971_v56 = vld [vmem:[%s15238_s2 + $0x508] sm:$0xf0]  ;;  %v9680_v30 = vld [vmem:[%s15238_s2 + $0x6f4] sm:$0xf]  ;;  %v9694_v45 = vld [vmem:[%s15238_s2 + $0x764] sm:$0xf] }
 0x1d2   :  { %5461 = vmatpush.bf16.msra.mxu2 %v7070_v53  ;;  %v5195_v0 = vadd.f32 %v5194_v1, %v5182_v20  ;;  %v6979_v53 = vld [vmem:[%s15238_s2 + $0x518] sm:$0xf0]  ;;  %v6907_v20 = vld [vmem:[%s15238_s2 + $0x488] sm:$0xf0]  ;;  %v9696_v1 = vld [vmem:[%s15238_s2 + $0x774] sm:$0xf] }
 0x1d3   :  { %5472 = vmatpush.bf16.msrb.mxu3 %v7150_v34  ;;  %v7123_v34 = vld [vmem:[%s15238_s2 + $0x638] sm:$0xf0]  ;;  %v6982_v55 = vor.u32 %v9620_v57, %v6979_v53  ;;  %v6910_v10 = vor.u32 %v9602_v33, %v6907_v20  ;;  %v7099_v8 = vld [vmem:[%s15238_s2 + $0x608] sm:$0xf0]  ;;  %v9728_v33 = vld [vmem:[%s15238_s2 + $0x874] sm:$0xf] }
 0x1d4   :  { %5436 = vmatpush.bf16.msra.mxu0 %v6934_v22  ;;  %v13366_v12 = vadd.f32 %v5207_v59, %v5195_v0  ;;  %v7126_v21 = vor.u32 %v9656_v29, %v7123_v34  ;;  %v9618_v22 = vld [vmem:[%s15238_s2 + $0x504] sm:$0xf]  ;;  %v9712_v0 = vld [vmem:[%s15238_s2 + $0x7f4] sm:$0xf]  ;;  %v7347_v59 = vld [vmem:[%s15238_s2 + $0x7f8] sm:$0xf0] }
 0x1d5   :  { %5449 = vmatpush.bf16.msra.mxu1 %v6998_v58  ;;  %v7219_v58 = vld [vmem:[%s15238_s2 + $0x6f8] sm:$0xf0]  ;;  %v5196_v29 = vpop.f32.mrf.mxu2  ;;  %v7211_v53 = vld [vmem:[%s15238_s2 + $0x6e8] sm:$0xf0]  ;;  %v7350_v26 = vor.u32 %v9712_v0, %v7347_v59  ;;  %v9690_v0 = vld [vmem:[%s15238_s2 + $0x744] sm:$0xf] }
 0x1d6   :  { %5462 = vmatpush.bf16.msra.mxu2 %v7062_v51  ;;  %v7118_v51 = vor.u32 %v9654_v54, %v7115_v27  ;;  %v7222_v34 = vor.u32 %v9680_v30, %v7219_v58  ;;  %v9710_v54 = vld [vmem:[%s15238_s2 + $0x7e4] sm:$0xf]  ;;  %v7339_v27 = vld [vmem:[%s15238_s2 + $0x7e8] sm:$0xf0]  ;;  %v7411_v20 = vld [vmem:[%s15238_s2 + $0x878] sm:$0xf0] }
 0x1d7   :  { %5473 = vmatpush.bf16.msrb.mxu3 %v7142_v44  ;;  %v6918_v44 = vor.u32 %v9604_v35, %v6915_v52  ;;  %v5209_v35 = vpop.f32.mrf.mxu3  ;;  %v6974_v52 = vor.u32 %v9618_v22, %v6971_v56  ;;  %v9676_v56 = vld [vmem:[%s15238_s2 + $0x6d4] sm:$0xf]  ;;  %v7203_v30 = vld [vmem:[%s15238_s2 + $0x6d8] sm:$0xf0]  ;;  %v7342_v58 = vor.u32 %v9710_v54, %v7339_v27  ;;  %v7259_v59 = vld [vmem:[%s15238_s2 + $0x748] sm:$0xf0] }
 0x1d8   :  { %5437 = vmatpush.bf16.msra.mxu0 %v6926_v24  ;;  %v7283_v24 = vld [vmem:[%s15238_s2 + $0x778] sm:$0xf0]  ;;  %v9706_v35 = vld [vmem:[%s15238_s2 + $0x7c4] sm:$0xf]  ;;  %v9688_v54 = vld [vmem:[%s15238_s2 + $0x734] sm:$0xf] }
 0x1d9   :  { %5450 = vmatpush.bf16.msra.mxu1 %v6990_v37  ;;  %v9650_v37 = vld [vmem:[%s15238_s2 + $0x604] sm:$0xf]  ;;  %v7286_v57 = vor.u32 %v9696_v1, %v7283_v24  ;;  %v7206_v1 = vor.u32 %v9676_v56, %v7203_v30  ;;  %v7251_v27 = vld [vmem:[%s15238_s2 + $0x738] sm:$0xf0] }
 0x1da   :  { %5463 = vmatpush.bf16.msra.mxu2 %v7054_v28  ;;  %v7110_v28 = vor.u32 %v9652_v32, %v7107_v60  ;;  %v9708_v32 = vld [vmem:[%s15238_s2 + $0x7d4] sm:$0xf]  ;;  %v7403_v60 = vld [vmem:[%s15238_s2 + $0x868] sm:$0xf0]  ;;  %v7254_v56 = vor.u32 %v9688_v54, %v7251_v27  ;;  %v9670_v30 = vld [vmem:[%s15238_s2 + $0x6a4] sm:$0xf] }
 0x1db   :  { %5474 = vmatpush.bf16.msrb.mxu3 %v7134_v2  ;;  %v7035_v2 = vld [vmem:[%s15238_s2 + $0x588] sm:$0xf0] }
 0x1dc   :  { %5438 = vmatpush.bf16.msra.mxu0 %v6918_v44  ;;  %v7038_v50 = vor.u32 %v9634_v3, %v7035_v2  ;;  %v7275_v44 = vld [vmem:[%s15238_s2 + $0x768] sm:$0xf0]  ;;  %v9692_v3 = vld [vmem:[%s15238_s2 + $0x754] sm:$0xf]  ;;  %v7267_v2 = vld [vmem:[%s15238_s2 + $0x758] sm:$0xf0] }
 0x1dd   :  { %5451 = vmatpush.bf16.msra.mxu1 %v6982_v55  ;;  %v7102_v55 = vor.u32 %v9650_v37, %v7099_v8  ;;  %v7270_v24 = vor.u32 %v9692_v3, %v7267_v2  ;;  %v7395_v37 = vld [vmem:[%s15238_s2 + $0x858] sm:$0xf0]  ;;  %v7262_v8 = vor.u32 %v9690_v0, %v7259_v59  ;;  %v9686_v2 = vld [vmem:[%s15238_s2 + $0x724] sm:$0xf]  ;;  %v9668_v0 = vld [vmem:[%s15238_s2 + $0x694] sm:$0xf] }
 0x1de   :  { %5464 = vmatpush.bf16.msra.mxu2 %v7046_v61  ;;  %v7278_v61 = vor.u32 %v9694_v45, %v7275_v44  ;;  %v7171_v59 = vld [vmem:[%s15238_s2 + $0x698] sm:$0xf0]  ;;  %v7163_v54 = vld [vmem:[%s15238_s2 + $0x688] sm:$0xf0] }
 0x1df   :  { %5475 = vmatpush.bf16.msrb.mxu3 %v7126_v21  ;;  %v9678_v21 = vld [vmem:[%s15238_s2 + $0x6e4] sm:$0xf] }
 0x1e0   :  { %5439 = vmatpush.bf16.msra.mxu0 %v6910_v10  ;;  %v7214_v22 = vor.u32 %v9678_v21, %v7211_v53  ;;  %v9726_v10 = vld [vmem:[%s15238_s2 + $0x864] sm:$0xf]  ;;  %v9672_v21 = vld [vmem:[%s15238_s2 + $0x6b4] sm:$0xf]  ;;  %v7187_v53 = vld [vmem:[%s15238_s2 + $0x6b8] sm:$0xf0] }
 0x1e1   :  { %5452 = vmatpush.bf16.msra.mxu1 %v6974_v52  ;;  %v7323_v52 = vld [vmem:[%s15238_s2 + $0x7c8] sm:$0xf0]  ;;  %v5233_v44 = vpop.f32.mrf.mxu1 }
 0x1e2   :  { %5465 = vmatpush.bf16.msra.mxu2 %v7038_v50  ;;  %v9724_v50 = vld [vmem:[%s15238_s2 + $0x854] sm:$0xf]  ;;  %v7326_v45 = vor.u32 %v9706_v35, %v7323_v52 }
 0x1e3   :  { %5476 = vmatpush.bf16.msrb.mxu3 %v7118_v51  ;;  %5440 = vmatmul.bf16.vlgmr.msra.gmra.mxu0 %v10999_v16  ;;  %v7414_v51 = vor.u32 %v9728_v33, %v7411_v20  ;;  %v7331_v16 = vld [vmem:[%s15238_s2 + $0x7d8] sm:$0xf0]  ;;  %v9704_v33 = vld [vmem:[%s15238_s2 + $0x7b4] sm:$0xf] }
 0x1e4   :  { %5484 = vmatpush.bf16.msrb.mxu0 %v7222_v34  ;;  %5453 = vmatmul.bf16.vlgmr.msra.gmra.mxu1 %v10997_v15  ;;  %v9674_v15 = vld [vmem:[%s15238_s2 + $0x6c4] sm:$0xf]  ;;  %v7334_v29 = vor.u32 %v9708_v32, %v7331_v16  ;;  %v7406_v34 = vor.u32 %v9726_v10, %v7403_v60  ;;  %v7315_v20 = vld [vmem:[%s15238_s2 + $0x7b8] sm:$0xf0]  ;;  %v7243_v32 = vld [vmem:[%s15238_s2 + $0x728] sm:$0xf0] }
 0x1e5   :  { %5497 = vmatpush.bf16.msrb.mxu1 %v7286_v57  ;;  %5466 = vmatmul.bf16.vlgmr.msra.gmra.mxu2 %v11001_v17  ;;  %v7195_v17 = vld [vmem:[%s15238_s2 + $0x6c8] sm:$0xf0]  ;;  %v5220_v57 = vpop.f32.mrf.mxu0  ;;  %v9702_v16 = vld [vmem:[%s15238_s2 + $0x7a4] sm:$0xf]  ;;  %v9720_v60 = vld [vmem:[%s15238_s2 + $0x834] sm:$0xf] }
 0x1e6   :  { %5510 = vmatpush.bf16.msrb.mxu2 %v7350_v26  ;;  %v5221_v26 = vadd.f32 %v5220_v57, %v13366_v12  ;;  %v9722_v12 = vld [vmem:[%s15238_s2 + $0x844] sm:$0xf]  ;;  %v7307_v10 = vld [vmem:[%s15238_s2 + $0x7a8] sm:$0xf0]  ;;  %v9700_v57 = vld [vmem:[%s15238_s2 + $0x794] sm:$0xf] }
 0x1e7   :  { %5477 = vmatpush.bf16.msrb.mxu3 %v7110_v28  ;;  %v7198_v28 = vor.u32 %v9674_v15, %v7195_v17  ;;  %v7310_v52 = vor.u32 %v9702_v16, %v7307_v10  ;;  %v9776_v16 = vld [vmem:[%s15238_s2 + $0x9f4] sm:$0xf]  ;;  %v7603_v10 = vld [vmem:[%s15238_s2 + $0x9f8] sm:$0xf0] }
 0x1e8   :  { %5485 = vmatpush.bf16.msrb.mxu0 %v7214_v22  ;;  %v7387_v22 = vld [vmem:[%s15238_s2 + $0x848] sm:$0xf0] }
 0x1e9   :  { %5498 = vmatpush.bf16.msrb.mxu1 %v7278_v61  ;;  %v7190_v61 = vor.u32 %v9672_v21, %v7187_v53  ;;  %v7390_v3 = vor.u32 %v9722_v12, %v7387_v22  ;;  %v7299_v53 = vld [vmem:[%s15238_s2 + $0x798] sm:$0xf0]  ;;  %v9698_v12 = vld [vmem:[%s15238_s2 + $0x784] sm:$0xf] }
 0x1ea   :  { %5511 = vmatpush.bf16.msrb.mxu2 %v7342_v58  ;;  %v7179_v58 = vld [vmem:[%s15238_s2 + $0x6a8] sm:$0xf0]  ;;  %v7302_v22 = vor.u32 %v9700_v57, %v7299_v53  ;;  %v9774_v57 = vld [vmem:[%s15238_s2 + $0x9e4] sm:$0xf] }
 0x1eb   :  { %5478 = vmatpush.bf16.msrb.mxu3 %v7102_v55  ;;  %v5234_v55 = vadd.f32 %v5233_v44, %v5221_v26  ;;  %v7182_v15 = vor.u32 %v9670_v30, %v7179_v58  ;;  %v9718_v26 = vld [vmem:[%s15238_s2 + $0x824] sm:$0xf]  ;;  %v7174_v44 = vor.u32 %v9668_v0, %v7171_v59  ;;  %v7475_v30 = vld [vmem:[%s15238_s2 + $0x8f8] sm:$0xf0]  ;;  %v9716_v58 = vld [vmem:[%s15238_s2 + $0x814] sm:$0xf] }
 0x1ec   :  { %5486 = vmatpush.bf16.msrb.mxu0 %v7206_v1  ;;  %v7379_v1 = vld [vmem:[%s15238_s2 + $0x838] sm:$0xf0]  ;;  %v7467_v0 = vld [vmem:[%s15238_s2 + $0x8e8] sm:$0xf0] }
 0x1ed   :  { %5499 = vmatpush.bf16.msrb.mxu1 %v7270_v24  ;;  %v5246_v24 = vpop.f32.mrf.mxu2  ;;  %v5222_v35 = vpop.f32.mrf.mxu0 }
 0x1ee   :  { %5479 = vmatmul.bf16.vlgmr.msrb.gmra.mxu3 %v11163_v46  ;;  %5512 = vmatpush.bf16.msrb.mxu2 %v7334_v29  ;;  %v7398_v46 = vor.u32 %v9724_v50, %v7395_v37  ;;  %v5247_v17 = vadd.f32 %v5246_v24, %v5234_v55  ;;  %v5259_v29 = vpop.f32.mrf.mxu3  ;;  %v7382_v50 = vor.u32 %v9720_v60, %v7379_v1  ;;  %v9684_v37 = vld [vmem:[%s15238_s2 + $0x714] sm:$0xf] }
 0x1ef   :  { %5523 = vmatpush.bf16.msra.mxu3 %v7414_v51  ;;  %v7318_v51 = vor.u32 %v9704_v33, %v7315_v20  ;;  %v9682_v33 = vld [vmem:[%s15238_s2 + $0x704] sm:$0xf]  ;;  %v7227_v20 = vld [vmem:[%s15238_s2 + $0x708] sm:$0xf0]  ;;  %v7606_v35 = vor.u32 %v9776_v16, %v7603_v10 }
 0x1f0   :  { %5487 = vmatpush.bf16.msrb.mxu0 %v7198_v28  ;;  %v7235_v28 = vld [vmem:[%s15238_s2 + $0x718] sm:$0xf0]  ;;  %v13571_v21 = vadd.f32 %v5259_v29, %v5247_v17  ;;  %v7230_v1 = vor.u32 %v9682_v33, %v7227_v20  ;;  %v9756_v20 = vld [vmem:[%s15238_s2 + $0x954] sm:$0xf]  ;;  %v7515_v16 = vld [vmem:[%s15238_s2 + $0x948] sm:$0xf0] }
 0x1f1   :  { %5500 = vmatpush.bf16.msrb.mxu1 %v7262_v8  ;;  %v5235_v8 = vpop.f32.mrf.mxu1  ;;  %v7238_v27 = vor.u32 %v9684_v37, %v7235_v28  ;;  %v9758_v37 = vld [vmem:[%s15238_s2 + $0x964] sm:$0xf]  ;;  %v7531_v28 = vld [vmem:[%s15238_s2 + $0x968] sm:$0xf0] }
 0x1f2   :  { %5513 = vmatpush.bf16.msrb.mxu2 %v7326_v45  ;;  %v7371_v45 = vld [vmem:[%s15238_s2 + $0x828] sm:$0xf0]  ;;  %v9770_v10 = vld [vmem:[%s15238_s2 + $0x9c4] sm:$0xf] }
 0x1f3   :  { %5524 = vmatpush.bf16.msra.mxu3 %v7406_v34  ;;  %v7246_v34 = vor.u32 %v9686_v2, %v7243_v32  ;;  %v7374_v55 = vor.u32 %v9718_v26, %v7371_v45  ;;  %v7539_v32 = vld [vmem:[%s15238_s2 + $0x978] sm:$0xf0]  ;;  %v7595_v8 = vld [vmem:[%s15238_s2 + $0x9e8] sm:$0xf0]  ;;  %v9792_v26 = vld [vmem:[%s15238_s2 + $0xa74] sm:$0xf] }
 0x1f4   :  { %5488 = vmatpush.bf16.msrb.mxu0 %v7190_v61  ;;  %v7291_v61 = vld [vmem:[%s15238_s2 + $0x788] sm:$0xf0]  ;;  %v7667_v45 = vld [vmem:[%s15238_s2 + $0xa78] sm:$0xf0]  ;;  %v7598_v33 = vor.u32 %v9774_v57, %v7595_v8 }
 0x1f5   :  { %5501 = vmatpush.bf16.msrb.mxu1 %v7254_v56  ;;  %v9744_v56 = vld [vmem:[%s15238_s2 + $0x8f4] sm:$0xf]  ;;  %v5248_v60 = vpop.f32.mrf.mxu2  ;;  %v7294_v17 = vor.u32 %v9698_v12, %v7291_v61  ;;  %v7670_v12 = vor.u32 %v9792_v26, %v7667_v45  ;;  %v7587_v61 = vld [vmem:[%s15238_s2 + $0x9d8] sm:$0xf0] }
 0x1f6   :  { %5514 = vmatpush.bf16.msrb.mxu2 %v7318_v51  ;;  %v7363_v51 = vld [vmem:[%s15238_s2 + $0x818] sm:$0xf0]  ;;  %v7478_v24 = vor.u32 %v9744_v56, %v7475_v30  ;;  %v7579_v60 = vld [vmem:[%s15238_s2 + $0x9c8] sm:$0xf0] }
 0x1f7   :  { %5525 = vmatpush.bf16.msra.mxu3 %v7398_v46  ;;  %v9666_v46 = vld [vmem:[%s15238_s2 + $0x684] sm:$0xf]  ;;  %v7366_v29 = vor.u32 %v9716_v58, %v7363_v51  ;;  %v7571_v57 = vld [vmem:[%s15238_s2 + $0x9b8] sm:$0xf0] }
 0x1f8   :  { %5489 = vmatpush.bf16.msrb.mxu0 %v7182_v15  ;;  %v7166_v2 = vor.u32 %v9666_v46, %v7163_v54  ;;  %v5261_v15 = vpop.f32.mrf.mxu3  ;;  %v9740_v46 = vld [vmem:[%s15238_s2 + $0x8d4] sm:$0xf]  ;;  %v7459_v54 = vld [vmem:[%s15238_s2 + $0x8d8] sm:$0xf0]  ;;  %v9738_v58 = vld [vmem:[%s15238_s2 + $0x8c4] sm:$0xf] }
 0x1f9   :  { %5502 = vmatpush.bf16.msrb.mxu1 %v7246_v34  ;;  %v9742_v34 = vld [vmem:[%s15238_s2 + $0x8e4] sm:$0xf]  ;;  %v7462_v56 = vor.u32 %v9740_v46, %v7459_v54  ;;  %v7651_v15 = vld [vmem:[%s15238_s2 + $0xa58] sm:$0xf0]  ;;  %v7435_v46 = vld [vmem:[%s15238_s2 + $0x8a8] sm:$0xf0] }
 0x1fa   :  { %5515 = vmatpush.bf16.msrb.mxu2 %v7310_v52  ;;  %v9714_v52 = vld [vmem:[%s15238_s2 + $0x804] sm:$0xf]  ;;  %v7470_v53 = vor.u32 %v9742_v34, %v7467_v0  ;;  %v7582_v0 = vor.u32 %v9770_v10, %v7579_v60 }
 0x1fb   :  { %5526 = vmatpush.bf16.msra.mxu3 %v7390_v3  ;;  %v9760_v3 = vld [vmem:[%s15238_s2 + $0x974] sm:$0xf] }
 0x1fc   :  { %5490 = vmatpush.bf16.msrb.mxu0 %v7174_v44  ;;  %v7542_v59 = vor.u32 %v9760_v3, %v7539_v32 }
 0x1fd   :  { %5503 = vmatpush.bf16.msrb.mxu1 %v7238_v27  ;;  %v7534_v27 = vor.u32 %v9758_v37, %v7531_v28  ;;  %v7507_v37 = vld [vmem:[%s15238_s2 + $0x938] sm:$0xf0]  ;;  %v9768_v28 = vld [vmem:[%s15238_s2 + $0x9b4] sm:$0xf] }
 0x1fe   :  { %5516 = vmatpush.bf16.msrb.mxu2 %v7302_v22  ;;  %v7523_v22 = vld [vmem:[%s15238_s2 + $0x958] sm:$0xf0] }
 0x1ff   :  { %5527 = vmatpush.bf16.msra.mxu3 %v7382_v50  ;;  %v7355_v50 = vld [vmem:[%s15238_s2 + $0x808] sm:$0xf0]  ;;  %v7526_v51 = vor.u32 %v9756_v20, %v7523_v22  ;;  %v9766_v22 = vld [vmem:[%s15238_s2 + $0x9a4] sm:$0xf] }
 0x200   :  { %5491 = vmatpush.bf16.msrb.mxu0 %v7166_v2  ;;  %v7358_v44 = vor.u32 %v9714_v52, %v7355_v50  ;;  %v13681_v30 = vpop.f32.mrf.mxu3  ;;  %v9754_v2 = vld [vmem:[%s15238_s2 + $0x944] sm:$0xf] }
 0x201   :  { %5504 = vmatpush.bf16.msrb.mxu1 %v7230_v1  ;;  %v7518_v34 = vor.u32 %v9754_v2, %v7515_v16  ;;  %v5285_v52 = vpop.f32.mrf.mxu1 }
 0x202   :  { %5517 = vmatpush.bf16.msrb.mxu2 %v7294_v17  ;;  %v9736_v17 = vld [vmem:[%s15238_s2 + $0x8b4] sm:$0xf] }
 0x203   :  { %5528 = vmatpush.bf16.msra.mxu3 %v7374_v55  ;;  %5492 = vmatmul.bf16.vlgmr.msrb.gmra.mxu0 %v11167_v48  ;;  %v9772_v55 = vld [vmem:[%s15238_s2 + $0x9d4] sm:$0xf]  ;;  %v7659_v48 = vld [vmem:[%s15238_s2 + $0xa68] sm:$0xf0] }
 0x204   :  { %5536 = vmatpush.bf16.msra.mxu0 %v7478_v24  ;;  %5505 = vmatmul.bf16.vlgmr.msrb.gmra.mxu1 %v11165_v47  ;;  %v9790_v47 = vld [vmem:[%s15238_s2 + $0xa64] sm:$0xf]  ;;  %v7590_v3 = vor.u32 %v9772_v55, %v7587_v61  ;;  %v9788_v24 = vld [vmem:[%s15238_s2 + $0xa54] sm:$0xf]  ;;  %v7563_v55 = vld [vmem:[%s15238_s2 + $0x9a8] sm:$0xf0] }
 0x205   :  { %5549 = vmatpush.bf16.msra.mxu1 %v7542_v59  ;;  %5518 = vmatmul.bf16.vlgmr.msrb.gmra.mxu2 %v11169_v49  ;;  %v7451_v49 = vld [vmem:[%s15238_s2 + $0x8c8] sm:$0xf0]  ;;  %v7662_v32 = vor.u32 %v9790_v47, %v7659_v48  ;;  %v9752_v59 = vld [vmem:[%s15238_s2 + $0x934] sm:$0xf]  ;;  %v7654_v50 = vor.u32 %v9788_v24, %v7651_v15  ;;  %v7635_v48 = vld [vmem:[%s15238_s2 + $0xa38] sm:$0xf0]  ;;  %v7566_v2 = vor.u32 %v9766_v22, %v7563_v55 }
 0x206   :  { %5562 = vmatpush.bf16.msra.mxu2 %v7606_v35  ;;  %v7454_v1 = vor.u32 %v9738_v58, %v7451_v49  ;;  %v7510_v54 = vor.u32 %v9752_v59, %v7507_v37  ;;  %v9784_v47 = vld [vmem:[%s15238_s2 + $0xa34] sm:$0xf]  ;;  %v7555_v15 = vld [vmem:[%s15238_s2 + $0x998] sm:$0xf0]  ;;  %v9746_v59 = vld [vmem:[%s15238_s2 + $0x904] sm:$0xf] }
 0x207   :  { %5529 = vmatpush.bf16.msra.mxu3 %v7366_v29  ;;  %v7443_v29 = vld [vmem:[%s15238_s2 + $0x8b8] sm:$0xf0]  ;;  %v9732_v49 = vld [vmem:[%s15238_s2 + $0x894] sm:$0xf]  ;;  %v7638_v60 = vor.u32 %v9784_v47, %v7635_v48 }
 0x208   :  { %5537 = vmatpush.bf16.msra.mxu0 %v7470_v53  ;;  %v7446_v8 = vor.u32 %v9736_v17, %v7443_v29  ;;  %v7643_v53 = vld [vmem:[%s15238_s2 + $0xa48] sm:$0xf0]  ;;  %v5313_v26 = vpop.f32.mrf.mxu3  ;;  %v5298_v61 = vpop.f32.mrf.mxu2  ;;  %v9764_v24 = vld [vmem:[%s15238_s2 + $0x994] sm:$0xf] }
 0x209   :  { %5550 = vmatpush.bf16.msra.mxu1 %v7534_v27  ;;  %v7574_v27 = vor.u32 %v9768_v28, %v7571_v57  ;;  %v5287_v17 = vpop.f32.mrf.mxu1  ;;  %v9808_v37 = vld [vmem:[%s15238_s2 + $0xaf4] sm:$0xf]  ;;  %v7731_v28 = vld [vmem:[%s15238_s2 + $0xaf8] sm:$0xf0] }
 0x20a   :  { %5563 = vmatpush.bf16.msra.mxu2 %v7598_v33  ;;  %v9750_v33 = vld [vmem:[%s15238_s2 + $0x924] sm:$0xf] }
 0x20b   :  { %5530 = vmatpush.bf16.msra.mxu3 %v7358_v44  ;;  %v9734_v44 = vld [vmem:[%s15238_s2 + $0x8a4] sm:$0xf] }
 0x20c   :  { %5538 = vmatpush.bf16.msra.mxu0 %v7462_v56  ;;  %v7438_v56 = vor.u32 %v9734_v44, %v7435_v46  ;;  %v7619_v44 = vld [vmem:[%s15238_s2 + $0xa18] sm:$0xf0]  ;;  %v9824_v46 = vld [vmem:[%s15238_s2 + $0xb74] sm:$0xf] }
 0x20d   :  { %5551 = vmatpush.bf16.msra.mxu1 %v7526_v51  ;;  %v7427_v51 = vld [vmem:[%s15238_s2 + $0x898] sm:$0xf0] }
 0x20e   :  { %5531 = vmatmul.bf16.vlgmr.msra.gmra.mxu3 %v11400_v9  ;;  %5564 = vmatpush.bf16.msra.mxu2 %v7590_v3  ;;  %v5272_v9 = vpop.f32.mrf.mxu0  ;;  %v7430_v29 = vor.u32 %v9732_v49, %v7427_v51  ;;  %v7723_v49 = vld [vmem:[%s15238_s2 + $0xae8] sm:$0xf0]  ;;  %v9822_v51 = vld [vmem:[%s15238_s2 + $0xb64] sm:$0xf] }
 0x20f   :  { %5575 = vmatpush.bf16.msrb.mxu3 %v7670_v12  ;;  %v5273_v35 = vadd.f32 %v5272_v9, %v13571_v21  ;;  %v9786_v21 = vld [vmem:[%s15238_s2 + $0xa44] sm:$0xf]  ;;  %v7499_v12 = vld [vmem:[%s15238_s2 + $0x928] sm:$0xf0] }
 0x210   :  { %5539 = vmatpush.bf16.msra.mxu0 %v7454_v1  ;;  %v7646_v20 = vor.u32 %v9786_v21, %v7643_v53  ;;  %v7502_v3 = vor.u32 %v9750_v33, %v7499_v12  ;;  %v7491_v1 = vld [vmem:[%s15238_s2 + $0x918] sm:$0xf0]  ;;  %v7627_v9 = vld [vmem:[%s15238_s2 + $0xa28] sm:$0xf0]  ;;  %v9780_v53 = vld [vmem:[%s15238_s2 + $0xa14] sm:$0xf]  ;;  %v7734_v33 = vor.u32 %v9808_v37, %v7731_v28 }
 0x211   :  { %v5286_v45 = vadd.f32 %v5285_v52, %v5273_v35  ;;  %5552 = vmatpush.bf16.msra.mxu1 %v7518_v34  ;;  %v9730_v34 = vld [vmem:[%s15238_s2 + $0x884] sm:$0xf]  ;;  %v7558_v52 = vor.u32 %v9764_v24, %v7555_v15  ;;  %v7547_v21 = vld [vmem:[%s15238_s2 + $0x988] sm:$0xf0]  ;;  %v13811_v26 = vpop.f32.mrf.mxu3  ;;  %v7859_v12 = vld [vmem:[%s15238_s2 + $0xbf8] sm:$0xf0]  ;;  %v7622_v47 = vor.u32 %v9780_v53, %v7619_v44 }
 0x212   :  { %5565 = vmatpush.bf16.msra.mxu2 %v7582_v0  ;;  %v7419_v0 = vld [vmem:[%s15238_s2 + $0x888] sm:$0xf0]  ;;  %v7843_v28 = vld [vmem:[%s15238_s2 + $0xbd8] sm:$0xf0]  ;;  %v9818_v44 = vld [vmem:[%s15238_s2 + $0xb44] sm:$0xf] }
 0x213   :  { %5576 = vmatpush.bf16.msrb.mxu3 %v7662_v32  ;;  %v5299_v58 = vadd.f32 %v5298_v61, %v5286_v45  ;;  %v9748_v32 = vld [vmem:[%s15238_s2 + $0x914] sm:$0xf]  ;;  %v7422_v45 = vor.u32 %v9730_v34, %v7419_v0  ;;  %v9778_v61 = vld [vmem:[%s15238_s2 + $0xa04] sm:$0xf]  ;;  %v35_v24 = vld [vmem:[%s15243_s7 + $0x8] sm:$0xff] }
 0x214   :  { %5540 = vmatpush.bf16.msra.mxu0 %v7446_v8  ;;  %v7494_v35 = vor.u32 %v9748_v32, %v7491_v1  ;;  %v9762_v8 = vld [vmem:[%s15238_s2 + $0x984] sm:$0xf]  ;;  %v7923_v1 = vld [vmem:[%s15238_s2 + $0xc78] sm:$0xf0]  ;;  %v9820_v34 = vld [vmem:[%s15238_s2 + $0xb54] sm:$0xf] }
 0x215   :  { %5553 = vmatpush.bf16.msra.mxu1 %v7510_v54  ;;  %v13767_v10 = vadd.f32 %v13681_v30, %v5299_v58  ;;  %v9782_v30 = vld [vmem:[%s15238_s2 + $0xa24] sm:$0xf]  ;;  %v7795_v54 = vld [vmem:[%s15238_s2 + $0xb78] sm:$0xf0]  ;;  %v7550_v55 = vor.u32 %v9762_v8, %v7547_v21  ;;  %v800_v37 = vperm.slane %v35_v24, 0 }
 0x216   :  { %5566 = vmatpush.bf16.msra.mxu2 %v7574_v27  ;;  %v5274_v16 = vpop.f32.mrf.mxu0  ;;  %v7630_v57 = vor.u32 %v9782_v30, %v7627_v9  ;;  %v5300_v27 = vpop.f32.mrf.mxu2  ;;  %v7798_v48 = vor.u32 %v9824_v46, %v7795_v54  ;;  %v9806_v58 = vld [vmem:[%s15238_s2 + $0xae4] sm:$0xf]  ;;  %v9804_v30 = vld [vmem:[%s15238_s2 + $0xad4] sm:$0xf]  ;;  %v7715_v9 = vld [vmem:[%s15238_s2 + $0xad8] sm:$0xf0] }
 0x217   :  { %5577 = vmatpush.bf16.msrb.mxu3 %v7654_v50  ;;  %v7483_v50 = vld [vmem:[%s15238_s2 + $0x908] sm:$0xf0]  ;;  %v9838_v32 = vld [vmem:[%s15238_s2 + $0xbe4] sm:$0xf]  ;;  %v7726_v15 = vor.u32 %v9806_v58, %v7723_v49  ;;  %v7718_v8 = vor.u32 %v9804_v30, %v7715_v9  ;;  %v5325_v27 = vadd.f32 %v13811_v26, %v800_v37  ;;  %v9800_v26 = vld [vmem:[%s15238_s2 + $0xab4] sm:$0xf] }
 0x218   :  { %5541 = vmatpush.bf16.msra.mxu0 %v7438_v56  ;;  %v7486_v22 = vor.u32 %v9746_v59, %v7483_v50  ;;  %v7611_v56 = vld [vmem:[%s15238_s2 + $0xa08] sm:$0xf0]  ;;  %v9836_v50 = vld [vmem:[%s15238_s2 + $0xbd4] sm:$0xf]  ;;  %v9834_v54 = vld [vmem:[%s15238_s2 + $0xbc4] sm:$0xf] }
 0x219   :  { %5554 = vmatpush.bf16.msra.mxu1 %v7502_v3  ;;  %v7851_v16 = vld [vmem:[%s15238_s2 + $0xbe8] sm:$0xf0]  ;;  %v7614_v17 = vor.u32 %v9778_v61, %v7611_v56  ;;  %v5326_v0 = vpop.f32.mrf.mxu3  ;;  %v7846_v53 = vor.u32 %v9836_v50, %v7843_v28  ;;  %v7699_v61 = vld [vmem:[%s15238_s2 + $0xab8] sm:$0xf0]  ;;  %v9832_v49 = vld [vmem:[%s15238_s2 + $0xbb4] sm:$0xf] }
 0x21a   :  { %5567 = vmatpush.bf16.msra.mxu2 %v7566_v2  ;;  %v7787_v2 = vld [vmem:[%s15238_s2 + $0xb68] sm:$0xf0]  ;;  %v7854_v59 = vor.u32 %v9838_v32, %v7851_v16  ;;  %v7763_v58 = vld [vmem:[%s15238_s2 + $0xb38] sm:$0xf0]  ;;  %v9850_v32 = vld [vmem:[%s15238_s2 + $0xc44] sm:$0xf] }
 0x21b   :  { %5578 = vmatpush.bf16.msrb.mxu3 %v7646_v20  ;;  %v9840_v20 = vld [vmem:[%s15238_s2 + $0xbf4] sm:$0xf]  ;;  %v7771_v46 = vld [vmem:[%s15238_s2 + $0xb48] sm:$0xf0]  ;;  %v9814_v9 = vld [vmem:[%s15238_s2 + $0xb24] sm:$0xf] }
 0x21c   :  { %5542 = vmatpush.bf16.msra.mxu0 %v7430_v29  ;;  %v7862_v3 = vor.u32 %v9840_v20, %v7859_v12  ;;  %v7790_v29 = vor.u32 %v9822_v51, %v7787_v2  ;;  %v9852_v20 = vld [vmem:[%s15238_s2 + $0xc54] sm:$0xf]  ;;  %v7907_v12 = vld [vmem:[%s15238_s2 + $0xc58] sm:$0xf0]  ;;  %v7899_v16 = vld [vmem:[%s15238_s2 + $0xc48] sm:$0xf0] }
 0x21d   :  { %5555 = vmatpush.bf16.msra.mxu1 %v7494_v35  ;;  %v7827_v2 = vld [vmem:[%s15238_s2 + $0xbb8] sm:$0xf0]  ;;  %v7902_v30 = vor.u32 %v9850_v32, %v7899_v16  ;;  %v9830_v0 = vld [vmem:[%s15238_s2 + $0xba4] sm:$0xf]  ;;  %v9888_v16 = vld [vmem:[%s15238_s2 + $0xd74] sm:$0xf] }
 0x21e   :  { %5568 = vmatpush.bf16.msra.mxu2 %v7558_v52  ;;  %v7779_v52 = vld [vmem:[%s15238_s2 + $0xb58] sm:$0xf0]  ;;  %vm5939_vm1 = vcmp.ge.f32.partialorder %v13767_v10, 0.0 }
 0x21f   :  { %5579 = vmatpush.bf16.msrb.mxu3 %v7638_v60  ;;  %v9856_v60 = vld [vmem:[%s15238_s2 + $0xc74] sm:$0xf]  ;;  %v7782_v21 = vor.u32 %v9820_v34, %v7779_v52  ;;  %v7755_v34 = vld [vmem:[%s15238_s2 + $0xb28] sm:$0xf0]  ;;  %v7891_v52 = vld [vmem:[%s15238_s2 + $0xc38] sm:$0xf0] }
 0x220   :  { %5543 = vmatpush.bf16.msra.mxu0 %v7422_v45  ;;  %v7926_v35 = vor.u32 %v9856_v60, %v7923_v1  ;;  %v5337_v56 = vpop.f32.mrf.mxu0  ;;  %v7702_v60 = vor.u32 %v9800_v26, %v7699_v61  ;;  %v7758_v28 = vor.u32 %v9814_v9, %v7755_v34  ;;  %v9810_v26 = vld [vmem:[%s15238_s2 + $0xb04] sm:$0xf]  ;;  %v7739_v61 = vld [vmem:[%s15238_s2 + $0xb08] sm:$0xf0]  ;;  %v7875_v32 = vld [vmem:[%s15238_s2 + $0xc18] sm:$0xf0] }
 0x221   :  { %5556 = vmatpush.bf16.msra.mxu1 %v7486_v22  ;;  %v5338_v51 = vadd.f32 %v5337_v56, %v5325_v27  ;;  %v9846_v27 = vld [vmem:[%s15238_s2 + $0xc24] sm:$0xf] }
 0x222   :  { %5569 = vmatpush.bf16.msra.mxu2 %v7550_v55  ;;  %v7774_v55 = vor.u32 %v9818_v44, %v7771_v46  ;;  %v9828_v44 = vld [vmem:[%s15238_s2 + $0xb94] sm:$0xf]  ;;  %v9826_v56 = vld [vmem:[%s15238_s2 + $0xb84] sm:$0xf] }
 0x223   :  { %5580 = vmatpush.bf16.msrb.mxu3 %v7630_v57  ;;  %5544 = vmatmul.bf16.vlgmr.msra.gmra.mxu0 %v11410_v14  ;;  %v9854_v14 = vld [vmem:[%s15238_s2 + $0xc64] sm:$0xf]  ;;  %v7915_v57 = vld [vmem:[%s15238_s2 + $0xc68] sm:$0xf0] }
 0x224   :  { %5588 = vmatpush.bf16.msrb.mxu0 %v7734_v33  ;;  %5557 = vmatmul.bf16.vlgmr.msra.gmra.mxu1 %v11408_v13  ;;  %v9802_v13 = vld [vmem:[%s15238_s2 + $0xac4] sm:$0xf]  ;;  %v7918_v45 = vor.u32 %v9854_v14, %v7915_v57  ;;  %v7835_v33 = vld [vmem:[%s15238_s2 + $0xbc8] sm:$0xf0]  ;;  %v9796_v14 = vld [vmem:[%s15238_s2 + $0xa94] sm:$0xf] }
 0x225   :  { %5601 = vmatpush.bf16.msrb.mxu1 %v7798_v48  ;;  %5570 = vmatmul.bf16.vlgmr.msra.gmra.mxu2 %v11412_v18  ;;  %v7707_v18 = vld [vmem:[%s15238_s2 + $0xac8] sm:$0xf0]  ;;  %v7910_v48 = vor.u32 %v9852_v20, %v7907_v12  ;;  %v7683_v57 = vld [vmem:[%s15238_s2 + $0xa98] sm:$0xf0]  ;;  %v9794_v12 = vld [vmem:[%s15238_s2 + $0xa84] sm:$0xf] }
 0x226   :  { %5614 = vmatpush.bf16.msrb.mxu2 %v7862_v3  ;;  %v7710_v22 = vor.u32 %v9802_v13, %v7707_v18  ;;  %v5350_v3 = vpop.f32.mrf.mxu1  ;;  %v7686_v20 = vor.u32 %v9796_v14, %v7683_v57  ;;  %v8043_v14 = vld [vmem:[%s15238_s2 + $0xd68] sm:$0xf0]  ;;  %v9902_v57 = vld [vmem:[%s15238_s2 + $0xde4] sm:$0xf] }
 0x227   :  { %5581 = vmatpush.bf16.msrb.mxu3 %v7622_v47  ;;  %v7838_v47 = vor.u32 %v9834_v54, %v7835_v33  ;;  %v5351_v1 = vadd.f32 %v5350_v3, %v5338_v51  ;;  %v7811_v54 = vld [vmem:[%s15238_s2 + $0xb98] sm:$0xf0]  ;;  %v7883_v33 = vld [vmem:[%s15238_s2 + $0xc28] sm:$0xf0] }
 0x228   :  { %5589 = vmatpush.bf16.msrb.mxu0 %v7726_v15  ;;  %v9798_v15 = vld [vmem:[%s15238_s2 + $0xaa4] sm:$0xf]  ;;  %v5363_v37 = vpop.f32.mrf.mxu2  ;;  %v7987_v51 = vld [vmem:[%s15238_s2 + $0xcf8] sm:$0xf0] }
 0x229   :  { %5602 = vmatpush.bf16.msrb.mxu1 %v7790_v29  ;;  %v7830_v29 = vor.u32 %v9832_v49, %v7827_v2  ;;  %v9872_v49 = vld [vmem:[%s15238_s2 + $0xcf4] sm:$0xf] }
 0x22a   :  { %5615 = vmatpush.bf16.msrb.mxu2 %v7854_v59  ;;  %v7819_v59 = vld [vmem:[%s15238_s2 + $0xba8] sm:$0xf0]  ;;  %v9844_v2 = vld [vmem:[%s15238_s2 + $0xc14] sm:$0xf] }
 0x22b   :  { %5582 = vmatpush.bf16.msrb.mxu3 %v7614_v17  ;;  %v7691_v17 = vld [vmem:[%s15238_s2 + $0xaa8] sm:$0xf0]  ;;  %v7822_v13 = vor.u32 %v9830_v0, %v7819_v59  ;;  %v7878_v34 = vor.u32 %v9844_v2, %v7875_v32  ;;  %v9870_v0 = vld [vmem:[%s15238_s2 + $0xce4] sm:$0xf]  ;;  %v9916_v32 = vld [vmem:[%s15238_s2 + $0xe54] sm:$0xf] }
 0x22c   :  { %5590 = vmatpush.bf16.msrb.mxu0 %v7718_v8  ;;  %v7694_v50 = vor.u32 %v9798_v15, %v7691_v17  ;;  %v5364_v8 = vadd.f32 %v5363_v37, %v5351_v1  ;;  %v8051_v1 = vld [vmem:[%s15238_s2 + $0xd78] sm:$0xf0]  ;;  %v7979_v59 = vld [vmem:[%s15238_s2 + $0xce8] sm:$0xf0] }
 0x22d   :  { %5603 = vmatpush.bf16.msrb.mxu1 %v7782_v21  ;;  %v5339_v21 = vpop.f32.mrf.mxu0  ;;  %v8115_v15 = vld [vmem:[%s15238_s2 + $0xdf8] sm:$0xf0]  ;;  %v7867_v37 = vld [vmem:[%s15238_s2 + $0xc08] sm:$0xf0] }
 0x22e   :  { %5583 = vmatmul.bf16.vlgmr.msrb.gmra.mxu3 %v11577_v6  ;;  %5616 = vmatpush.bf16.msrb.mxu2 %v7846_v53  ;;  %v9816_v6 = vld [vmem:[%s15238_s2 + $0xb34] sm:$0xf]  ;;  %v5352_v46 = vpop.f32.mrf.mxu1  ;;  %v7982_v21 = vor.u32 %v9870_v0, %v7979_v59  ;;  %v8083_v0 = vld [vmem:[%s15238_s2 + $0xdb8] sm:$0xf0] }
 0x22f   :  { %5627 = vmatpush.bf16.msra.mxu3 %v7926_v35  ;;  %v7766_v24 = vor.u32 %v9816_v6, %v7763_v58  ;;  %v9848_v35 = vld [vmem:[%s15238_s2 + $0xc34] sm:$0xf]  ;;  %v7886_v6 = vor.u32 %v9846_v27, %v7883_v33  ;;  %v7803_v58 = vld [vmem:[%s15238_s2 + $0xb88] sm:$0xf0]  ;;  %v7971_v46 = vld [vmem:[%s15238_s2 + $0xcd8] sm:$0xf0] }
 0x230   :  { %5591 = vmatpush.bf16.msrb.mxu0 %v7710_v22  ;;  %v7894_v18 = vor.u32 %v9848_v35, %v7891_v52  ;;  %v9812_v53 = vld [vmem:[%s15238_s2 + $0xb14] sm:$0xf]  ;;  %v7675_v22 = vld [vmem:[%s15238_s2 + $0xa88] sm:$0xf0]  ;;  %v5365_v17 = vpop.f32.mrf.mxu2  ;;  %v7806_v9 = vor.u32 %v9826_v56, %v7803_v58  ;;  %v8054_v35 = vor.u32 %v9888_v16, %v8051_v1  ;;  %v8163_v16 = vld [vmem:[%s15238_s2 + $0xe58] sm:$0xf0] }
 0x231   :  { %5604 = vmatpush.bf16.msrb.mxu1 %v7774_v55  ;;  %v9884_v33 = vld [vmem:[%s15238_s2 + $0xd54] sm:$0xf]  ;;  %v7963_v56 = vld [vmem:[%s15238_s2 + $0xcc8] sm:$0xf0]  ;;  %v7955_v1 = vld [vmem:[%s15238_s2 + $0xcb8] sm:$0xf0] }
 0x232   :  { %5617 = vmatpush.bf16.msrb.mxu2 %v7838_v47  ;;  %v5376_v47 = vpop.f32.mrf.mxu3  ;;  %v8027_v58 = vld [vmem:[%s15238_s2 + $0xd48] sm:$0xf0] }
 0x233   :  { %5628 = vmatpush.bf16.msra.mxu3 %v7918_v45  ;;  %v7747_v45 = vld [vmem:[%s15238_s2 + $0xb18] sm:$0xf0]  ;;  %v14010_v3 = vadd.f32 %v5376_v47, %v5364_v8  ;;  %v8107_v8 = vld [vmem:[%s15238_s2 + $0xde8] sm:$0xf0] }
 0x234   :  { %5592 = vmatpush.bf16.msrb.mxu0 %v7702_v60  ;;  %v7750_v55 = vor.u32 %v9812_v53, %v7747_v45  ;;  %v7678_v60 = vor.u32 %v9794_v12, %v7675_v22  ;;  %v8110_v27 = vor.u32 %v9902_v57, %v8107_v8  ;;  %v8035_v12 = vld [vmem:[%s15238_s2 + $0xd58] sm:$0xf0]  ;;  %v9900_v22 = vld [vmem:[%s15238_s2 + $0xdd4] sm:$0xf]  ;;  %v9878_v8 = vld [vmem:[%s15238_s2 + $0xd24] sm:$0xf] }
 0x235   :  { %5605 = vmatpush.bf16.msrb.mxu1 %v7766_v24  ;;  %v9904_v24 = vld [vmem:[%s15238_s2 + $0xdf4] sm:$0xf] }
 0x236   :  { %5618 = vmatpush.bf16.msrb.mxu2 %v7830_v29  ;;  %v7742_v29 = vor.u32 %v9810_v26, %v7739_v61  ;;  %v8118_v52 = vor.u32 %v9904_v24, %v8115_v15  ;;  %v9866_v61 = vld [vmem:[%s15238_s2 + $0xcc4] sm:$0xf]  ;;  %v9880_v15 = vld [vmem:[%s15238_s2 + $0xd34] sm:$0xf] }
 0x237   :  { %5629 = vmatpush.bf16.msra.mxu3 %v7910_v48  ;;  %v7814_v48 = vor.u32 %v9828_v44, %v7811_v54  ;;  %v9868_v44 = vld [vmem:[%s15238_s2 + $0xcd4] sm:$0xf]  ;;  %v7966_v2 = vor.u32 %v9866_v61, %v7963_v56  ;;  %v8003_v61 = vld [vmem:[%s15238_s2 + $0xd18] sm:$0xf0] }
 0x238   :  { %5593 = vmatpush.bf16.msrb.mxu0 %v7694_v50  ;;  %v9842_v50 = vld [vmem:[%s15238_s2 + $0xc04] sm:$0xf]  ;;  %v7974_v26 = vor.u32 %v9868_v44, %v7971_v46  ;;  %v9912_v44 = vld [vmem:[%s15238_s2 + $0xe34] sm:$0xf]  ;;  %v8147_v46 = vld [vmem:[%s15238_s2 + $0xe38] sm:$0xf0] }
 0x239   :  { %5606 = vmatpush.bf16.msrb.mxu1 %v7758_v28  ;;  %v9886_v28 = vld [vmem:[%s15238_s2 + $0xd64] sm:$0xf]  ;;  %v7870_v45 = vor.u32 %v9842_v50, %v7867_v37  ;;  %v8155_v50 = vld [vmem:[%s15238_s2 + $0xe48] sm:$0xf0]  ;;  %v9892_v56 = vld [vmem:[%s15238_s2 + $0xd94] sm:$0xf] }
 0x23a   :  { %5619 = vmatpush.bf16.msrb.mxu2 %v7822_v13  ;;  %v9920_v13 = vld [vmem:[%s15238_s2 + $0xe74] sm:$0xf]  ;;  %v5378_v53 = vpop.f32.mrf.mxu3  ;;  %v8046_v54 = vor.u32 %v9886_v28, %v8043_v14  ;;  %v9862_v28 = vld [vmem:[%s15238_s2 + $0xca4] sm:$0xf]  ;;  %v7947_v14 = vld [vmem:[%s15238_s2 + $0xca8] sm:$0xf0] }
 0x23b   :  { %5630 = vmatpush.bf16.msra.mxu3 %v7902_v30  ;;  %v7990_v30 = vor.u32 %v9872_v49, %v7987_v51  ;;  %v9898_v49 = vld [vmem:[%s15238_s2 + $0xdc4] sm:$0xf]  ;;  %v8091_v51 = vld [vmem:[%s15238_s2 + $0xdc8] sm:$0xf0] }
 0x23c   :  { %5594 = vmatpush.bf16.msrb.mxu0 %v7686_v20  ;;  %v8094_v24 = vor.u32 %v9898_v49, %v8091_v51  ;;  %v8075_v53 = vld [vmem:[%s15238_s2 + $0xda8] sm:$0xf0]  ;;  %v9858_v49 = vld [vmem:[%s15238_s2 + $0xc84] sm:$0xf] }
 0x23d   :  { %5607 = vmatpush.bf16.msrb.mxu1 %v7750_v55  ;;  %v8099_v55 = vld [vmem:[%s15238_s2 + $0xdd8] sm:$0xf0]  ;;  %v7931_v51 = vld [vmem:[%s15238_s2 + $0xc88] sm:$0xf0] }
 0x23e   :  { %5620 = vmatpush.bf16.msrb.mxu2 %v7814_v48  ;;  %v8102_v47 = vor.u32 %v9900_v22, %v8099_v55  ;;  %v9882_v48 = vld [vmem:[%s15238_s2 + $0xd44] sm:$0xf]  ;;  %v9876_v55 = vld [vmem:[%s15238_s2 + $0xd14] sm:$0xf] }
 0x23f   :  { %5631 = vmatpush.bf16.msra.mxu3 %v7894_v18  ;;  %v8179_v18 = vld [vmem:[%s15238_s2 + $0xe78] sm:$0xf0] }
 0x240   :  { %5595 = vmatpush.bf16.msrb.mxu0 %v7678_v60  ;;  %v8182_v20 = vor.u32 %v9920_v13, %v8179_v18  ;;  %v9864_v60 = vld [vmem:[%s15238_s2 + $0xcb4] sm:$0xf]  ;;  %v5389_v17 = vpop.f32.mrf.mxu0  ;;  %v8011_v13 = vld [vmem:[%s15238_s2 + $0xd28] sm:$0xf0]  ;;  %v9894_v18 = vld [vmem:[%s15238_s2 + $0xda4] sm:$0xf] }
 0x241   :  { %5608 = vmatpush.bf16.msrb.mxu1 %v7742_v29  ;;  %v5402_v29 = vpop.f32.mrf.mxu1  ;;  %v5390_v59 = vadd.f32 %v5389_v17, %v14010_v3  ;;  %v9890_v17 = vld [vmem:[%s15238_s2 + $0xd84] sm:$0xf] }
 0x242   :  { %5621 = vmatpush.bf16.msrb.mxu2 %v7806_v9  ;;  %v8019_v9 = vld [vmem:[%s15238_s2 + $0xd38] sm:$0xf0] }
 0x243   :  { %5632 = vmatpush.bf16.msra.mxu3 %v7886_v6  ;;  %5596 = vmatmul.bf16.vlgmr.msrb.gmra.mxu0 %v11581_v11  ;;  %v8171_v11 = vld [vmem:[%s15238_s2 + $0xe68] sm:$0xf0]  ;;  %v5403_v37 = vadd.f32 %v5402_v29, %v5390_v59  ;;  %v8022_v3 = vor.u32 %v9880_v15, %v8019_v9  ;;  %v7934_v9 = vor.u32 %v9858_v49, %v7931_v51  ;;  %v8307_v59 = vld [vmem:[%s15238_s2 + $0xf78] sm:$0xf0] }
 0x244   :  { %5640 = vmatpush.bf16.msra.mxu0 %v7990_v30  ;;  %5609 = vmatmul.bf16.vlgmr.msrb.gmra.mxu1 %v11579_v7  ;;  %v9918_v7 = vld [vmem:[%s15238_s2 + $0xe64] sm:$0xf]  ;;  %v8166_v30 = vor.u32 %v9916_v32, %v8163_v16  ;;  %v8006_v16 = vor.u32 %v9876_v55, %v8003_v61  ;;  %v8059_v29 = vld [vmem:[%s15238_s2 + $0xd88] sm:$0xf0] }
 0x245   :  { %5653 = vmatpush.bf16.msra.mxu1 %v8054_v35  ;;  %5622 = vmatmul.bf16.vlgmr.msrb.gmra.mxu2 %v11583_v19  ;;  %v8038_v19 = vor.u32 %v9884_v33, %v8035_v12  ;;  %v8174_v6 = vor.u32 %v9918_v7, %v8171_v11  ;;  %v7958_v35 = vor.u32 %v9864_v60, %v7955_v1  ;;  %v7939_v33 = vld [vmem:[%s15238_s2 + $0xc98] sm:$0xf0]  ;;  %v7995_v1 = vld [vmem:[%s15238_s2 + $0xd08] sm:$0xf0] }
 0x246   :  { %5666 = vmatpush.bf16.msra.mxu2 %v8118_v52  ;;  %v9914_v52 = vld [vmem:[%s15238_s2 + $0xe44] sm:$0xf]  ;;  %v8078_v12 = vor.u32 %v9894_v18, %v8075_v53  ;;  %v8150_v11 = vor.u32 %v9912_v44, %v8147_v46  ;;  %v8235_v18 = vld [vmem:[%s15238_s2 + $0xee8] sm:$0xf0] }
 0x247   :  { %5633 = vmatpush.bf16.msra.mxu3 %v7878_v34  ;;  %v9896_v34 = vld [vmem:[%s15238_s2 + $0xdb4] sm:$0xf]  ;;  %v8299_v44 = vld [vmem:[%s15238_s2 + $0xf68] sm:$0xf0]  ;;  %v9966_v46 = vld [vmem:[%s15238_s2 + $0xfe4] sm:$0xf] }
 0x248   :  { %5641 = vmatpush.bf16.msra.mxu0 %v7982_v21  ;;  %v8086_v57 = vor.u32 %v9896_v34, %v8083_v0  ;;  %v8158_v21 = vor.u32 %v9914_v52, %v8155_v50  ;;  %v8131_v34 = vld [vmem:[%s15238_s2 + $0xe18] sm:$0xf0]  ;;  %v9952_v0 = vld [vmem:[%s15238_s2 + $0xf74] sm:$0xf] }
 0x249   :  { %5654 = vmatpush.bf16.msra.mxu1 %v8046_v54  ;;  %v5415_v54 = vpop.f32.mrf.mxu2  ;;  %v5404_v7 = vpop.f32.mrf.mxu1  ;;  %v9968_v52 = vld [vmem:[%s15238_s2 + $0xff4] sm:$0xf]  ;;  %v8371_v50 = vld [vmem:[%s15238_s2 + $0xff8] sm:$0xf0] }
 0x24a   :  { %5667 = vmatpush.bf16.msra.mxu2 %v8110_v27  ;;  %v9860_v27 = vld [vmem:[%s15238_s2 + $0xc94] sm:$0xf]  ;;  %v5416_v22 = vadd.f32 %v5415_v54, %v5403_v37  ;;  %v8374_v53 = vor.u32 %v9968_v52, %v8371_v50  ;;  %v8363_v54 = vld [vmem:[%s15238_s2 + $0xfe8] sm:$0xf0]  ;;  %v8227_v7 = vld [vmem:[%s15238_s2 + $0xed8] sm:$0xf0] }
 0x24b   :  { %5634 = vmatpush.bf16.msra.mxu3 %v7870_v45  ;;  %v7950_v45 = vor.u32 %v9862_v28, %v7947_v14  ;;  %v8062_v14 = vor.u32 %v9890_v17, %v8059_v29  ;;  %v9944_v52 = vld [vmem:[%s15238_s2 + $0xf34] sm:$0xf]  ;;  %v8275_v50 = vld [vmem:[%s15238_s2 + $0xf38] sm:$0xf0] }
 0x24c   :  { %5642 = vmatpush.bf16.msra.mxu0 %v7974_v26  ;;  %v5391_v26 = vpop.f32.mrf.mxu0 }
 0x24d   :  { %5655 = vmatpush.bf16.msra.mxu1 %v8038_v19  ;;  %v8067_v19 = vld [vmem:[%s15238_s2 + $0xd98] sm:$0xf0]  ;;  %v9932_v26 = vld [vmem:[%s15238_s2 + $0xed4] sm:$0xf] }
 0x24e   :  { %5635 = vmatmul.bf16.vlgmr.msra.gmra.mxu3 %v11819_v38  ;;  %5668 = vmatpush.bf16.msra.mxu2 %v8102_v47  ;;  %v8030_v38 = vor.u32 %v9882_v48, %v8027_v58  ;;  %v7942_v47 = vor.u32 %v9860_v27, %v7939_v33  ;;  %v9910_v48 = vld [vmem:[%s15238_s2 + $0xe24] sm:$0xf]  ;;  %v8070_v60 = vor.u32 %v9892_v56, %v8067_v19  ;;  %v9984_v27 = vld [vmem:[%s15238_s2 + $0x1074] sm:$0xf]  ;;  %v8435_v33 = vld [vmem:[%s15238_s2 + $0x1078] sm:$0xf0] }
 0x24f   :  { %5679 = vmatpush.bf16.msrb.mxu3 %v8182_v20  ;;  %v8014_v20 = vor.u32 %v9878_v8, %v8011_v13  ;;  %v8310_v8 = vor.u32 %v9952_v0, %v8307_v59  ;;  %v9934_v13 = vld [vmem:[%s15238_s2 + $0xee4] sm:$0xf]  ;;  %v8438_v61 = vor.u32 %v9984_v27, %v8435_v33  ;;  %v9948_v56 = vld [vmem:[%s15238_s2 + $0xf54] sm:$0xf]  ;;  %v8291_v19 = vld [vmem:[%s15238_s2 + $0xf58] sm:$0xf0] }
 0x250   :  { %5643 = vmatpush.bf16.msra.mxu0 %v7966_v2  ;;  %v9874_v2 = vld [vmem:[%s15238_s2 + $0xd04] sm:$0xf]  ;;  %v8294_v49 = vor.u32 %v9948_v56, %v8291_v19  ;;  %v9976_v27 = vld [vmem:[%s15238_s2 + $0x1034] sm:$0xf]  ;;  %v8403_v33 = vld [vmem:[%s15238_s2 + $0x1038] sm:$0xf0] }
 0x251   :  { %5656 = vmatpush.bf16.msra.mxu1 %v8030_v38  ;;  %v5428_v58 = vpop.f32.mrf.mxu3  ;;  %v9936_v38 = vld [vmem:[%s15238_s2 + $0xef4] sm:$0xf]  ;;  %v5417_v37 = vpop.f32.mrf.mxu2  ;;  %v7998_v28 = vor.u32 %v9874_v2, %v7995_v1  ;;  %v9962_v1 = vld [vmem:[%s15238_s2 + $0xfc4] sm:$0xf]  ;;  %v8406_v56 = vor.u32 %v9976_v27, %v8403_v33 }
 0x252   :  { %5669 = vmatpush.bf16.msra.mxu2 %v8094_v24  ;;  %v14194_v32 = vadd.f32 %v5428_v58, %v5416_v22  ;;  %v8243_v24 = vld [vmem:[%s15238_s2 + $0xef8] sm:$0xf0]  ;;  %v8230_v58 = vor.u32 %v9932_v26, %v8227_v7  ;;  %v9960_v37 = vld [vmem:[%s15238_s2 + $0xfb4] sm:$0xf] }
 0x253   :  { %5680 = vmatpush.bf16.msrb.mxu3 %v8174_v6  ;;  %v8139_v6 = vld [vmem:[%s15238_s2 + $0xe28] sm:$0xf0]  ;;  %v9924_v26 = vld [vmem:[%s15238_s2 + $0xe94] sm:$0xf]  ;;  %v8195_v7 = vld [vmem:[%s15238_s2 + $0xe98] sm:$0xf0] }
 0x254   :  { %5644 = vmatpush.bf16.msra.mxu0 %v7958_v35  ;;  %v8142_v15 = vor.u32 %v9910_v48, %v8139_v6  ;;  %v8246_v35 = vor.u32 %v9936_v38, %v8243_v24  ;;  %v9982_v48 = vld [vmem:[%s15238_s2 + $0x1064] sm:$0xf]  ;;  %v8427_v6 = vld [vmem:[%s15238_s2 + $0x1068] sm:$0xf0]  ;;  %v9980_v24 = vld [vmem:[%s15238_s2 + $0x1054] sm:$0xf] }
 0x255   :  { %5657 = vmatpush.bf16.msra.mxu1 %v8022_v3  ;;  %v9906_v3 = vld [vmem:[%s15238_s2 + $0xe04] sm:$0xf]  ;;  %v8430_v2 = vor.u32 %v9982_v48, %v8427_v6  ;;  %v8347_v38 = vld [vmem:[%s15238_s2 + $0xfc8] sm:$0xf0]  ;;  %v9940_v19 = vld [vmem:[%s15238_s2 + $0xf14] sm:$0xf] }
 0x256   :  { %5670 = vmatpush.bf16.msra.mxu2 %v8086_v57  ;;  %v8350_v59 = vor.u32 %v9962_v1, %v8347_v38  ;;  %v8323_v6 = vld [vmem:[%s15238_s2 + $0xf98] sm:$0xf0]  ;;  %v8251_v1 = vld [vmem:[%s15238_s2 + $0xf08] sm:$0xf0]  ;;  %v9954_v38 = vld [vmem:[%s15238_s2 + $0xf84] sm:$0xf] }
 0x257   :  { %5681 = vmatpush.bf16.msrb.mxu3 %v8166_v30  ;;  %v9908_v30 = vld [vmem:[%s15238_s2 + $0xe14] sm:$0xf] }
 0x258   :  { %5645 = vmatpush.bf16.msra.mxu0 %v7950_v45  ;;  %v8134_v57 = vor.u32 %v9908_v30, %v8131_v34  ;;  %v9950_v45 = vld [vmem:[%s15238_s2 + $0xf64] sm:$0xf]  ;;  %v8211_v34 = vld [vmem:[%s15238_s2 + $0xeb8] sm:$0xf0]  ;;  %v10048_v33 = vld [vmem:[%s15238_s2 + $0x1274] sm:$0xf] }
 0x259   :  { %5658 = vmatpush.bf16.msra.mxu1 %v8014_v20  ;;  %v5430_v20 = vpop.f32.mrf.mxu3  ;;  %v8302_v55 = vor.u32 %v9950_v45, %v8299_v44  ;;  %v9942_v45 = vld [vmem:[%s15238_s2 + $0xf24] sm:$0xf]  ;;  %v8267_v44 = vld [vmem:[%s15238_s2 + $0xf28] sm:$0xf0] }
 0x25a   :  { %5671 = vmatpush.bf16.msra.mxu2 %v8078_v12  ;;  %v8238_v12 = vor.u32 %v9934_v13, %v8235_v18  ;;  %v8203_v13 = vld [vmem:[%s15238_s2 + $0xea8] sm:$0xf0] }
 0x25b   :  { %5682 = vmatpush.bf16.msrb.mxu3 %v8158_v21  ;;  %v8123_v21 = vld [vmem:[%s15238_s2 + $0xe08] sm:$0xf0] }
 0x25c   :  { %5646 = vmatpush.bf16.msra.mxu0 %v7942_v47  ;;  %v8126_v22 = vor.u32 %v9906_v3, %v8123_v21  ;;  %v9964_v47 = vld [vmem:[%s15238_s2 + $0xfd4] sm:$0xf]  ;;  %v9926_v21 = vld [vmem:[%s15238_s2 + $0xea4] sm:$0xf] }
 0x25d   :  { %5659 = vmatpush.bf16.msra.mxu1 %v8006_v16  ;;  %v9946_v16 = vld [vmem:[%s15238_s2 + $0xf44] sm:$0xf] }
 0x25e   :  { %5672 = vmatpush.bf16.msra.mxu2 %v8070_v60  ;;  %v8283_v60 = vld [vmem:[%s15238_s2 + $0xf48] sm:$0xf0] }
 0x25f   :  { %5683 = vmatpush.bf16.msrb.mxu3 %v8150_v11  ;;  %v8366_v11 = vor.u32 %v9966_v46, %v8363_v54  ;;  %v8286_v30 = vor.u32 %v9946_v16, %v8283_v60  ;;  %v9958_v46 = vld [vmem:[%s15238_s2 + $0xfa4] sm:$0xf]  ;;  %v8331_v54 = vld [vmem:[%s15238_s2 + $0xfa8] sm:$0xf0] }
 0x260   :  { %5647 = vmatpush.bf16.msra.mxu0 %v7934_v9  ;;  %v5441_v29 = vpop.f32.mrf.mxu0  ;;  %v9928_v9 = vld [vmem:[%s15238_s2 + $0xeb4] sm:$0xf]  ;;  %v9938_v60 = vld [vmem:[%s15238_s2 + $0xf04] sm:$0xf] }
 0x261   :  { %5660 = vmatpush.bf16.msra.mxu1 %v7998_v28  ;;  %v5442_v0 = vadd.f32 %v5441_v29, %v14194_v32  ;;  %v8339_v28 = vld [vmem:[%s15238_s2 + $0xfb8] sm:$0xf0]  ;;  %v9978_v32 = vld [vmem:[%s15238_s2 + $0x1044] sm:$0xf]  ;;  %v8315_v29 = vld [vmem:[%s15238_s2 + $0xf88] sm:$0xf0] }
 0x262   :  { %5673 = vmatpush.bf16.msra.mxu2 %v8062_v14  ;;  %v8411_v14 = vld [vmem:[%s15238_s2 + $0x1048] sm:$0xf0]  ;;  %v8342_v18 = vor.u32 %v9960_v37, %v8339_v28  ;;  %v8254_v28 = vor.u32 %v9938_v60, %v8251_v1  ;;  %v10044_v1 = vld [vmem:[%s15238_s2 + $0x1254] sm:$0xf] }
 0x263   :  { %5684 = vmatpush.bf16.msrb.mxu3 %v8142_v15  ;;  %5648 = vmatmul.bf16.vlgmr.msra.gmra.mxu0 %v11829_v42  ;;  %v8355_v42 = vld [vmem:[%s15238_s2 + $0xfd8] sm:$0xf0] }
 0x264   :  { %5692 = vmatpush.bf16.msrb.mxu0 %v8246_v35  ;;  %5661 = vmatmul.bf16.vlgmr.msra.gmra.mxu1 %v11827_v41  ;;  %v9930_v41 = vld [vmem:[%s15238_s2 + $0xec4] sm:$0xf]  ;;  %v8358_v51 = vor.u32 %v9964_v47, %v8355_v42  ;;  %v8419_v15 = vld [vmem:[%s15238_s2 + $0x1058] sm:$0xf0]  ;;  %v5454_v35 = vpop.f32.mrf.mxu1  ;;  %v9956_v42 = vld [vmem:[%s15238_s2 + $0xf94] sm:$0xf] }
 0x265   :  { %5705 = vmatpush.bf16.msrb.mxu1 %v8310_v8  ;;  %5674 = vmatmul.bf16.vlgmr.msra.gmra.mxu2 %v11831_v43  ;;  %v8219_v43 = vld [vmem:[%s15238_s2 + $0xec8] sm:$0xf0]  ;;  %v5455_v3 = vadd.f32 %v5454_v35, %v5442_v0  ;;  %v8278_v8 = vor.u32 %v9944_v52, %v8275_v50  ;;  %v8259_v47 = vld [vmem:[%s15238_s2 + $0xf18] sm:$0xf0]  ;;  %v10032_v52 = vld [vmem:[%s15238_s2 + $0x11f4] sm:$0xf] }
 0x266   :  { %5718 = vmatpush.bf16.msrb.mxu2 %v8374_v53  ;;  %v8222_v17 = vor.u32 %v9930_v41, %v8219_v43  ;;  %v8414_v53 = vor.u32 %v9978_v32, %v8411_v14  ;;  %v8198_v41 = vor.u32 %v9924_v26, %v8195_v7  ;;  %v9922_v43 = vld [vmem:[%s15238_s2 + $0xe84] sm:$0xf]  ;;  %v8262_v16 = vor.u32 %v9940_v19, %v8259_v47  ;;  %v8387_v0 = vld [vmem:[%s15238_s2 + $0x1018] sm:$0xf0]  ;;  %v10028_v47 = vld [vmem:[%s15238_s2 + $0x11d4] sm:$0xf] }
 0x267   :  { %5685 = vmatpush.bf16.msrb.mxu3 %v8134_v57  ;;  %v8214_v57 = vor.u32 %v9928_v9, %v8211_v34  ;;  %v8499_v9 = vld [vmem:[%s15238_s2 + $0x10f8] sm:$0xf0]  ;;  %v9972_v34 = vld [vmem:[%s15238_s2 + $0x1014] sm:$0xf]  ;;  %v8318_v14 = vor.u32 %v9954_v38, %v8315_v29 }
 0x268   :  { %5693 = vmatpush.bf16.msrb.mxu0 %v8238_v12  ;;  %v5467_v20 = vpop.f32.mrf.mxu2  ;;  %v8206_v12 = vor.u32 %v9926_v21, %v8203_v13  ;;  %v8627_v50 = vld [vmem:[%s15238_s2 + $0x11f8] sm:$0xf0] }
 0x269   :  { %5706 = vmatpush.bf16.msrb.mxu1 %v8302_v55  ;;  %v8270_v55 = vor.u32 %v9942_v45, %v8267_v44  ;;  %v8630_v13 = vor.u32 %v10032_v52, %v8627_v50  ;;  %v10014_v45 = vld [vmem:[%s15238_s2 + $0x1164] sm:$0xf]  ;;  %v8555_v44 = vld [vmem:[%s15238_s2 + $0x1168] sm:$0xf0]  ;;  %v8483_v26 = vld [vmem:[%s15238_s2 + $0x10d8] sm:$0xf0] }
 0x26a   :  { %5719 = vmatpush.bf16.msrb.mxu2 %v8366_v11  ;;  %v5443_v11 = vpop.f32.mrf.mxu0  ;;  %v8558_v7 = vor.u32 %v10014_v45, %v8555_v44  ;;  %v8547_v19 = vld [vmem:[%s15238_s2 + $0x1158] sm:$0xf0]  ;;  %v10040_v44 = vld [vmem:[%s15238_s2 + $0x1234] sm:$0xf] }
 0x26b   :  { %5686 = vmatpush.bf16.msrb.mxu3 %v8126_v22  ;;  %v5468_v22 = vadd.f32 %v5467_v20, %v5455_v3  ;;  %v8390_v3 = vor.u32 %v9972_v34, %v8387_v0  ;;  %v8691_v20 = vld [vmem:[%s15238_s2 + $0x1278] sm:$0xf0]  ;;  %v10008_v34 = vld [vmem:[%s15238_s2 + $0x1134] sm:$0xf] }
 0x26c   :  { %5694 = vmatpush.bf16.msrb.mxu0 %v8230_v58  ;;  %v5456_v48 = vpop.f32.mrf.mxu1  ;;  %v9974_v58 = vld [vmem:[%s15238_s2 + $0x1024] sm:$0xf]  ;;  %v8675_v38 = vld [vmem:[%s15238_s2 + $0x1258] sm:$0xf0] }
 0x26d   :  { %5707 = vmatpush.bf16.msrb.mxu1 %v8294_v49  ;;  %v8395_v49 = vld [vmem:[%s15238_s2 + $0x1028] sm:$0xf0]  ;;  %v8595_v52 = vld [vmem:[%s15238_s2 + $0x11b8] sm:$0xf0] }
 0x26e   :  { %5687 = vmatmul.bf16.vlgmr.msrb.gmra.mxu3 %v11996_v62  ;;  %5720 = vmatpush.bf16.msrb.mxu2 %v8358_v51  ;;  %v8422_v62 = vor.u32 %v9980_v24, %v8419_v15  ;;  %v8187_v51 = vld [vmem:[%s15238_s2 + $0xe88] sm:$0xf0]  ;;  %v8326_v15 = vor.u32 %v9956_v42, %v8323_v6  ;;  %v8611_v42 = vld [vmem:[%s15238_s2 + $0x11d8] sm:$0xf0]  ;;  %v9994_v6 = vld [vmem:[%s15238_s2 + $0x10c4] sm:$0xf] }
 0x26f   :  { %5731 = vmatpush.bf16.msra.mxu3 %v8438_v61  ;;  %v8334_v61 = vor.u32 %v9958_v46, %v8331_v54  ;;  %v8190_v35 = vor.u32 %v9922_v43, %v8187_v51  ;;  %v10030_v46 = vld [vmem:[%s15238_s2 + $0x11e4] sm:$0xf]  ;;  %v8619_v54 = vld [vmem:[%s15238_s2 + $0x11e8] sm:$0xf0] }
 0x270   :  { %5695 = vmatpush.bf16.msrb.mxu0 %v8222_v17  ;;  %v8398_v17 = vor.u32 %v9974_v58, %v8395_v49  ;;  %v5469_v37 = vpop.f32.mrf.mxu2  ;;  %v8622_v11 = vor.u32 %v10030_v46, %v8619_v54  ;;  %v8475_v58 = vld [vmem:[%s15238_s2 + $0x10c8] sm:$0xf0]  ;;  %v8614_v49 = vor.u32 %v10028_v47, %v8611_v42  ;;  %v8659_v46 = vld [vmem:[%s15238_s2 + $0x1238] sm:$0xf0]  ;;  %v10038_v42 = vld [vmem:[%s15238_s2 + $0x1224] sm:$0xf] }
 0x271   :  { %5708 = vmatpush.bf16.msrb.mxu1 %v8286_v30  ;;  %v10000_v30 = vld [vmem:[%s15238_s2 + $0x10f4] sm:$0xf]  ;;  %v8539_v51 = vld [vmem:[%s15238_s2 + $0x1148] sm:$0xf0]  ;;  %v8478_v60 = vor.u32 %v9994_v6, %v8475_v58  ;;  %v10042_v37 = vld [vmem:[%s15238_s2 + $0x1244] sm:$0xf] }
 0x272   :  { %5721 = vmatpush.bf16.msrb.mxu2 %v8350_v59  ;;  %v10016_v59 = vld [vmem:[%s15238_s2 + $0x1174] sm:$0xf]  ;;  %v8502_v32 = vor.u32 %v10000_v30, %v8499_v9  ;;  %v8443_v6 = vld [vmem:[%s15238_s2 + $0x1088] sm:$0xf0]  ;;  %v10002_v58 = vld [vmem:[%s15238_s2 + $0x1104] sm:$0xf] }
 0x273   :  { %5732 = vmatpush.bf16.msra.mxu3 %v8430_v2  ;;  %v5480_v2 = vpop.f32.mrf.mxu3 }
 0x274   :  { %5696 = vmatpush.bf16.msrb.mxu0 %v8214_v57  ;;  %v14399_v24 = vadd.f32 %v5480_v2, %v5468_v22  ;;  %v9998_v57 = vld [vmem:[%s15238_s2 + $0x10e4] sm:$0xf] }
 0x275   :  { %5709 = vmatpush.bf16.msrb.mxu1 %v8278_v8  ;;  %v8491_v8 = vld [vmem:[%s15238_s2 + $0x10e8] sm:$0xf0]  ;;  %v10026_v2 = vld [vmem:[%s15238_s2 + $0x11c4] sm:$0xf] }
 0x276   :  { %5722 = vmatpush.bf16.msrb.mxu2 %v8342_v18  ;;  %v9970_v18 = vld [vmem:[%s15238_s2 + $0x1004] sm:$0xf]  ;;  %v8494_v27 = vor.u32 %v9998_v57, %v8491_v8 }
 0x277   :  { %5733 = vmatpush.bf16.msra.mxu3 %v8422_v62  ;;  %v8563_v62 = vld [vmem:[%s15238_s2 + $0x1178] sm:$0xf0]  ;;  %v10006_v8 = vld [vmem:[%s15238_s2 + $0x1124] sm:$0xf] }
 0x278   :  { %5697 = vmatpush.bf16.msrb.mxu0 %v8206_v12  ;;  %v8566_v21 = vor.u32 %v10016_v59, %v8563_v62  ;;  %v8678_v59 = vor.u32 %v10044_v1, %v8675_v38  ;;  %v10024_v62 = vld [vmem:[%s15238_s2 + $0x11b4] sm:$0xf]  ;;  %v8571_v1 = vld [vmem:[%s15238_s2 + $0x1188] sm:$0xf0] }
 0x279   :  { %5710 = vmatpush.bf16.msrb.mxu1 %v8270_v55  ;;  %v9996_v55 = vld [vmem:[%s15238_s2 + $0x10d4] sm:$0xf]  ;;  %v8598_v57 = vor.u32 %v10024_v62, %v8595_v52  ;;  %v10034_v62 = vld [vmem:[%s15238_s2 + $0x1204] sm:$0xf] }
 0x27a   :  { %5723 = vmatpush.bf16.msrb.mxu2 %v8334_v61  ;;  %v10012_v61 = vld [vmem:[%s15238_s2 + $0x1154] sm:$0xf]  ;;  %v8486_v48 = vor.u32 %v9996_v55, %v8483_v26 }
 0x27b   :  { %5734 = vmatpush.bf16.msra.mxu3 %v8414_v53  ;;  %v8379_v53 = vld [vmem:[%s15238_s2 + $0x1008] sm:$0xf0]  ;;  %v5482_v12 = vpop.f32.mrf.mxu3  ;;  %v10004_v55 = vld [vmem:[%s15238_s2 + $0x1114] sm:$0xf] }
 0x27c   :  { %5698 = vmatpush.bf16.msrb.mxu0 %v8198_v41  ;;  %v8382_v22 = vor.u32 %v9970_v18, %v8379_v53  ;;  %v10010_v41 = vld [vmem:[%s15238_s2 + $0x1144] sm:$0xf]  ;;  %v8587_v53 = vld [vmem:[%s15238_s2 + $0x11a8] sm:$0xf0]  ;;  %v10036_v38 = vld [vmem:[%s15238_s2 + $0x1214] sm:$0xf] }
 0x27d   :  { %5711 = vmatpush.bf16.msrb.mxu1 %v8262_v16  ;;  %v8603_v16 = vld [vmem:[%s15238_s2 + $0x11c8] sm:$0xf0]  ;;  %v8542_v29 = vor.u32 %v10010_v41, %v8539_v51  ;;  %v10022_v18 = vld [vmem:[%s15238_s2 + $0x11a4] sm:$0xf]  ;;  %v10064_v51 = vld [vmem:[%s15238_s2 + $0x12f4] sm:$0xf] }
 0x27e   :  { %5724 = vmatpush.bf16.msrb.mxu2 %v8326_v15  ;;  %v9992_v15 = vld [vmem:[%s15238_s2 + $0x10b4] sm:$0xf]  ;;  %v8606_v30 = vor.u32 %v10026_v2, %v8603_v16  ;;  %v8755_v2 = vld [vmem:[%s15238_s2 + $0x12f8] sm:$0xf0] }
 0x27f   :  { %5735 = vmatpush.bf16.msra.mxu3 %v8406_v56  ;;  %v8694_v56 = vor.u32 %v10048_v33, %v8691_v20  ;;  %v8451_v33 = vld [vmem:[%s15238_s2 + $0x1098] sm:$0xf0] }
 0x280   :  { %5699 = vmatpush.bf16.msrb.mxu0 %v8190_v35  ;;  %v8531_v35 = vld [vmem:[%s15238_s2 + $0x1138] sm:$0xf0] }
 0x281   :  { %5712 = vmatpush.bf16.msrb.mxu1 %v8254_v28  ;;  %v5506_v9 = vpop.f32.mrf.mxu1 }
 0x282   :  { %5725 = vmatpush.bf16.msrb.mxu2 %v8318_v14  ;;  %v8459_v14 = vld [vmem:[%s15238_s2 + $0x10a8] sm:$0xf0] }
 0x283   :  { %5736 = vmatpush.bf16.msra.mxu3 %v8398_v17  ;;  %5700 = vmatmul.bf16.vlgmr.msrb.gmra.mxu0 %v12000_v4  ;;  %v8683_v4 = vld [vmem:[%s15238_s2 + $0x1268] sm:$0xf0]  ;;  %v8467_v17 = vld [vmem:[%s15238_s2 + $0x10b8] sm:$0xf0] }
 0x284   :  { %5744 = vmatpush.bf16.msra.mxu0 %v8502_v32  ;;  %5713 = vmatmul.bf16.vlgmr.msrb.gmra.mxu1 %v11998_v63  ;;  %v10046_v63 = vld [vmem:[%s15238_s2 + $0x1264] sm:$0xf]  ;;  %v8470_v50 = vor.u32 %v9992_v15, %v8467_v17  ;;  %v8643_v17 = vld [vmem:[%s15238_s2 + $0x1218] sm:$0xf0] }
 0x285   :  { %5757 = vmatpush.bf16.msra.mxu1 %v8566_v21  ;;  %5726 = vmatmul.bf16.vlgmr.msrb.gmra.mxu2 %v12002_v5  ;;  %v8550_v5 = vor.u32 %v10012_v61, %v8547_v19  ;;  %v8686_v43 = vor.u32 %v10046_v63, %v8683_v4  ;;  %v9990_v32 = vld [vmem:[%s15238_s2 + $0x10a4] sm:$0xf]  ;;  %v8515_v61 = vld [vmem:[%s15238_s2 + $0x1118] sm:$0xf0]  ;;  %v8646_v52 = vor.u32 %v10036_v38, %v8643_v17  ;;  %v10072_v17 = vld [vmem:[%s15238_s2 + $0x1334] sm:$0xf] }
 0x286   :  { %5770 = vmatpush.bf16.msra.mxu2 %v8630_v13  ;;  %v8523_v13 = vld [vmem:[%s15238_s2 + $0x1128] sm:$0xf0]  ;;  %v8462_v45 = vor.u32 %v9990_v32, %v8459_v14  ;;  %v8579_v19 = vld [vmem:[%s15238_s2 + $0x1198] sm:$0xf0]  ;;  %v9986_v4 = vld [vmem:[%s15238_s2 + $0x1084] sm:$0xf] }
 0x287   :  { %5737 = vmatpush.bf16.msra.mxu3 %v8390_v3  ;;  %v8534_v3 = vor.u32 %v10008_v34, %v8531_v35  ;;  %v8526_v12 = vor.u32 %v10006_v8, %v8523_v13  ;;  %v8446_v15 = vor.u32 %v9986_v4, %v8443_v6  ;;  %v8883_v34 = vld [vmem:[%s15238_s2 + $0x13f8] sm:$0xf0]  ;;  %v10078_v14 = vld [vmem:[%s15238_s2 + $0x1364] sm:$0xf]  ;;  %v8875_v8 = vld [vmem:[%s15238_s2 + $0x13e8] sm:$0xf0] }
 0x288   :  { %5745 = vmatpush.bf16.msra.mxu0 %v8494_v27  ;;  %v5519_v54 = vpop.f32.mrf.mxu2  ;;  %v9988_v27 = vld [vmem:[%s15238_s2 + $0x1094] sm:$0xf]  ;;  %v8947_v13 = vld [vmem:[%s15238_s2 + $0x1478] sm:$0xf0]  ;;  %v8795_v4 = vld [vmem:[%s15238_s2 + $0x1348] sm:$0xf0] }
 0x289   :  { %5758 = vmatpush.bf16.msra.mxu1 %v8558_v7  ;;  %v5508_v7 = vpop.f32.mrf.mxu1  ;;  %v8454_v47 = vor.u32 %v9988_v27, %v8451_v33  ;;  %v10090_v6 = vld [vmem:[%s15238_s2 + $0x13c4] sm:$0xf] }
 0x28a   :  { %5771 = vmatpush.bf16.msra.mxu2 %v8622_v11  ;;  %v8662_v11 = vor.u32 %v10040_v44, %v8659_v46  ;;  %v10060_v46 = vld [vmem:[%s15238_s2 + $0x12d4] sm:$0xf]  ;;  %v10110_v7 = vld [vmem:[%s15238_s2 + $0x1464] sm:$0xf] }
 0x28b   :  { %5738 = vmatpush.bf16.msra.mxu3 %v8382_v22  ;;  %v8590_v22 = vor.u32 %v10022_v18, %v8587_v53 }
 0x28c   :  { %5746 = vmatpush.bf16.msra.mxu0 %v8486_v48  ;;  %v8651_v48 = vld [vmem:[%s15238_s2 + $0x1228] sm:$0xf0] }
 0x28d   :  { %5759 = vmatpush.bf16.msra.mxu1 %v8550_v5  ;;  %v8654_v16 = vor.u32 %v10038_v42, %v8651_v48 }
 0x28e   :  { %5739 = vmatmul.bf16.vlgmr.msra.gmra.mxu3 %v12236_v23  ;;  %5772 = vmatpush.bf16.msra.mxu2 %v8614_v49  ;;  %v5493_v23 = vpop.f32.mrf.mxu0  ;;  %v8518_v49 = vor.u32 %v10004_v55, %v8515_v61  ;;  %v15250_v55 = vld [vmem:[#allocation6_spill] sm:$0xff] }
 0x28f   :  { %5783 = vmatpush.bf16.msrb.mxu3 %v8694_v56  ;;  %v5494_v0 = vadd.f32 %v5493_v23, %v14399_v24  ;;  %v8667_v24 = vld [vmem:[%s15238_s2 + $0x1248] sm:$0xf0]  ;;  %v10020_v56 = vld [vmem:[%s15238_s2 + $0x1194] sm:$0xf] }
 0x290   :  { %5747 = vmatpush.bf16.msra.mxu0 %v8478_v60  ;;  %v8670_v21 = vor.u32 %v10042_v37, %v8667_v24  ;;  %v8582_v41 = vor.u32 %v10020_v56, %v8579_v19  ;;  %v10018_v60 = vld [vmem:[%s15238_s2 + $0x1184] sm:$0xf]  ;;  %v10080_v23 = vld [vmem:[%s15238_s2 + $0x1374] sm:$0xf]  ;;  %v8635_v37 = vld [vmem:[%s15238_s2 + $0x1208] sm:$0xf0] }
 0x291   :  { %v5507_v28 = vadd.f32 %v5506_v9, %v5494_v0  ;;  %5760 = vmatpush.bf16.msra.mxu1 %v8542_v29  ;;  %v5532_v63 = vpop.f32.mrf.mxu3  ;;  %v8819_v29 = vld [vmem:[%s15238_s2 + $0x1378] sm:$0xf0]  ;;  %v10096_v9 = vld [vmem:[%s15238_s2 + $0x13f4] sm:$0xf]  ;;  %v5521_v0 = vpop.f32.mrf.mxu2  ;;  %v8574_v35 = vor.u32 %v10018_v60, %v8571_v1  ;;  %v10062_v24 = vld [vmem:[%s15238_s2 + $0x12e4] sm:$0xf] }
 0x292   :  { %5773 = vmatpush.bf16.msra.mxu2 %v8606_v30  ;;  %v8758_v30 = vor.u32 %v10064_v51, %v8755_v2  ;;  %v8886_v32 = vor.u32 %v10096_v9, %v8883_v34  ;;  %v10058_v19 = vld [vmem:[%s15238_s2 + $0x12c4] sm:$0xf]  ;;  %v8723_v60 = vld [vmem:[%s15238_s2 + $0x12b8] sm:$0xf0]  ;;  %v8923_v9 = vld [vmem:[%s15238_s2 + $0x1448] sm:$0xf0] }
 0x293   :  { %5784 = vmatpush.bf16.msrb.mxu3 %v8686_v43  ;;  %v5520_v20 = vadd.f32 %v5519_v54, %v5507_v28  ;;  %v8507_v43 = vld [vmem:[%s15238_s2 + $0x1108] sm:$0xf0]  ;;  %v8739_v54 = vld [vmem:[%s15238_s2 + $0x12d8] sm:$0xf0] }
 0x294   :  { %5748 = vmatpush.bf16.msra.mxu0 %v8470_v50  ;;  %v8822_v50 = vor.u32 %v10080_v23, %v8819_v29  ;;  %v8747_v28 = vld [vmem:[%s15238_s2 + $0x12e8] sm:$0xf0]  ;;  %v8742_v61 = vor.u32 %v10060_v46, %v8739_v54  ;;  %v8787_v23 = vld [vmem:[%s15238_s2 + $0x1338] sm:$0xf0]  ;;  %v10088_v29 = vld [vmem:[%s15238_s2 + $0x13b4] sm:$0xf] }
 0x295   :  { %5761 = vmatpush.bf16.msra.mxu1 %v8534_v3  ;;  %v14592_v5 = vadd.f32 %v5532_v63, %v5520_v20  ;;  %v8811_v3 = vld [vmem:[%s15238_s2 + $0x1368] sm:$0xf0]  ;;  %v8750_v53 = vor.u32 %v10062_v24, %v8747_v28  ;;  %v10076_v20 = vld [vmem:[%s15238_s2 + $0x1354] sm:$0xf]  ;;  %v10074_v63 = vld [vmem:[%s15238_s2 + $0x1344] sm:$0xf] }
 0x296   :  { %5774 = vmatpush.bf16.msra.mxu2 %v8598_v57  ;;  %v5495_v26 = vpop.f32.mrf.mxu0  ;;  %v10094_v57 = vld [vmem:[%s15238_s2 + $0x13e4] sm:$0xf]  ;;  %v8814_v44 = vor.u32 %v10078_v14, %v8811_v3  ;;  %v8798_v2 = vor.u32 %v10074_v63, %v8795_v4  ;;  %v8779_v24 = vld [vmem:[%s15238_s2 + $0x1328] sm:$0xf0]  ;;  %v10104_v14 = vld [vmem:[%s15238_s2 + $0x1434] sm:$0xf] }
 0x297   :  { %5785 = vmatpush.bf16.msrb.mxu3 %v8678_v59  ;;  %v8510_v59 = vor.u32 %v10002_v58, %v8507_v43  ;;  %v8878_v27 = vor.u32 %v10094_v57, %v8875_v8  ;;  %v15251_v26 = vld [vmem:[#allocation5_spill] sm:$0xff]  ;;  %v10086_v28 = vld [vmem:[%s15238_s2 + $0x13a4] sm:$0xf]  ;;  %v8915_v3 = vld [vmem:[%s15238_s2 + $0x1438] sm:$0xf0] }
 0x298   :  { %5749 = vmatpush.bf16.msra.mxu0 %v8462_v45  ;;  %v8638_v45 = vor.u32 %v10034_v62, %v8635_v37  ;;  %v8859_v58 = vld [vmem:[%s15238_s2 + $0x13c8] sm:$0xf0]  ;;  %v10070_v37 = vld [vmem:[%s15238_s2 + $0x1324] sm:$0xf]  ;;  %v8918_v46 = vor.u32 %v10104_v14, %v8915_v3  ;;  %v10068_v54 = vld [vmem:[%s15238_s2 + $0x1314] sm:$0xf] }
 0x299   :  { %5762 = vmatpush.bf16.msra.mxu1 %v8526_v12  ;;  %v5534_v18 = vpop.f32.mrf.mxu3  ;;  %v8803_v12 = vld [vmem:[%s15238_s2 + $0x1358] sm:$0xf0]  ;;  %v8862_v38 = vor.u32 %v10090_v6, %v8859_v58  ;;  %v8715_v62 = vld [vmem:[%s15238_s2 + $0x12a8] sm:$0xf0]  ;;  %v10128_v6 = vld [vmem:[%s15238_s2 + $0x14f4] sm:$0xf] }
 0x29a   :  { %5775 = vmatpush.bf16.msra.mxu2 %v8590_v22  ;;  %v10092_v22 = vld [vmem:[%s15238_s2 + $0x13d4] sm:$0xf]  ;;  %v8806_v56 = vor.u32 %v10076_v20, %v8803_v12  ;;  %v8835_v12 = vld [vmem:[%s15238_s2 + $0x1398] sm:$0xf0]  ;;  %v8827_v4 = vld [vmem:[%s15238_s2 + $0x1388] sm:$0xf0] }
 0x29b   :  { %5786 = vmatpush.bf16.msrb.mxu3 %v8670_v21  ;;  %v10112_v21 = vld [vmem:[%s15238_s2 + $0x1474] sm:$0xf]  ;;  %v9011_v58 = vld [vmem:[%s15238_s2 + $0x14f8] sm:$0xf0] }
 0x29c   :  { %5750 = vmatpush.bf16.msra.mxu0 %v8454_v47  ;;  %v8950_v33 = vor.u32 %v10112_v21, %v8947_v13  ;;  %v8731_v47 = vld [vmem:[%s15238_s2 + $0x12c8] sm:$0xf0]  ;;  %v8782_v13 = vor.u32 %v10070_v37, %v8779_v24  ;;  %v10052_v18 = vld [vmem:[%s15238_s2 + $0x1294] sm:$0xf]  ;;  %v9203_v37 = vld [vmem:[%s15238_s2 + $0x1678] sm:$0xf0] }
 0x29d   :  { %5763 = vmatpush.bf16.msra.mxu1 %v8518_v49  ;;  %v10108_v49 = vld [vmem:[%s15238_s2 + $0x1454] sm:$0xf]  ;;  %v8734_v43 = vor.u32 %v10058_v19, %v8731_v47  ;;  %v8763_v19 = vld [vmem:[%s15238_s2 + $0x1308] sm:$0xf0]  ;;  %v10082_v47 = vld [vmem:[%s15238_s2 + $0x1384] sm:$0xf] }
 0x29e   :  { %5776 = vmatpush.bf16.msra.mxu2 %v8582_v41  ;;  %v8931_v41 = vld [vmem:[%s15238_s2 + $0x1458] sm:$0xf0] }
 0x29f   :  { %5787 = vmatpush.bf16.msrb.mxu3 %v8662_v11  ;;  %v8939_v11 = vld [vmem:[%s15238_s2 + $0x1468] sm:$0xf0]  ;;  %v8995_v14 = vld [vmem:[%s15238_s2 + $0x14d8] sm:$0xf0] }
 0x2a0   :  { %5751 = vmatpush.bf16.msra.mxu0 %v8446_v15  ;;  %v8942_v48 = vor.u32 %v10110_v7, %v8939_v11  ;;  %v5545_v51 = vpop.f32.mrf.mxu0  ;;  %v8699_v7 = vld [vmem:[%s15238_s2 + $0x1288] sm:$0xf0] }
 0x2a1   :  { %5764 = vmatpush.bf16.msra.mxu1 %v8510_v59  ;;  %v5546_v1 = vadd.f32 %v5545_v51, %v14592_v5  ;;  %v5558_v15 = vpop.f32.mrf.mxu1  ;;  %v10106_v5 = vld [vmem:[%s15238_s2 + $0x1444] sm:$0xf]  ;;  %v8790_v59 = vor.u32 %v10072_v17, %v8787_v23 }
 0x2a2   :  { %5777 = vmatpush.bf16.msra.mxu2 %v8574_v35  ;;  %v10054_v35 = vld [vmem:[%s15238_s2 + $0x12a4] sm:$0xf] }
 0x2a3   :  { %5788 = vmatpush.bf16.msrb.mxu3 %v8654_v16  ;;  %5752 = vmatmul.bf16.vlgmr.msra.gmra.mxu0 %v12246_v31  ;;  %v8867_v31 = vld [vmem:[%s15238_s2 + $0x13d8] sm:$0xf0]  ;;  %v10056_v16 = vld [vmem:[%s15238_s2 + $0x12b4] sm:$0xf]  ;;  %v5559_v34 = vadd.f32 %v5558_v15, %v5546_v1  ;;  %v8718_v8 = vor.u32 %v10054_v35, %v8715_v62  ;;  %v9014_v15 = vor.u32 %v10128_v6, %v9011_v58  ;;  %v10126_v23 = vld [vmem:[%s15238_s2 + $0x14e4] sm:$0xf] }
 0x2a4   :  { %5796 = vmatpush.bf16.msrb.mxu0 %v8758_v30  ;;  %5765 = vmatmul.bf16.vlgmr.msra.gmra.mxu1 %v15251_v26  ;;  %v8870_v42 = vor.u32 %v10092_v22, %v8867_v31  ;;  %v8851_v30 = vld [vmem:[%s15238_s2 + $0x13b8] sm:$0xf0]  ;;  %v8726_v0 = vor.u32 %v10056_v16, %v8723_v60  ;;  %v10102_v22 = vld [vmem:[%s15238_s2 + $0x1424] sm:$0xf]  ;;  %v10160_v16 = vld [vmem:[%s15238_s2 + $0x15f4] sm:$0xf] }
 0x2a5   :  { %5809 = vmatpush.bf16.msrb.mxu1 %v8822_v50  ;;  %5778 = vmatmul.bf16.vlgmr.msra.gmra.mxu2 %v15250_v55  ;;  %v8926_v50 = vor.u32 %v10106_v5, %v8923_v9  ;;  %v8907_v55 = vld [vmem:[%s15238_s2 + $0x1428] sm:$0xf0]  ;;  %v10050_v31 = vld [vmem:[%s15238_s2 + $0x1284] sm:$0xf]  ;;  %v9139_v60 = vld [vmem:[%s15238_s2 + $0x15f8] sm:$0xf0] }
 0x2a6   :  { %5822 = vmatpush.bf16.msrb.mxu2 %v8886_v32  ;;  %v8843_v32 = vld [vmem:[%s15238_s2 + $0x13a8] sm:$0xf0]  ;;  %v8910_v63 = vor.u32 %v10102_v22, %v8907_v55  ;;  %v8702_v51 = vor.u32 %v10050_v31, %v8699_v7  ;;  %v9142_v5 = vor.u32 %v10160_v16, %v9139_v60  ;;  %v10098_v9 = vld [vmem:[%s15238_s2 + $0x1404] sm:$0xf]  ;;  %v10172_v31 = vld [vmem:[%s15238_s2 + $0x1654] sm:$0xf] }
 0x2a7   :  { %5789 = vmatpush.bf16.msrb.mxu3 %v8646_v52  ;;  %v8854_v52 = vor.u32 %v10088_v29, %v8851_v30  ;;  %v9003_v29 = vld [vmem:[%s15238_s2 + $0x14e8] sm:$0xf0]  ;;  %v10158_v35 = vld [vmem:[%s15238_s2 + $0x15e4] sm:$0xf]  ;;  %v9187_v7 = vld [vmem:[%s15238_s2 + $0x1658] sm:$0xf0] }
 0x2a8   :  { %5797 = vmatpush.bf16.msrb.mxu0 %v8750_v53  ;;  %v5571_v57 = vpop.f32.mrf.mxu2  ;;  %v8707_v53 = vld [vmem:[%s15238_s2 + $0x1298] sm:$0xf0]  ;;  %v9131_v62 = vld [vmem:[%s15238_s2 + $0x15e8] sm:$0xf0]  ;;  %v10254_v55 = vld [vmem:[#allocation1] sm:$0xff]  ;;  %v9190_v6 = vor.u32 %v10172_v31, %v9187_v7 }
 0x2a9   :  { %5810 = vmatpush.bf16.msrb.mxu1 %v8814_v44  ;;  %v5572_v21 = vadd.f32 %v5571_v57, %v5559_v34  ;;  %v8846_v44 = vor.u32 %v10086_v28, %v8843_v32  ;;  %v5560_v20 = vpop.f32.mrf.mxu1  ;;  %v8710_v26 = vor.u32 %v10052_v18, %v8707_v53  ;;  %v8891_v34 = vld [vmem:[%s15238_s2 + $0x1408] sm:$0xf0]  ;;  %v10124_v32 = vld [vmem:[%s15238_s2 + $0x14d4] sm:$0xf]  ;;  %v9134_v57 = vor.u32 %v10158_v35, %v9131_v62  ;;  %v9123_v53 = vld [vmem:[%s15238_s2 + $0x15d8] sm:$0xf0] }
 0x2aa   :  { %5823 = vmatpush.bf16.msrb.mxu2 %v8878_v27  ;;  %v8771_v27 = vld [vmem:[%s15238_s2 + $0x1318] sm:$0xf0]  ;;  %v8894_v28 = vor.u32 %v10098_v9, %v8891_v34  ;;  %v10156_v18 = vld [vmem:[%s15238_s2 + $0x15d4] sm:$0xf]  ;;  %v9051_v20 = vld [vmem:[%s15238_s2 + $0x1548] sm:$0xf0] }
 0x2ab   :  { %5790 = vmatpush.bf16.msrb.mxu3 %v8638_v45  ;;  %v5547_v45 = vpop.f32.mrf.mxu0  ;;  %v9115_v22 = vld [vmem:[%s15238_s2 + $0x15c8] sm:$0xf0]  ;;  %v9043_v58 = vld [vmem:[%s15238_s2 + $0x1538] sm:$0xf0]  ;;  %v10118_v16 = vld [vmem:[%s15238_s2 + $0x14a4] sm:$0xf] }
 0x2ac   :  { %5798 = vmatpush.bf16.msrb.mxu0 %v8742_v61  ;;  %v8774_v61 = vor.u32 %v10068_v54, %v8771_v27  ;;  %v8998_v45 = vor.u32 %v10124_v32, %v8995_v14  ;;  %v9126_v54 = vor.u32 %v10156_v18, %v9123_v53  ;;  %v10138_v27 = vld [vmem:[%s15238_s2 + $0x1544] sm:$0xf]  ;;  %v8971_v60 = vld [vmem:[%s15238_s2 + $0x14a8] sm:$0xf0]  ;;  %v9171_v9 = vld [vmem:[%s15238_s2 + $0x1638] sm:$0xf0] }
 0x2ad   :  { %5811 = vmatpush.bf16.msrb.mxu1 %v8806_v56  ;;  %v10066_v56 = vld [vmem:[%s15238_s2 + $0x1304] sm:$0xf]  ;;  %v9027_v32 = vld [vmem:[%s15238_s2 + $0x1518] sm:$0xf0]  ;;  %v10148_v14 = vld [vmem:[%s15238_s2 + $0x1594] sm:$0xf] }
 0x2ae   :  { %5791 = vmatmul.bf16.vlgmr.msrb.gmra.mxu3 %v12413_v36  ;;  %5824 = vmatpush.bf16.msrb.mxu2 %v8870_v42  ;;  %v8934_v36 = vor.u32 %v10108_v49, %v8931_v41  ;;  %v10100_v49 = vld [vmem:[%s15238_s2 + $0x1414] sm:$0xf]  ;;  %v8899_v41 = vld [vmem:[%s15238_s2 + $0x1418] sm:$0xf0]  ;;  %v10114_v18 = vld [vmem:[%s15238_s2 + $0x1484] sm:$0xf] }
 0x2af   :  { %5835 = vmatpush.bf16.msra.mxu3 %v8950_v33  ;;  %v10084_v33 = vld [vmem:[%s15238_s2 + $0x1394] sm:$0xf]  ;;  %v8902_v17 = vor.u32 %v10100_v49, %v8899_v41  ;;  %v9107_v41 = vld [vmem:[%s15238_s2 + $0x15b8] sm:$0xf0]  ;;  %v8955_v53 = vld [vmem:[%s15238_s2 + $0x1488] sm:$0xf0] }
 0x2b0   :  { %5799 = vmatpush.bf16.msrb.mxu0 %v8734_v43  ;;  %v10144_v43 = vld [vmem:[%s15238_s2 + $0x1574] sm:$0xf]  ;;  %v5573_v1 = vpop.f32.mrf.mxu2  ;;  %v9331_v31 = vld [vmem:[%s15238_s2 + $0x1778] sm:$0xf0] }
 0x2b1   :  { %5812 = vmatpush.bf16.msrb.mxu1 %v8798_v2  ;;  %v5584_v11 = vpop.f32.mrf.mxu3  ;;  %v9075_v2 = vld [vmem:[%s15238_s2 + $0x1578] sm:$0xf0]  ;;  %v10152_v49 = vld [vmem:[%s15238_s2 + $0x15b4] sm:$0xf] }
 0x2b2   :  { %5825 = vmatpush.bf16.msrb.mxu2 %v8862_v38  ;;  %v14797_v42 = vadd.f32 %v5584_v11, %v5572_v21  ;;  %v8766_v38 = vor.u32 %v10066_v56, %v8763_v19  ;;  %v9078_v30 = vor.u32 %v10144_v43, %v9075_v2  ;;  %v10120_v11 = vld [vmem:[%s15238_s2 + $0x14b4] sm:$0xf]  ;;  %v9054_v19 = vor.u32 %v10138_v27, %v9051_v20  ;;  %v9083_v20 = vld [vmem:[%s15238_s2 + $0x1588] sm:$0xf0] }
 0x2b3   :  { %5836 = vmatpush.bf16.msra.mxu3 %v8942_v48  ;;  %v8838_v48 = vor.u32 %v10084_v33, %v8835_v12  ;;  %v10154_v12 = vld [vmem:[%s15238_s2 + $0x15c4] sm:$0xf] }
 0x2b4   :  { %5800 = vmatpush.bf16.msrb.mxu0 %v8726_v0  ;;  %v10142_v0 = vld [vmem:[%s15238_s2 + $0x1564] sm:$0xf] }
 0x2b5   :  { %5813 = vmatpush.bf16.msrb.mxu1 %v8790_v59  ;;  %v9067_v59 = vld [vmem:[%s15238_s2 + $0x1568] sm:$0xf0] }
 0x2b6   :  { %5826 = vmatpush.bf16.msrb.mxu2 %v8854_v52  ;;  %v9006_v52 = vor.u32 %v10126_v23, %v9003_v29  ;;  %v9070_v3 = vor.u32 %v10142_v0, %v9067_v59  ;;  %v10150_v23 = vld [vmem:[%s15238_s2 + $0x15a4] sm:$0xf]  ;;  %v9099_v29 = vld [vmem:[%s15238_s2 + $0x15a8] sm:$0xf0]  ;;  %v10116_v0 = vld [vmem:[%s15238_s2 + $0x1494] sm:$0xf] }
 0x2b7   :  { %5837 = vmatpush.bf16.msra.mxu3 %v8934_v36  ;;  %v8830_v36 = vor.u32 %v10082_v47, %v8827_v4  ;;  %v9118_v47 = vor.u32 %v10154_v12, %v9115_v22  ;;  %v8963_v59 = vld [vmem:[%s15238_s2 + $0x1498] sm:$0xf0]  ;;  %v10164_v12 = vld [vmem:[%s15238_s2 + $0x1614] sm:$0xf]  ;;  %v8958_v22 = vor.u32 %v10114_v18, %v8955_v53  ;;  %v10219_v18 = vld [vmem:[%s15239_s3 + $0x28] sm:$0xff] }
 0x2b8   :  { %5801 = vmatpush.bf16.msrb.mxu0 %v8718_v8  ;;  %v10140_v8 = vld [vmem:[%s15238_s2 + $0x1554] sm:$0xf] }
 0x2b9   :  { %5814 = vmatpush.bf16.msrb.mxu1 %v8782_v13  ;;  %v5586_v24 = vpop.f32.mrf.mxu3  ;;  %v9059_v13 = vld [vmem:[%s15238_s2 + $0x1558] sm:$0xf0]  ;;  %v10200_v53 = vld [vmem:[%s15238_s2 + $0x1734] sm:$0xf] }
 0x2ba   :  { %5827 = vmatpush.bf16.msrb.mxu2 %v8846_v44  ;;  %v10122_v44 = vld [vmem:[%s15238_s2 + $0x14c4] sm:$0xf] }
 0x2bb   :  { %5838 = vmatpush.bf16.msra.mxu3 %v8926_v50  ;;  %v10176_v50 = vld [vmem:[%s15238_s2 + $0x1674] sm:$0xf] }
 0x2bc   :  { %5802 = vmatpush.bf16.msrb.mxu0 %v8710_v26  ;;  %v9206_v21 = vor.u32 %v10176_v50, %v9203_v37  ;;  %v10132_v50 = vld [vmem:[%s15238_s2 + $0x1514] sm:$0xf] }
 0x2bd   :  { %5815 = vmatpush.bf16.msrb.mxu1 %v8774_v61  ;;  %v8979_v61 = vld [vmem:[%s15238_s2 + $0x14b8] sm:$0xf0] }
 0x2be   :  { %5828 = vmatpush.bf16.msrb.mxu2 %v8838_v48  ;;  %v8982_v43 = vor.u32 %v10120_v11, %v8979_v61  ;;  %v10212_v61 = vld [vmem:[%s15238_s2 + $0x1794] sm:$0xf] }
 0x2bf   :  { %5839 = vmatpush.bf16.msra.mxu3 %v8918_v46  ;;  %v8987_v46 = vld [vmem:[%s15238_s2 + $0x14c8] sm:$0xf0] }
 0x2c0   :  { %5803 = vmatpush.bf16.msrb.mxu0 %v8702_v51  ;;  %v8990_v26 = vor.u32 %v10122_v44, %v8987_v46  ;;  %v5597_v56 = vpop.f32.mrf.mxu0  ;;  %v10170_v51 = vld [vmem:[%s15238_s2 + $0x1644] sm:$0xf]  ;;  %v9019_v46 = vld [vmem:[%s15238_s2 + $0x1508] sm:$0xf0] }
 0x2c1   :  { %5816 = vmatpush.bf16.msrb.mxu1 %v8766_v38  ;;  %v5610_v48 = vpop.f32.mrf.mxu1  ;;  %v5598_v4 = vadd.f32 %v5597_v56, %v14797_v42  ;;  %v9179_v42 = vld [vmem:[%s15238_s2 + $0x1648] sm:$0xf0]  ;;  %v9110_v38 = vor.u32 %v10152_v49, %v9107_v41  ;;  %v9347_v56 = vld [vmem:[%s15238_s2 + $0x1798] sm:$0xf0]  ;;  %v10206_v41 = vld [vmem:[%s15238_s2 + $0x1764] sm:$0xf] }
 0x2c2   :  { %5829 = vmatpush.bf16.msrb.mxu2 %v8830_v36  ;;  %v9182_v36 = vor.u32 %v10170_v51, %v9179_v42  ;;  %v9147_v49 = vld [vmem:[%s15238_s2 + $0x1608] sm:$0xf0]  ;;  %v9350_v51 = vor.u32 %v10212_v61, %v9347_v56  ;;  %v10196_v61 = vld [vmem:[%s15238_s2 + $0x1714] sm:$0xf]  ;;  %v9283_v56 = vld [vmem:[%s15238_s2 + $0x1718] sm:$0xf0] }
 0x2c3   :  { %5840 = vmatpush.bf16.msra.mxu3 %v8910_v63  ;;  %5804 = vmatmul.bf16.vlgmr.msrb.gmra.mxu0 %v12417_v39  ;;  %v9195_v39 = vld [vmem:[%s15238_s2 + $0x1668] sm:$0xf0]  ;;  %v10136_v63 = vld [vmem:[%s15238_s2 + $0x1534] sm:$0xf]  ;;  %v5611_v2 = vadd.f32 %v5610_v48, %v5598_v4  ;;  %v10162_v4 = vld [vmem:[%s15238_s2 + $0x1604] sm:$0xf] }
 0x2c4   :  { %5848 = vmatpush.bf16.msra.mxu0 %v9014_v15  ;;  %5817 = vmatmul.bf16.vlgmr.msrb.gmra.mxu1 %v12415_v25  ;;  %v10174_v25 = vld [vmem:[%s15238_s2 + $0x1664] sm:$0xf]  ;;  %v9046_v1 = vor.u32 %v10136_v63, %v9043_v58  ;;  %v9259_v58 = vld [vmem:[%s15238_s2 + $0x16e8] sm:$0xf0] }
 0x2c5   :  { %5861 = vmatpush.bf16.msra.mxu1 %v9078_v30  ;;  %5830 = vmatmul.bf16.vlgmr.msrb.gmra.mxu2 %v12419_v40  ;;  %v9062_v40 = vor.u32 %v10140_v8, %v9059_v13  ;;  %v9198_v33 = vor.u32 %v10174_v25, %v9195_v39  ;;  %v10134_v15 = vld [vmem:[%s15238_s2 + $0x1524] sm:$0xf]  ;;  %v8974_v30 = vor.u32 %v10118_v16, %v8971_v60  ;;  %v9339_v16 = vld [vmem:[%s15238_s2 + $0x1788] sm:$0xf0] }
 0x2c6   :  { %5874 = vmatpush.bf16.msra.mxu2 %v9142_v5  ;;  %v10168_v5 = vld [vmem:[%s15238_s2 + $0x1634] sm:$0xf]  ;;  %v10166_v8 = vld [vmem:[%s15238_s2 + $0x1624] sm:$0xf]  ;;  %v9030_v39 = vor.u32 %v10132_v50, %v9027_v32 }
 0x2c7   :  { %5841 = vmatpush.bf16.msra.mxu3 %v8902_v17  ;;  %v9035_v17 = vld [vmem:[%s15238_s2 + $0x1528] sm:$0xf0]  ;;  %v10220_v50 = vld [vmem:[%s15239_s3 + $0x30] sm:$0xff] }
 0x2c8   :  { %5849 = vmatpush.bf16.msra.mxu0 %v9006_v52  ;;  %v5623_v34 = vpop.f32.mrf.mxu2  ;;  %v9038_v62 = vor.u32 %v10134_v15, %v9035_v17  ;;  %v9102_v52 = vor.u32 %v10150_v23, %v9099_v29  ;;  %v5599_v37 = vpop.f32.mrf.mxu0  ;;  %v10188_v15 = vld [vmem:[%s15238_s2 + $0x16d4] sm:$0xf]  ;;  %v10255_v17 = vld [vmem:[#allocation1 + $0x9] sm:$0xff]  ;;  %v10221_v23 = vld [vmem:[%s15239_s3 + $0x38] sm:$0xff] }
 0x2c9   :  { %5862 = vmatpush.bf16.msra.mxu1 %v9070_v3  ;;  %v5624_v35 = vadd.f32 %v5623_v34, %v5611_v2  ;;  %v5612_v24 = vpop.f32.mrf.mxu1  ;;  %v9091_v3 = vld [vmem:[%s15238_s2 + $0x1598] sm:$0xf0]  ;;  %v10210_v2 = vld [vmem:[%s15238_s2 + $0x1784] sm:$0xf]  ;;  %v10204_v29 = vld [vmem:[%s15238_s2 + $0x1754] sm:$0xf] }
 0x2ca   :  { %5875 = vmatpush.bf16.msra.mxu2 %v9134_v57  ;;  %v8966_v57 = vor.u32 %v10116_v0, %v8963_v59  ;;  %v9094_v44 = vor.u32 %v10148_v14, %v9091_v3  ;;  %v10257_v34 = vld [vmem:[#allocation1 + $0x12] sm:$0xff]  ;;  %v10230_v0 = vld [vmem:[%s15240_s4] sm:$0xff]  ;;  %v9307_v24 = vld [vmem:[%s15238_s2 + $0x1748] sm:$0xf0] }
 0x2cb   :  { %5842 = vmatpush.bf16.msra.mxu3 %v8894_v28  ;;  %v9174_v28 = vor.u32 %v10168_v5, %v9171_v9  ;;  %v9342_v5 = vor.u32 %v10210_v2, %v9339_v16  ;;  %v10256_v9 = vld [vmem:[#allocation1 + $0x1b] sm:$0xff]  ;;  %v10202_v37 = vld [vmem:[%s15238_s2 + $0x1744] sm:$0xf] }
 0x2cc   :  { %5850 = vmatpush.bf16.msra.mxu0 %v8998_v45  ;;  %v10130_v45 = vld [vmem:[%s15238_s2 + $0x1504] sm:$0xf]  ;;  %v9310_v3 = vor.u32 %v10202_v37, %v9307_v24 }
 0x2cd   :  { %5863 = vmatpush.bf16.msra.mxu1 %v9062_v40  ;;  %v10192_v40 = vld [vmem:[%s15238_s2 + $0x16f4] sm:$0xf] }
 0x2ce   :  { %5843 = vmatmul.bf16.vlgmr.msra.gmra.mxu3 %v10254_v55  ;;  %5876 = vmatpush.bf16.msra.mxu2 %v9126_v54  ;;  %v9267_v54 = vld [vmem:[%s15238_s2 + $0x16f8] sm:$0xf0] }
 0x2cf   :  { %5887 = vmatpush.bf16.msrb.mxu3 %v9206_v21  ;;  %v9163_v21 = vld [vmem:[%s15238_s2 + $0x1628] sm:$0xf0]  ;;  %v9155_v55 = vld [vmem:[%s15238_s2 + $0x1618] sm:$0xf0]  ;;  %v9270_v7 = vor.u32 %v10192_v40, %v9267_v54  ;;  %v10218_v54 = vld [vmem:[%s15239_s3 + $0x20] sm:$0xff] }
 0x2d0   :  { %5851 = vmatpush.bf16.msra.mxu0 %v8990_v26  ;;  %v9166_v27 = vor.u32 %v10166_v8, %v9163_v21  ;;  %v10208_v26 = vld [vmem:[%s15238_s2 + $0x1774] sm:$0xf]  ;;  %v5625_v11 = vpop.f32.mrf.mxu2  ;;  %v9158_v48 = vor.u32 %v10164_v12, %v9155_v55  ;;  %v9235_v8 = vld [vmem:[%s15238_s2 + $0x16b8] sm:$0xf0]  ;;  %v9227_v40 = vld [vmem:[%s15238_s2 + $0x16a8] sm:$0xf0] }
 0x2d1   :  { %5864 = vmatpush.bf16.msra.mxu1 %v9054_v19  ;;  %v5636_v13 = vpop.f32.mrf.mxu3  ;;  %v9022_v19 = vor.u32 %v10130_v45, %v9019_v46  ;;  %v9334_v63 = vor.u32 %v10208_v26, %v9331_v31  ;;  %v9299_v45 = vld [vmem:[%s15238_s2 + $0x1738] sm:$0xf0]  ;;  %v10180_v26 = vld [vmem:[%s15238_s2 + $0x1694] sm:$0xf] }
 0x2d2   :  { %5877 = vmatpush.bf16.msra.mxu2 %v9118_v47  ;;  %v14989_v25 = vadd.f32 %v5636_v13, %v5624_v35  ;;  %v9302_v46 = vor.u32 %v10200_v53, %v9299_v45  ;;  %v9219_v31 = vld [vmem:[%s15238_s2 + $0x1698] sm:$0xf0] }
 0x2d3   :  { %5888 = vmatpush.bf16.msrb.mxu3 %v9198_v33  ;;  %v10146_v33 = vld [vmem:[%s15238_s2 + $0x1584] sm:$0xf]  ;;  %v10217_v11 = vld [vmem:[%s15239_s3 + $0x18] sm:$0xff] }
 0x2d4   :  { %5852 = vmatpush.bf16.msra.mxu0 %v8982_v43  ;;  %v9086_v47 = vor.u32 %v10146_v33, %v9083_v20  ;;  %v9323_v43 = vld [vmem:[%s15238_s2 + $0x1768] sm:$0xf0] }
 0x2d5   :  { %5865 = vmatpush.bf16.msra.mxu1 %v9046_v1  ;;  %v9150_v1 = vor.u32 %v10162_v4, %v9147_v49  ;;  %v9291_v33 = vld [vmem:[%s15238_s2 + $0x1728] sm:$0xf0]  ;;  %v9286_v4 = vor.u32 %v10196_v61, %v9283_v56  ;;  %v10222_v56 = vld [vmem:[%s15239_s3 + $0x40] sm:$0xff] }
 0x2d6   :  { %5878 = vmatpush.bf16.msra.mxu2 %v9110_v38  ;;  %v9326_v38 = vor.u32 %v10206_v41, %v9323_v43  ;;  %v10216_v41 = vld [vmem:[%s15239_s3 + $0x10] sm:$0xff]  ;;  %v10194_v43 = vld [vmem:[%s15238_s2 + $0x1704] sm:$0xf]  ;;  %v10223_v61 = vld [vmem:[%s15239_s3 + $0x48] sm:$0xff] }
 0x2d7   :  { %5889 = vmatpush.bf16.msrb.mxu3 %v9190_v6  ;;  %v10190_v6 = vld [vmem:[%s15238_s2 + $0x16e4] sm:$0xf] }
 0x2d8   :  { %5853 = vmatpush.bf16.msra.mxu0 %v8974_v30  ;;  %v9262_v60 = vor.u32 %v10190_v6, %v9259_v58  ;;  %v9315_v30 = vld [vmem:[%s15238_s2 + $0x1758] sm:$0xf0]  ;;  %v10178_v6 = vld [vmem:[%s15238_s2 + $0x1684] sm:$0xf]  ;;  %v9211_v58 = vld [vmem:[%s15238_s2 + $0x1688] sm:$0xf0] }
 0x2d9   :  { %5866 = vmatpush.bf16.msra.mxu1 %v9038_v62  ;;  %v5638_v42 = vpop.f32.mrf.mxu3  ;;  %v9318_v35 = vor.u32 %v10204_v29, %v9315_v30  ;;  %v10186_v62 = vld [vmem:[%s15238_s2 + $0x16c4] sm:$0xf]  ;;  %v10261_v30 = vld [vmem:[#allocation1 + $0x36] sm:$0xff] }
 0x2da   :  { %5879 = vmatpush.bf16.msra.mxu2 %v9102_v52  ;;  %v9243_v52 = vld [vmem:[%s15238_s2 + $0x16c8] sm:$0xf0]  ;;  %v9214_v42 = vor.u32 %v10178_v6, %v9211_v58 }
 0x2db   :  { %5890 = vmatpush.bf16.msrb.mxu3 %v9182_v36  ;;  %v9251_v36 = vld [vmem:[%s15238_s2 + $0x16d8] sm:$0xf0]  ;;  %v9246_v32 = vor.u32 %v10186_v62, %v9243_v52 }
 0x2dc   :  { %5854 = vmatpush.bf16.msra.mxu0 %v8966_v57  ;;  %v9254_v59 = vor.u32 %v10188_v15, %v9251_v36  ;;  %v10184_v57 = vld [vmem:[%s15238_s2 + $0x16b4] sm:$0xf]  ;;  %v10214_v36 = vld [vmem:[%s15239_s3] sm:$0xff] }
 0x2dd   :  { %5867 = vmatpush.bf16.msra.mxu1 %v9030_v39 }
 0x2de   :  { %5880 = vmatpush.bf16.msra.mxu2 %v9094_v44  ;;  %v9238_v44 = vor.u32 %v10184_v57, %v9235_v8 }
 0x2df   :  { %5891 = vmatpush.bf16.msrb.mxu3 %v9174_v28  ;;  %v10258_v28 = vld [vmem:[#allocation1 + $0x24] sm:$0xff] }
 0x2e0   :  { %5855 = vmatpush.bf16.msra.mxu0 %v8958_v22  ;;  %v5649_v14 = vpop.f32.mrf.mxu0 }
 0x2e1   :  { %5868 = vmatpush.bf16.msra.mxu1 %v9022_v19  ;;  %v5650_v21 = vadd.f32 %v5649_v14, %v14989_v25  ;;  %v5662_v13 = vpop.f32.mrf.mxu1  ;;  %v10182_v25 = vld [vmem:[%s15238_s2 + $0x16a4] sm:$0xf] }
 0x2e2   :  { %5881 = vmatpush.bf16.msra.mxu2 %v9086_v47  ;;  %v9230_v12 = vor.u32 %v10182_v25, %v9227_v40  ;;  %v10259_v47 = vld [vmem:[#allocation1 + $0x3f] sm:$0xff] }
 0x2e3   :  { %5892 = vmatpush.bf16.msrb.mxu3 %v9166_v27  ;;  %5856 = vmatmul.bf16.vlgmr.msra.gmra.mxu0 %v10255_v17  ;;  %v5663_v39 = vadd.f32 %v5662_v13, %v5650_v21  ;;  %v10198_v27 = vld [vmem:[%s15238_s2 + $0x1724] sm:$0xf]  ;;  %v10260_v17 = vld [vmem:[#allocation1 + $0x2d] sm:$0xff] }
 0x2e4   :  { %5900 = vmatpush.bf16.msrb.mxu0 %v9270_v7  ;;  %5869 = vmatmul.bf16.vlgmr.msra.gmra.mxu1 %v10257_v34  ;;  %v9294_v55 = vor.u32 %v10198_v27, %v9291_v33  ;;  %v10228_v27 = vld [vmem:[%s15239_s3 + $0x70] sm:$0xff] }
 0x2e5   :  { %5913 = vmatpush.bf16.msrb.mxu1 %v9334_v63  ;;  %5882 = vmatmul.bf16.vlgmr.msra.gmra.mxu2 %v10256_v9 }
 0x2e6   :  { %5932 = vmatpush.bf16.msrb.mxu2 %v9350_v51  ;;  %v9275_v51 = vld [vmem:[%s15238_s2 + $0x1708] sm:$0xf0] }
 0x2e7   :  { %5893 = vmatpush.bf16.msrb.mxu3 %v9158_v48  ;;  %v9222_v48 = vor.u32 %v10180_v26, %v9219_v31  ;;  %v9278_v16 = vor.u32 %v10194_v43, %v9275_v51  ;;  %v10225_v26 = vld [vmem:[%s15239_s3 + $0x58] sm:$0xff]  ;;  %v10224_v31 = vld [vmem:[%s15239_s3 + $0x50] sm:$0xff] }
 0x2e8   :  { %5901 = vmatpush.bf16.msrb.mxu0 %v9262_v60  ;;  %v5675_v20 = vpop.f32.mrf.mxu2  ;;  %v5651_v7 = vpop.f32.mrf.mxu0  ;;  %v10215_v60 = vld [vmem:[%s15239_s3 + $0x8] sm:$0xff] }
 0x2e9   :  { %5914 = vmatpush.bf16.msrb.mxu1 %v9326_v38  ;;  %v5676_v22 = vadd.f32 %v5675_v20, %v5663_v39  ;;  %v5664_v19 = vpop.f32.mrf.mxu1  ;;  %v5979_v38 = vld [vmem:[%s15237_s1] sm:$0x3]  ;;  %v10227_v20 = vld [vmem:[%s15239_s3 + $0x68] sm:$0xff] }
 0x2ea   :  { %5933 = vmatpush.bf16.msrb.mxu2 %v9342_v5 }
 0x2eb   :  { %5894 = vmatpush.bf16.msrb.mxu3 %v9150_v1  ;;  %v5941_v1 = vmul.f32 0.01, %v13767_v10 }
 0x2ec   :  { %5902 = vmatpush.bf16.msrb.mxu0 %v9254_v59 }
 0x2ed   :  { %5915 = vmatpush.bf16.msrb.mxu1 %v9318_v35  ;;  %v5943_v29 = vsel %vm5939_vm1, %v13767_v10, %v5941_v1 }
 0x2ee   :  { %6000 = vmatpush.bf16.msra.mxu2 %v10230_v0  ;;  %5895 = vmatmul.bf16.vlgmr.msrb.gmra.mxu3 %v10258_v28  ;;  %v5945_v5 = vpack.c.bf16 %v5943_v29, %v5943_v29 }
 0x2ef   :  { %6102 = vmatpush.bf16.msra.mxu3 %v10221_v23  ;;  %v5980_v23 = vpack.c.bf16 %v5979_v38, %v5979_v38 }
 0x2f0   :  { %5903 = vmatpush.bf16.msrb.mxu0 %v9246_v32  ;;  %v5677_v2 = vpop.f32.mrf.mxu2 }
 0x2f1   :  { %5916 = vmatpush.bf16.msrb.mxu1 %v9310_v3  ;;  %v5688_v63 = vpop.f32.mrf.mxu3 }
 0x2f2   :  { %v5689_v49 = vadd.f32 %v5688_v63, %v5676_v22  ;;  %v10226_v22 = vld [vmem:[%s15239_s3 + $0x60] sm:$0xff] }
 0x2f3   :  { %6103 = vmatpush.bf16.msra.mxu3 %v10220_v50 }
 0x2f4   :  { %5904 = vmatpush.bf16.msrb.mxu0 %v9238_v44 }
 0x2f5   :  { %5917 = vmatpush.bf16.msrb.mxu1 %v9302_v46  ;;  %9352 = vmatmul.msk.bf16.vlgmr.msrb.gmra.mxu2 %vm4688_vm0, %v10259_v47  ;;  %v10229_v46 = vld [vmem:[%s15239_s3 + $0x78] sm:$0xff] }
 0x2f7   :  { %6104 = vmatpush.bf16.msra.mxu3 %v10219_v18 }
 0x2f8   :  { %5905 = vmatpush.bf16.msrb.mxu0 %v9230_v12 }
 0x2f9   :  { %5918 = vmatpush.bf16.msrb.mxu1 %v9294_v55  ;;  %v5690_v15 = vpop.f32.mrf.mxu3 }
 0x2fb   :  { %6105 = vmatpush.bf16.msra.mxu3 %v10218_v54 }
 0x2fc   :  { %5906 = vmatpush.bf16.msrb.mxu0 %v9222_v48 }
 0x2fd   :  { %5919 = vmatpush.bf16.msrb.mxu1 %v9286_v4 }
 0x2ff   :  { %6106 = vmatpush.bf16.msra.mxu3 %v10217_v11 }
 0x300   :  { %5907 = vmatpush.bf16.msrb.mxu0 %v9214_v42  ;;  %v5701_v9 = vpop.f32.mrf.mxu0 }
 0x301   :  { %5920 = vmatpush.bf16.msrb.mxu1 %v9278_v16  ;;  %v5714_v34 = vpop.f32.mrf.mxu1  ;;  %v5702_v0 = vadd.f32 %v5701_v9, %v5689_v49 }
 0x303   :  { %6107 = vmatpush.bf16.msra.mxu3 %v10216_v41  ;;  %5908 = vmatmul.bf16.vlgmr.msrb.gmra.mxu0 %v10260_v17  ;;  %v5715_v59 = vadd.f32 %v5714_v34, %v5702_v0 }
 0x304   :  { %5921 = vmatmul.bf16.vlgmr.msrb.gmra.mxu1 %v10261_v30  ;;  %6115 = vmatpush.bf16.msra.mxu0 %v10229_v46 }
 0x305   :  { %9357 = vmatmul.msk.bf16.vlgmr.msra.gmra.mxu2 %vm5989_vm2, %v5980_v23 }
 0x307   :  { %6108 = vmatpush.bf16.msra.mxu3 %v10215_v60 }
 0x308   :  { %v5727_v35 = vpop.f32.mrf.mxu2  ;;  %v5703_v52 = vpop.f32.mrf.mxu0  ;;  %6116 = vmatpush.bf16.msra.mxu0 %v10228_v27 }
 0x309   :  { %v5728_v62 = vadd.f32 %v5727_v35, %v5715_v59  ;;  %v5716_v50 = vpop.f32.mrf.mxu1 }
 0x30b   :  { %6109 = vmatpush.bf16.msra.mxu3 %v10214_v36 }
 0x30c   :  { %6117 = vmatpush.bf16.msra.mxu0 %v10227_v20 }
 0x30e   :  { %6110 = vmatmul.bf16.vlgmr.msra.gmra.mxu3 %v5945_v5 }
 0x310   :  { %v5729_v28 = vpop.f32.mrf.mxu2  ;;  %6118 = vmatpush.bf16.msra.mxu0 %v10226_v22 }
 0x311   :  { %v5740_v37 = vpop.f32.mrf.mxu3 }
 0x312   :  { %v5741_v24 = vadd.f32 %v5740_v37, %v5728_v62 }
 0x314   :  { %6119 = vmatpush.bf16.msra.mxu0 %v10225_v26  ;;  %v10233_v26 = vld [vmem:[%s15241_s5 + $0x10] sm:$0xff] }
 0x318   :  { %6120 = vmatpush.bf16.msra.mxu0 %v10224_v31  ;;  %v10232_v31 = vld [vmem:[%s15241_s5 + $0x8] sm:$0xff] }
 0x319   :  { %v5742_v32 = vpop.f32.mrf.mxu3 }
 0x31c   :  { %6121 = vmatpush.bf16.msra.mxu0 %v10223_v61 }
 0x320   :  { %v5753_v10 = vpop.f32.mrf.mxu0  ;;  %6122 = vmatpush.bf16.msra.mxu0 %v10222_v56 }
 0x321   :  { %v5754_v14 = vadd.f32 %v5753_v10, %v5741_v24  ;;  %v5766_v3 = vpop.f32.mrf.mxu1  ;;  %v15182_v24 = vld [vmem:[%s15243_s7] sm:$0xff] }
 0x322   :  { %v6128_v28 = vperm.slane %v15182_v24, 3 }
 0x323   :  { %v5767_v57 = vadd.f32 %v5766_v3, %v5754_v14 }
 0x328   :  { %v5779_v8 = vpop.f32.mrf.mxu2  ;;  %v5755_v21 = vpop.f32.mrf.mxu0 }
 0x329   :  { %v5768_v13 = vpop.f32.mrf.mxu1  ;;  %v5780_v19 = vadd.f32 %v5779_v8, %v5767_v57 }
 0x330   :  { %v5781_v53 = vpop.f32.mrf.mxu2 }
 0x331   :  { %v5792_v18 = vpop.f32.mrf.mxu3 }
 0x332   :  { %v5793_v48 = vadd.f32 %v5792_v18, %v5780_v19 }
 0x339   :  { %v5794_v45 = vpop.f32.mrf.mxu3 }
 0x33a   :  { %v10289_v45 = vmov 64.0  }
 0x340   :  { %v5805_v39 = vpop.f32.mrf.mxu0 }
 0x341   :  { %v5818_v44 = vpop.f32.mrf.mxu1  ;;  %v5806_v6 = vadd.f32 %v5805_v39, %v5793_v48 }
 0x343   :  { %v5819_v49 = vadd.f32 %v5818_v44, %v5806_v6 }
 0x348   :  { %v5831_v25 = vpop.f32.mrf.mxu2  ;;  %v5807_v40 = vpop.f32.mrf.mxu0 }
 0x349   :  { %v5820_v54 = vpop.f32.mrf.mxu1  ;;  %v5832_v43 = vadd.f32 %v5831_v25, %v5819_v49 }
 0x350   :  { %v5833_v12 = vpop.f32.mrf.mxu2 }
 0x351   :  { %v5844_v33 = vpop.f32.mrf.mxu3 }
 0x352   :  { %v5845_v51 = vadd.f32 %v5844_v33, %v5832_v43 }
 0x359   :  { %v5846_v55 = vpop.f32.mrf.mxu3 }
 0x35a   :  { %v10234_v55 = vld [vmem:[%s15241_s5 + $0x18] sm:$0xff] }
 0x35b   :  { %6212 = vmatpush.bf16.msra.mxu1 %v10234_v55 }
 0x35f   :  { %6213 = vmatpush.bf16.msra.mxu1 %v10233_v26 }
 0x360   :  { %v5857_v7 = vpop.f32.mrf.mxu0 }
 0x361   :  { %v5870_v11 = vpop.f32.mrf.mxu1  ;;  %v5858_v42 = vadd.f32 %v5857_v7, %v5845_v51  ;;  %v10231_v7 = vld [vmem:[%s15241_s5] sm:$0xff] }
 0x363   :  { %v5871_v60 = vadd.f32 %v5870_v11, %v5858_v42  ;;  %6214 = vmatpush.bf16.msra.mxu1 %v10232_v31 }
 0x367   :  { %6215 = vmatpush.bf16.msra.mxu1 %v10231_v7 }
 0x368   :  { %v5883_v47 = vpop.f32.mrf.mxu2  ;;  %v5859_v63 = vpop.f32.mrf.mxu0 }
 0x369   :  { %v5872_v4 = vpop.f32.mrf.mxu1  ;;  %v5884_v1 = vadd.f32 %v5883_v47, %v5871_v60 }
 0x370   :  { %v5885_v41 = vpop.f32.mrf.mxu2 }
 0x371   :  { %v5896_v58 = vpop.f32.mrf.mxu3  ;;  %v6168_v41 = vperm.slane %v15182_v24, 5 }
 0x372   :  { %v5897_v38 = vadd.f32 %v5896_v58, %v5884_v1  ;;  %v6166_v58 = vperm.slane %v15182_v24, 4 }
 0x378   :  { %v5935_v16 = vpop.f32.mrf.mxu2 }
 0x379   :  { %v5898_v2 = vpop.f32.mrf.mxu3 }
 0x380   :  { %v5909_v15 = vpop.f32.mrf.mxu0  ;;  %v5937_v23 = vpop.f32.mrf.mxu2 }
 0x381   :  { %v5910_v36 = vadd.f32 %v5909_v15, %v5897_v38  ;;  %v5922_v17 = vpop.f32.mrf.mxu1 }
 0x383   :  { %v5923_v29 = vadd.f32 %v5922_v17, %v5910_v36 }
 0x385   :  { %v5936_v30 = vadd.f32 %v5935_v16, %v5923_v29  ;;  %v6179_v16 = vperm.slane %v15182_v24, 6 }
 0x387   :  { %vm5940_vm3 = vcmp.ge.f32.partialorder %v5936_v30, 0.0  ;;  %v5942_v5 = vmul.f32 0.01, %v5936_v30 }
 0x388   :  { %v5911_v9 = vpop.f32.mrf.mxu0  ;;  %v6002_v35 = vpop.f32.mrf.mxu2 }
 0x389   :  { %v5944_v34 = vsel %vm5940_vm3, %v5936_v30, %v5942_v5  ;;  %v5924_v0 = vpop.f32.mrf.mxu1 }
 0x38a   :  { %v5946_v59 = vpack.c.bf16 %v5944_v34, %v5944_v34 }
 0x38c   :  { %6123 = vmatmul.bf16.vlgmr.msra.gmra.mxu0 %v5946_v59 }
 0x390   :  { %v6004_v50 = vpop.f32.mrf.mxu2 }
 0x391   :  { %v6111_v62 = vpop.f32.mrf.mxu3  ;;  %v10235_v50 = vld [vmem:[%s15242_s6] sm:$0xff] }
 0x392   :  { %v6112_v52 = vadd.f32 %v6111_v62, %v6002_v35  ;;  %v10238_v35 = vld [vmem:[%s15242_s6 + $0x18] sm:$0xff]  ;;  %v10237_v62 = vld [vmem:[%s15242_s6 + $0x10] sm:$0xff] }
 0x393   :  { %6294 = vmatpush.bf16.msrb.mxu2 %v10238_v35 }
 0x397   :  { %6295 = vmatpush.bf16.msrb.mxu2 %v10237_v62 }
 0x399   :  { %v6113_v37 = vpop.f32.mrf.mxu3 }
 0x409   :  { %v6124_v32 = vpop.f32.mrf.mxu0 }
 0x40a   :  { %v6125_v10 = vadd.f32 %v6124_v32, %v6112_v52  ;;  %v10236_v52 = vld [vmem:[%s15242_s6 + $0x8] sm:$0xff] }
 0x40b   :  { %6296 = vmatpush.bf16.msrb.mxu2 %v10236_v52 }
 0x40c   :  { %v6129_v14 = vadd.f32 %v6128_v28, %v6125_v10 }
 0x40e   :  { %v6131_v3 = vmin.f32 %v6129_v14, 0.0  ;;  %vm6130_vm5 = vcmp.ge.f32.partialorder %v6129_v14, 0.0 }
 0x40f   :  { %6297 = vmatpush.bf16.msrb.mxu2 %v10235_v50 }
 0x410   :  { %v6132_v57 = vmul.f32 1.442695, %v6131_v3 }
 0x411   :  { %v6126_v8 = vpop.f32.mrf.mxu0 }
 0x412   :  { %10242 = vpow2.f32 %v6132_v57 }
 0x413   :  { %10244 = vrcp.f32 %v10289_v45 }
 0x418   :  { %v10243_v21 = vpop.eup %10242 }
 0x419   :  { %v9422_v13 = vadd.f32 -1.0, %v10243_v21  ;;  %v10245_v39 = vpop.eup %10244 }
 0x41a   :  { %v6141_v44 = vmul.f32 64.0, %v10245_v39  ;;  %vm6145_vm6 = vweird.f32 %v10245_v39 }
 0x41b   :  { %v6135_v18 = vsel %vm6130_vm5, %v6129_v14, %v9422_v13  ;;  %v6249_v13 = vperm.slane %v15182_v24, 7 }
 0x41c   :  { %v6137_v53 = vsel %vm6136_vm4, %v6135_v18, 0.0  ;;  %v6142_v46 = vsub.f32 1.0, %v6141_v44 }
 0x41d   :  { %6138 = vadd.xlane.f32.xlu0 %v6137_v53  ;;  %v10241_v53 = vld [vmem:[%s15243_s7 + $0x10] ss:$0 sm:$0xff]  ;;  %s10290_s7 = smov [#allocation2]  }
 0x41e   :  { %v6143_v25 = vmul.f32 %v10245_v39, %v6142_v46  ;;  %s6316_s12 = sshll.u32 %s10290_s7, 4  ;;  %s6317_s12 = int_to_ptr.vmem [resolvable:$true] %s6316_s12 }
 0x420   :  { %v6144_v40 = vadd.f32 %v10245_v39, %v6143_v25  ;;  %v6303_v25 = vmul.f32 1.442695, %v15182_v24 }
 0x422   :  { %v15186_v54 = vsel %vm6145_vm6, %v10245_v39, %v6144_v40 }
 0x490   :  { %v6139_v27 = vpop.xlane.xlu0 %6138 }
 0x491   :  { %v6147_v33 = vmul.f32 %v15186_v54, %v6139_v27  ;;  %v6305_v27 = vld [vmem:[%s15244_s8] sm:$0x3] }
 0x493   :  { %v6148_v20 = vsub.f32 %v6135_v18, %v6147_v33  ;;  %v6262_v33 = vperm.slane %v15182_v24, 2 }
 0x495   :  { %v6149_v12 = vmul.f32 %v6148_v20, %v6148_v20 }
 0x497   :  { %v6150_v22 = vsel %vm6136_vm4, %v6149_v12, 0.0 }
 0x498   :  { %6151 = vadd.xlane.f32.xlu0 %v6150_v22 }
 0x50b   :  { %v6152_v11 = vpop.xlane.xlu0 %6151 }
 0x50c   :  { %v6153_v61 = vmul.f32 %v6152_v11, %v15186_v54 }
 0x50e   :  { %v6154_v56 = vadd.f32 1e-05, %v6153_v61 }
 0x510   :  { %10246 = vrsqrt.f32 %v6154_v56  ;;  %vm6161_vm8 = vweird.f32 %v6154_v56 }
 0x516   :  { %v10247_v19 = vpop.eup %10246 }
 0x517   :  { %v6156_v47 = vmul.f32 %v10247_v19, %v6154_v56  ;;  %vm6162_vm7 = vweird.f32 %v10247_v19 }
 0x518   :  { %vm6163_vm9 = vmor %vm6161_vm8, %vm6162_vm7 }
 0x519   :  { %v6157_v48 = vmul.f32 %v10247_v19, %v6156_v47 }
 0x51b   :  { %v6158_v63 = vmul.f32 0.5, %v6157_v48 }
 0x51d   :  { %v6159_v4 = vsub.f32 1.5, %v6158_v63 }
 0x51f   :  { %v6160_v6 = vmul.f32 %v10247_v19, %v6159_v4 }
 0x521   :  { %v6164_v49 = vsel %vm6163_vm9, %v10247_v19, %v6160_v6 }
 0x522   :  { %v6165_v43 = vmul.f32 %v6164_v49, %v6148_v20 }
 0x524   :  { %v6167_v51 = vmul.f32 %v6166_v58, %v6165_v43 }
 0x526   :  { %v6169_v42 = vadd.f32 %v6168_v41, %v6167_v51 }
 0x528   :  { %v6170_v2 = vpack.c.bf16 %v6169_v42, %v6169_v42 }
 0x52a   :  { %9439 = vmatmul.msk.bf16.vlgmr.msra.gmra.mxu1 %vm6204_vm10, %v6170_v2 }
 0x5a7   :  { %v6217_v60 = vpop.f32.mrf.mxu1 }
 0x5a8   :  { %v6218_v1 = vadd.f32 %v6217_v60, %v6179_v16 }
 0x5aa   :  { %v6222_v38 = vmin.f32 %v6218_v1, 0.0  ;;  %vm6221_vm11 = vcmp.ge.f32.partialorder %v6218_v1, 0.0 }
 0x5ac   :  { %v6223_v15 = vmul.f32 1.442695, %v6222_v38 }
 0x5ae   :  { %10248 = vpow2.f32 %v6223_v15 }
 0x5af   :  { %v6219_v36 = vpop.f32.mrf.mxu1 }
 0x5b4   :  { %v10249_v17 = vpop.eup %10248 }
 0x5b5   :  { %v9440_v23 = vadd.f32 -1.0, %v10249_v17 }
 0x5b7   :  { %v6226_v29 = vsel %vm6221_vm11, %v6218_v1, %v9440_v23 }
 0x5b8   :  { %v6227_v30 = vsel %vm6136_vm4, %v6226_v29, 0.0 }
 0x5b9   :  { %6228 = vadd.xlane.f32.xlu1 %v6227_v30 }
 0x62c   :  { %v6229_v5 = vpop.xlane.xlu1 %6228 }
 0x62d   :  { %v6230_v9 = vmul.f32 %v6229_v5, %v15186_v54 }
 0x62f   :  { %v6231_v34 = vsub.f32 %v6226_v29, %v6230_v9 }
 0x631   :  { %v6232_v0 = vmul.f32 %v6231_v34, %v6231_v34 }
 0x633   :  { %v6233_v59 = vsel %vm6136_vm4, %v6232_v0, 0.0 }
 0x634   :  { %6234 = vadd.xlane.f32.xlu1 %v6233_v59 }
 0x6a7   :  { %v6235_v37 = vpop.xlane.xlu1 %6234 }
 0x6a8   :  { %v6236_v28 = vmul.f32 %v6235_v37, %v15186_v54 }
 0x6aa   :  { %v6237_v32 = vadd.f32 1e-05, %v6236_v28 }
 0x6ac   :  { %10250 = vrsqrt.f32 %v6237_v32  ;;  %vm6244_vm13 = vweird.f32 %v6237_v32 }
 0x6ad   :  { %10252 = vpow2.f32 %v6303_v25 }
 0x6b2   :  { %v10251_v10 = vpop.eup %10250 }
 0x6b3   :  { %v6239_v14 = vmul.f32 %v10251_v10, %v6237_v32  ;;  %vm6245_vm12 = vweird.f32 %v10251_v10  ;;  %v10253_v40 = vpop.eup %10252 }
 0x6b4   :  { %vm6246_vm14 = vmor %vm6244_vm13, %vm6245_vm12  ;;  %v6306_v54 = vperm.slane %v10253_v40, 1 }
 0x6b5   :  { %v6240_v3 = vmul.f32 %v10251_v10, %v6239_v14 }
 0x6b6   :  { %v6307_v20 = vmul.f32 %v6306_v54, %v6305_v27 }
 0x6b7   :  { %v6241_v57 = vmul.f32 0.5, %v6240_v3 }
 0x6b9   :  { %v6242_v8 = vsub.f32 1.5, %v6241_v57 }
 0x6bb   :  { %v6243_v21 = vmul.f32 %v10251_v10, %v6242_v8 }
 0x6bd   :  { %v6247_v18 = vsel %vm6246_vm14, %v10251_v10, %v6243_v21 }
 0x6be   :  { %v6248_v45 = vmul.f32 %v6247_v18, %v6231_v34 }
 0x6c0   :  { %v6250_v39 = vmul.f32 %v6249_v13, %v6248_v45 }
 0x6c2   :  { %v6252_v44 = vadd.f32 %v10241_v53, %v6250_v39 }
 0x6c4   :  { %v6253_v46 = vpack.c.bf16 %v6252_v44, %v6252_v44 }
 0x6c6   :  { %9457 = vmatmul.msk.bf16.vlgmr.msrb.gmra.mxu2 %vm6204_vm10, %v6253_v46 }
 0x749   :  { %v6299_v12 = vpop.f32.mrf.mxu2 }
 0x74a   :  { %v6300_v22 = vadd.f32 %v6299_v12, %v6262_v33 }
 0x74c   :  { %v6308_v55 = vadd.f32 %v6307_v20, %v6300_v22 }
 0x74e   :  { %6310 = vst.msk [vmem:[#allocation2] sm:$0x3] %vm6309_vm15, %v6308_v55 }
 0x74f   :  { %6321 = dma.vmem_to_hbm [thread:$0]  %s6317_s12, 32, %s6319_s0, [#allocation3]  }
 0x751   :  { %v6301_v26 = vpop.f32.mrf.mxu2 }
 0x752   :  { %10287 = dma.done.wait [#allocation3], 32  }
 0x753   :  { %10288 = vsyncadd [#allocation3], 4294967264 }
 0x754   :  { %6326 = vsyncpa [#allocation3], 1 }

</bundles_post_ra>
